<compile_context>
chip_gen: v7x
topology: tpu7x:2x2x1
jax: 0.10.0
libtpu: 0.0.40
codegen_flags: <defaults>
</compile_context>

<pallas_src>
import jax
import jax.numpy as jnp
from jax.experimental import pallas as pl
from jax.experimental.pallas import tpu as pltpu

# ----------------------------------------------------------------------------
# Model hyper-parameters (scaled-down but structurally identical to the module)
# ----------------------------------------------------------------------------
FEATURE_DIM = [32, 32, 64, 64, 128, 128, 256]           # per-stage channels
TEXT_LENS   = [12, 12, 8, 8, 4, 4, 2]                    # scaled analogue of [384,384,256,256,128,128,64]
MAX_LEN     = 12                                         # input_text_len (scaled down from 384)
TEXT_EMBED  = 32                                         # scaled down from BERT's 768
NODE_COUNTS = [512, 256, 128, 64, 32, 16, 8]             # nodes per stage (finest -> coarsest)
NUM_STAGES  = len(FEATURE_DIM)
HEAD_COLS   = 8                                          # cols 0:2 log_softmax, col 2 dist, rest pad
PACK_LANES  = 256                                        # lane width of the packed weight/bias tables


# ----------------------------------------------------------------------------
# Static per-decoder-stage metadata (known at trace time)
# ----------------------------------------------------------------------------
def _build_stage_meta():
    metas = []
    for idx in range(NUM_STAGES - 1):
        stage_from = NUM_STAGES - 1 - idx
        stage_to = stage_from - 1
        n_from, n_to = NODE_COUNTS[stage_from], NODE_COUNTS[stage_to]
        factor = n_to // n_from
        assert n_to == factor * n_from, "only integer nearest-neighbour upsample supported"
        # TODO(synk): non-integer upsample ratios and the chunked-attention path
        #             (N_from > 50000) would need a PrefetchScalarGridSpec /
        #             tiled variant; not needed at these sizes.
        metas.append(dict(
            idx=idx, stage_from=stage_from, stage_to=stage_to,
            in_ch=FEATURE_DIM[stage_from], out_ch=FEATURE_DIM[stage_to],
            skip_ch=FEATURE_DIM[stage_to],
            n_from=n_from, n_to=n_to, factor=factor,
            t_len=TEXT_LENS[stage_to],
            use_text=stage_to > 1,                       # same gating as the reference
        ))
    return metas


STAGE_META = _build_stage_meta()


# ----------------------------------------------------------------------------
# Static layout of the packed weight / bias tables (pure function of shapes)
# ----------------------------------------------------------------------------
def _build_layout():
    w_entries, b_entries = {}, {}
    w_off, b_row = 0, 0

    def add_w(key, k, n):
        nonlocal w_off
        w_entries[key] = (w_off, k, n)
        w_off += (k + 7) // 8 * 8                        # 8-align each matrix start

    def add_b(key, c):
        nonlocal b_row
        b_entries[key] = (b_row, c)
        b_row += 1

    for m in STAGE_META:
        i, c_in, c_out, c_skip = m['idx'], m['in_ch'], m['out_ch'], m['skip_ch']
        if m['use_text']:
            add_w((i, 'w_len_t'), m['t_len'], MAX_LEN)
            add_w((i, 'w_feat'), TEXT_EMBED, c_in)
            for nm in ('wq', 'wk', 'wv', 'wo'):
                add_w((i, nm), c_in, c_in)
            for nm in ('b_feat', 'bq', 'bk', 'bv', 'bo', 'ln_g_s', 'ln_b_s'):
                add_b((i, nm), c_in)
        add_w((i, 'w_up'), c_in, c_out)
        add_w((i, 'w_skip'), c_skip, c_out)
        add_b((i, 'b_fuse'), c_out)
    add_w(('head', 'w_head'), FEATURE_DIM[0], HEAD_COLS)
    add_b(('head', 'b_head'), HEAD_COLS)

    return dict(w=w_entries, b=b_entries,
                w_rows=(w_off + 7) // 8 * 8,
                b_rows=(b_row + 7) // 8 * 8)


LAYOUT = _build_layout()


# ----------------------------------------------------------------------------
# The single fused forward kernel.  One grid step per batch sample.
# ----------------------------------------------------------------------------
def _fused_forward_kernel(*refs):
    vis_ref = refs[0]
    skip_refs = refs[1:1 + (NUM_STAGES - 1)]             # stage_to = 5,4,3,2,1,0
    txt_ref, w_ref, b_ref, out_ref = refs[7], refs[8], refs[9], refs[10]

    f32, bf16 = jnp.float32, jnp.bfloat16
    wE, bE = LAYOUT['w'], LAYOUT['b']

    def W(idx, name):                                     # bf16 weight slice (static view)
        off, k, n = wE[(idx, name)]
        return w_ref[off:off + k, :n]

    def BV(idx, name):                                    # f32 [1, c] bias / LN row
        row, c = bE[(idx, name)]
        return b_ref[row:row + 1, :c]

    txt = txt_ref[...].astype(bf16)                       # [MAX_LEN, E]

    # ---- hoisted text projections + K/V for all text-guided stages ----------
    kv = {}
    for m in STAGE_META:
        if not m['use_text']:
            continue
        i = m['idx']
        txt_l = jnp.dot(W(i, 'w_len_t'), txt, preferred_element_type=f32)    # [t_len, E]
        txt_l = jax.nn.gelu(txt_l, approximate=True)
        txt_p = jnp.dot(txt_l.astype(bf16), W(i, 'w_feat'),
                        preferred_element_type=f32) + BV(i, 'b_feat')        # [t_len, c_in]
        txt_p = jnp.where(txt_p >= 0, txt_p, 0.01 * txt_p)                   # LeakyReLU
        tpb = txt_p.astype(bf16)
        k = jnp.dot(tpb, W(i, 'wk'), preferred_element_type=f32) + BV(i, 'bk')
        v = jnp.dot(tpb, W(i, 'wv'), preferred_element_type=f32) + BV(i, 'bv')
        kv[i] = (k.astype(bf16), v.astype(bf16))

    # ---- decoder stack (fully unrolled, activations never leave VMEM) -------
    vis = vis_ref[...]                                    # [8, 256] f32 (coarsest gnn_x)

    for si, m in enumerate(STAGE_META):
        i = m['idx']
        n_from, n_to, factor = m['n_from'], m['n_to'], m['factor']
        c_in, c_out = m['in_ch'], m['out_ch']
        skip = skip_refs[si][...]                          # [n_to, c_skip] f32

        if m['use_text']:
            # single-head cross attention (query = vision nodes, key/value = text)
            k_b, v_b = kv[i]
            q = jnp.dot(vis.astype(bf16), W(i, 'wq'),
                        preferred_element_type=f32) + BV(i, 'bq')            # [n_from, c_in]
            s = jax.lax.dot_general(q.astype(bf16), k_b, (((1,), (1,)), ((), ())),
                                    preferred_element_type=f32)              # [n_from, t_len]
            s = s * (1.0 / jnp.sqrt(jnp.float32(c_in)))
            s = s - jnp.max(s, axis=-1, keepdims=True)
            p = jnp.exp(s)
            p = p * pl.reciprocal(jnp.sum(p, axis=-1, keepdims=True), approx=True)
            attn = jnp.dot(p.astype(bf16), v_b, preferred_element_type=f32)  # [n_from, c_in]
            attn = jnp.dot(attn.astype(bf16), W(i, 'wo'),
                           preferred_element_type=f32) + BV(i, 'bo')
            # layernorm over channels; residual `scale` pre-folded into ln_g_s/ln_b_s
            mu = jnp.mean(attn, axis=-1, keepdims=True)
            var = jnp.mean((attn - mu) ** 2, axis=-1, keepdims=True)
            normed = (attn - mu) * jax.lax.rsqrt(var + 1e-5) * BV(i, 'ln_g_s') + BV(i, 'ln_b_s')
            vis = vis + normed

        # nearest-neighbour upsample + skip fusion + ReLU
        z = jnp.dot(vis.astype(bf16), W(i, 'w_up'), preferred_element_type=f32)   # [n_from, c_out]
        # exact replication matrix (row r of zr == z[r // factor]); built from iotas,
        # multiplied in f32 so the upsample is a bit-exact row copy.
        ri = jax.lax.broadcasted_iota(jnp.int32, (n_to, n_from), 0)
        ci = jax.lax.broadcasted_iota(jnp.int32, (n_to, n_from), 1)
        d = ri - factor * ci
        rep = ((d >= 0) & (d < factor)).astype(f32)                                # [n_to, n_from]
        zr = jnp.dot(rep, z, preferred_element_type=f32)                           # [n_to, c_out]
        sk = jnp.dot(skip.astype(bf16), W(i, 'w_skip'), preferred_element_type=f32)
        vis = jnp.maximum(zr + sk + BV(i, 'b_fuse'), 0.0)                          # [n_to, c_out]

    # ---- fused heads: seg log-softmax (cols 0:2) + dist logit (col 2) --------
    y = jnp.dot(vis.astype(bf16), W('head', 'w_head'),
                preferred_element_type=f32) + BV('head', 'b_head')                 # [N0, HEAD_COLS]
    col = jax.lax.broadcasted_iota(jnp.int32, y.shape, 1)
    seg_mask = col < 2
    mx = jnp.max(jnp.where(seg_mask, y, jnp.float32(-1e30)), axis=-1, keepdims=True)
    e = jnp.where(seg_mask, jnp.exp(y - mx), 0.0)
    lse = mx + jnp.log(jnp.sum(e, axis=-1, keepdims=True))
    out_ref[...] = jnp.where(seg_mask, y - lse, y)


# ----------------------------------------------------------------------------
# Forward pass wrapper (mirrors LanGuideMedSeg.forward, batched over subjects)
# ----------------------------------------------------------------------------
def lan_guide_med_seg_forward(graph_features, text_hidden_last, fused):
    B = graph_features[0].shape[0]
    N0 = NODE_COUNTS[0]

    vis0 = graph_features[NUM_STAGES - 1]                                  # coarsest gnn_x
    skips = [graph_features[m['stage_to']] for m in STAGE_META]

    def per_sample(a):
        return pl.BlockSpec((None,) + a.shape[1:], lambda b: (b, 0, 0))

    def whole(a):
        return pl.BlockSpec(a.shape, lambda b: (0, 0))

    in_arrays = [vis0, *skips, text_hidden_last, fused['w_pack'], fused['b_pack']]
    in_specs = ([per_sample(vis0)] + [per_sample(s) for s in skips]
                + [per_sample(text_hidden_last),
                   whole(fused['w_pack']), whole(fused['b_pack'])])

    out = pl.pallas_call(
        _fused_forward_kernel,
        out_shape=jax.ShapeDtypeStruct((B, N0, HEAD_COLS), jnp.float32),
        grid=(B,),
        in_specs=in_specs,
        out_specs=pl.BlockSpec((None, N0, HEAD_COLS), lambda b: (b, 0, 0)),
        compiler_params=pltpu.CompilerParams(dimension_semantics=("parallel",)),
    )(*in_arrays)

    # sample-major flatten == torch.cat over per-subject outputs
    flat = out.reshape(B * N0, HEAD_COLS)
    return {'log_softmax': flat[:, :2], 'non_lesion_logits': flat[:, 2]}


forward_jit = jax.jit(lan_guide_med_seg_forward)


# ----------------------------------------------------------------------------
# Parameter init (deterministic, in-script) + one-time packing/fusion step
# ----------------------------------------------------------------------------
def init_params(key):
    def nrm(k, shape):
        return 0.05 * jax.random.normal(k, shape, dtype=jnp.float32)

    params = {'decoders': []}
    for i in range(NUM_STAGES - 1, 0, -1):            # same order as the ModuleList
        in_ch, out_ch, skip_ch = FEATURE_DIM[i], FEATURE_DIM[i - 1], FEATURE_DIM[i - 1]
        t_len = TEXT_LENS[i - 1]
        key, *ks = jax.random.split(key, 12)
        d = {
            'w_len_t': nrm(ks[0], (t_len, MAX_LEN)),      # seq-length projection (pre-transposed)
            'w_feat':  nrm(ks[1], (TEXT_EMBED, in_ch)),
            'b_feat':  jnp.zeros((1, in_ch), jnp.float32),
            'wq': nrm(ks[2], (in_ch, in_ch)), 'bq': jnp.zeros((1, in_ch), jnp.float32),
            'wk': nrm(ks[3], (in_ch, in_ch)), 'bk': jnp.zeros((1, in_ch), jnp.float32),
            'wv': nrm(ks[4], (in_ch, in_ch)), 'bv': jnp.zeros((1, in_ch), jnp.float32),
            'wo': nrm(ks[5], (in_ch, in_ch)), 'bo': jnp.zeros((1, in_ch), jnp.float32),
            'scale': jnp.float32(0.01),
            'ln_g': jnp.ones((1, in_ch), jnp.float32),
            'ln_b': jnp.zeros((1, in_ch), jnp.float32),
            'w_up':   nrm(ks[6], (in_ch, out_ch)),
            'w_skip': nrm(ks[7], (skip_ch, out_ch)),
            'b_fuse': jnp.zeros((1, out_ch), jnp.float32),
        }
        params['decoders'].append(d)
    key, k1, k2 = jax.random.split(key, 3)
    params['w_seg'] = 0.05 * jax.random.normal(k1, (FEATURE_DIM[0], 2), jnp.float32)
    params['b_seg'] = jnp.zeros((1, 2), jnp.float32)
    params['w_dist'] = 0.05 * jax.random.normal(k2, (FEATURE_DIM[0], 1), jnp.float32)
    params['b_dist'] = jnp.zeros((1, 1), jnp.float32)
    return params


def prepare_fused_params(params):
    """Pack every per-stage weight into one bf16 lane-dense table and every
    bias/LN row into one f32 table; fold the residual `scale` into the LN
    affine; fuse the two heads into a single [C0, HEAD_COLS] matrix."""
    wE, bE = LAYOUT['w'], LAYOUT['b']
    w_pack = jnp.zeros((LAYOUT['w_rows'], PACK_LANES), jnp.float32)
    b_pack = jnp.zeros((LAYOUT['b_rows'], PACK_LANES), jnp.float32)

    def put_w(key, mat):
        nonlocal w_pack
        off, k, n = wE[key]
        w_pack = w_pack.at[off:off + k, :n].set(mat)

    def put_b(key, vec):
        nonlocal b_pack
        row, c = bE[key]
        b_pack = b_pack.at[row:row + 1, :c].set(vec)

    for m in STAGE_META:
        i = m['idx']
        d = params['decoders'][i]
        if m['use_text']:
            put_w((i, 'w_len_t'), d['w_len_t'])
            put_w((i, 'w_feat'), d['w_feat'])
            for nm in ('wq', 'wk', 'wv', 'wo'):
                put_w((i, nm), d[nm])
            for nm in ('b_feat', 'bq', 'bk', 'bv', 'bo'):
                put_b((i, nm), d[nm])
            put_b((i, 'ln_g_s'), d['scale'] * d['ln_g'])
            put_b((i, 'ln_b_s'), d['scale'] * d['ln_b'])
        put_w((i, 'w_up'), d['w_up'])
        put_w((i, 'w_skip'), d['w_skip'])
        put_b((i, 'b_fuse'), d['b_fuse'])

    c0 = FEATURE_DIM[0]
    w_head = jnp.concatenate([params['w_seg'], params['w_dist'],
                              jnp.zeros((c0, HEAD_COLS - 3), jnp.float32)], axis=1)
    b_head = jnp.concatenate([params['b_seg'], params['b_dist'],
                              jnp.zeros((1, HEAD_COLS - 3), jnp.float32)], axis=1)
    put_w(('head', 'w_head'), w_head)
    put_b(('head', 'b_head'), b_head)

    return {'w_pack': w_pack.astype(jnp.bfloat16), 'b_pack': b_pack}


# ----------------------------------------------------------------------------
if __name__ == "__main__":
    key = jax.random.PRNGKey(0)
    B = 2

    # synthetic per-stage graph node features (stand-in for the MELD GNN encoder output)
    # TODO(synk): the pretrained VisionModel / BERTModel backbones are external; their
    #             outputs are synthesized here.
    graph_features = []
    for s in range(NUM_STAGES):
        key, k = jax.random.split(key)
        graph_features.append(
            jax.random.normal(k, (B, NODE_COUNTS[s], FEATURE_DIM[s]), jnp.float32))

    # synthetic last-hidden-state of the text encoder (stand-in for BERT)
    key, k = jax.random.split(key)
    text_hidden_last = jax.random.normal(k, (B, MAX_LEN, TEXT_EMBED), jnp.float32)

    params = init_params(jax.random.PRNGKey(42))
    fused = prepare_fused_params(params)

    out = forward_jit(graph_features, text_hidden_last, fused)
    jax.block_until_ready(out['log_softmax'])
    jax.block_until_ready(out['non_lesion_logits'])

    assert out['log_softmax'].shape == (B * NODE_COUNTS[0], 2)
    assert out['non_lesion_logits'].shape == (B * NODE_COUNTS[0],)
    assert bool(jnp.all(jnp.isfinite(out['log_softmax'])))
    # rows of log_softmax must exp-sum to 1 (log-softmax itself is exact f32)
    assert bool(jnp.allclose(jnp.sum(jnp.exp(out['log_softmax']), axis=1), 1.0, atol=1e-4))

    print("KERNEL_OK")
</pallas_src>

<mosaic_0001>
module attributes {stable_mosaic.version = 11 : i64} {
  func.func @_fused_forward_kernel(%arg0: i32, %arg1: memref<1x8x256xf32, #tpu.memory_space<vmem>>, %arg2: memref<1x16x128xf32, #tpu.memory_space<vmem>>, %arg3: memref<1x32x128xf32, #tpu.memory_space<vmem>>, %arg4: memref<1x64x64xf32, #tpu.memory_space<vmem>>, %arg5: memref<1x128x64xf32, #tpu.memory_space<vmem>>, %arg6: memref<1x256x32xf32, #tpu.memory_space<vmem>>, %arg7: memref<1x512x32xf32, #tpu.memory_space<vmem>>, %arg8: memref<1x12x32xf32, #tpu.memory_space<vmem>>, %arg9: memref<3616x256xbf16, #tpu.memory_space<vmem>>, %arg10: memref<40x256xf32, #tpu.memory_space<vmem>>, %arg11: memref<1x512x8xf32, #tpu.memory_space<vmem>>) attributes {dimension_semantics = [#tpu.dimension_semantics<parallel>], iteration_bounds = array<i64: 2>, scalar_prefetch = 0 : i64, scratch_operands = 0 : i64, tpu.core_type = #tpu.core_type<tc>, window_params = [{transform_indices = @transform_0, window_bounds = array<i64: 1, 8, 256>}, {transform_indices = @transform_1, window_bounds = array<i64: 1, 16, 128>}, {transform_indices = @transform_2, window_bounds = array<i64: 1, 32, 128>}, {transform_indices = @transform_3, window_bounds = array<i64: 1, 64, 64>}, {transform_indices = @transform_4, window_bounds = array<i64: 1, 128, 64>}, {transform_indices = @transform_5, window_bounds = array<i64: 1, 256, 32>}, {transform_indices = @transform_6, window_bounds = array<i64: 1, 512, 32>}, {transform_indices = @transform_7, window_bounds = array<i64: 1, 12, 32>}, {pipeline_mode = #tpu.pipeline_mode<synchronous>, transform_indices = @transform_8, window_bounds = array<i64: 3616, 256>}, {pipeline_mode = #tpu.pipeline_mode<synchronous>, transform_indices = @transform_9, window_bounds = array<i64: 40, 256>}, {transform_indices = @transform_10, window_bounds = array<i64: 1, 512, 8>}]} {
    %c0 = arith.constant 0 : index
    %c0_0 = arith.constant 0 : index
    %c0_1 = arith.constant 0 : index
    %0 = vector.load %arg8[%c0, %c0_0, %c0_1] : memref<1x12x32xf32, #tpu.memory_space<vmem>>, vector<1x12x32xf32>
    %1 = vector.shape_cast %0 : vector<1x12x32xf32> to vector<12x32xf32>
    %2 = arith.truncf %1 : vector<12x32xf32> to vector<12x32xbf16>
    %c0_2 = arith.constant 0 : index
    %c0_3 = arith.constant 0 : index
    %3 = vector.load %arg9[%c0_2, %c0_3] : memref<3616x256xbf16, #tpu.memory_space<vmem>>, vector<4x12xbf16>
    %cst = arith.constant dense<0.000000e+00> : vector<4x32xf32>
    %4 = tpu.matmul %3, %2, %cst {dimension_numbers = #tpu.dot_dimension_numbers<[1], [0], [0], [1], [0, 0, 1, 1], [], []>} : vector<4x12xbf16>, vector<12x32xbf16>, vector<4x32xf32> -> vector<4x32xf32>
    %5 = arith.mulf %4, %4 : vector<4x32xf32>
    %6 = arith.mulf %4, %5 : vector<4x32xf32>
    %cst_4 = arith.constant 4.471500e-02 : f32
    %7 = vector.broadcast %cst_4 : f32 to vector<4x32xf32>
    %8 = arith.mulf %7, %6 : vector<4x32xf32>
    %9 = arith.addf %4, %8 : vector<4x32xf32>
    %cst_5 = arith.constant 0.797884583 : f32
    %10 = vector.broadcast %cst_5 : f32 to vector<4x32xf32>
    %11 = arith.mulf %10, %9 : vector<4x32xf32>
    %12 = math.tanh %11 : vector<4x32xf32>
    %cst_6 = arith.constant 1.000000e+00 : f32
    %13 = vector.broadcast %cst_6 : f32 to vector<4x32xf32>
    %14 = arith.addf %13, %12 : vector<4x32xf32>
    %cst_7 = arith.constant 5.000000e-01 : f32
    %15 = vector.broadcast %cst_7 : f32 to vector<4x32xf32>
    %16 = arith.mulf %15, %14 : vector<4x32xf32>
    %17 = arith.mulf %4, %16 : vector<4x32xf32>
    %18 = arith.truncf %17 : vector<4x32xf32> to vector<4x32xbf16>
    %c8 = arith.constant 8 : index
    %c0_8 = arith.constant 0 : index
    %19 = vector.load %arg9[%c8, %c0_8] : memref<3616x256xbf16, #tpu.memory_space<vmem>>, vector<32x256xbf16>
    %cst_9 = arith.constant dense<0.000000e+00> : vector<4x256xf32>
    %20 = tpu.matmul %18, %19, %cst_9 {dimension_numbers = #tpu.dot_dimension_numbers<[1], [0], [0], [1], [0, 0, 1, 1], [], []>} : vector<4x32xbf16>, vector<32x256xbf16>, vector<4x256xf32> -> vector<4x256xf32>
    %c0_10 = arith.constant 0 : index
    %c0_11 = arith.constant 0 : index
    %21 = vector.load %arg10[%c0_10, %c0_11] : memref<40x256xf32, #tpu.memory_space<vmem>>, vector<1x256xf32>
    %22 = vector.broadcast %21 : vector<1x256xf32> to vector<4x256xf32>
    %23 = arith.addf %20, %22 : vector<4x256xf32>
    %cst_12 = arith.constant 0.000000e+00 : f32
    %24 = vector.broadcast %cst_12 : f32 to vector<4x256xf32>
    %25 = arith.cmpf oge, %23, %24 : vector<4x256xf32>
    %cst_13 = arith.constant 0.00999999977 : f32
    %26 = vector.broadcast %cst_13 : f32 to vector<4x256xf32>
    %27 = arith.mulf %26, %23 : vector<4x256xf32>
    %28 = arith.select %25, %23, %27 : vector<4x256xi1>, vector<4x256xf32>
    %29 = arith.truncf %28 : vector<4x256xf32> to vector<4x256xbf16>
    %c296 = arith.constant 296 : index
    %c0_14 = arith.constant 0 : index
    %30 = vector.load %arg9[%c296, %c0_14] : memref<3616x256xbf16, #tpu.memory_space<vmem>>, vector<256x256xbf16>
    %cst_15 = arith.constant dense<0.000000e+00> : vector<4x256xf32>
    %31 = tpu.matmul %29, %30, %cst_15 {dimension_numbers = #tpu.dot_dimension_numbers<[1], [0], [0], [1], [0, 0, 1, 1], [], []>} : vector<4x256xbf16>, vector<256x256xbf16>, vector<4x256xf32> -> vector<4x256xf32>
    %c2 = arith.constant 2 : index
    %c0_16 = arith.constant 0 : index
    %32 = vector.load %arg10[%c2, %c0_16] : memref<40x256xf32, #tpu.memory_space<vmem>>, vector<1x256xf32>
    %33 = vector.broadcast %32 : vector<1x256xf32> to vector<4x256xf32>
    %34 = arith.addf %31, %33 : vector<4x256xf32>
    %c552 = arith.constant 552 : index
    %c0_17 = arith.constant 0 : index
    %35 = vector.load %arg9[%c552, %c0_17] : memref<3616x256xbf16, #tpu.memory_space<vmem>>, vector<256x256xbf16>
    %cst_18 = arith.constant dense<0.000000e+00> : vector<4x256xf32>
    %36 = tpu.matmul %29, %35, %cst_18 {dimension_numbers = #tpu.dot_dimension_numbers<[1], [0], [0], [1], [0, 0, 1, 1], [], []>} : vector<4x256xbf16>, vector<256x256xbf16>, vector<4x256xf32> -> vector<4x256xf32>
    %c3 = arith.constant 3 : index
    %c0_19 = arith.constant 0 : index
    %37 = vector.load %arg10[%c3, %c0_19] : memref<40x256xf32, #tpu.memory_space<vmem>>, vector<1x256xf32>
    %38 = vector.broadcast %37 : vector<1x256xf32> to vector<4x256xf32>
    %39 = arith.addf %36, %38 : vector<4x256xf32>
    %40 = arith.truncf %34 : vector<4x256xf32> to vector<4x256xbf16>
    %41 = arith.truncf %39 : vector<4x256xf32> to vector<4x256xbf16>
    %c1448 = arith.constant 1448 : index
    %c0_20 = arith.constant 0 : index
    %42 = vector.load %arg9[%c1448, %c0_20] : memref<3616x256xbf16, #tpu.memory_space<vmem>>, vector<4x12xbf16>
    %cst_21 = arith.constant dense<0.000000e+00> : vector<4x32xf32>
    %43 = tpu.matmul %42, %2, %cst_21 {dimension_numbers = #tpu.dot_dimension_numbers<[1], [0], [0], [1], [0, 0, 1, 1], [], []>} : vector<4x12xbf16>, vector<12x32xbf16>, vector<4x32xf32> -> vector<4x32xf32>
    %44 = arith.mulf %43, %43 : vector<4x32xf32>
    %45 = arith.mulf %43, %44 : vector<4x32xf32>
    %cst_22 = arith.constant 4.471500e-02 : f32
    %46 = vector.broadcast %cst_22 : f32 to vector<4x32xf32>
    %47 = arith.mulf %46, %45 : vector<4x32xf32>
    %48 = arith.addf %43, %47 : vector<4x32xf32>
    %cst_23 = arith.constant 0.797884583 : f32
    %49 = vector.broadcast %cst_23 : f32 to vector<4x32xf32>
    %50 = arith.mulf %49, %48 : vector<4x32xf32>
    %51 = math.tanh %50 : vector<4x32xf32>
    %cst_24 = arith.constant 1.000000e+00 : f32
    %52 = vector.broadcast %cst_24 : f32 to vector<4x32xf32>
    %53 = arith.addf %52, %51 : vector<4x32xf32>
    %cst_25 = arith.constant 5.000000e-01 : f32
    %54 = vector.broadcast %cst_25 : f32 to vector<4x32xf32>
    %55 = arith.mulf %54, %53 : vector<4x32xf32>
    %56 = arith.mulf %43, %55 : vector<4x32xf32>
    %57 = arith.truncf %56 : vector<4x32xf32> to vector<4x32xbf16>
    %c1456 = arith.constant 1456 : index
    %c0_26 = arith.constant 0 : index
    %58 = vector.load %arg9[%c1456, %c0_26] : memref<3616x256xbf16, #tpu.memory_space<vmem>>, vector<32x128xbf16>
    %cst_27 = arith.constant dense<0.000000e+00> : vector<4x128xf32>
    %59 = tpu.matmul %57, %58, %cst_27 {dimension_numbers = #tpu.dot_dimension_numbers<[1], [0], [0], [1], [0, 0, 1, 1], [], []>} : vector<4x32xbf16>, vector<32x128xbf16>, vector<4x128xf32> -> vector<4x128xf32>
    %c8_28 = arith.constant 8 : index
    %c0_29 = arith.constant 0 : index
    %60 = vector.load %arg10[%c8_28, %c0_29] : memref<40x256xf32, #tpu.memory_space<vmem>>, vector<1x128xf32>
    %61 = vector.broadcast %60 : vector<1x128xf32> to vector<4x128xf32>
    %62 = arith.addf %59, %61 : vector<4x128xf32>
    %cst_30 = arith.constant 0.000000e+00 : f32
    %63 = vector.broadcast %cst_30 : f32 to vector<4x128xf32>
    %64 = arith.cmpf oge, %62, %63 : vector<4x128xf32>
    %cst_31 = arith.constant 0.00999999977 : f32
    %65 = vector.broadcast %cst_31 : f32 to vector<4x128xf32>
    %66 = arith.mulf %65, %62 : vector<4x128xf32>
    %67 = arith.select %64, %62, %66 : vector<4x128xi1>, vector<4x128xf32>
    %68 = arith.truncf %67 : vector<4x128xf32> to vector<4x128xbf16>
    %c1616 = arith.constant 1616 : index
    %c0_32 = arith.constant 0 : index
    %69 = vector.load %arg9[%c1616, %c0_32] : memref<3616x256xbf16, #tpu.memory_space<vmem>>, vector<128x128xbf16>
    %cst_33 = arith.constant dense<0.000000e+00> : vector<4x128xf32>
    %70 = tpu.matmul %68, %69, %cst_33 {dimension_numbers = #tpu.dot_dimension_numbers<[1], [0], [0], [1], [0, 0, 1, 1], [], []>} : vector<4x128xbf16>, vector<128x128xbf16>, vector<4x128xf32> -> vector<4x128xf32>
    %c10 = arith.constant 10 : index
    %c0_34 = arith.constant 0 : index
    %71 = vector.load %arg10[%c10, %c0_34] : memref<40x256xf32, #tpu.memory_space<vmem>>, vector<1x128xf32>
    %72 = vector.broadcast %71 : vector<1x128xf32> to vector<4x128xf32>
    %73 = arith.addf %70, %72 : vector<4x128xf32>
    %c1744 = arith.constant 1744 : index
    %c0_35 = arith.constant 0 : index
    %74 = vector.load %arg9[%c1744, %c0_35] : memref<3616x256xbf16, #tpu.memory_space<vmem>>, vector<128x128xbf16>
    %cst_36 = arith.constant dense<0.000000e+00> : vector<4x128xf32>
    %75 = tpu.matmul %68, %74, %cst_36 {dimension_numbers = #tpu.dot_dimension_numbers<[1], [0], [0], [1], [0, 0, 1, 1], [], []>} : vector<4x128xbf16>, vector<128x128xbf16>, vector<4x128xf32> -> vector<4x128xf32>
    %c11 = arith.constant 11 : index
    %c0_37 = arith.constant 0 : index
    %76 = vector.load %arg10[%c11, %c0_37] : memref<40x256xf32, #tpu.memory_space<vmem>>, vector<1x128xf32>
    %77 = vector.broadcast %76 : vector<1x128xf32> to vector<4x128xf32>
    %78 = arith.addf %75, %77 : vector<4x128xf32>
    %79 = arith.truncf %73 : vector<4x128xf32> to vector<4x128xbf16>
    %80 = arith.truncf %78 : vector<4x128xf32> to vector<4x128xbf16>
    %c2256 = arith.constant 2256 : index
    %c0_38 = arith.constant 0 : index
    %81 = vector.load %arg9[%c2256, %c0_38] : memref<3616x256xbf16, #tpu.memory_space<vmem>>, vector<8x12xbf16>
    %cst_39 = arith.constant dense<0.000000e+00> : vector<8x32xf32>
    %82 = tpu.matmul %81, %2, %cst_39 {dimension_numbers = #tpu.dot_dimension_numbers<[1], [0], [0], [1], [0, 0, 1, 1], [], []>} : vector<8x12xbf16>, vector<12x32xbf16>, vector<8x32xf32> -> vector<8x32xf32>
    %83 = arith.mulf %82, %82 : vector<8x32xf32>
    %84 = arith.mulf %82, %83 : vector<8x32xf32>
    %cst_40 = arith.constant 4.471500e-02 : f32
    %85 = vector.broadcast %cst_40 : f32 to vector<8x32xf32>
    %86 = arith.mulf %85, %84 : vector<8x32xf32>
    %87 = arith.addf %82, %86 : vector<8x32xf32>
    %cst_41 = arith.constant 0.797884583 : f32
    %88 = vector.broadcast %cst_41 : f32 to vector<8x32xf32>
    %89 = arith.mulf %88, %87 : vector<8x32xf32>
    %90 = math.tanh %89 : vector<8x32xf32>
    %cst_42 = arith.constant 1.000000e+00 : f32
    %91 = vector.broadcast %cst_42 : f32 to vector<8x32xf32>
    %92 = arith.addf %91, %90 : vector<8x32xf32>
    %cst_43 = arith.constant 5.000000e-01 : f32
    %93 = vector.broadcast %cst_43 : f32 to vector<8x32xf32>
    %94 = arith.mulf %93, %92 : vector<8x32xf32>
    %95 = arith.mulf %82, %94 : vector<8x32xf32>
    %96 = arith.truncf %95 : vector<8x32xf32> to vector<8x32xbf16>
    %c2264 = arith.constant 2264 : index
    %c0_44 = arith.constant 0 : index
    %97 = vector.load %arg9[%c2264, %c0_44] : memref<3616x256xbf16, #tpu.memory_space<vmem>>, vector<32x128xbf16>
    %cst_45 = arith.constant dense<0.000000e+00> : vector<8x128xf32>
    %98 = tpu.matmul %96, %97, %cst_45 {dimension_numbers = #tpu.dot_dimension_numbers<[1], [0], [0], [1], [0, 0, 1, 1], [], []>} : vector<8x32xbf16>, vector<32x128xbf16>, vector<8x128xf32> -> vector<8x128xf32>
    %c16 = arith.constant 16 : index
    %c0_46 = arith.constant 0 : index
    %99 = vector.load %arg10[%c16, %c0_46] : memref<40x256xf32, #tpu.memory_space<vmem>>, vector<1x128xf32>
    %100 = vector.broadcast %99 : vector<1x128xf32> to vector<8x128xf32>
    %101 = arith.addf %98, %100 : vector<8x128xf32>
    %cst_47 = arith.constant 0.000000e+00 : f32
    %102 = vector.broadcast %cst_47 : f32 to vector<8x128xf32>
    %103 = arith.cmpf oge, %101, %102 : vector<8x128xf32>
    %cst_48 = arith.constant 0.00999999977 : f32
    %104 = vector.broadcast %cst_48 : f32 to vector<8x128xf32>
    %105 = arith.mulf %104, %101 : vector<8x128xf32>
    %106 = arith.select %103, %101, %105 : vector<8x128xi1>, vector<8x128xf32>
    %107 = arith.truncf %106 : vector<8x128xf32> to vector<8x128xbf16>
    %c2424 = arith.constant 2424 : index
    %c0_49 = arith.constant 0 : index
    %108 = vector.load %arg9[%c2424, %c0_49] : memref<3616x256xbf16, #tpu.memory_space<vmem>>, vector<128x128xbf16>
    %cst_50 = arith.constant dense<0.000000e+00> : vector<8x128xf32>
    %109 = tpu.matmul %107, %108, %cst_50 {dimension_numbers = #tpu.dot_dimension_numbers<[1], [0], [0], [1], [0, 0, 1, 1], [], []>} : vector<8x128xbf16>, vector<128x128xbf16>, vector<8x128xf32> -> vector<8x128xf32>
    %c18 = arith.constant 18 : index
    %c0_51 = arith.constant 0 : index
    %110 = vector.load %arg10[%c18, %c0_51] : memref<40x256xf32, #tpu.memory_space<vmem>>, vector<1x128xf32>
    %111 = vector.broadcast %110 : vector<1x128xf32> to vector<8x128xf32>
    %112 = arith.addf %109, %111 : vector<8x128xf32>
    %c2552 = arith.constant 2552 : index
    %c0_52 = arith.constant 0 : index
    %113 = vector.load %arg9[%c2552, %c0_52] : memref<3616x256xbf16, #tpu.memory_space<vmem>>, vector<128x128xbf16>
    %cst_53 = arith.constant dense<0.000000e+00> : vector<8x128xf32>
    %114 = tpu.matmul %107, %113, %cst_53 {dimension_numbers = #tpu.dot_dimension_numbers<[1], [0], [0], [1], [0, 0, 1, 1], [], []>} : vector<8x128xbf16>, vector<128x128xbf16>, vector<8x128xf32> -> vector<8x128xf32>
    %c19 = arith.constant 19 : index
    %c0_54 = arith.constant 0 : index
    %115 = vector.load %arg10[%c19, %c0_54] : memref<40x256xf32, #tpu.memory_space<vmem>>, vector<1x128xf32>
    %116 = vector.broadcast %115 : vector<1x128xf32> to vector<8x128xf32>
    %117 = arith.addf %114, %116 : vector<8x128xf32>
    %118 = arith.truncf %112 : vector<8x128xf32> to vector<8x128xbf16>
    %119 = arith.truncf %117 : vector<8x128xf32> to vector<8x128xbf16>
    %c3000 = arith.constant 3000 : index
    %c0_55 = arith.constant 0 : index
    %120 = vector.load %arg9[%c3000, %c0_55] : memref<3616x256xbf16, #tpu.memory_space<vmem>>, vector<8x12xbf16>
    %cst_56 = arith.constant dense<0.000000e+00> : vector<8x32xf32>
    %121 = tpu.matmul %120, %2, %cst_56 {dimension_numbers = #tpu.dot_dimension_numbers<[1], [0], [0], [1], [0, 0, 1, 1], [], []>} : vector<8x12xbf16>, vector<12x32xbf16>, vector<8x32xf32> -> vector<8x32xf32>
    %122 = arith.mulf %121, %121 : vector<8x32xf32>
    %123 = arith.mulf %121, %122 : vector<8x32xf32>
    %cst_57 = arith.constant 4.471500e-02 : f32
    %124 = vector.broadcast %cst_57 : f32 to vector<8x32xf32>
    %125 = arith.mulf %124, %123 : vector<8x32xf32>
    %126 = arith.addf %121, %125 : vector<8x32xf32>
    %cst_58 = arith.constant 0.797884583 : f32
    %127 = vector.broadcast %cst_58 : f32 to vector<8x32xf32>
    %128 = arith.mulf %127, %126 : vector<8x32xf32>
    %129 = math.tanh %128 : vector<8x32xf32>
    %cst_59 = arith.constant 1.000000e+00 : f32
    %130 = vector.broadcast %cst_59 : f32 to vector<8x32xf32>
    %131 = arith.addf %130, %129 : vector<8x32xf32>
    %cst_60 = arith.constant 5.000000e-01 : f32
    %132 = vector.broadcast %cst_60 : f32 to vector<8x32xf32>
    %133 = arith.mulf %132, %131 : vector<8x32xf32>
    %134 = arith.mulf %121, %133 : vector<8x32xf32>
    %135 = arith.truncf %134 : vector<8x32xf32> to vector<8x32xbf16>
    %c3008 = arith.constant 3008 : index
    %c0_61 = arith.constant 0 : index
    %136 = vector.load %arg9[%c3008, %c0_61] : memref<3616x256xbf16, #tpu.memory_space<vmem>>, vector<32x64xbf16>
    %cst_62 = arith.constant dense<0.000000e+00> : vector<8x64xf32>
    %137 = tpu.matmul %135, %136, %cst_62 {dimension_numbers = #tpu.dot_dimension_numbers<[1], [0], [0], [1], [0, 0, 1, 1], [], []>} : vector<8x32xbf16>, vector<32x64xbf16>, vector<8x64xf32> -> vector<8x64xf32>
    %c24 = arith.constant 24 : index
    %c0_63 = arith.constant 0 : index
    %138 = vector.load %arg10[%c24, %c0_63] : memref<40x256xf32, #tpu.memory_space<vmem>>, vector<1x64xf32>
    %139 = vector.broadcast %138 : vector<1x64xf32> to vector<8x64xf32>
    %140 = arith.addf %137, %139 : vector<8x64xf32>
    %cst_64 = arith.constant 0.000000e+00 : f32
    %141 = vector.broadcast %cst_64 : f32 to vector<8x64xf32>
    %142 = arith.cmpf oge, %140, %141 : vector<8x64xf32>
    %cst_65 = arith.constant 0.00999999977 : f32
    %143 = vector.broadcast %cst_65 : f32 to vector<8x64xf32>
    %144 = arith.mulf %143, %140 : vector<8x64xf32>
    %145 = arith.select %142, %140, %144 : vector<8x64xi1>, vector<8x64xf32>
    %146 = arith.truncf %145 : vector<8x64xf32> to vector<8x64xbf16>
    %c3104 = arith.constant 3104 : index
    %c0_66 = arith.constant 0 : index
    %147 = vector.load %arg9[%c3104, %c0_66] : memref<3616x256xbf16, #tpu.memory_space<vmem>>, vector<64x64xbf16>
    %cst_67 = arith.constant dense<0.000000e+00> : vector<8x64xf32>
    %148 = tpu.matmul %146, %147, %cst_67 {dimension_numbers = #tpu.dot_dimension_numbers<[1], [0], [0], [1], [0, 0, 1, 1], [], []>} : vector<8x64xbf16>, vector<64x64xbf16>, vector<8x64xf32> -> vector<8x64xf32>
    %c26 = arith.constant 26 : index
    %c0_68 = arith.constant 0 : index
    %149 = vector.load %arg10[%c26, %c0_68] : memref<40x256xf32, #tpu.memory_space<vmem>>, vector<1x64xf32>
    %150 = vector.broadcast %149 : vector<1x64xf32> to vector<8x64xf32>
    %151 = arith.addf %148, %150 : vector<8x64xf32>
    %c3168 = arith.constant 3168 : index
    %c0_69 = arith.constant 0 : index
    %152 = vector.load %arg9[%c3168, %c0_69] : memref<3616x256xbf16, #tpu.memory_space<vmem>>, vector<64x64xbf16>
    %cst_70 = arith.constant dense<0.000000e+00> : vector<8x64xf32>
    %153 = tpu.matmul %146, %152, %cst_70 {dimension_numbers = #tpu.dot_dimension_numbers<[1], [0], [0], [1], [0, 0, 1, 1], [], []>} : vector<8x64xbf16>, vector<64x64xbf16>, vector<8x64xf32> -> vector<8x64xf32>
    %c27 = arith.constant 27 : index
    %c0_71 = arith.constant 0 : index
    %154 = vector.load %arg10[%c27, %c0_71] : memref<40x256xf32, #tpu.memory_space<vmem>>, vector<1x64xf32>
    %155 = vector.broadcast %154 : vector<1x64xf32> to vector<8x64xf32>
    %156 = arith.addf %153, %155 : vector<8x64xf32>
    %157 = arith.truncf %151 : vector<8x64xf32> to vector<8x64xbf16>
    %158 = arith.truncf %156 : vector<8x64xf32> to vector<8x64xbf16>
    %c0_72 = arith.constant 0 : index
    %c0_73 = arith.constant 0 : index
    %c0_74 = arith.constant 0 : index
    %159 = vector.load %arg1[%c0_72, %c0_73, %c0_74] : memref<1x8x256xf32, #tpu.memory_space<vmem>>, vector<1x8x256xf32>
    %160 = vector.shape_cast %159 : vector<1x8x256xf32> to vector<8x256xf32>
    %c0_75 = arith.constant 0 : index
    %c0_76 = arith.constant 0 : index
    %c0_77 = arith.constant 0 : index
    %161 = vector.load %arg2[%c0_75, %c0_76, %c0_77] : memref<1x16x128xf32, #tpu.memory_space<vmem>>, vector<1x16x128xf32>
    %162 = vector.shape_cast %161 : vector<1x16x128xf32> to vector<16x128xf32>
    %163 = arith.truncf %160 : vector<8x256xf32> to vector<8x256xbf16>
    %c40 = arith.constant 40 : index
    %c0_78 = arith.constant 0 : index
    %164 = vector.load %arg9[%c40, %c0_78] : memref<3616x256xbf16, #tpu.memory_space<vmem>>, vector<256x256xbf16>
    %cst_79 = arith.constant dense<0.000000e+00> : vector<8x256xf32>
    %165 = tpu.matmul %163, %164, %cst_79 {dimension_numbers = #tpu.dot_dimension_numbers<[1], [0], [0], [1], [0, 0, 1, 1], [], []>} : vector<8x256xbf16>, vector<256x256xbf16>, vector<8x256xf32> -> vector<8x256xf32>
    %c1 = arith.constant 1 : index
    %c0_80 = arith.constant 0 : index
    %166 = vector.load %arg10[%c1, %c0_80] : memref<40x256xf32, #tpu.memory_space<vmem>>, vector<1x256xf32>
    %167 = vector.broadcast %166 : vector<1x256xf32> to vector<8x256xf32>
    %168 = arith.addf %165, %167 : vector<8x256xf32>
    %169 = arith.truncf %168 : vector<8x256xf32> to vector<8x256xbf16>
    %cst_81 = arith.constant dense<0.000000e+00> : vector<8x4xf32>
    %170 = tpu.matmul %169, %40, %cst_81 {dimension_numbers = #tpu.dot_dimension_numbers<[1], [1], [0], [0], [0, 0, 1, 0], [], []>} : vector<8x256xbf16>, vector<4x256xbf16>, vector<8x4xf32> -> vector<8x4xf32>
    %cst_82 = arith.constant 2.560000e+02 : f32
    %171 = math.sqrt %cst_82 : f32
    %cst_83 = arith.constant 1.000000e+00 : f32
    %172 = arith.divf %cst_83, %171 : f32
    %173 = vector.broadcast %172 : f32 to vector<8x4xf32>
    %174 = arith.mulf %170, %173 : vector<8x4xf32>
    %cst_84 = arith.constant dense<0xFF800000> : vector<8xf32>
    %175 = vector.multi_reduction <maximumf>, %174, %cst_84 [1] : vector<8x4xf32> to vector<8xf32>
    %176 = vector.shape_cast %175 : vector<8xf32> to vector<8x1xf32>
    %177 = vector.broadcast %176 : vector<8x1xf32> to vector<8x4xf32>
    %178 = arith.subf %174, %177 : vector<8x4xf32>
    %179 = math.exp %178 : vector<8x4xf32>
    %cst_85 = arith.constant dense<0.000000e+00> : vector<8xf32>
    %180 = vector.multi_reduction <add>, %179, %cst_85 [1] : vector<8x4xf32> to vector<8xf32>
    %181 = vector.shape_cast %180 : vector<8xf32> to vector<8x1xf32>
    %182 = tpu.reciprocal %181 {approx = true} : vector<8x1xf32> -> vector<8x1xf32>
    %183 = vector.broadcast %182 : vector<8x1xf32> to vector<8x4xf32>
    %184 = arith.mulf %179, %183 : vector<8x4xf32>
    %185 = arith.truncf %184 : vector<8x4xf32> to vector<8x4xbf16>
    %cst_86 = arith.constant dense<0.000000e+00> : vector<8x256xf32>
    %186 = tpu.matmul %185, %41, %cst_86 {dimension_numbers = #tpu.dot_dimension_numbers<[1], [0], [0], [1], [0, 0, 1, 1], [], []>} : vector<8x4xbf16>, vector<4x256xbf16>, vector<8x256xf32> -> vector<8x256xf32>
    %187 = arith.truncf %186 : vector<8x256xf32> to vector<8x256xbf16>
    %c808 = arith.constant 808 : index
    %c0_87 = arith.constant 0 : index
    %188 = vector.load %arg9[%c808, %c0_87] : memref<3616x256xbf16, #tpu.memory_space<vmem>>, vector<256x256xbf16>
    %cst_88 = arith.constant dense<0.000000e+00> : vector<8x256xf32>
    %189 = tpu.matmul %187, %188, %cst_88 {dimension_numbers = #tpu.dot_dimension_numbers<[1], [0], [0], [1], [0, 0, 1, 1], [], []>} : vector<8x256xbf16>, vector<256x256xbf16>, vector<8x256xf32> -> vector<8x256xf32>
    %c4 = arith.constant 4 : index
    %c0_89 = arith.constant 0 : index
    %190 = vector.load %arg10[%c4, %c0_89] : memref<40x256xf32, #tpu.memory_space<vmem>>, vector<1x256xf32>
    %191 = vector.broadcast %190 : vector<1x256xf32> to vector<8x256xf32>
    %192 = arith.addf %189, %191 : vector<8x256xf32>
    %cst_90 = arith.constant dense<0.000000e+00> : vector<8xf32>
    %193 = vector.multi_reduction <add>, %192, %cst_90 [1] : vector<8x256xf32> to vector<8xf32>
    %194 = vector.shape_cast %193 : vector<8xf32> to vector<8x1xf32>
    %cst_91 = arith.constant 2.560000e+02 : f32
    %195 = vector.broadcast %cst_91 : f32 to vector<8x1xf32>
    %196 = arith.divf %194, %195 : vector<8x1xf32>
    %197 = vector.broadcast %196 : vector<8x1xf32> to vector<8x256xf32>
    %198 = arith.subf %192, %197 : vector<8x256xf32>
    %199 = arith.mulf %198, %198 : vector<8x256xf32>
    %cst_92 = arith.constant dense<0.000000e+00> : vector<8xf32>
    %200 = vector.multi_reduction <add>, %199, %cst_92 [1] : vector<8x256xf32> to vector<8xf32>
    %201 = vector.shape_cast %200 : vector<8xf32> to vector<8x1xf32>
    %cst_93 = arith.constant 2.560000e+02 : f32
    %202 = vector.broadcast %cst_93 : f32 to vector<8x1xf32>
    %203 = arith.divf %201, %202 : vector<8x1xf32>
    %204 = vector.broadcast %196 : vector<8x1xf32> to vector<8x256xf32>
    %205 = arith.subf %192, %204 : vector<8x256xf32>
    %cst_94 = arith.constant 9.99999974E-6 : f32
    %206 = vector.broadcast %cst_94 : f32 to vector<8x1xf32>
    %207 = arith.addf %203, %206 : vector<8x1xf32>
    %208 = math.rsqrt %207 : vector<8x1xf32>
    %209 = vector.broadcast %208 : vector<8x1xf32> to vector<8x256xf32>
    %210 = arith.mulf %205, %209 : vector<8x256xf32>
    %c5 = arith.constant 5 : index
    %c0_95 = arith.constant 0 : index
    %211 = vector.load %arg10[%c5, %c0_95] : memref<40x256xf32, #tpu.memory_space<vmem>>, vector<1x256xf32>
    %212 = vector.broadcast %211 : vector<1x256xf32> to vector<8x256xf32>
    %213 = arith.mulf %210, %212 : vector<8x256xf32>
    %c6 = arith.constant 6 : index
    %c0_96 = arith.constant 0 : index
    %214 = vector.load %arg10[%c6, %c0_96] : memref<40x256xf32, #tpu.memory_space<vmem>>, vector<1x256xf32>
    %215 = vector.broadcast %214 : vector<1x256xf32> to vector<8x256xf32>
    %216 = arith.addf %213, %215 : vector<8x256xf32>
    %217 = arith.addf %160, %216 : vector<8x256xf32>
    %218 = arith.truncf %217 : vector<8x256xf32> to vector<8x256xbf16>
    %c1064 = arith.constant 1064 : index
    %c0_97 = arith.constant 0 : index
    %219 = vector.load %arg9[%c1064, %c0_97] : memref<3616x256xbf16, #tpu.memory_space<vmem>>, vector<256x128xbf16>
    %cst_98 = arith.constant dense<0.000000e+00> : vector<8x128xf32>
    %220 = tpu.matmul %218, %219, %cst_98 {dimension_numbers = #tpu.dot_dimension_numbers<[1], [0], [0], [1], [0, 0, 1, 1], [], []>} : vector<8x256xbf16>, vector<256x128xbf16>, vector<8x128xf32> -> vector<8x128xf32>
    %221 = tpu.iota {dimensions = array<i32: 0>} : vector<16x8xi32>
    %222 = tpu.iota {dimensions = array<i32: 1>} : vector<16x8xi32>
    %c2_i32 = arith.constant 2 : i32
    %223 = vector.broadcast %c2_i32 : i32 to vector<16x8xi32>
    %224 = arith.muli %223, %222 : vector<16x8xi32>
    %225 = arith.subi %221, %224 : vector<16x8xi32>
    %c0_i32 = arith.constant 0 : i32
    %226 = vector.broadcast %c0_i32 : i32 to vector<16x8xi32>
    %227 = arith.cmpi sge, %225, %226 : vector<16x8xi32>
    %c2_i32_99 = arith.constant 2 : i32
    %228 = vector.broadcast %c2_i32_99 : i32 to vector<16x8xi32>
    %229 = arith.cmpi slt, %225, %228 : vector<16x8xi32>
    %230 = arith.andi %227, %229 : vector<16x8xi1>
    %231 = arith.extui %230 : vector<16x8xi1> to vector<16x8xi32>
    %232 = arith.sitofp %231 : vector<16x8xi32> to vector<16x8xf32>
    %cst_100 = arith.constant dense<0.000000e+00> : vector<16x128xf32>
    %233 = tpu.matmul %232, %220, %cst_100 {dimension_numbers = #tpu.dot_dimension_numbers<[1], [0], [0], [1], [0, 0, 1, 1], [], []>} : vector<16x8xf32>, vector<8x128xf32>, vector<16x128xf32> -> vector<16x128xf32>
    %234 = arith.truncf %162 : vector<16x128xf32> to vector<16x128xbf16>
    %c1320 = arith.constant 1320 : index
    %c0_101 = arith.constant 0 : index
    %235 = vector.load %arg9[%c1320, %c0_101] : memref<3616x256xbf16, #tpu.memory_space<vmem>>, vector<128x128xbf16>
    %cst_102 = arith.constant dense<0.000000e+00> : vector<16x128xf32>
    %236 = tpu.matmul %234, %235, %cst_102 {dimension_numbers = #tpu.dot_dimension_numbers<[1], [0], [0], [1], [0, 0, 1, 1], [], []>} : vector<16x128xbf16>, vector<128x128xbf16>, vector<16x128xf32> -> vector<16x128xf32>
    %237 = arith.addf %233, %236 : vector<16x128xf32>
    %c7 = arith.constant 7 : index
    %c0_103 = arith.constant 0 : index
    %238 = vector.load %arg10[%c7, %c0_103] : memref<40x256xf32, #tpu.memory_space<vmem>>, vector<1x128xf32>
    %239 = vector.broadcast %238 : vector<1x128xf32> to vector<16x128xf32>
    %240 = arith.addf %237, %239 : vector<16x128xf32>
    %cst_104 = arith.constant 0.000000e+00 : f32
    %241 = vector.broadcast %cst_104 : f32 to vector<16x128xf32>
    %242 = arith.maximumf %240, %241 : vector<16x128xf32>
    %c0_105 = arith.constant 0 : index
    %c0_106 = arith.constant 0 : index
    %c0_107 = arith.constant 0 : index
    %243 = vector.load %arg3[%c0_105, %c0_106, %c0_107] : memref<1x32x128xf32, #tpu.memory_space<vmem>>, vector<1x32x128xf32>
    %244 = vector.shape_cast %243 : vector<1x32x128xf32> to vector<32x128xf32>
    %245 = arith.truncf %242 : vector<16x128xf32> to vector<16x128xbf16>
    %c1488 = arith.constant 1488 : index
    %c0_108 = arith.constant 0 : index
    %246 = vector.load %arg9[%c1488, %c0_108] : memref<3616x256xbf16, #tpu.memory_space<vmem>>, vector<128x128xbf16>
    %cst_109 = arith.constant dense<0.000000e+00> : vector<16x128xf32>
    %247 = tpu.matmul %245, %246, %cst_109 {dimension_numbers = #tpu.dot_dimension_numbers<[1], [0], [0], [1], [0, 0, 1, 1], [], []>} : vector<16x128xbf16>, vector<128x128xbf16>, vector<16x128xf32> -> vector<16x128xf32>
    %c9 = arith.constant 9 : index
    %c0_110 = arith.constant 0 : index
    %248 = vector.load %arg10[%c9, %c0_110] : memref<40x256xf32, #tpu.memory_space<vmem>>, vector<1x128xf32>
    %249 = vector.broadcast %248 : vector<1x128xf32> to vector<16x128xf32>
    %250 = arith.addf %247, %249 : vector<16x128xf32>
    %251 = arith.truncf %250 : vector<16x128xf32> to vector<16x128xbf16>
    %cst_111 = arith.constant dense<0.000000e+00> : vector<16x4xf32>
    %252 = tpu.matmul %251, %79, %cst_111 {dimension_numbers = #tpu.dot_dimension_numbers<[1], [1], [0], [0], [0, 0, 1, 0], [], []>} : vector<16x128xbf16>, vector<4x128xbf16>, vector<16x4xf32> -> vector<16x4xf32>
    %cst_112 = arith.constant 1.280000e+02 : f32
    %253 = math.sqrt %cst_112 : f32
    %cst_113 = arith.constant 1.000000e+00 : f32
    %254 = arith.divf %cst_113, %253 : f32
    %255 = vector.broadcast %254 : f32 to vector<16x4xf32>
    %256 = arith.mulf %252, %255 : vector<16x4xf32>
    %cst_114 = arith.constant dense<0xFF800000> : vector<16xf32>
    %257 = vector.multi_reduction <maximumf>, %256, %cst_114 [1] : vector<16x4xf32> to vector<16xf32>
    %258 = vector.shape_cast %257 : vector<16xf32> to vector<16x1xf32>
    %259 = vector.broadcast %258 : vector<16x1xf32> to vector<16x4xf32>
    %260 = arith.subf %256, %259 : vector<16x4xf32>
    %261 = math.exp %260 : vector<16x4xf32>
    %cst_115 = arith.constant dense<0.000000e+00> : vector<16xf32>
    %262 = vector.multi_reduction <add>, %261, %cst_115 [1] : vector<16x4xf32> to vector<16xf32>
    %263 = vector.shape_cast %262 : vector<16xf32> to vector<16x1xf32>
    %264 = tpu.reciprocal %263 {approx = true} : vector<16x1xf32> -> vector<16x1xf32>
    %265 = vector.broadcast %264 : vector<16x1xf32> to vector<16x4xf32>
    %266 = arith.mulf %261, %265 : vector<16x4xf32>
    %267 = arith.truncf %266 : vector<16x4xf32> to vector<16x4xbf16>
    %cst_116 = arith.constant dense<0.000000e+00> : vector<16x128xf32>
    %268 = tpu.matmul %267, %80, %cst_116 {dimension_numbers = #tpu.dot_dimension_numbers<[1], [0], [0], [1], [0, 0, 1, 1], [], []>} : vector<16x4xbf16>, vector<4x128xbf16>, vector<16x128xf32> -> vector<16x128xf32>
    %269 = arith.truncf %268 : vector<16x128xf32> to vector<16x128xbf16>
    %c1872 = arith.constant 1872 : index
    %c0_117 = arith.constant 0 : index
    %270 = vector.load %arg9[%c1872, %c0_117] : memref<3616x256xbf16, #tpu.memory_space<vmem>>, vector<128x128xbf16>
    %cst_118 = arith.constant dense<0.000000e+00> : vector<16x128xf32>
    %271 = tpu.matmul %269, %270, %cst_118 {dimension_numbers = #tpu.dot_dimension_numbers<[1], [0], [0], [1], [0, 0, 1, 1], [], []>} : vector<16x128xbf16>, vector<128x128xbf16>, vector<16x128xf32> -> vector<16x128xf32>
    %c12 = arith.constant 12 : index
    %c0_119 = arith.constant 0 : index
    %272 = vector.load %arg10[%c12, %c0_119] : memref<40x256xf32, #tpu.memory_space<vmem>>, vector<1x128xf32>
    %273 = vector.broadcast %272 : vector<1x128xf32> to vector<16x128xf32>
    %274 = arith.addf %271, %273 : vector<16x128xf32>
    %cst_120 = arith.constant dense<0.000000e+00> : vector<16xf32>
    %275 = vector.multi_reduction <add>, %274, %cst_120 [1] : vector<16x128xf32> to vector<16xf32>
    %276 = vector.shape_cast %275 : vector<16xf32> to vector<16x1xf32>
    %cst_121 = arith.constant 1.280000e+02 : f32
    %277 = vector.broadcast %cst_121 : f32 to vector<16x1xf32>
    %278 = arith.divf %276, %277 : vector<16x1xf32>
    %279 = vector.broadcast %278 : vector<16x1xf32> to vector<16x128xf32>
    %280 = arith.subf %274, %279 : vector<16x128xf32>
    %281 = arith.mulf %280, %280 : vector<16x128xf32>
    %cst_122 = arith.constant dense<0.000000e+00> : vector<16xf32>
    %282 = vector.multi_reduction <add>, %281, %cst_122 [1] : vector<16x128xf32> to vector<16xf32>
    %283 = vector.shape_cast %282 : vector<16xf32> to vector<16x1xf32>
    %cst_123 = arith.constant 1.280000e+02 : f32
    %284 = vector.broadcast %cst_123 : f32 to vector<16x1xf32>
    %285 = arith.divf %283, %284 : vector<16x1xf32>
    %286 = vector.broadcast %278 : vector<16x1xf32> to vector<16x128xf32>
    %287 = arith.subf %274, %286 : vector<16x128xf32>
    %cst_124 = arith.constant 9.99999974E-6 : f32
    %288 = vector.broadcast %cst_124 : f32 to vector<16x1xf32>
    %289 = arith.addf %285, %288 : vector<16x1xf32>
    %290 = math.rsqrt %289 : vector<16x1xf32>
    %291 = vector.broadcast %290 : vector<16x1xf32> to vector<16x128xf32>
    %292 = arith.mulf %287, %291 : vector<16x128xf32>
    %c13 = arith.constant 13 : index
    %c0_125 = arith.constant 0 : index
    %293 = vector.load %arg10[%c13, %c0_125] : memref<40x256xf32, #tpu.memory_space<vmem>>, vector<1x128xf32>
    %294 = vector.broadcast %293 : vector<1x128xf32> to vector<16x128xf32>
    %295 = arith.mulf %292, %294 : vector<16x128xf32>
    %c14 = arith.constant 14 : index
    %c0_126 = arith.constant 0 : index
    %296 = vector.load %arg10[%c14, %c0_126] : memref<40x256xf32, #tpu.memory_space<vmem>>, vector<1x128xf32>
    %297 = vector.broadcast %296 : vector<1x128xf32> to vector<16x128xf32>
    %298 = arith.addf %295, %297 : vector<16x128xf32>
    %299 = arith.addf %242, %298 : vector<16x128xf32>
    %300 = arith.truncf %299 : vector<16x128xf32> to vector<16x128xbf16>
    %c2000 = arith.constant 2000 : index
    %c0_127 = arith.constant 0 : index
    %301 = vector.load %arg9[%c2000, %c0_127] : memref<3616x256xbf16, #tpu.memory_space<vmem>>, vector<128x128xbf16>
    %cst_128 = arith.constant dense<0.000000e+00> : vector<16x128xf32>
    %302 = tpu.matmul %300, %301, %cst_128 {dimension_numbers = #tpu.dot_dimension_numbers<[1], [0], [0], [1], [0, 0, 1, 1], [], []>} : vector<16x128xbf16>, vector<128x128xbf16>, vector<16x128xf32> -> vector<16x128xf32>
    %303 = tpu.iota {dimensions = array<i32: 0>} : vector<32x16xi32>
    %304 = tpu.iota {dimensions = array<i32: 1>} : vector<32x16xi32>
    %c2_i32_129 = arith.constant 2 : i32
    %305 = vector.broadcast %c2_i32_129 : i32 to vector<32x16xi32>
    %306 = arith.muli %305, %304 : vector<32x16xi32>
    %307 = arith.subi %303, %306 : vector<32x16xi32>
    %c0_i32_130 = arith.constant 0 : i32
    %308 = vector.broadcast %c0_i32_130 : i32 to vector<32x16xi32>
    %309 = arith.cmpi sge, %307, %308 : vector<32x16xi32>
    %c2_i32_131 = arith.constant 2 : i32
    %310 = vector.broadcast %c2_i32_131 : i32 to vector<32x16xi32>
    %311 = arith.cmpi slt, %307, %310 : vector<32x16xi32>
    %312 = arith.andi %309, %311 : vector<32x16xi1>
    %313 = arith.extui %312 : vector<32x16xi1> to vector<32x16xi32>
    %314 = arith.sitofp %313 : vector<32x16xi32> to vector<32x16xf32>
    %cst_132 = arith.constant dense<0.000000e+00> : vector<32x128xf32>
    %315 = tpu.matmul %314, %302, %cst_132 {dimension_numbers = #tpu.dot_dimension_numbers<[1], [0], [0], [1], [0, 0, 1, 1], [], []>} : vector<32x16xf32>, vector<16x128xf32>, vector<32x128xf32> -> vector<32x128xf32>
    %316 = arith.truncf %244 : vector<32x128xf32> to vector<32x128xbf16>
    %c2128 = arith.constant 2128 : index
    %c0_133 = arith.constant 0 : index
    %317 = vector.load %arg9[%c2128, %c0_133] : memref<3616x256xbf16, #tpu.memory_space<vmem>>, vector<128x128xbf16>
    %cst_134 = arith.constant dense<0.000000e+00> : vector<32x128xf32>
    %318 = tpu.matmul %316, %317, %cst_134 {dimension_numbers = #tpu.dot_dimension_numbers<[1], [0], [0], [1], [0, 0, 1, 1], [], []>} : vector<32x128xbf16>, vector<128x128xbf16>, vector<32x128xf32> -> vector<32x128xf32>
    %319 = arith.addf %315, %318 : vector<32x128xf32>
    %c15 = arith.constant 15 : index
    %c0_135 = arith.constant 0 : index
    %320 = vector.load %arg10[%c15, %c0_135] : memref<40x256xf32, #tpu.memory_space<vmem>>, vector<1x128xf32>
    %321 = vector.broadcast %320 : vector<1x128xf32> to vector<32x128xf32>
    %322 = arith.addf %319, %321 : vector<32x128xf32>
    %cst_136 = arith.constant 0.000000e+00 : f32
    %323 = vector.broadcast %cst_136 : f32 to vector<32x128xf32>
    %324 = arith.maximumf %322, %323 : vector<32x128xf32>
    %c0_137 = arith.constant 0 : index
    %c0_138 = arith.constant 0 : index
    %c0_139 = arith.constant 0 : index
    %325 = vector.load %arg4[%c0_137, %c0_138, %c0_139] : memref<1x64x64xf32, #tpu.memory_space<vmem>>, vector<1x64x64xf32>
    %326 = vector.shape_cast %325 : vector<1x64x64xf32> to vector<64x64xf32>
    %327 = arith.truncf %324 : vector<32x128xf32> to vector<32x128xbf16>
    %c2296 = arith.constant 2296 : index
    %c0_140 = arith.constant 0 : index
    %328 = vector.load %arg9[%c2296, %c0_140] : memref<3616x256xbf16, #tpu.memory_space<vmem>>, vector<128x128xbf16>
    %cst_141 = arith.constant dense<0.000000e+00> : vector<32x128xf32>
    %329 = tpu.matmul %327, %328, %cst_141 {dimension_numbers = #tpu.dot_dimension_numbers<[1], [0], [0], [1], [0, 0, 1, 1], [], []>} : vector<32x128xbf16>, vector<128x128xbf16>, vector<32x128xf32> -> vector<32x128xf32>
    %c17 = arith.constant 17 : index
    %c0_142 = arith.constant 0 : index
    %330 = vector.load %arg10[%c17, %c0_142] : memref<40x256xf32, #tpu.memory_space<vmem>>, vector<1x128xf32>
    %331 = vector.broadcast %330 : vector<1x128xf32> to vector<32x128xf32>
    %332 = arith.addf %329, %331 : vector<32x128xf32>
    %333 = arith.truncf %332 : vector<32x128xf32> to vector<32x128xbf16>
    %cst_143 = arith.constant dense<0.000000e+00> : vector<32x8xf32>
    %334 = tpu.matmul %333, %118, %cst_143 {dimension_numbers = #tpu.dot_dimension_numbers<[1], [1], [0], [0], [0, 0, 1, 0], [], []>} : vector<32x128xbf16>, vector<8x128xbf16>, vector<32x8xf32> -> vector<32x8xf32>
    %cst_144 = arith.constant 1.280000e+02 : f32
    %335 = math.sqrt %cst_144 : f32
    %cst_145 = arith.constant 1.000000e+00 : f32
    %336 = arith.divf %cst_145, %335 : f32
    %337 = vector.broadcast %336 : f32 to vector<32x8xf32>
    %338 = arith.mulf %334, %337 : vector<32x8xf32>
    %cst_146 = arith.constant dense<0xFF800000> : vector<32xf32>
    %339 = vector.multi_reduction <maximumf>, %338, %cst_146 [1] : vector<32x8xf32> to vector<32xf32>
    %340 = vector.shape_cast %339 : vector<32xf32> to vector<32x1xf32>
    %341 = vector.broadcast %340 : vector<32x1xf32> to vector<32x8xf32>
    %342 = arith.subf %338, %341 : vector<32x8xf32>
    %343 = math.exp %342 : vector<32x8xf32>
    %cst_147 = arith.constant dense<0.000000e+00> : vector<32xf32>
    %344 = vector.multi_reduction <add>, %343, %cst_147 [1] : vector<32x8xf32> to vector<32xf32>
    %345 = vector.shape_cast %344 : vector<32xf32> to vector<32x1xf32>
    %346 = tpu.reciprocal %345 {approx = true} : vector<32x1xf32> -> vector<32x1xf32>
    %347 = vector.broadcast %346 : vector<32x1xf32> to vector<32x8xf32>
    %348 = arith.mulf %343, %347 : vector<32x8xf32>
    %349 = arith.truncf %348 : vector<32x8xf32> to vector<32x8xbf16>
    %cst_148 = arith.constant dense<0.000000e+00> : vector<32x128xf32>
    %350 = tpu.matmul %349, %119, %cst_148 {dimension_numbers = #tpu.dot_dimension_numbers<[1], [0], [0], [1], [0, 0, 1, 1], [], []>} : vector<32x8xbf16>, vector<8x128xbf16>, vector<32x128xf32> -> vector<32x128xf32>
    %351 = arith.truncf %350 : vector<32x128xf32> to vector<32x128xbf16>
    %c2680 = arith.constant 2680 : index
    %c0_149 = arith.constant 0 : index
    %352 = vector.load %arg9[%c2680, %c0_149] : memref<3616x256xbf16, #tpu.memory_space<vmem>>, vector<128x128xbf16>
    %cst_150 = arith.constant dense<0.000000e+00> : vector<32x128xf32>
    %353 = tpu.matmul %351, %352, %cst_150 {dimension_numbers = #tpu.dot_dimension_numbers<[1], [0], [0], [1], [0, 0, 1, 1], [], []>} : vector<32x128xbf16>, vector<128x128xbf16>, vector<32x128xf32> -> vector<32x128xf32>
    %c20 = arith.constant 20 : index
    %c0_151 = arith.constant 0 : index
    %354 = vector.load %arg10[%c20, %c0_151] : memref<40x256xf32, #tpu.memory_space<vmem>>, vector<1x128xf32>
    %355 = vector.broadcast %354 : vector<1x128xf32> to vector<32x128xf32>
    %356 = arith.addf %353, %355 : vector<32x128xf32>
    %cst_152 = arith.constant dense<0.000000e+00> : vector<32xf32>
    %357 = vector.multi_reduction <add>, %356, %cst_152 [1] : vector<32x128xf32> to vector<32xf32>
    %358 = vector.shape_cast %357 : vector<32xf32> to vector<32x1xf32>
    %cst_153 = arith.constant 1.280000e+02 : f32
    %359 = vector.broadcast %cst_153 : f32 to vector<32x1xf32>
    %360 = arith.divf %358, %359 : vector<32x1xf32>
    %361 = vector.broadcast %360 : vector<32x1xf32> to vector<32x128xf32>
    %362 = arith.subf %356, %361 : vector<32x128xf32>
    %363 = arith.mulf %362, %362 : vector<32x128xf32>
    %cst_154 = arith.constant dense<0.000000e+00> : vector<32xf32>
    %364 = vector.multi_reduction <add>, %363, %cst_154 [1] : vector<32x128xf32> to vector<32xf32>
    %365 = vector.shape_cast %364 : vector<32xf32> to vector<32x1xf32>
    %cst_155 = arith.constant 1.280000e+02 : f32
    %366 = vector.broadcast %cst_155 : f32 to vector<32x1xf32>
    %367 = arith.divf %365, %366 : vector<32x1xf32>
    %368 = vector.broadcast %360 : vector<32x1xf32> to vector<32x128xf32>
    %369 = arith.subf %356, %368 : vector<32x128xf32>
    %cst_156 = arith.constant 9.99999974E-6 : f32
    %370 = vector.broadcast %cst_156 : f32 to vector<32x1xf32>
    %371 = arith.addf %367, %370 : vector<32x1xf32>
    %372 = math.rsqrt %371 : vector<32x1xf32>
    %373 = vector.broadcast %372 : vector<32x1xf32> to vector<32x128xf32>
    %374 = arith.mulf %369, %373 : vector<32x128xf32>
    %c21 = arith.constant 21 : index
    %c0_157 = arith.constant 0 : index
    %375 = vector.load %arg10[%c21, %c0_157] : memref<40x256xf32, #tpu.memory_space<vmem>>, vector<1x128xf32>
    %376 = vector.broadcast %375 : vector<1x128xf32> to vector<32x128xf32>
    %377 = arith.mulf %374, %376 : vector<32x128xf32>
    %c22 = arith.constant 22 : index
    %c0_158 = arith.constant 0 : index
    %378 = vector.load %arg10[%c22, %c0_158] : memref<40x256xf32, #tpu.memory_space<vmem>>, vector<1x128xf32>
    %379 = vector.broadcast %378 : vector<1x128xf32> to vector<32x128xf32>
    %380 = arith.addf %377, %379 : vector<32x128xf32>
    %381 = arith.addf %324, %380 : vector<32x128xf32>
    %382 = arith.truncf %381 : vector<32x128xf32> to vector<32x128xbf16>
    %c2808 = arith.constant 2808 : index
    %c0_159 = arith.constant 0 : index
    %383 = vector.load %arg9[%c2808, %c0_159] : memref<3616x256xbf16, #tpu.memory_space<vmem>>, vector<128x64xbf16>
    %cst_160 = arith.constant dense<0.000000e+00> : vector<32x64xf32>
    %384 = tpu.matmul %382, %383, %cst_160 {dimension_numbers = #tpu.dot_dimension_numbers<[1], [0], [0], [1], [0, 0, 1, 1], [], []>} : vector<32x128xbf16>, vector<128x64xbf16>, vector<32x64xf32> -> vector<32x64xf32>
    %385 = tpu.iota {dimensions = array<i32: 0>} : vector<64x32xi32>
    %386 = tpu.iota {dimensions = array<i32: 1>} : vector<64x32xi32>
    %c2_i32_161 = arith.constant 2 : i32
    %387 = vector.broadcast %c2_i32_161 : i32 to vector<64x32xi32>
    %388 = arith.muli %387, %386 : vector<64x32xi32>
    %389 = arith.subi %385, %388 : vector<64x32xi32>
    %c0_i32_162 = arith.constant 0 : i32
    %390 = vector.broadcast %c0_i32_162 : i32 to vector<64x32xi32>
    %391 = arith.cmpi sge, %389, %390 : vector<64x32xi32>
    %c2_i32_163 = arith.constant 2 : i32
    %392 = vector.broadcast %c2_i32_163 : i32 to vector<64x32xi32>
    %393 = arith.cmpi slt, %389, %392 : vector<64x32xi32>
    %394 = arith.andi %391, %393 : vector<64x32xi1>
    %395 = arith.extui %394 : vector<64x32xi1> to vector<64x32xi32>
    %396 = arith.sitofp %395 : vector<64x32xi32> to vector<64x32xf32>
    %cst_164 = arith.constant dense<0.000000e+00> : vector<64x64xf32>
    %397 = tpu.matmul %396, %384, %cst_164 {dimension_numbers = #tpu.dot_dimension_numbers<[1], [0], [0], [1], [0, 0, 1, 1], [], []>} : vector<64x32xf32>, vector<32x64xf32>, vector<64x64xf32> -> vector<64x64xf32>
    %398 = arith.truncf %326 : vector<64x64xf32> to vector<64x64xbf16>
    %c2936 = arith.constant 2936 : index
    %c0_165 = arith.constant 0 : index
    %399 = vector.load %arg9[%c2936, %c0_165] : memref<3616x256xbf16, #tpu.memory_space<vmem>>, vector<64x64xbf16>
    %cst_166 = arith.constant dense<0.000000e+00> : vector<64x64xf32>
    %400 = tpu.matmul %398, %399, %cst_166 {dimension_numbers = #tpu.dot_dimension_numbers<[1], [0], [0], [1], [0, 0, 1, 1], [], []>} : vector<64x64xbf16>, vector<64x64xbf16>, vector<64x64xf32> -> vector<64x64xf32>
    %401 = arith.addf %397, %400 : vector<64x64xf32>
    %c23 = arith.constant 23 : index
    %c0_167 = arith.constant 0 : index
    %402 = vector.load %arg10[%c23, %c0_167] : memref<40x256xf32, #tpu.memory_space<vmem>>, vector<1x64xf32>
    %403 = vector.broadcast %402 : vector<1x64xf32> to vector<64x64xf32>
    %404 = arith.addf %401, %403 : vector<64x64xf32>
    %cst_168 = arith.constant 0.000000e+00 : f32
    %405 = vector.broadcast %cst_168 : f32 to vector<64x64xf32>
    %406 = arith.maximumf %404, %405 : vector<64x64xf32>
    %c0_169 = arith.constant 0 : index
    %c0_170 = arith.constant 0 : index
    %c0_171 = arith.constant 0 : index
    %407 = vector.load %arg5[%c0_169, %c0_170, %c0_171] : memref<1x128x64xf32, #tpu.memory_space<vmem>>, vector<1x128x64xf32>
    %408 = vector.shape_cast %407 : vector<1x128x64xf32> to vector<128x64xf32>
    %409 = arith.truncf %406 : vector<64x64xf32> to vector<64x64xbf16>
    %c3040 = arith.constant 3040 : index
    %c0_172 = arith.constant 0 : index
    %410 = vector.load %arg9[%c3040, %c0_172] : memref<3616x256xbf16, #tpu.memory_space<vmem>>, vector<64x64xbf16>
    %cst_173 = arith.constant dense<0.000000e+00> : vector<64x64xf32>
    %411 = tpu.matmul %409, %410, %cst_173 {dimension_numbers = #tpu.dot_dimension_numbers<[1], [0], [0], [1], [0, 0, 1, 1], [], []>} : vector<64x64xbf16>, vector<64x64xbf16>, vector<64x64xf32> -> vector<64x64xf32>
    %c25 = arith.constant 25 : index
    %c0_174 = arith.constant 0 : index
    %412 = vector.load %arg10[%c25, %c0_174] : memref<40x256xf32, #tpu.memory_space<vmem>>, vector<1x64xf32>
    %413 = vector.broadcast %412 : vector<1x64xf32> to vector<64x64xf32>
    %414 = arith.addf %411, %413 : vector<64x64xf32>
    %415 = arith.truncf %414 : vector<64x64xf32> to vector<64x64xbf16>
    %cst_175 = arith.constant dense<0.000000e+00> : vector<64x8xf32>
    %416 = tpu.matmul %415, %157, %cst_175 {dimension_numbers = #tpu.dot_dimension_numbers<[1], [1], [0], [0], [0, 0, 1, 0], [], []>} : vector<64x64xbf16>, vector<8x64xbf16>, vector<64x8xf32> -> vector<64x8xf32>
    %cst_176 = arith.constant 6.400000e+01 : f32
    %417 = math.sqrt %cst_176 : f32
    %cst_177 = arith.constant 1.000000e+00 : f32
    %418 = arith.divf %cst_177, %417 : f32
    %419 = vector.broadcast %418 : f32 to vector<64x8xf32>
    %420 = arith.mulf %416, %419 : vector<64x8xf32>
    %cst_178 = arith.constant dense<0xFF800000> : vector<64xf32>
    %421 = vector.multi_reduction <maximumf>, %420, %cst_178 [1] : vector<64x8xf32> to vector<64xf32>
    %422 = vector.shape_cast %421 : vector<64xf32> to vector<64x1xf32>
    %423 = vector.broadcast %422 : vector<64x1xf32> to vector<64x8xf32>
    %424 = arith.subf %420, %423 : vector<64x8xf32>
    %425 = math.exp %424 : vector<64x8xf32>
    %cst_179 = arith.constant dense<0.000000e+00> : vector<64xf32>
    %426 = vector.multi_reduction <add>, %425, %cst_179 [1] : vector<64x8xf32> to vector<64xf32>
    %427 = vector.shape_cast %426 : vector<64xf32> to vector<64x1xf32>
    %428 = tpu.reciprocal %427 {approx = true} : vector<64x1xf32> -> vector<64x1xf32>
    %429 = vector.broadcast %428 : vector<64x1xf32> to vector<64x8xf32>
    %430 = arith.mulf %425, %429 : vector<64x8xf32>
    %431 = arith.truncf %430 : vector<64x8xf32> to vector<64x8xbf16>
    %cst_180 = arith.constant dense<0.000000e+00> : vector<64x64xf32>
    %432 = tpu.matmul %431, %158, %cst_180 {dimension_numbers = #tpu.dot_dimension_numbers<[1], [0], [0], [1], [0, 0, 1, 1], [], []>} : vector<64x8xbf16>, vector<8x64xbf16>, vector<64x64xf32> -> vector<64x64xf32>
    %433 = arith.truncf %432 : vector<64x64xf32> to vector<64x64xbf16>
    %c3232 = arith.constant 3232 : index
    %c0_181 = arith.constant 0 : index
    %434 = vector.load %arg9[%c3232, %c0_181] : memref<3616x256xbf16, #tpu.memory_space<vmem>>, vector<64x64xbf16>
    %cst_182 = arith.constant dense<0.000000e+00> : vector<64x64xf32>
    %435 = tpu.matmul %433, %434, %cst_182 {dimension_numbers = #tpu.dot_dimension_numbers<[1], [0], [0], [1], [0, 0, 1, 1], [], []>} : vector<64x64xbf16>, vector<64x64xbf16>, vector<64x64xf32> -> vector<64x64xf32>
    %c28 = arith.constant 28 : index
    %c0_183 = arith.constant 0 : index
    %436 = vector.load %arg10[%c28, %c0_183] : memref<40x256xf32, #tpu.memory_space<vmem>>, vector<1x64xf32>
    %437 = vector.broadcast %436 : vector<1x64xf32> to vector<64x64xf32>
    %438 = arith.addf %435, %437 : vector<64x64xf32>
    %cst_184 = arith.constant dense<0.000000e+00> : vector<64xf32>
    %439 = vector.multi_reduction <add>, %438, %cst_184 [1] : vector<64x64xf32> to vector<64xf32>
    %440 = vector.shape_cast %439 : vector<64xf32> to vector<64x1xf32>
    %cst_185 = arith.constant 6.400000e+01 : f32
    %441 = vector.broadcast %cst_185 : f32 to vector<64x1xf32>
    %442 = arith.divf %440, %441 : vector<64x1xf32>
    %443 = vector.broadcast %442 : vector<64x1xf32> to vector<64x64xf32>
    %444 = arith.subf %438, %443 : vector<64x64xf32>
    %445 = arith.mulf %444, %444 : vector<64x64xf32>
    %cst_186 = arith.constant dense<0.000000e+00> : vector<64xf32>
    %446 = vector.multi_reduction <add>, %445, %cst_186 [1] : vector<64x64xf32> to vector<64xf32>
    %447 = vector.shape_cast %446 : vector<64xf32> to vector<64x1xf32>
    %cst_187 = arith.constant 6.400000e+01 : f32
    %448 = vector.broadcast %cst_187 : f32 to vector<64x1xf32>
    %449 = arith.divf %447, %448 : vector<64x1xf32>
    %450 = vector.broadcast %442 : vector<64x1xf32> to vector<64x64xf32>
    %451 = arith.subf %438, %450 : vector<64x64xf32>
    %cst_188 = arith.constant 9.99999974E-6 : f32
    %452 = vector.broadcast %cst_188 : f32 to vector<64x1xf32>
    %453 = arith.addf %449, %452 : vector<64x1xf32>
    %454 = math.rsqrt %453 : vector<64x1xf32>
    %455 = vector.broadcast %454 : vector<64x1xf32> to vector<64x64xf32>
    %456 = arith.mulf %451, %455 : vector<64x64xf32>
    %c29 = arith.constant 29 : index
    %c0_189 = arith.constant 0 : index
    %457 = vector.load %arg10[%c29, %c0_189] : memref<40x256xf32, #tpu.memory_space<vmem>>, vector<1x64xf32>
    %458 = vector.broadcast %457 : vector<1x64xf32> to vector<64x64xf32>
    %459 = arith.mulf %456, %458 : vector<64x64xf32>
    %c30 = arith.constant 30 : index
    %c0_190 = arith.constant 0 : index
    %460 = vector.load %arg10[%c30, %c0_190] : memref<40x256xf32, #tpu.memory_space<vmem>>, vector<1x64xf32>
    %461 = vector.broadcast %460 : vector<1x64xf32> to vector<64x64xf32>
    %462 = arith.addf %459, %461 : vector<64x64xf32>
    %463 = arith.addf %406, %462 : vector<64x64xf32>
    %464 = arith.truncf %463 : vector<64x64xf32> to vector<64x64xbf16>
    %c3296 = arith.constant 3296 : index
    %c0_191 = arith.constant 0 : index
    %465 = vector.load %arg9[%c3296, %c0_191] : memref<3616x256xbf16, #tpu.memory_space<vmem>>, vector<64x64xbf16>
    %cst_192 = arith.constant dense<0.000000e+00> : vector<64x64xf32>
    %466 = tpu.matmul %464, %465, %cst_192 {dimension_numbers = #tpu.dot_dimension_numbers<[1], [0], [0], [1], [0, 0, 1, 1], [], []>} : vector<64x64xbf16>, vector<64x64xbf16>, vector<64x64xf32> -> vector<64x64xf32>
    %467 = tpu.iota {dimensions = array<i32: 0>} : vector<128x64xi32>
    %468 = tpu.iota {dimensions = array<i32: 1>} : vector<128x64xi32>
    %c2_i32_193 = arith.constant 2 : i32
    %469 = vector.broadcast %c2_i32_193 : i32 to vector<128x64xi32>
    %470 = arith.muli %469, %468 : vector<128x64xi32>
    %471 = arith.subi %467, %470 : vector<128x64xi32>
    %c0_i32_194 = arith.constant 0 : i32
    %472 = vector.broadcast %c0_i32_194 : i32 to vector<128x64xi32>
    %473 = arith.cmpi sge, %471, %472 : vector<128x64xi32>
    %c2_i32_195 = arith.constant 2 : i32
    %474 = vector.broadcast %c2_i32_195 : i32 to vector<128x64xi32>
    %475 = arith.cmpi slt, %471, %474 : vector<128x64xi32>
    %476 = arith.andi %473, %475 : vector<128x64xi1>
    %477 = arith.extui %476 : vector<128x64xi1> to vector<128x64xi32>
    %478 = arith.sitofp %477 : vector<128x64xi32> to vector<128x64xf32>
    %cst_196 = arith.constant dense<0.000000e+00> : vector<128x64xf32>
    %479 = tpu.matmul %478, %466, %cst_196 {dimension_numbers = #tpu.dot_dimension_numbers<[1], [0], [0], [1], [0, 0, 1, 1], [], []>} : vector<128x64xf32>, vector<64x64xf32>, vector<128x64xf32> -> vector<128x64xf32>
    %480 = arith.truncf %408 : vector<128x64xf32> to vector<128x64xbf16>
    %c3360 = arith.constant 3360 : index
    %c0_197 = arith.constant 0 : index
    %481 = vector.load %arg9[%c3360, %c0_197] : memref<3616x256xbf16, #tpu.memory_space<vmem>>, vector<64x64xbf16>
    %cst_198 = arith.constant dense<0.000000e+00> : vector<128x64xf32>
    %482 = tpu.matmul %480, %481, %cst_198 {dimension_numbers = #tpu.dot_dimension_numbers<[1], [0], [0], [1], [0, 0, 1, 1], [], []>} : vector<128x64xbf16>, vector<64x64xbf16>, vector<128x64xf32> -> vector<128x64xf32>
    %483 = arith.addf %479, %482 : vector<128x64xf32>
    %c31 = arith.constant 31 : index
    %c0_199 = arith.constant 0 : index
    %484 = vector.load %arg10[%c31, %c0_199] : memref<40x256xf32, #tpu.memory_space<vmem>>, vector<1x64xf32>
    %485 = vector.broadcast %484 : vector<1x64xf32> to vector<128x64xf32>
    %486 = arith.addf %483, %485 : vector<128x64xf32>
    %cst_200 = arith.constant 0.000000e+00 : f32
    %487 = vector.broadcast %cst_200 : f32 to vector<128x64xf32>
    %488 = arith.maximumf %486, %487 : vector<128x64xf32>
    %c0_201 = arith.constant 0 : index
    %c0_202 = arith.constant 0 : index
    %c0_203 = arith.constant 0 : index
    %489 = vector.load %arg6[%c0_201, %c0_202, %c0_203] : memref<1x256x32xf32, #tpu.memory_space<vmem>>, vector<1x256x32xf32>
    %490 = vector.shape_cast %489 : vector<1x256x32xf32> to vector<256x32xf32>
    %491 = arith.truncf %488 : vector<128x64xf32> to vector<128x64xbf16>
    %c3424 = arith.constant 3424 : index
    %c0_204 = arith.constant 0 : index
    %492 = vector.load %arg9[%c3424, %c0_204] : memref<3616x256xbf16, #tpu.memory_space<vmem>>, vector<64x32xbf16>
    %cst_205 = arith.constant dense<0.000000e+00> : vector<128x32xf32>
    %493 = tpu.matmul %491, %492, %cst_205 {dimension_numbers = #tpu.dot_dimension_numbers<[1], [0], [0], [1], [0, 0, 1, 1], [], []>} : vector<128x64xbf16>, vector<64x32xbf16>, vector<128x32xf32> -> vector<128x32xf32>
    %494 = tpu.iota {dimensions = array<i32: 0>} : vector<256x128xi32>
    %495 = tpu.iota {dimensions = array<i32: 1>} : vector<256x128xi32>
    %c2_i32_206 = arith.constant 2 : i32
    %496 = vector.broadcast %c2_i32_206 : i32 to vector<256x128xi32>
    %497 = arith.muli %496, %495 : vector<256x128xi32>
    %498 = arith.subi %494, %497 : vector<256x128xi32>
    %c0_i32_207 = arith.constant 0 : i32
    %499 = vector.broadcast %c0_i32_207 : i32 to vector<256x128xi32>
    %500 = arith.cmpi sge, %498, %499 : vector<256x128xi32>
    %c2_i32_208 = arith.constant 2 : i32
    %501 = vector.broadcast %c2_i32_208 : i32 to vector<256x128xi32>
    %502 = arith.cmpi slt, %498, %501 : vector<256x128xi32>
    %503 = arith.andi %500, %502 : vector<256x128xi1>
    %504 = arith.extui %503 : vector<256x128xi1> to vector<256x128xi32>
    %505 = arith.sitofp %504 : vector<256x128xi32> to vector<256x128xf32>
    %cst_209 = arith.constant dense<0.000000e+00> : vector<256x32xf32>
    %506 = tpu.matmul %505, %493, %cst_209 {dimension_numbers = #tpu.dot_dimension_numbers<[1], [0], [0], [1], [0, 0, 1, 1], [], []>} : vector<256x128xf32>, vector<128x32xf32>, vector<256x32xf32> -> vector<256x32xf32>
    %507 = arith.truncf %490 : vector<256x32xf32> to vector<256x32xbf16>
    %c3488 = arith.constant 3488 : index
    %c0_210 = arith.constant 0 : index
    %508 = vector.load %arg9[%c3488, %c0_210] : memref<3616x256xbf16, #tpu.memory_space<vmem>>, vector<32x32xbf16>
    %cst_211 = arith.constant dense<0.000000e+00> : vector<256x32xf32>
    %509 = tpu.matmul %507, %508, %cst_211 {dimension_numbers = #tpu.dot_dimension_numbers<[1], [0], [0], [1], [0, 0, 1, 1], [], []>} : vector<256x32xbf16>, vector<32x32xbf16>, vector<256x32xf32> -> vector<256x32xf32>
    %510 = arith.addf %506, %509 : vector<256x32xf32>
    %c32 = arith.constant 32 : index
    %c0_212 = arith.constant 0 : index
    %511 = vector.load %arg10[%c32, %c0_212] : memref<40x256xf32, #tpu.memory_space<vmem>>, vector<1x32xf32>
    %512 = vector.broadcast %511 : vector<1x32xf32> to vector<256x32xf32>
    %513 = arith.addf %510, %512 : vector<256x32xf32>
    %cst_213 = arith.constant 0.000000e+00 : f32
    %514 = vector.broadcast %cst_213 : f32 to vector<256x32xf32>
    %515 = arith.maximumf %513, %514 : vector<256x32xf32>
    %c0_214 = arith.constant 0 : index
    %c0_215 = arith.constant 0 : index
    %c0_216 = arith.constant 0 : index
    %516 = vector.load %arg7[%c0_214, %c0_215, %c0_216] : memref<1x512x32xf32, #tpu.memory_space<vmem>>, vector<1x512x32xf32>
    %517 = vector.shape_cast %516 : vector<1x512x32xf32> to vector<512x32xf32>
    %518 = arith.truncf %515 : vector<256x32xf32> to vector<256x32xbf16>
    %c3520 = arith.constant 3520 : index
    %c0_217 = arith.constant 0 : index
    %519 = vector.load %arg9[%c3520, %c0_217] : memref<3616x256xbf16, #tpu.memory_space<vmem>>, vector<32x32xbf16>
    %cst_218 = arith.constant dense<0.000000e+00> : vector<256x32xf32>
    %520 = tpu.matmul %518, %519, %cst_218 {dimension_numbers = #tpu.dot_dimension_numbers<[1], [0], [0], [1], [0, 0, 1, 1], [], []>} : vector<256x32xbf16>, vector<32x32xbf16>, vector<256x32xf32> -> vector<256x32xf32>
    %521 = tpu.iota {dimensions = array<i32: 0>} : vector<512x256xi32>
    %522 = tpu.iota {dimensions = array<i32: 1>} : vector<512x256xi32>
    %c2_i32_219 = arith.constant 2 : i32
    %523 = vector.broadcast %c2_i32_219 : i32 to vector<512x256xi32>
    %524 = arith.muli %523, %522 : vector<512x256xi32>
    %525 = arith.subi %521, %524 : vector<512x256xi32>
    %c0_i32_220 = arith.constant 0 : i32
    %526 = vector.broadcast %c0_i32_220 : i32 to vector<512x256xi32>
    %527 = arith.cmpi sge, %525, %526 : vector<512x256xi32>
    %c2_i32_221 = arith.constant 2 : i32
    %528 = vector.broadcast %c2_i32_221 : i32 to vector<512x256xi32>
    %529 = arith.cmpi slt, %525, %528 : vector<512x256xi32>
    %530 = arith.andi %527, %529 : vector<512x256xi1>
    %531 = arith.extui %530 : vector<512x256xi1> to vector<512x256xi32>
    %532 = arith.sitofp %531 : vector<512x256xi32> to vector<512x256xf32>
    %cst_222 = arith.constant dense<0.000000e+00> : vector<512x32xf32>
    %533 = tpu.matmul %532, %520, %cst_222 {dimension_numbers = #tpu.dot_dimension_numbers<[1], [0], [0], [1], [0, 0, 1, 1], [], []>} : vector<512x256xf32>, vector<256x32xf32>, vector<512x32xf32> -> vector<512x32xf32>
    %534 = arith.truncf %517 : vector<512x32xf32> to vector<512x32xbf16>
    %c3552 = arith.constant 3552 : index
    %c0_223 = arith.constant 0 : index
    %535 = vector.load %arg9[%c3552, %c0_223] : memref<3616x256xbf16, #tpu.memory_space<vmem>>, vector<32x32xbf16>
    %cst_224 = arith.constant dense<0.000000e+00> : vector<512x32xf32>
    %536 = tpu.matmul %534, %535, %cst_224 {dimension_numbers = #tpu.dot_dimension_numbers<[1], [0], [0], [1], [0, 0, 1, 1], [], []>} : vector<512x32xbf16>, vector<32x32xbf16>, vector<512x32xf32> -> vector<512x32xf32>
    %537 = arith.addf %533, %536 : vector<512x32xf32>
    %c33 = arith.constant 33 : index
    %c0_225 = arith.constant 0 : index
    %538 = vector.load %arg10[%c33, %c0_225] : memref<40x256xf32, #tpu.memory_space<vmem>>, vector<1x32xf32>
    %539 = vector.broadcast %538 : vector<1x32xf32> to vector<512x32xf32>
    %540 = arith.addf %537, %539 : vector<512x32xf32>
    %cst_226 = arith.constant 0.000000e+00 : f32
    %541 = vector.broadcast %cst_226 : f32 to vector<512x32xf32>
    %542 = arith.maximumf %540, %541 : vector<512x32xf32>
    %543 = arith.truncf %542 : vector<512x32xf32> to vector<512x32xbf16>
    %c3584 = arith.constant 3584 : index
    %c0_227 = arith.constant 0 : index
    %544 = vector.load %arg9[%c3584, %c0_227] : memref<3616x256xbf16, #tpu.memory_space<vmem>>, vector<32x8xbf16>
    %cst_228 = arith.constant dense<0.000000e+00> : vector<512x8xf32>
    %545 = tpu.matmul %543, %544, %cst_228 {dimension_numbers = #tpu.dot_dimension_numbers<[1], [0], [0], [1], [0, 0, 1, 1], [], []>} : vector<512x32xbf16>, vector<32x8xbf16>, vector<512x8xf32> -> vector<512x8xf32>
    %c34 = arith.constant 34 : index
    %c0_229 = arith.constant 0 : index
    %546 = vector.load %arg10[%c34, %c0_229] : memref<40x256xf32, #tpu.memory_space<vmem>>, vector<1x8xf32>
    %547 = vector.broadcast %546 : vector<1x8xf32> to vector<512x8xf32>
    %548 = arith.addf %545, %547 : vector<512x8xf32>
    %549 = tpu.iota {dimensions = array<i32: 1>} : vector<512x8xi32>
    %c2_i32_230 = arith.constant 2 : i32
    %550 = vector.broadcast %c2_i32_230 : i32 to vector<512x8xi32>
    %551 = arith.cmpi slt, %549, %550 : vector<512x8xi32>
    %cst_231 = arith.constant -1.000000e+30 : f32
    %552 = vector.broadcast %cst_231 : f32 to vector<512x8xf32>
    %553 = arith.select %551, %548, %552 : vector<512x8xi1>, vector<512x8xf32>
    %cst_232 = arith.constant dense<0xFF800000> : vector<512xf32>
    %554 = vector.multi_reduction <maximumf>, %553, %cst_232 [1] : vector<512x8xf32> to vector<512xf32>
    %555 = vector.shape_cast %554 : vector<512xf32> to vector<512x1xf32>
    %556 = vector.broadcast %555 : vector<512x1xf32> to vector<512x8xf32>
    %557 = arith.subf %548, %556 : vector<512x8xf32>
    %558 = math.exp %557 : vector<512x8xf32>
    %cst_233 = arith.constant 0.000000e+00 : f32
    %559 = vector.broadcast %cst_233 : f32 to vector<512x8xf32>
    %560 = arith.select %551, %558, %559 : vector<512x8xi1>, vector<512x8xf32>
    %cst_234 = arith.constant dense<0.000000e+00> : vector<512xf32>
    %561 = vector.multi_reduction <add>, %560, %cst_234 [1] : vector<512x8xf32> to vector<512xf32>
    %562 = vector.shape_cast %561 : vector<512xf32> to vector<512x1xf32>
    %563 = math.log %562 : vector<512x1xf32>
    %564 = arith.addf %555, %563 : vector<512x1xf32>
    %565 = vector.broadcast %564 : vector<512x1xf32> to vector<512x8xf32>
    %566 = arith.subf %548, %565 : vector<512x8xf32>
    %567 = arith.select %551, %566, %548 : vector<512x8xi1>, vector<512x8xf32>
    %c0_235 = arith.constant 0 : index
    %c0_236 = arith.constant 0 : index
    %c0_237 = arith.constant 0 : index
    %568 = vector.load %arg11[%c0_235, %c0_236, %c0_237] : memref<1x512x8xf32, #tpu.memory_space<vmem>>, vector<1x512x8xf32>
    %569 = vector.shape_cast %568 : vector<1x512x8xf32> to vector<512x8xf32>
    %570 = vector.shape_cast %567 : vector<512x8xf32> to vector<1x512x8xf32>
    tpu.vector_store %arg11[%c0_235, %c0_236, %c0_237], %570 {strides = array<i32>} : memref<1x512x8xf32, #tpu.memory_space<vmem>>, vector<1x512x8xf32>,
    return
  }
  func.func @transform_0(%arg0: i32) -> (i32, i32, i32) {
    %c0_i32 = arith.constant 0 : i32
    %c0_i32_0 = arith.constant 0 : i32
    %c0_i32_1 = arith.constant 0 : i32
    return %arg0, %c0_i32, %c0_i32_0 : i32, i32, i32
  }
  func.func @transform_1(%arg0: i32) -> (i32, i32, i32) {
    %c0_i32 = arith.constant 0 : i32
    %c0_i32_0 = arith.constant 0 : i32
    %c0_i32_1 = arith.constant 0 : i32
    return %arg0, %c0_i32, %c0_i32_0 : i32, i32, i32
  }
  func.func @transform_2(%arg0: i32) -> (i32, i32, i32) {
    %c0_i32 = arith.constant 0 : i32
    %c0_i32_0 = arith.constant 0 : i32
    %c0_i32_1 = arith.constant 0 : i32
    return %arg0, %c0_i32, %c0_i32_0 : i32, i32, i32
  }
  func.func @transform_3(%arg0: i32) -> (i32, i32, i32) {
    %c0_i32 = arith.constant 0 : i32
    %c0_i32_0 = arith.constant 0 : i32
    %c0_i32_1 = arith.constant 0 : i32
    return %arg0, %c0_i32, %c0_i32_0 : i32, i32, i32
  }
  func.func @transform_4(%arg0: i32) -> (i32, i32, i32) {
    %c0_i32 = arith.constant 0 : i32
    %c0_i32_0 = arith.constant 0 : i32
    %c0_i32_1 = arith.constant 0 : i32
    return %arg0, %c0_i32, %c0_i32_0 : i32, i32, i32
  }
  func.func @transform_5(%arg0: i32) -> (i32, i32, i32) {
    %c0_i32 = arith.constant 0 : i32
    %c0_i32_0 = arith.constant 0 : i32
    %c0_i32_1 = arith.constant 0 : i32
    return %arg0, %c0_i32, %c0_i32_0 : i32, i32, i32
  }
  func.func @transform_6(%arg0: i32) -> (i32, i32, i32) {
    %c0_i32 = arith.constant 0 : i32
    %c0_i32_0 = arith.constant 0 : i32
    %c0_i32_1 = arith.constant 0 : i32
    return %arg0, %c0_i32, %c0_i32_0 : i32, i32, i32
  }
  func.func @transform_7(%arg0: i32) -> (i32, i32, i32) {
    %c0_i32 = arith.constant 0 : i32
    %c0_i32_0 = arith.constant 0 : i32
    %c0_i32_1 = arith.constant 0 : i32
    return %arg0, %c0_i32, %c0_i32_0 : i32, i32, i32
  }
  func.func @transform_8(%arg0: i32) -> (i32, i32) {
    %c0_i32 = arith.constant 0 : i32
    %c0_i32_0 = arith.constant 0 : i32
    %c0_i32_1 = arith.constant 0 : i32
    return %c0_i32, %c0_i32_0 : i32, i32
  }
  func.func @transform_9(%arg0: i32) -> (i32, i32) {
    %c0_i32 = arith.constant 0 : i32
    %c0_i32_0 = arith.constant 0 : i32
    %c0_i32_1 = arith.constant 0 : i32
    return %c0_i32, %c0_i32_0 : i32, i32
  }
  func.func @transform_10(%arg0: i32) -> (i32, i32, i32) {
    %c0_i32 = arith.constant 0 : i32
    %c0_i32_0 = arith.constant 0 : i32
    %c0_i32_1 = arith.constant 0 : i32
    return %arg0, %c0_i32, %c0_i32_0 : i32, i32, i32
  }
}

</mosaic_0001>

<bundles_post_ra>
// kernel: lan_guide_med_seg_forward.1
= control target key start
LH: loop header
LB: loop body
LE: loop exit
PB: predicated region body
PF: predicated region fallthrough
CT: control target
= control target key end

     0   :  { %s17355_s0 = inlined_call_operand.hbm [shape: f32[2,8,256], index: 0, kind: input, shape index: {}]   ;;  %s17356_s1 = inlined_call_operand.hbm [shape: f32[2,16,128], index: 1, kind: input, shape index: {}]   ;;  %s17357_s2 = inlined_call_operand.hbm [shape: f32[2,32,128], index: 2, kind: input, shape index: {}]   ;;  %s17358_s3 = inlined_call_operand.hbm [shape: f32[2,64,64], index: 3, kind: input, shape index: {}]   ;;  %s17359_s4 = inlined_call_operand.vmem [shape: f32[2,128,64], index: 4, kind: input, shape index: {}]   ;;  %s17360_s5 = inlined_call_operand.vmem [shape: f32[2,256,32], index: 5, kind: input, shape index: {}]   ;;  %s17361_s6 = inlined_call_operand.vmem [shape: f32[2,512,32], index: 6, kind: input, shape index: {}]   ;;  %s17362_s7 = inlined_call_operand.vmem [shape: f32[2,12,32], index: 7, kind: input, shape index: {}]   ;;  %s17363_s8 = inlined_call_operand.hbm [shape: bf16[3616,256], index: 8, kind: input, shape index: {}]   ;;  %s17364_s9 = inlined_call_operand.hbm [shape: f32[40,256], index: 9, kind: input, shape index: {}]   ;;  %s17365_s10 = inlined_call_operand.vmem [shape: f32[2,512,8], index: 10, kind: output, shape index: {}]  }
   0x1   :  { %17603 = sst [smem:[#allocation86_spill]] %s17356_s1 }
   0x2   :  { %17604 = sst [smem:[#allocation87_spill]] %s17360_s5 }
   0x3   :  { %17605 = sst [smem:[#allocation88_spill]] %s17361_s6 }
   0x4   :  { %17606 = sst [smem:[#allocation89_spill]] %s17363_s8 }
   0x5   :  { %17607 = sst [smem:[#allocation90_spill]] %s17365_s10 }
   0x6   :  { %15 = vsyncpa [#allocation3], 0 }
   0x7   :  { %17 = vsyncpa [#allocation3 + $0x1], 0 }
   0x8   :  { %18 = vsyncpa [#allocation5], 0 }
   0x9   :  { %20 = vsyncpa [#allocation5 + $0x1], 0 }
   0xa   :  { %21 = vsyncpa [#allocation8], 0 }
   0xb   :  { %23 = vsyncpa [#allocation8 + $0x1], 0 }
   0xc   :  { %24 = vsyncpa [#allocation11], 0  ;;  %s13668_s13 = smov 0   ;;  %s13670_s14 = smov 0  }
   0xd   :  { %s13672_s15 = smov 0   ;;  %s13674_s16 = smov 0  }
   0xe LB: > { %17608 = sst [smem:[#allocation17_spill]] %s13592_s15  ;;  %s13687_s17 = sadd.s32 4294967295, %s13596_s16   ;;  %s13596_s16 = sphi %s13674_s16, %s18310_s16   ;;  %s13592_s15 = sphi %s13672_s15, %s18312_s15   ;;  %s13588_s14 = sphi %s13670_s14, %s18314_s14   ;;  %s13584_s13 = sphi %s13668_s13, %s18313_s13  }
   0xf   : > { %s13690_s18 = sadd.s32 1, %s13596_s16   ;;  %s37_s20 = sadd.s32 1, %s13592_s15 }
  0x10   : > { %17609 = sst [smem:[#allocation18_spill]] %s13690_s18  ;;  %s34_s19 = ssub.s32 %s13596_s16, %s13690_s18 }
  0x11   : > { %p35_p0 = scmp.eq.s32.totalorder %s34_s19, 0  ;;  %p44_p1 = scmp.ne.s32.totalorder %s13592_s15, %s13588_s14 }
  0x12   : > { %p45_p2 = scmp.eq.s32.totalorder %s13596_s16, 0  ;;  %p50_p3 = scmp.ne.s32.totalorder %s13588_s14, %s13584_s13 }
  0x13   : > { %s13700_s21 = scalar_select %p35_p0, %s13592_s15, %s37_s20  }
  0x14   : > { %p13702_p4 = por %p45_p2, %p44_p1  ;;  %p17366_p5 = scmp.eq.s32.totalorder %s13687_s17, 0 }
  0x15   : > { %17610 = sst [smem:[#allocation19_spill]] %s13700_s21  ;;  %p10387_p6 = scmp.ge.s32.totalorder %s13596_s16, 1 }
  0x16   : > { %s17611_s22 = scalar_select %p13702_p4, 1, 0 }
  0x17   : > { %p311_p7 = scmp.lt.s32.totalorder %s13596_s16, 3  ;;  %p13711_p8 = por %p17366_p5, %p50_p3 }
  0x18   : > { %s13598_s25 = smov [#allocation9]   ;;  %s13729_s28 = sand.u32 1, %s13592_s15  }
  0x19   : > { %s17612_s23 = scalar_select %p13711_p8, 1, 0 }
  0x1a   : > { %p13715_p9 = pnand %p10387_p6, %p311_p7  ;;  %s323_s26 = sshll.u32 %s13598_s25, 4  ;;  %s324_s26 = int_to_ptr.vmem [resolvable:$true] %s323_s26 }
  0x1b   : > { %s17374_s29 = sshll.u32 %s13596_s16, 8  ;;  %s17615_s8 = sld [smem:[#allocation89_spill]] }
  0x1c   : > { %s17613_s24 = scalar_select %p13715_p9, 1, 0 }
  0x1d   : > { %p12590_p10 = pneg %p13715_p9 }
  0x1f   : > { %p13723_p11 = pnand %p12590_p10, %p17366_p5 }
  0x21   : > { %s17614_s27 = scalar_select %p13723_p11, 1, 0 }
  0x22   : > { %s13370_s13 = scalar_lea.hbm %s17615_s8, 57856  ;;  %p17376_p0 = pneg %p13723_p11 }
  0x23   : > { %p13371_p13 = scmp.ne.s32.totalorder %s17615_s8, %s13370_s13  ;;  %p13377_p3 = scmp.lt.u32.totalorder %s13370_s13, %s17615_s8 }
  0x25   : > { %p13373_p1 = pnand %p17376_p0, %p13371_p13 }
  0x27   : > { %p13374_p2 = pneg %p13373_p1 }
  0x29   : > { %p13379_p6 = pnand %p13377_p3, %p13374_p2 }
  0x2b   : > { %13382 = shalt.err (!%p13379_p6)
}
  0x2c   : > { %s13383_s30 = scalar_lea.vmem %s324_s26, 57856  ;;  %p13391_p12 = scmp.lt.s32.totalorder %s324_s26, %s324_s26 }
  0x2d   : > { %p13384_p7 = scmp.ne.s32.totalorder %s324_s26, %s13383_s30  ;;  %p13392_p8 = scmp.lt.s32.totalorder %s13383_s30, %s13383_s30 }
  0x2f   : > { %p13386_p10 = pnand %p13384_p7, %p17376_p0  ;;  %p13393_p9 = por %p13392_p8, %p13391_p12 }
  0x31   : > { %p13387_p5 = pneg %p13386_p10 }
  0x33   : > { %p13394_p4 = pnand %p13393_p9, %p13387_p5 }
  0x35   : > { %13397 = shalt.err (!%p13394_p4)
}
  0x36   : > { %s17372_s11 = smov 128   ;;  %s17383_s21 = smov 8  }
  0x37   : > { %12593 = dma.hbm_to_vmem [thread:$0]  (!%p13723_p11), %s17615_s8, 57856, %s324_s26, [#allocation8], %s17372_s11, %s17372_s11, %s17383_s21  }
  0x38   : > { %p17616_p8 = scmp.ne.s32.totalorder %s17611_s22, 0  ;;  %p17617_p5 = scmp.lt.s32.totalorder %s13596_s16, 2 }
  0x39   : > { %s17375_s19 = sand.u32 1, %s13596_s16   ;;  %s17619_s1 = sld [smem:[#allocation86_spill]] }
  0x3a   : > { %p13762_p4 = pnand %p17617_p5, %p17616_p8  ;;  %s17620_s18 = sshll.u32 %s13729_s28, 4 }
  0x3b   : > { %s373_s26 = scalar_lea.vmem [#allocation4], %s17620_s18  ;;  %s13780_s12 = scalar_lea.sflag [#allocation5], %s17375_s19 }
  0x3c   : > { %s17618_s30 = scalar_select %p13762_p4, 1, 0 }
  0x3d   : > { %s380_s22 = sshll.u32 %s373_s26, 4  ;;  %p13786_p12 = pneg %p13762_p4  ;;  %s13776_s22 = int_to_ptr.vmem [resolvable:$true] %s380_s22 }
  0x3f   : > { %s13772_s15 = scalar_lea.hbm %s17619_s1, %s17374_s29  ;;  %s13403_s18 = scalar_lea.hbm %s17619_s1, 512 }
  0x40   : > { %s13398_s13 = scalar_lea.hbm %s13772_s15, 256  ;;  %p13404_p2 = scmp.lt.u32.totalorder %s13772_s15, %s17619_s1 }
  0x41   : > { %p13399_p9 = scmp.ne.s32.totalorder %s13772_s15, %s13398_s13  ;;  %p13405_p3 = scmp.lt.u32.totalorder %s13403_s18, %s13398_s13 }
  0x42   : > { %s17621_s11 = scalar_select %p13786_p12, 1, 0 }
  0x43   : > { %p13401_p13 = pnand %p13786_p12, %p13399_p9  ;;  %p13406_p6 = por %p13405_p3, %p13404_p2 }
  0x44   : > { %p13407_p7 = scmp.lt.u32.totalorder %s13398_s13, %s13772_s15 }
  0x45   : > { %p13402_p1 = pneg %p13401_p13 }
  0x46   : > { %p13408_p10 = por %p13407_p7, %p13406_p6 }
  0x48   : > { %p13409_p8 = pnand %p13408_p10, %p13402_p1 }
  0x4a   : > { %13412 = shalt.err (!%p13409_p8)
}
  0x4b   : > { %s13413_s19 = scalar_lea.vmem %s13776_s22, 256  ;;  %s13601_s20 = smov [#allocation4]  }
  0x4c   : > { %p13414_p5 = scmp.ne.s32.totalorder %s13776_s22, %s13413_s19  ;;  %s13418_s25 = sshll.u32 %s13601_s20, 4  ;;  %s13419_s25 = int_to_ptr.vmem [resolvable:$false] %s13418_s25 }
  0x4d   : > { %s13420_s29 = scalar_lea.vmem %s13419_s25, 512  ;;  %p13421_p0 = scmp.lt.s32.totalorder %s13776_s22, %s13419_s25 }
  0x4e   : > { %p13416_p9 = pnand %p13414_p5, %p13786_p12  ;;  %p13422_p11 = scmp.lt.s32.totalorder %s13420_s29, %s13413_s19 }
  0x50   : > { %p13417_p13 = pneg %p13416_p9  ;;  %p13423_p2 = por %p13422_p11, %p13421_p0 }
  0x52   : > { %p13424_p3 = pnand %p13423_p2, %p13417_p13 }
  0x54   : > { %13427 = shalt.err (!%p13424_p3)
}
  0x55   : > { %s17622_s13 = smov 128   ;;  %s13602_s18 = smov [#allocation10]  }
  0x56   : > { %12603 = dma.hbm_to_vmem [thread:$0]  (!%p13762_p4), %s13772_s15, 256, %s13776_s22, %s13780_s12, %s17622_s13, %s17622_s13, %s17383_s21  }
  0x57   : > { %s336_s26 = sshll.u32 %s13602_s18, 4  ;;  %s13428_s19 = scalar_lea.hbm %s17364_s9, 1280  ;;  %s337_s26 = int_to_ptr.vmem [resolvable:$true] %s336_s26 }
  0x58   : > { %p13429_p11 = scmp.ne.s32.totalorder %s17364_s9, %s13428_s19  ;;  %p17623_p0 = scmp.ne.s32.totalorder %s17614_s27, 0 }
  0x59   : > { %p13435_p10 = scmp.lt.u32.totalorder %s13428_s19, %s17364_s9 }
  0x5a   : > { %p17624_p1 = pneg %p17623_p0 }
  0x5c   : > { %p13431_p6 = pnand %p13429_p11, %p17624_p1 }
  0x5e   : > { %p13432_p7 = pneg %p13431_p6 }
  0x60   : > { %p13437_p8 = pnand %p13435_p10, %p13432_p7 }
  0x62   : > { %13440 = shalt.err (!%p13437_p8)
}
  0x63   : > { %s13441_s15 = scalar_lea.vmem %s337_s26, 1280  ;;  %p17625_p9 = pmov %p17624_p1 }
  0x64   : > { %p13442_p5 = scmp.ne.s32.totalorder %s337_s26, %s13441_s15  ;;  %p13449_p3 = scmp.lt.s32.totalorder %s337_s26, %s337_s26 }
  0x65   : > { %p13450_p4 = scmp.lt.s32.totalorder %s13441_s15, %s13441_s15 }
  0x66   : > { %p13444_p13 = pnand %p13442_p5, %p17625_p9 }
  0x67   : > { %p13451_p12 = por %p13450_p4, %p13449_p3 }
  0x68   : > { %p13445_p2 = pneg %p13444_p13 }
  0x6a   : > { %p13452_p1 = pnand %p13451_p12, %p13445_p2 }
  0x6c   : > { %13455 = shalt.err (!%p13452_p1)
}
  0x6d   : > { %s13603_s1 = smov 256   ;;  %s13604_s8 = smov 16  }
  0x6e   : > { %12596 = dma.hbm_to_vmem [thread:$0]  (!%p17623_p0), %s17364_s9, 1280, %s337_s26, [#allocation11], %s13603_s1, %s13603_s1, %s13604_s8  }
  0x6f   : > { %s17626_s18 = sshll.u32 %s13596_s16, 8  ;;  %s17627_s29 = sshll.u32 %s13729_s28, 4 }
  0x70   : > { %s13838_s25 = scalar_lea.hbm %s17355_s0, %s17626_s18  ;;  %s354_s15 = scalar_lea.vmem [#allocation2], %s17627_s29 }
  0x71   : > { %s362_s21 = sshll.u32 %s354_s15, 4  ;;  %s10397_s27 = sshll.u32 %s13729_s28, 5  ;;  %s13842_s21 = int_to_ptr.vmem [resolvable:$true] %s362_s21 }
  0x72   : > { %s351_s6 = scalar_lea.sflag [#allocation3], %s13729_s28  ;;  %s13456_s5 = scalar_lea.hbm %s13838_s25, 256 }
  0x73   : > { %p13457_p4 = scmp.ne.s32.totalorder %s13838_s25, %s13456_s5  ;;  %p17628_p12 = scmp.ne.s32.totalorder %s17621_s11, 0 }
  0x74   : > { %s13461_s8 = scalar_lea.hbm %s17355_s0, 512  ;;  %p13462_p6 = scmp.lt.u32.totalorder %s13838_s25, %s17355_s0 }
  0x75   : > { %p13459_p11 = pnand %p13457_p4, %p17628_p12  ;;  %p13463_p7 = scmp.lt.u32.totalorder %s13461_s8, %s13456_s5 }
  0x76   : > { %p13465_p8 = scmp.lt.u32.totalorder %s13456_s5, %s13838_s25 }
  0x77   : > { %p13460_p0 = pneg %p13459_p11  ;;  %p13464_p10 = por %p13463_p7, %p13462_p6 }
  0x79   : > { %p13466_p5 = por %p13465_p8, %p13464_p10 }
  0x7b   : > { %p13467_p9 = pnand %p13466_p5, %p13460_p0 }
  0x7d   : > { %13470 = shalt.err (!%p13467_p9)
}
  0x7e   : > { %s13471_s18 = scalar_lea.vmem %s13842_s21, 256  ;;  %s13605_s20 = smov [#allocation2]  }
  0x7f   : > { %p13472_p13 = scmp.ne.s32.totalorder %s13842_s21, %s13471_s18  ;;  %s13476_s19 = sshll.u32 %s13605_s20, 4  ;;  %s13477_s19 = int_to_ptr.vmem [resolvable:$false] %s13476_s19 }
  0x80   : > { %s13478_s29 = scalar_lea.vmem %s13477_s19, 512  ;;  %p13479_p1 = scmp.lt.s32.totalorder %s13842_s21, %s13477_s19 }
  0x81   : > { %p13474_p2 = pnand %p13472_p13, %p17628_p12  ;;  %p13480_p4 = scmp.lt.s32.totalorder %s13478_s29, %s13471_s18 }
  0x83   : > { %p13475_p3 = pneg %p13474_p2  ;;  %p13481_p11 = por %p13480_p4, %p13479_p1 }
  0x85   : > { %p13482_p6 = pnand %p13481_p11, %p13475_p3 }
  0x87   : > { %13485 = shalt.err (!%p13482_p6)
}
  0x88   : > { %p17629_p0 = scmp.ne.s32.totalorder %s17618_s30, 0  ;;  %s11183_s5 = sshll.u32 %s13596_s16, 9 }
  0x89   : > { %s13871_s1 = scalar_lea.hbm %s17357_s2, %s11183_s5  ;;  %s394_s8 = scalar_lea.vmem [#allocation6], %s10397_s27 }
  0x8a   : > { %12600 = dma.hbm_to_vmem [thread:$0]  (!%p17629_p0), %s13838_s25, 256, %s13842_s21, %s351_s6  }
  0x8b   : > { %s401_s10 = sshll.u32 %s394_s8, 4  ;;  %s10400_s22 = sshll.u32 %s13729_s28, 6  ;;  %s13875_s10 = int_to_ptr.vmem [resolvable:$true] %s401_s10 }
  0x8c   : > { %s13486_s18 = scalar_lea.hbm %s13871_s1, 512  ;;  %s13491_s25 = scalar_lea.hbm %s17357_s2, 1024 }
  0x8d   : > { %p13487_p7 = scmp.ne.s32.totalorder %s13871_s1, %s13486_s18  ;;  %p13492_p5 = scmp.lt.u32.totalorder %s13871_s1, %s17357_s2 }
  0x8e   : > { %p13493_p9 = scmp.lt.u32.totalorder %s13491_s25, %s13486_s18  ;;  %p13495_p2 = scmp.lt.u32.totalorder %s13486_s18, %s13871_s1 }
  0x8f   : > { %p13489_p10 = pnand %p13487_p7, %p17628_p12 }
  0x90   : > { %p13494_p13 = por %p13493_p9, %p13492_p5 }
  0x91   : > { %p13490_p8 = pneg %p13489_p10 }
  0x92   : > { %p13496_p3 = por %p13495_p2, %p13494_p13 }
  0x94   : > { %p13497_p1 = pnand %p13496_p3, %p13490_p8 }
  0x96   : > { %13500 = shalt.err (!%p13497_p1)
}
  0x97   : > { %s13501_s27 = scalar_lea.vmem %s13875_s10, 512  ;;  %s13606_s29 = smov [#allocation6]  }
  0x98   : > { %p13502_p4 = scmp.ne.s32.totalorder %s13875_s10, %s13501_s27  ;;  %s13506_s5 = sshll.u32 %s13606_s29, 4  ;;  %s13507_s5 = int_to_ptr.vmem [resolvable:$false] %s13506_s5 }
  0x99   : > { %s13508_s15 = scalar_lea.vmem %s13507_s5, 1024  ;;  %p13509_p7 = scmp.lt.s32.totalorder %s13875_s10, %s13507_s5 }
  0x9a   : > { %p13504_p11 = pnand %p13502_p4, %p17628_p12  ;;  %p13510_p10 = scmp.lt.s32.totalorder %s13508_s15, %s13501_s27 }
  0x9c   : > { %p13505_p6 = pneg %p13504_p11  ;;  %p13511_p5 = por %p13510_p10, %p13509_p7 }
  0x9e   : > { %p13512_p9 = pnand %p13511_p5, %p13505_p6 }
  0xa0   : > { %13515 = shalt.err (!%p13512_p9)
}
  0xa1   : > { %s17630_s26 = smov 8   ;;  %s11184_s8 = sshll.u32 %s13596_s16, 10 }
  0xa2   : > { %12606 = dma.hbm_to_vmem [thread:$0]  (!%p17629_p0), %s13871_s1, 512, %s13875_s10, %s13780_s12, %s17622_s13, %s17622_s13, %s17630_s26  }
  0xa3   : > { %s13907_s21 = scalar_lea.hbm %s17358_s3, %s11184_s8  ;;  %s415_s25 = scalar_lea.vmem [#allocation7], %s10400_s22 }
  0xa4   : > { %s422_s20 = sshll.u32 %s415_s25, 4  ;;  %s17631_s19 = sand.u32 1, %s13596_s16   ;;  %s13911_s20 = int_to_ptr.vmem [resolvable:$true] %s422_s20 }
  0xa5   : > { %s13915_s27 = scalar_lea.sflag [#allocation8], %s17631_s19  ;;  %s13516_s29 = scalar_lea.hbm %s13907_s21, 1024 }
  0xa6   : > { %p13517_p8 = scmp.ne.s32.totalorder %s13907_s21, %s13516_s29  ;;  %s13521_s28 = scalar_lea.hbm %s17358_s3, 2048 }
  0xa7   : > { %p13522_p3 = scmp.lt.u32.totalorder %s13907_s21, %s17358_s3  ;;  %p13523_p1 = scmp.lt.u32.totalorder %s13521_s28, %s13516_s29 }
  0xa8   : > { %p13519_p13 = pnand %p13517_p8, %p17628_p12  ;;  %p13525_p11 = scmp.lt.u32.totalorder %s13516_s29, %s13907_s21 }
  0xa9   : > { %p13524_p4 = por %p13523_p1, %p13522_p3 }
  0xaa   : > { %p13520_p2 = pneg %p13519_p13 }
  0xab   : > { %p13526_p6 = por %p13525_p11, %p13524_p4 }
  0xad   : > { %p13527_p7 = pnand %p13526_p6, %p13520_p2 }
  0xaf   : > { %13530 = shalt.err (!%p13527_p7)
}
  0xb0   : > { %s13531_s16 = scalar_lea.vmem %s13911_s20, 1024  ;;  %s13607_s22 = smov [#allocation7]  }
  0xb1   : > { %p13532_p10 = scmp.ne.s32.totalorder %s13911_s20, %s13531_s16  ;;  %s13536_s15 = sshll.u32 %s13607_s22, 4  ;;  %s13537_s15 = int_to_ptr.vmem [resolvable:$false] %s13536_s15 }
  0xb2   : > { %s13538_s8 = scalar_lea.vmem %s13537_s15, 2048  ;;  %p13539_p8 = scmp.lt.s32.totalorder %s13911_s20, %s13537_s15 }
  0xb3   : > { %p13534_p5 = pnand %p13532_p10, %p17628_p12  ;;  %p13540_p13 = scmp.lt.s32.totalorder %s13538_s8, %s13531_s16 }
  0xb5   : > { %p13535_p9 = pneg %p13534_p5  ;;  %p13541_p3 = por %p13540_p13, %p13539_p8 }
  0xb7   : > { %p13542_p1 = pnand %p13541_p3, %p13535_p9 }
  0xb9   : > { %13545 = shalt.err (!%p13542_p1)
}
  0xba   : > { %12609 = dma.hbm_to_vmem [thread:$0]  (!%p17629_p0), %s13907_s21, 1024, %s13911_s20, %s13915_s27, %s17622_s13, %s17622_s13, %s17630_s26  }
  0xbb   : > { %p17632_p12 = scmp.ne.s32.totalorder %s17613_s24, 0 }
  0xbd   : > { %466 = sbr.rel (%p17632_p12) target bundleno = 11738 (0x2dda), region = 60 }
  0xc4   : > { %s468_s11 = sand.u32 1, %s13588_s14   ;;  %p17633_p2 = scmp.ne.s32.totalorder %s17612_s23, 0 }
  0xc5   : > { %s10404_s18 = sshll.u32 %s468_s11, 4  ;;  %s469_s6 = scalar_lea.sflag [#allocation3], %s468_s11 }
  0xc6   : > { %s13945_s25 = scalar_lea.vmem [#allocation2], %s10404_s18 }
  0xc7   : > { %13563 = dma.done.wait (%p17633_p2), %s469_s6, 256  }
  0xc8   : > { %13565 = vsyncadd (%p17633_p2), %s469_s6, 4294967040  ;;  %s477_s30 = sand.u32 1, %s13687_s17   ;;  %s13952_s13 = scalar_lea.vmem [#allocation4], %s10404_s18 }
  0xc9   : > { %s478_s19 = scalar_lea.sflag [#allocation5], %s477_s30 }
  0xca   : > { %13567 = dma.done.wait (%p17633_p2), %s478_s19, 768  }
  0xcb   : > { %13569 = vsyncadd (%p17633_p2), %s478_s19, 4294966528  ;;  %s10406_s24 = sshll.u32 %s468_s11, 5  ;;  %s10407_s26 = sshll.u32 %s468_s11, 6 }
  0xcc   : > { %s13958_s21 = scalar_lea.vmem [#allocation6], %s10406_s24  ;;  %s496_s20 = scalar_lea.sflag [#allocation8], %s477_s30 }
  0xcd   : > { %s13960_s27 = scalar_lea.vmem [#allocation7], %s10407_s26 }
  0xce   : > { %13571 = dma.done.wait (%p17633_p2), %s496_s20, 1024  }
  0xcf   : > { %13573 = vsyncadd (%p17633_p2), %s496_s20, 4294966272  ;;  %p17634_p0 = scmp.eq.s32.totalorder %s13687_s17, 0 }
  0xd1   : > { %13575 = dma.done.wait (%p17634_p0), [#allocation8], 57856   ;;  %p17635_p4 = pmov %p17634_p0 }
  0xd2   : > { %p17636_p11 = pmov %p17634_p0 }
  0xd3   : > { %13577 = vsyncadd (%p17635_p4), [#allocation8], 4294909440 }
  0xd4   : > { %13579 = dma.done.wait (%p17636_p11), [#allocation11], 1280   ;;  %p17637_p6 = pmov %p17634_p0 }
  0xd5   : > { %p579_p7 = scmp.lt.s32.totalorder %s13687_s17, 1  ;;  %v17386_v0 = vmov 0.0   ;;  %vm13609_vm0 = vmmov 0   ;;  %vm613_vm1 = vcmask 1045504   ;;  %v608_v4 = vld [vmem:[#allocation9] sm:$0x3] }
  0xd6   : > { %13581 = vsyncadd (%p17637_p6), [#allocation11], 4294966016  ;;  %11624 = vmatprep.subr.bf16.mxu0 %v17386_v0  ;;  %11626 = vmatprep.mubr.msk.bf16.mxu0 %vm13609_vm0, %v17386_v0  ;;  %vm609_vm2 = vcmask 97280   ;;  %v12658_v6 = vld [vmem:[#allocation9 + $0xc] ss:$8 sps:$4 sm:$0xff]   ;;  %v13610_v10 = vmov 0  }
  0xd7   : > { %s18316_s17 = smov (!%p579_p7, %s13687_s17), 1  ;;  %v12660_v7 = vld [vmem:[#allocation9 + $0x8] ss:$8 sps:$4 sm:$0xff]   ;;  %v12661_v8 = vld [vmem:[#allocation9 + $0x1c] ss:$8 sps:$4 sm:$0xff]   ;;  %707 = vmatprep.subr.bf16.mxu1 %v12658_v6  ;;  %739 = vmatprep.mubr.bf16.mxu1 %v13610_v10  ;;  %vm17393_vm3 = vcmask 261120  }
  0xd8   : > { %s11188_s23 = sshll.u32 %s18316_s17, 4  ;;  %v12663_v9 = vld [vmem:[#allocation9 + $0x18] ss:$8 sps:$4 sm:$0xff]   ;;  %708 = vmatpush1.bf16.msra.mxu1 %v12660_v7  ;;  %v12664_v11 = vld [vmem:[#allocation9 + $0x128] ss:$8 sps:$4 sm:$0xff]   ;;  %vm17394_vm9 = vcmask 523264  }
  0xd9   : > { %s598_s1 = scalar_lea.vmem %s17362_s7, %s11188_s23  ;;  %709 = vmatprep.subr.bf16.mxu1 %v12661_v8  ;;  %v12666_v12 = vld [vmem:[#allocation9 + $0x12c] ss:$8 sps:$4 sm:$0xff]   ;;  %v12672_v14 = vld [vmem:[#allocation9 + $0x13c] ss:$8 sps:$4 sm:$0xff]   ;;  %v12670_v15 = vld [vmem:[#allocation9 + $0x138] ss:$8 sps:$4 sm:$0xff]  }
  0xda   : > { %v605_v1 = vld [vmem:[%s598_s1] sm:$0xff]  ;;  %v606_v2 = vld [vmem:[%s598_s1 + $0x8] sm:$0xf]  ;;  %v12669_v13 = vld [vmem:[#allocation9 + $0x22c] ss:$8 sps:$4 sm:$0xff]   ;;  %vm2493_vm10 = vcmask 1041408  }
  0xdb   : > { %v607_v3 = vpack.c.bf16 %v606_v2, %v605_v1  ;;  %v12678_v16 = vld [vmem:[#allocation9 + $0x14c] ss:$8 sps:$4 sm:$0xff]   ;;  %v12676_v17 = vld [vmem:[#allocation9 + $0x148] ss:$8 sps:$4 sm:$0xff]   ;;  %v12684_v18 = vld [vmem:[#allocation9 + $0x15c] ss:$8 sps:$4 sm:$0xff]  }
  0xdc   : > { %710 = vmatpush1.bf16.msra.mxu1 %v12663_v9  ;;  %v12682_v19 = vld [vmem:[#allocation9 + $0x158] ss:$8 sps:$4 sm:$0xff]   ;;  %v12690_v20 = vld [vmem:[#allocation9 + $0x16c] ss:$8 sps:$4 sm:$0xff]   ;;  %v12688_v21 = vld [vmem:[#allocation9 + $0x168] ss:$8 sps:$4 sm:$0xff]  }
  0xdd   : > { %v13985_v5 = vsel %vm613_vm1, %v607_v3, 0  ;;  %1207 = vmatprep.subr.bf16.mxu1 %v12669_v13  ;;  %v12696_v22 = vld [vmem:[#allocation9 + $0x17c] ss:$8 sps:$4 sm:$0xff]   ;;  %v12694_v23 = vld [vmem:[#allocation9 + $0x178] ss:$8 sps:$4 sm:$0xff]   ;;  %vm2477_vm11 = vcmask 31744  }
  0xde   : > { %11625 = vmatpush3.bf16.msra.mxu0 %v13985_v5  ;;  %v12702_v24 = vld [vmem:[#allocation9 + $0x18c] ss:$8 sps:$4 sm:$0xff]   ;;  %v12700_v25 = vld [vmem:[#allocation9 + $0x188] ss:$8 sps:$4 sm:$0xff]   ;;  %v12708_v26 = vld [vmem:[#allocation9 + $0x19c] ss:$8 sps:$4 sm:$0xff]  }
  0xdf   : > { %961 = vmatprep.subr.bf16.mxu0 %v12666_v12  ;;  %v12706_v27 = vld [vmem:[#allocation9 + $0x198] ss:$8 sps:$4 sm:$0xff]   ;;  %v12714_v28 = vld [vmem:[#allocation9 + $0x1ac] ss:$8 sps:$4 sm:$0xff]   ;;  %v12712_v29 = vld [vmem:[#allocation9 + $0x1a8] ss:$8 sps:$4 sm:$0xff]  }
  0xe0   : > { %v12720_v30 = vld [vmem:[#allocation9 + $0x1bc] ss:$8 sps:$4 sm:$0xff]   ;;  %v12718_v31 = vld [vmem:[#allocation9 + $0x1b8] ss:$8 sps:$4 sm:$0xff]   ;;  %v12726_v32 = vld [vmem:[#allocation9 + $0x1cc] ss:$8 sps:$4 sm:$0xff]  }
  0xe1   : > { %11627 = vmatmul.mubr.msk.bf16.vlgmr.msra.gmra.mrb[0].mxu0 %vm609_vm2, %v608_v4  ;;  %v12724_v33 = vld [vmem:[#allocation9 + $0x1c8] ss:$8 sps:$4 sm:$0xff]   ;;  %v12732_v34 = vld [vmem:[#allocation9 + $0x1dc] ss:$8 sps:$4 sm:$0xff]   ;;  %v12730_v35 = vld [vmem:[#allocation9 + $0x1d8] ss:$8 sps:$4 sm:$0xff]  }
  0xe2   : > { %962 = vmatpush1.bf16.msra.mxu0 %v12664_v11  ;;  %v12738_v36 = vld [vmem:[#allocation9 + $0x1ec] ss:$8 sps:$4 sm:$0xff]   ;;  %v12736_v37 = vld [vmem:[#allocation9 + $0x1e8] ss:$8 sps:$4 sm:$0xff]   ;;  %v12744_v38 = vld [vmem:[#allocation9 + $0x1fc] ss:$8 sps:$4 sm:$0xff]  }
  0xe3   : > { %963 = vmatprep.subr.bf16.mxu0 %v12672_v14  ;;  %v12742_v39 = vld [vmem:[#allocation9 + $0x1f8] ss:$8 sps:$4 sm:$0xff]   ;;  %v12667_v53 = vld [vmem:[#allocation9 + $0x228] ss:$8 sps:$4 sm:$0xff]   ;;  %v12675_v55 = vld [vmem:[#allocation9 + $0x23c] ss:$8 sps:$4 sm:$0xff]  }
  0xe4   : > { %v12673_v56 = vld [vmem:[#allocation9 + $0x238] ss:$8 sps:$4 sm:$0xff]   ;;  %v12681_v57 = vld [vmem:[#allocation9 + $0x24c] ss:$8 sps:$4 sm:$0xff]   ;;  %v12679_v58 = vld [vmem:[#allocation9 + $0x248] ss:$8 sps:$4 sm:$0xff]  }
  0xe5   : > { %v12687_v59 = vld [vmem:[#allocation9 + $0x25c] ss:$8 sps:$4 sm:$0xff]   ;;  %v12685_v60 = vld [vmem:[#allocation9 + $0x258] ss:$8 sps:$4 sm:$0xff]   ;;  %v12693_v61 = vld [vmem:[#allocation9 + $0x26c] ss:$8 sps:$4 sm:$0xff]  }
  0xe6   : > { %964 = vmatpush1.bf16.msra.mxu0 %v12670_v15  ;;  %v12691_v62 = vld [vmem:[#allocation9 + $0x268] ss:$8 sps:$4 sm:$0xff]   ;;  %v12699_v63 = vld [vmem:[#allocation9 + $0x27c] ss:$8 sps:$4 sm:$0xff]   ;;  %v12697_v1 = vld [vmem:[#allocation9 + $0x278] ss:$8 sps:$4 sm:$0xff]  }
  0xe7   : > { %965 = vmatprep.subr.bf16.mxu0 %v12678_v16  ;;  %v12705_v2 = vld [vmem:[#allocation9 + $0x28c] ss:$8 sps:$4 sm:$0xff]   ;;  %v12703_v3 = vld [vmem:[#allocation9 + $0x288] ss:$8 sps:$4 sm:$0xff]   ;;  %v12711_v4 = vld [vmem:[#allocation9 + $0x29c] ss:$8 sps:$4 sm:$0xff]  }
  0xe8   : > { %v12709_v6 = vld [vmem:[#allocation9 + $0x298] ss:$8 sps:$4 sm:$0xff]   ;;  %v12717_v7 = vld [vmem:[#allocation9 + $0x2ac] ss:$8 sps:$4 sm:$0xff]   ;;  %v12715_v8 = vld [vmem:[#allocation9 + $0x2a8] ss:$8 sps:$4 sm:$0xff]  }
  0xe9   : > { %v12723_v9 = vld [vmem:[#allocation9 + $0x2bc] ss:$8 sps:$4 sm:$0xff]   ;;  %v12721_v11 = vld [vmem:[#allocation9 + $0x2b8] ss:$8 sps:$4 sm:$0xff]   ;;  %v12729_v12 = vld [vmem:[#allocation9 + $0x2cc] ss:$8 sps:$4 sm:$0xff]  }
  0xea   : > { %966 = vmatpush1.bf16.msra.mxu0 %v12676_v17  ;;  %v12727_v13 = vld [vmem:[#allocation9 + $0x2c8] ss:$8 sps:$4 sm:$0xff]   ;;  %v12735_v14 = vld [vmem:[#allocation9 + $0x2dc] ss:$8 sps:$4 sm:$0xff]   ;;  %v12733_v15 = vld [vmem:[#allocation9 + $0x2d8] ss:$8 sps:$4 sm:$0xff]  }
  0xeb   : > { %967 = vmatprep.subr.bf16.mxu0 %v12684_v18  ;;  %v12741_v16 = vld [vmem:[#allocation9 + $0x2ec] ss:$8 sps:$4 sm:$0xff]   ;;  %v12739_v17 = vld [vmem:[#allocation9 + $0x2e8] ss:$8 sps:$4 sm:$0xff]   ;;  %v12747_v18 = vld [vmem:[#allocation9 + $0x2fc] ss:$8 sps:$4 sm:$0xff]  }
  0xec   : > { %vm17385_vm15 = vcmask 64512   ;;  %s11185_s28 = sshll.u32 %s18316_s17, 7  ;;  %s11186_s22 = sshll.u32 %s18316_s17, 8 }
  0xed   : > { %s14562_s16 = scalar_lea.vmem %s17359_s4, %s11185_s28  ;;  %s17732_s11 = sld [smem:[#allocation87_spill]] }
  0xee   : > { %968 = vmatpush1.bf16.msra.mxu0 %v12682_v19  ;;  %v12745_v19 = vld [vmem:[#allocation9 + $0x2f8] ss:$8 sps:$4 sm:$0xff]   ;;  %s11187_s6 = sshll.u32 %s18316_s17, 9  ;;  %s17835_s19 = sld [smem:[#allocation88_spill]] }
  0xef   : > { %969 = vmatprep.subr.bf16.mxu0 %v12690_v20  ;;  %v12750_v20 = vld [vmem:[#allocation9 + $0x20c] ss:$8 sps:$4 sm:$0xff]  }
  0xf2   : > { %970 = vmatpush1.bf16.msra.mxu0 %v12688_v21  ;;  %v12753_v21 = vld [vmem:[#allocation9 + $0x30c] ss:$8 sps:$4 sm:$0xff]  }
  0xf3   : > { %971 = vmatprep.subr.bf16.mxu0 %v12696_v22  ;;  %v12748_v22 = vld [vmem:[#allocation9 + $0x208] ss:$8 sps:$4 sm:$0xff]   ;;  %s14802_s18 = scalar_lea.vmem %s17732_s11, %s11186_s22 }
  0xf6   : > { %972 = vmatpush1.bf16.msra.mxu0 %v12694_v23  ;;  %v12751_v23 = vld [vmem:[#allocation9 + $0x308] ss:$8 sps:$4 sm:$0xff]  }
  0xf7   : > { %973 = vmatprep.subr.bf16.mxu0 %v12702_v24  ;;  %v12754_v24 = vld [vmem:[#allocation9 + $0x218] ss:$8 sps:$4 sm:$0xff]  }
  0xfa   : > { %974 = vmatpush1.bf16.msra.mxu0 %v12700_v25  ;;  %v12756_v25 = vld [vmem:[#allocation9 + $0x21c] ss:$8 sps:$4 sm:$0xff]  }
  0xfb   : > { %975 = vmatprep.subr.bf16.mxu0 %v12708_v26  ;;  %v12757_v26 = vld [vmem:[#allocation9 + $0x318] ss:$8 sps:$4 sm:$0xff]  }
  0xfe   : > { %976 = vmatpush1.bf16.msra.mxu0 %v12706_v27  ;;  %v12759_v27 = vld [vmem:[#allocation9 + $0x31c] ss:$8 sps:$4 sm:$0xff]  }
  0xff   : > { %977 = vmatprep.subr.bf16.mxu0 %v12714_v28  ;;  %v673_v28 = vlaneseq }
 0x102   : > { %978 = vmatpush1.bf16.msra.mxu0 %v12712_v29  ;;  %v13994_v29 = vshrl.u32 %v673_v28, 7 }
 0x103   : > { %979 = vmatprep.subr.bf16.mxu0 %v12720_v30 }
 0x104   : > { %v13997_v30 = vsub.s32 0, %v13994_v29 }
 0x106   : > { %980 = vmatpush1.bf16.msra.mxu0 %v12718_v31  ;;  %v671_v31 = vld [vmem:[#allocation10] ss:$8 sm:$0x3] }
 0x107   : > { %981 = vmatprep.subr.bf16.mxu0 %v12726_v32  ;;  %v14000_v32 = vsub.s32 1, %v13994_v29 }
 0x10a   : > { %982 = vmatpush1.bf16.msra.mxu0 %v12724_v33  ;;  %v676_v33 = vrot.slane %v671_v31, %v13997_v30 }
 0x10b   : > { %983 = vmatprep.subr.bf16.mxu0 %v12732_v34  ;;  %v680_v34 = vrot.slane %v671_v31, %v14000_v32  ;;  %v12776_v31 = vld [vmem:[#allocation9 + $0x6c0] ss:$8 sps:$4 sm:$0xff]  }
 0x10e   : > { %984 = vmatpush1.bf16.msra.mxu0 %v12730_v35 }
 0x10f   : > { %985 = vmatprep.subr.bf16.mxu0 %v12738_v36 }
 0x112   : > { %986 = vmatpush1.bf16.msra.mxu0 %v12736_v37 }
 0x113   : > { %987 = vmatprep.subr.bf16.mxu0 %v12744_v38 }
 0x116   : > { %988 = vmatpush1.bf16.msra.mxu0 %v12742_v39 }
 0x117   : > { %989 = vmatprep.subr.bf16.mxu0 %v12750_v20 }
 0x11a   : > { %990 = vmatpush1.bf16.msra.mxu0 %v12748_v22  ;;  %v12767_v22 = vld [vmem:[#allocation9 + $0x6f0] ss:$8 sps:$4 sm:$0xff]  }
 0x11b   : > { %991 = vmatprep.subr.bf16.mxu0 %v12756_v25  ;;  %v12773_v25 = vld [vmem:[#allocation9 + $0x720] ss:$8 sps:$4 sm:$0xff]  }
 0x11e   : > { %992 = vmatpush1.bf16.msra.mxu0 %v12754_v24  ;;  %v12771_v24 = vld [vmem:[#allocation9 + $0x710] ss:$8 sps:$4 sm:$0xff]  }
 0x11f   : > { %11630 = vmatprep.subr.bf16.mxu0 %v17386_v0 }
 0x1b4   : > { %v651_v40 = vpop.f32.mrb[0].mxu0 }
 0x1b5   : > { %v657_v41 = vmul.f32 %v651_v40, %v651_v40  ;;  %v11628_v42 = vpop.f32.mrb[1].mxu0 }
 0x1b6   : > { %v654_v43 = vpop.f32.mrb[2].mxu0 }
 0x1b7   : > { %v658_v44 = vmul.f32 %v657_v41, %v651_v40  ;;  %v11629_v45 = vpop.f32.mrb[3].mxu0 }
 0x1b9   : > { %v659_v46 = vmul.f32 0.044715, %v658_v44 }
 0x1bb   : > { %v660_v47 = vadd.f32 %v659_v46, %v651_v40 }
 0x1bd   : > { %v661_v48 = vmul.f32 0.7978846, %v660_v47  ;;  %v1252_v47 = vld [vmem:[#allocation9 + $0x5a8] sm:$0x3] }
 0x1bf   : > { %13014 = vtanh.f32 %v661_v48  ;;  %v12760_v48 = vld [vmem:[#allocation9 + $0x5b0] ss:$8 sps:$4 sm:$0xff]  }
 0x1c9   : > { %v13015_v49 = vpop.eup %13014 }
 0x1ca   : > { %v663_v50 = vadd.f32 1.0, %v13015_v49  ;;  %v12761_v49 = vld [vmem:[#allocation9 + $0x5c0] ss:$8 sps:$4 sm:$0xff]  }
 0x1cc   : > { %v664_v51 = vmul.f32 0.5, %v663_v50  ;;  %v12762_v50 = vld [vmem:[#allocation9 + $0x650] ss:$8 sps:$4 sm:$0xff]  }
 0x1ce   : > { %v665_v52 = vmul.f32 %v664_v51, %v651_v40  ;;  %v12764_v51 = vld [vmem:[#allocation9 + $0x660] ss:$8 sps:$4 sm:$0xff]  }
 0x1d0   : > { %v666_v54 = vpack.c.bf16 %v665_v52, %v665_v52  ;;  %v12766_v52 = vld [vmem:[#allocation9 + $0x670] ss:$8 sps:$4 sm:$0xff]  }
 0x1d2   : > { %10425 = vmatmul.mubr.msk.bf16.vlgmr.msra.gmra.mrb[0].mxu1 %vm17393_vm3, %v666_v54  ;;  %v12770_v54 = vld [vmem:[#allocation9 + $0x690] ss:$8 sps:$4 sm:$0xff]  }
 0x1d3   : > { %1208 = vmatpush1.bf16.msra.mxu1 %v12667_v53  ;;  %v12768_v53 = vld [vmem:[#allocation9 + $0x680] ss:$8 sps:$4 sm:$0xff]  }
 0x1d4   : > { %1209 = vmatprep.subr.bf16.mxu1 %v12675_v55  ;;  %v12772_v55 = vld [vmem:[#allocation9 + $0x6a0] ss:$8 sps:$4 sm:$0xff]  }
 0x1d7   : > { %1210 = vmatpush1.bf16.msra.mxu1 %v12673_v56  ;;  %v14021_v56 = vld [vmem:[#allocation10 + $0x3] ss:$8 sm:$0x3] }
 0x1d8   : > { %1211 = vmatprep.subr.bf16.mxu1 %v12681_v57  ;;  %v1040_v57 = vrot.slane %v14021_v56, %v13997_v30 }
 0x1db   : > { %1212 = vmatpush1.bf16.msra.mxu1 %v12679_v58 }
 0x1dc   : > { %1213 = vmatprep.subr.bf16.mxu1 %v12687_v59 }
 0x1df   : > { %1214 = vmatpush1.bf16.msra.mxu1 %v12685_v60 }
 0x1e0   : > { %1215 = vmatprep.subr.bf16.mxu1 %v12693_v61 }
 0x1e3   : > { %1216 = vmatpush1.bf16.msra.mxu1 %v12691_v62 }
 0x1e4   : > { %1217 = vmatprep.subr.bf16.mxu1 %v12699_v63 }
 0x1e7   : > { %1218 = vmatpush1.bf16.msra.mxu1 %v12697_v1 }
 0x1e8   : > { %1219 = vmatprep.subr.bf16.mxu1 %v12705_v2 }
 0x1eb   : > { %1220 = vmatpush1.bf16.msra.mxu1 %v12703_v3 }
 0x1ec   : > { %1221 = vmatprep.subr.bf16.mxu1 %v12711_v4 }
 0x1ef   : > { %1222 = vmatpush1.bf16.msra.mxu1 %v12709_v6 }
 0x1f0   : > { %1223 = vmatprep.subr.bf16.mxu1 %v12717_v7 }
 0x1f3   : > { %1224 = vmatpush1.bf16.msra.mxu1 %v12715_v8 }
 0x1f4   : > { %1225 = vmatprep.subr.bf16.mxu1 %v12723_v9 }
 0x1f7   : > { %1226 = vmatpush1.bf16.msra.mxu1 %v12721_v11 }
 0x1f8   : > { %1227 = vmatprep.subr.bf16.mxu1 %v12729_v12 }
 0x1fb   : > { %1228 = vmatpush1.bf16.msra.mxu1 %v12727_v13 }
 0x1fc   : > { %1229 = vmatprep.subr.bf16.mxu1 %v12735_v14 }
 0x1ff   : > { %1230 = vmatpush1.bf16.msra.mxu1 %v12733_v15 }
 0x200   : > { %1231 = vmatprep.subr.bf16.mxu1 %v12741_v16 }
 0x203   : > { %1232 = vmatpush1.bf16.msra.mxu1 %v12739_v17 }
 0x204   : > { %1233 = vmatprep.subr.bf16.mxu1 %v12747_v18 }
 0x207   : > { %1234 = vmatpush1.bf16.msra.mxu1 %v12745_v19  ;;  %v12763_v19 = vld [vmem:[#allocation9 + $0x6d0] ss:$8 sps:$4 sm:$0xff]  }
 0x208   : > { %1235 = vmatprep.subr.bf16.mxu1 %v12753_v21  ;;  %v12765_v21 = vld [vmem:[#allocation9 + $0x6e0] ss:$8 sps:$4 sm:$0xff]  }
 0x20b   : > { %1236 = vmatpush1.bf16.msra.mxu1 %v12751_v23  ;;  %v12769_v23 = vld [vmem:[#allocation9 + $0x700] ss:$8 sps:$4 sm:$0xff]  }
 0x20c   : > { %1237 = vmatprep.subr.bf16.mxu1 %v12759_v27  ;;  %v12775_v27 = vld [vmem:[#allocation9 + $0x730] ss:$8 sps:$4 sm:$0xff]  }
 0x20f   : > { %1238 = vmatpush1.bf16.msra.mxu1 %v12757_v26  ;;  %v12774_v26 = vld [vmem:[#allocation9 + $0x6b0] ss:$8 sps:$4 sm:$0xff]  }
 0x210   : > { %11636 = vmatprep.subr.bf16.mxu1 %v17386_v0 }
 0x2a5   : > { %v741_v35 = vpop.f32.mrb[0].mxu1 }
 0x2a6   : > { %v742_v36 = vadd.f32 %v741_v35, %v676_v33  ;;  %v743_v37 = vpop.f32.mrb[1].mxu1  ;;  %v12777_v33 = vld [vmem:[#allocation9 + $0x740] ss:$8 sps:$4 sm:$0xff]  }
 0x2a7   : > { %v744_v38 = vadd.f32 %v743_v37, %v680_v34  ;;  %v745_v39 = vpop.f32.mrb[2].mxu1  ;;  %v1310_v34 = vld [vmem:[#allocation10 + $0x10] ss:$0 sm:$0xff] }
 0x2a8   : > { %vm748_vm4 = vcmp.ge.f32.partialorder %v742_v36, 0.0  ;;  %v750_v40 = vmul.f32 0.01, %v742_v36  ;;  %v746_v41 = vpop.f32.mrb[3].mxu1 }
 0x2a9   : > { %v751_v42 = vmul.f32 0.01, %v744_v38  ;;  %vm749_vm5 = vcmp.ge.f32.partialorder %v744_v38, 0.0 }
 0x2aa   : > { %v752_v43 = vsel %vm748_vm4, %v742_v36, %v750_v40 }
 0x2ab   : > { %v753_v44 = vsel %vm749_vm5, %v744_v38, %v751_v42  ;;  %v754_v46 = vpack.c.bf16 %v752_v43, %v752_v43  ;;  %v1582_v43 = vld [vmem:[#allocation9 + $0x8d0] sm:$0xf]  ;;  %vm3817_vm5 = vcmask 130048  }
 0x2ac   : > { %v755_v45 = vpack.c.bf16 %v753_v44, %v753_v44  ;;  %v12778_v44 = vld [vmem:[#allocation9 + $0x8d8] ss:$8 sps:$4 sm:$0xff]  }
 0x2ae   : > { %993 = vmatprep.mubr.bf16.mxu0 %v755_v45  ;;  %1239 = vmatprep.mubr.bf16.mxu1 %v755_v45  ;;  %v12779_v45 = vld [vmem:[#allocation9 + $0x8e8] ss:$8 sps:$4 sm:$0xff]  }
 0x2af   : > { %994 = vmatmul.mubr.bf16.vlgmr.msra.gmra.mrb[4].mxu0 %v754_v46  ;;  %1240 = vmatmul.mubr.bf16.vlgmr.msra.gmra.mrb[4].mxu1 %v754_v46  ;;  %v12780_v46 = vld [vmem:[#allocation9 + $0x978] ss:$8 sps:$4 sm:$0xff]  }
 0x2b0   : > { %11631 = vmatpush3.bf16.msra.mxu0 %v13985_v5  ;;  %11632 = vmatprep.mubr.msk.bf16.mxu0 %vm13609_vm0, %v17386_v0 }
 0x2b1   : > { %11640 = vmatprep.mubr.msk.bf16.mxu1 %vm13609_vm0, %v17386_v0  ;;  %11644 = vmatprep.subr.bf16.mxu0 %v17386_v0 }
 0x2b2   : > { %11637 = vmatpush3.bf16.msra.mxu1 %v12760_v48  ;;  %v12784_v48 = vld [vmem:[#allocation9 + $0x998] ss:$8 sps:$4 sm:$0xff]  }
 0x2b3   : > { %11638 = vmatprep.subr.bf16.mxu1 %v17386_v0 }
 0x2b6   : > { %11639 = vmatpush3.bf16.msra.mxu1 %v12761_v49  ;;  %v12786_v49 = vld [vmem:[#allocation9 + $0x9a8] ss:$8 sps:$4 sm:$0xff]  }
 0x2b7   : > { %11633 = vmatmul.mubr.msk.bf16.vlgmr.msra.gmra.mrb[8].mxu0 %vm609_vm2, %v1252_v47  ;;  %11664 = vmatprep.subr.bf16.mxu1 %v17386_v0  ;;  %v12782_v47 = vld [vmem:[#allocation9 + $0x988] ss:$8 sps:$4 sm:$0xff]  }
 0x2b8   : > { %11660 = vmatprep.mubr.msk.bf16.mxu0 %vm13609_vm0, %v17386_v0  ;;  %11645 = vmatpush3.bf16.msra.mxu0 %v12762_v50  ;;  %v12788_v50 = vld [vmem:[#allocation9 + $0x9b8] ss:$8 sps:$4 sm:$0xff]  }
 0x2b9   : > { %11646 = vmatprep.subr.bf16.mxu0 %v17386_v0 }
 0x2bc   : > { %11647 = vmatpush3.bf16.msra.mxu0 %v12764_v51  ;;  %v12790_v51 = vld [vmem:[#allocation9 + $0x9c8] ss:$8 sps:$4 sm:$0xff]  }
 0x2bd   : > { %11648 = vmatprep.subr.bf16.mxu0 %v17386_v0 }
 0x2c0   : > { %11649 = vmatpush3.bf16.msra.mxu0 %v12766_v52 }
 0x2c1   : > { %11650 = vmatprep.subr.bf16.mxu0 %v17386_v0 }
 0x2c4   : > { %11651 = vmatpush3.bf16.msra.mxu0 %v12768_v53 }
 0x2c5   : > { %11652 = vmatprep.subr.bf16.mxu0 %v17386_v0 }
 0x2c8   : > { %11653 = vmatpush3.bf16.msra.mxu0 %v12770_v54 }
 0x2c9   : > { %11654 = vmatprep.subr.bf16.mxu0 %v17386_v0 }
 0x2cc   : > { %11655 = vmatpush3.bf16.msra.mxu0 %v12772_v55 }
 0x2cd   : > { %11656 = vmatprep.subr.bf16.mxu0 %v17386_v0 }
 0x2d0   : > { %11657 = vmatpush3.bf16.msra.mxu0 %v12774_v26  ;;  %v12794_v26 = vld [vmem:[#allocation9 + $0x9e8] ss:$8 sps:$4 sm:$0xff]  }
 0x2d1   : > { %11658 = vmatprep.subr.bf16.mxu0 %v17386_v0 }
 0x2d4   : > { %11659 = vmatpush3.bf16.msra.mxu0 %v12776_v31  ;;  %v1640_v31 = vld [vmem:[#allocation10 + $0x20] ss:$0 sm:$0xff] }
 0x2d5   : > { %11684 = vmatprep.subr.bf16.mxu0 %v17386_v0 }
 0x382   : > { %v14025_v58 = vpop.f32.mrb[4].mxu0  ;;  %v1241_v59 = vpop.f32.mrb[4].mxu1 }
 0x383   : > { %v14027_v60 = vadd.f32 %v1241_v59, %v1040_v57  ;;  %v14029_v61 = vpop.f32.mrb[5].mxu0  ;;  %v14031_v62 = vpop.f32.mrb[5].mxu1 }
 0x384   : > { %v999_v63 = vpop.f32.mrb[6].mxu0  ;;  %v1245_v1 = vpop.f32.mrb[6].mxu1 }
 0x385   : > { %v1000_v2 = vpop.f32.mrb[7].mxu0  ;;  %v1246_v3 = vpop.f32.mrb[7].mxu1 }
 0x38a   : > { %v1290_v4 = vpop.f32.mrb[8].mxu0 }
 0x38b   : > { %v1296_v6 = vmul.f32 %v1290_v4, %v1290_v4  ;;  %v11634_v7 = vpop.f32.mrb[9].mxu0 }
 0x38c   : > { %v1293_v8 = vpop.f32.mrb[10].mxu0 }
 0x38d   : > { %v1297_v9 = vmul.f32 %v1296_v6, %v1290_v4  ;;  %v11635_v11 = vpop.f32.mrb[11].mxu0 }
 0x38f   : > { %v1298_v12 = vmul.f32 0.044715, %v1297_v9 }
 0x391   : > { %v1299_v13 = vadd.f32 %v1298_v12, %v1290_v4 }
 0x393   : > { %v1300_v14 = vmul.f32 0.7978846, %v1299_v13 }
 0x395   : > { %13016 = vtanh.f32 %v1300_v14 }
 0x39f   : > { %v13017_v15 = vpop.eup %13016 }
 0x3a0   : > { %v1302_v16 = vadd.f32 1.0, %v13017_v15 }
 0x3a2   : > { %v1303_v17 = vmul.f32 0.5, %v1302_v16 }
 0x3a4   : > { %v1304_v18 = vmul.f32 %v1303_v17, %v1290_v4  ;;  %v12781_v17 = vld [vmem:[#allocation9 + $0x9f8] ss:$8 sps:$4 sm:$0xff]  }
 0x3a6   : > { %v1305_v20 = vpack.c.bf16 %v1304_v18, %v1304_v18 }
 0x3a8   : > { %11641 = vmatmul.mubr.msk.bf16.vlgmr.msra.gmra.mrb[8].mxu1 %vm17393_vm3, %v1305_v20  ;;  %v12785_v20 = vld [vmem:[#allocation9 + $0xa18] ss:$8 sps:$4 sm:$0xff]  }
 0x3a9   : > { %11665 = vmatpush3.bf16.msra.mxu1 %v12763_v19  ;;  %11680 = vmatprep.mubr.msk.bf16.mxu1 %vm13609_vm0, %v17386_v0  ;;  %v12783_v19 = vld [vmem:[#allocation9 + $0xa08] ss:$8 sps:$4 sm:$0xff]  }
 0x3aa   : > { %11666 = vmatprep.subr.bf16.mxu1 %v17386_v0 }
 0x3ad   : > { %11667 = vmatpush3.bf16.msra.mxu1 %v12765_v21  ;;  %v12787_v21 = vld [vmem:[#allocation9 + $0xa28] ss:$8 sps:$4 sm:$0xff]  }
 0x3ae   : > { %11668 = vmatprep.subr.bf16.mxu1 %v17386_v0 }
 0x3b1   : > { %11669 = vmatpush3.bf16.msra.mxu1 %v12767_v22  ;;  %v12789_v22 = vld [vmem:[#allocation9 + $0xa38] ss:$8 sps:$4 sm:$0xff]  }
 0x3b2   : > { %11670 = vmatprep.subr.bf16.mxu1 %v17386_v0 }
 0x3b5   : > { %11671 = vmatpush3.bf16.msra.mxu1 %v12769_v23  ;;  %v12791_v23 = vld [vmem:[#allocation9 + $0xa48] ss:$8 sps:$4 sm:$0xff]  }
 0x3b6   : > { %11672 = vmatprep.subr.bf16.mxu1 %v17386_v0 }
 0x3b9   : > { %11673 = vmatpush3.bf16.msra.mxu1 %v12771_v24  ;;  %v12792_v24 = vld [vmem:[#allocation9 + $0x9d8] ss:$8 sps:$4 sm:$0xff]  }
 0x3ba   : > { %11674 = vmatprep.subr.bf16.mxu1 %v17386_v0 }
 0x3bd   : > { %11675 = vmatpush3.bf16.msra.mxu1 %v12773_v25  ;;  %v12793_v25 = vld [vmem:[#allocation9 + $0xa58] ss:$8 sps:$4 sm:$0xff]  }
 0x3be   : > { %11676 = vmatprep.subr.bf16.mxu1 %v17386_v0 }
 0x3c1   : > { %11677 = vmatpush3.bf16.msra.mxu1 %v12775_v27  ;;  %v12795_v27 = vld [vmem:[#allocation9 + $0xa68] ss:$8 sps:$4 sm:$0xff]  }
 0x3c2   : > { %11678 = vmatprep.subr.bf16.mxu1 %v17386_v0 }
 0x3c5   : > { %11679 = vmatpush3.bf16.msra.mxu1 %v12777_v33 }
 0x3c6   : > { %11690 = vmatprep.subr.bf16.mxu1 %v17386_v0 }
 0x47b   : > { %v1360_v35 = vpop.f32.mrb[8].mxu1 }
 0x47c   : > { %v1361_v36 = vadd.f32 %v1360_v35, %v1310_v34  ;;  %v11642_v37 = vpop.f32.mrb[9].mxu1 }
 0x47d   : > { %v1363_v38 = vpop.f32.mrb[10].mxu1 }
 0x47e   : > { %vm1366_vm6 = vcmp.ge.f32.partialorder %v1361_v36, 0.0  ;;  %v1367_v39 = vmul.f32 0.01, %v1361_v36  ;;  %v11643_v40 = vpop.f32.mrb[11].mxu1 }
 0x480   : > { %v1368_v41 = vsel %vm1366_vm6, %v1361_v36, %v1367_v39 }
 0x481   : > { %v1369_v42 = vpack.c.bf16 %v1368_v41, %v1368_v41  ;;  %v1912_v41 = vld [vmem:[#allocation9 + $0xbb8] sm:$0xf] }
 0x483   : > { %11661 = vmatmul.mubr.bf16.vlgmr.msra.gmra.mrb[12].mxu0 %v1369_v42  ;;  %11681 = vmatmul.mubr.bf16.vlgmr.msra.gmra.mrb[12].mxu1 %v1369_v42  ;;  %v12796_v42 = vld [vmem:[#allocation9 + $0xbc0] ss:$8 sps:$4 sm:$0xff]  }
 0x484   : > { %11685 = vmatpush3.bf16.msra.mxu0 %v13985_v5  ;;  %11686 = vmatprep.mubr.msk.bf16.mxu0 %vm13609_vm0, %v17386_v0 }
 0x485   : > { %11694 = vmatprep.mubr.msk.bf16.mxu1 %vm13609_vm0, %v17386_v0  ;;  %11698 = vmatprep.subr.bf16.mxu0 %v17386_v0 }
 0x486   : > { %11691 = vmatpush3.bf16.msra.mxu1 %v12778_v44  ;;  %v12803_v44 = vld [vmem:[#allocation9 + $0xc30] ss:$8 sps:$4 sm:$0xff]  }
 0x487   : > { %11692 = vmatprep.subr.bf16.mxu1 %v17386_v0 }
 0x48a   : > { %11693 = vmatpush3.bf16.msra.mxu1 %v12779_v45 }
 0x48b   : > { %11687 = vmatmul.mubr.msk.bf16.vlgmr.msra.gmra.mrb[16].mxu0 %vm609_vm2, %v1582_v43  ;;  %11718 = vmatprep.subr.bf16.mxu1 %v17386_v0  ;;  %v12797_v43 = vld [vmem:[#allocation9 + $0xbd0] ss:$8 sps:$4 sm:$0xff]  }
 0x48c   : > { %11714 = vmatprep.mubr.msk.bf16.mxu0 %vm13609_vm0, %v17386_v0  ;;  %11699 = vmatpush3.bf16.msra.mxu0 %v12780_v46 }
 0x48d   : > { %11700 = vmatprep.subr.bf16.mxu0 %v17386_v0 }
 0x490   : > { %11701 = vmatpush3.bf16.msra.mxu0 %v12782_v47 }
 0x491   : > { %11702 = vmatprep.subr.bf16.mxu0 %v17386_v0 }
 0x494   : > { %11703 = vmatpush3.bf16.msra.mxu0 %v12784_v48 }
 0x495   : > { %11704 = vmatprep.subr.bf16.mxu0 %v17386_v0 }
 0x498   : > { %11705 = vmatpush3.bf16.msra.mxu0 %v12786_v49 }
 0x499   : > { %11706 = vmatprep.subr.bf16.mxu0 %v17386_v0 }
 0x49c   : > { %11707 = vmatpush3.bf16.msra.mxu0 %v12788_v50 }
 0x49d   : > { %11708 = vmatprep.subr.bf16.mxu0 %v17386_v0 }
 0x4a0   : > { %11709 = vmatpush3.bf16.msra.mxu0 %v12790_v51 }
 0x4a1   : > { %11710 = vmatprep.subr.bf16.mxu0 %v17386_v0 }
 0x4a4   : > { %11711 = vmatpush3.bf16.msra.mxu0 %v12792_v24  ;;  %v1970_v24 = vld [vmem:[#allocation10 + $0x30] ss:$0 sm:$0xff] }
 0x4a5   : > { %11712 = vmatprep.subr.bf16.mxu0 %v17386_v0 }
 0x4a8   : > { %11713 = vmatpush3.bf16.msra.mxu0 %v12794_v26 }
 0x4a9   : > { %11738 = vmatprep.subr.bf16.mxu0 %v17386_v0 }
 0x556   : > { %v14063_v52 = vpop.f32.mrb[12].mxu0  ;;  %v14065_v53 = vpop.f32.mrb[12].mxu1 }
 0x557   : > { %v11662_v54 = vpop.f32.mrb[13].mxu0  ;;  %v11682_v55 = vpop.f32.mrb[13].mxu1 }
 0x558   : > { %v1472_v57 = vpop.f32.mrb[14].mxu0  ;;  %v1577_v59 = vpop.f32.mrb[14].mxu1 }
 0x559   : > { %v11663_v63 = vpop.f32.mrb[15].mxu0  ;;  %v11683_v1 = vpop.f32.mrb[15].mxu1 }
 0x55e   : > { %v1620_v2 = vpop.f32.mrb[16].mxu0 }
 0x55f   : > { %v1626_v3 = vmul.f32 %v1620_v2, %v1620_v2  ;;  %v11688_v4 = vpop.f32.mrb[17].mxu0 }
 0x560   : > { %v1623_v6 = vpop.f32.mrb[18].mxu0 }
 0x561   : > { %v1627_v7 = vmul.f32 %v1626_v3, %v1620_v2  ;;  %v11689_v8 = vpop.f32.mrb[19].mxu0 }
 0x563   : > { %v1628_v9 = vmul.f32 0.044715, %v1627_v7 }
 0x565   : > { %v1629_v11 = vadd.f32 %v1628_v9, %v1620_v2 }
 0x567   : > { %v1630_v12 = vmul.f32 0.7978846, %v1629_v11 }
 0x569   : > { %13018 = vtanh.f32 %v1630_v12  ;;  %v12798_v12 = vld [vmem:[#allocation9 + $0xc60] ss:$8 sps:$4 sm:$0xff]  }
 0x573   : > { %v13019_v13 = vpop.eup %13018 }
 0x574   : > { %v1632_v14 = vadd.f32 1.0, %v13019_v13 }
 0x576   : > { %v1633_v15 = vmul.f32 0.5, %v1632_v14  ;;  %v789_v14 = vld [vmem:[#allocation10 + $0x2] ss:$8 sm:$0x3] }
 0x578   : > { %v1634_v16 = vmul.f32 %v1633_v15, %v1620_v2  ;;  %v12799_v15 = vld [vmem:[#allocation9 + $0xc70] ss:$8 sps:$4 sm:$0xff]  }
 0x57a   : > { %v1635_v18 = vpack.c.bf16 %v1634_v16, %v1634_v16  ;;  %v798_v16 = vrot.slane %v789_v14, %v14000_v32 }
 0x57c   : > { %11695 = vmatmul.mubr.msk.bf16.vlgmr.msra.gmra.mrb[16].mxu1 %vm17393_vm3, %v1635_v18  ;;  %v998_v18 = vadd.f32 %v14029_v61, %v798_v16  ;;  %v1044_v61 = vrot.slane %v14021_v56, %v14000_v32  ;;  %v12848_v16 = vld [vmem:[#allocation9 + $0x108] ss:$8 sps:$4 sm:$0xff]  }
 0x57d   : > { %11719 = vmatpush3.bf16.msra.mxu1 %v12781_v17  ;;  %11734 = vmatprep.mubr.msk.bf16.mxu1 %vm13609_vm0, %v17386_v0  ;;  %v12800_v17 = vld [vmem:[#allocation9 + $0xc80] ss:$8 sps:$4 sm:$0xff]  }
 0x57e   : > { %11720 = vmatprep.subr.bf16.mxu1 %v17386_v0 }
 0x581   : > { %11721 = vmatpush3.bf16.msra.mxu1 %v12783_v19  ;;  %v12801_v19 = vld [vmem:[#allocation9 + $0xc90] ss:$8 sps:$4 sm:$0xff]  }
 0x582   : > { %11722 = vmatprep.subr.bf16.mxu1 %v17386_v0 }
 0x585   : > { %11723 = vmatpush3.bf16.msra.mxu1 %v12785_v20  ;;  %v1249_v20 = vpack.c.bf16 %v998_v18, %v998_v18  ;;  %v12851_v18 = vld [vmem:[#allocation9 + $0x118] ss:$8 sps:$4 sm:$0xff]  }
 0x586   : > { %11724 = vmatprep.subr.bf16.mxu1 %v17386_v0 }
 0x589   : > { %11725 = vmatpush3.bf16.msra.mxu1 %v12787_v21  ;;  %v12804_v21 = vld [vmem:[#allocation9 + $0xc40] ss:$8 sps:$4 sm:$0xff]  }
 0x58a   : > { %11726 = vmatprep.subr.bf16.mxu1 %v17386_v0 }
 0x58d   : > { %11727 = vmatpush3.bf16.msra.mxu1 %v12789_v22  ;;  %v12805_v22 = vld [vmem:[#allocation9 + $0xc50] ss:$8 sps:$4 sm:$0xff]  }
 0x58e   : > { %11728 = vmatprep.subr.bf16.mxu1 %v17386_v0 }
 0x591   : > { %11729 = vmatpush3.bf16.msra.mxu1 %v12791_v23  ;;  %v12808_v23 = vld [vmem:[#allocation9 + $0x2c] ss:$8 sps:$4 sm:$0xff]  }
 0x592   : > { %11730 = vmatprep.subr.bf16.mxu1 %v17386_v0 }
 0x595   : > { %11731 = vmatpush3.bf16.msra.mxu1 %v12793_v25  ;;  %v794_v25 = vrot.slane %v789_v14, %v13997_v30  ;;  %v12845_v14 = vld [vmem:[#allocation9 + $0xf8] ss:$8 sps:$4 sm:$0xff]  }
 0x596   : > { %11732 = vmatprep.subr.bf16.mxu1 %v17386_v0 }
 0x599   : > { %11733 = vmatpush3.bf16.msra.mxu1 %v12795_v27 }
 0x59a   : > { %11744 = vmatprep.subr.bf16.mxu1 %v17386_v0 }
 0x64f   : > { %v1690_v33 = vpop.f32.mrb[16].mxu1 }
 0x650   : > { %v1691_v34 = vadd.f32 %v1690_v33, %v1640_v31  ;;  %v11696_v35 = vpop.f32.mrb[17].mxu1 }
 0x651   : > { %v1693_v36 = vpop.f32.mrb[18].mxu1 }
 0x652   : > { %vm1696_vm7 = vcmp.ge.f32.partialorder %v1691_v34, 0.0  ;;  %v1697_v37 = vmul.f32 0.01, %v1691_v34  ;;  %v11697_v38 = vpop.f32.mrb[19].mxu1 }
 0x653   : > { %v14112_v38 = vld [vmem:[%s13945_s25 + $0x8] sm:$0xff] }
 0x654   : > { %v1698_v39 = vsel %vm1696_vm7, %v1691_v34, %v1697_v37  ;;  %v996_v34 = vadd.f32 %v14025_v58, %v794_v25  ;;  %v1244_v37 = vadd.f32 %v14031_v62, %v1044_v61  ;;  %v2187_v56 = vpack.c.bf16 %v14112_v38, %v14112_v38  ;;  %v12809_v58 = vld [vmem:[#allocation9 + $0x38] ss:$8 sps:$4 sm:$0xff]   ;;  %v12814_v62 = vld [vmem:[#allocation9 + $0x4c] ss:$8 sps:$4 sm:$0xff]  }
 0x655   : > { %v1699_v40 = vpack.c.bf16 %v1698_v39, %v1698_v39 }
 0x657   : > { %11715 = vmatmul.mubr.bf16.vlgmr.msra.gmra.mrb[20].mxu0 %v1699_v40  ;;  %11735 = vmatmul.mubr.bf16.vlgmr.msra.gmra.mrb[20].mxu1 %v1699_v40  ;;  %v12806_v40 = vld [vmem:[#allocation9 + $0x28] ss:$8 sps:$4 sm:$0xff]  }
 0x658   : > { %11739 = vmatpush3.bf16.msra.mxu0 %v13985_v5  ;;  %11740 = vmatprep.mubr.msk.bf16.mxu0 %vm13609_vm0, %v17386_v0  ;;  %v12802_v5 = vld [vmem:[#allocation9 + $0xc20] ss:$8 sps:$4 sm:$0xff]  }
 0x659   : > { %11748 = vmatprep.mubr.msk.bf16.mxu1 %vm13609_vm0, %v17386_v0  ;;  %11752 = vmatprep.subr.bf16.mxu0 %v17386_v0 }
 0x65a   : > { %11745 = vmatpush3.bf16.msra.mxu1 %v12796_v42  ;;  %v12811_v42 = vld [vmem:[#allocation9 + $0x3c] ss:$8 sps:$4 sm:$0xff]  }
 0x65b   : > { %11746 = vmatprep.subr.bf16.mxu1 %v17386_v0 }
 0x65e   : > { %11747 = vmatpush3.bf16.msra.mxu1 %v12797_v43  ;;  %v1248_v43 = vpack.c.bf16 %v996_v34, %v996_v34 }
 0x65f   : > { %11741 = vmatmul.mubr.msk.bf16.vlgmr.msra.gmra.mrb[24].mxu0 %vm609_vm2, %v1912_v41  ;;  %11764 = vmatprep.subr.bf16.mxu1 %v17386_v0 }
 0x660   : > { %11760 = vmatprep.mubr.msk.bf16.mxu0 %vm13609_vm0, %v17386_v0  ;;  %11753 = vmatpush3.bf16.msra.mxu0 %v12802_v5  ;;  %v1251_v5 = vpack.c.bf16 %v1244_v37, %v1244_v37 }
 0x661   : > { %11754 = vmatprep.subr.bf16.mxu0 %v17386_v0 }
 0x664   : > { %11755 = vmatpush3.bf16.msra.mxu0 %v12803_v44  ;;  %v12812_v44 = vld [vmem:[#allocation9 + $0x48] ss:$8 sps:$4 sm:$0xff]  }
 0x665   : > { %11756 = vmatprep.subr.bf16.mxu0 %v17386_v0 }
 0x668   : > { %11757 = vmatpush3.bf16.msra.mxu0 %v12804_v21 }
 0x669   : > { %11758 = vmatprep.subr.bf16.mxu0 %v17386_v0 }
 0x66c   : > { %11759 = vmatpush3.bf16.msra.mxu0 %v12805_v22 }
 0x66d   : > { %2393 = vmatprep.subr.bf16.mxu0 %v12808_v23 }
 0x72a   : > { %v14093_v45 = vpop.f32.mrb[20].mxu0  ;;  %v14095_v46 = vpop.f32.mrb[20].mxu1 }
 0x72b   : > { %v11716_v47 = vpop.f32.mrb[21].mxu0  ;;  %v11736_v48 = vpop.f32.mrb[21].mxu1 }
 0x72c   : > { %v1802_v49 = vpop.f32.mrb[22].mxu0  ;;  %v1907_v50 = vpop.f32.mrb[22].mxu1  ;;  %v12817_v47 = vld [vmem:[#allocation9 + $0x5c] ss:$8 sps:$4 sm:$0xff]   ;;  %v12815_v48 = vld [vmem:[#allocation9 + $0x58] ss:$8 sps:$4 sm:$0xff]  }
 0x72d   : > { %v11717_v51 = vpop.f32.mrb[23].mxu0  ;;  %v11737_v54 = vpop.f32.mrb[23].mxu1  ;;  %v12820_v49 = vld [vmem:[#allocation9 + $0x6c] ss:$8 sps:$4 sm:$0xff]   ;;  %v12818_v50 = vld [vmem:[#allocation9 + $0x68] ss:$8 sps:$4 sm:$0xff]  }
 0x72e   : > { %v12823_v51 = vld [vmem:[#allocation9 + $0x7c] ss:$8 sps:$4 sm:$0xff]   ;;  %v12821_v54 = vld [vmem:[#allocation9 + $0x78] ss:$8 sps:$4 sm:$0xff]  }
 0x732   : > { %v1950_v55 = vpop.f32.mrb[24].mxu0 }
 0x733   : > { %v1956_v57 = vmul.f32 %v1950_v55, %v1950_v55  ;;  %v11742_v59 = vpop.f32.mrb[25].mxu0 }
 0x734   : > { %v1953_v63 = vpop.f32.mrb[26].mxu0  ;;  %v12829_v59 = vld [vmem:[#allocation9 + $0x9c] ss:$8 sps:$4 sm:$0xff]  }
 0x735   : > { %v1957_v1 = vmul.f32 %v1956_v57, %v1950_v55  ;;  %v11743_v2 = vpop.f32.mrb[27].mxu0  ;;  %v12824_v57 = vld [vmem:[#allocation9 + $0x88] ss:$8 sps:$4 sm:$0xff]   ;;  %v12827_v63 = vld [vmem:[#allocation9 + $0x98] ss:$8 sps:$4 sm:$0xff]  }
 0x736   : > { %v12830_v2 = vld [vmem:[#allocation9 + $0xa8] ss:$8 sps:$4 sm:$0xff]  }
 0x737   : > { %v1958_v3 = vmul.f32 0.044715, %v1957_v1  ;;  %v12832_v1 = vld [vmem:[#allocation9 + $0xac] ss:$8 sps:$4 sm:$0xff]  }
 0x739   : > { %v1959_v4 = vadd.f32 %v1958_v3, %v1950_v55  ;;  %v12835_v3 = vld [vmem:[#allocation9 + $0xbc] ss:$8 sps:$4 sm:$0xff]  }
 0x73b   : > { %v1960_v6 = vmul.f32 0.7978846, %v1959_v4  ;;  %v12833_v4 = vld [vmem:[#allocation9 + $0xb8] ss:$8 sps:$4 sm:$0xff]  }
 0x73d   : > { %13020 = vtanh.f32 %v1960_v6  ;;  %v12838_v6 = vld [vmem:[#allocation9 + $0xcc] ss:$8 sps:$4 sm:$0xff]  }
 0x747   : > { %v13021_v7 = vpop.eup %13020 }
 0x748   : > { %v1962_v8 = vadd.f32 1.0, %v13021_v7  ;;  %v12836_v7 = vld [vmem:[#allocation9 + $0xc8] ss:$8 sps:$4 sm:$0xff]  }
 0x74a   : > { %v1963_v9 = vmul.f32 0.5, %v1962_v8  ;;  %v12841_v8 = vld [vmem:[#allocation9 + $0xdc] ss:$8 sps:$4 sm:$0xff]  }
 0x74c   : > { %v1964_v11 = vmul.f32 %v1963_v9, %v1950_v55  ;;  %v12826_v55 = vld [vmem:[#allocation9 + $0x8c] ss:$8 sps:$4 sm:$0xff]   ;;  %v12839_v9 = vld [vmem:[#allocation9 + $0xd8] ss:$8 sps:$4 sm:$0xff]  }
 0x74e   : > { %v1965_v13 = vpack.c.bf16 %v1964_v11, %v1964_v11  ;;  %v12844_v11 = vld [vmem:[#allocation9 + $0xec] ss:$8 sps:$4 sm:$0xff]  }
 0x750   : > { %11749 = vmatmul.mubr.msk.bf16.vlgmr.msra.gmra.mrb[24].mxu1 %vm17393_vm3, %v1965_v13  ;;  %v12847_v13 = vld [vmem:[#allocation9 + $0xfc] ss:$8 sps:$4 sm:$0xff]  }
 0x751   : > { %11765 = vmatpush3.bf16.msra.mxu1 %v12798_v12  ;;  %11772 = vmatprep.mubr.msk.bf16.mxu1 %vm13609_vm0, %v17386_v0  ;;  %v12842_v12 = vld [vmem:[#allocation9 + $0xe8] ss:$8 sps:$4 sm:$0xff]  }
 0x752   : > { %11766 = vmatprep.subr.bf16.mxu1 %v17386_v0 }
 0x755   : > { %11767 = vmatpush3.bf16.msra.mxu1 %v12799_v15  ;;  %v12850_v15 = vld [vmem:[#allocation9 + $0x10c] ss:$8 sps:$4 sm:$0xff]  }
 0x756   : > { %11768 = vmatprep.subr.bf16.mxu1 %v17386_v0 }
 0x759   : > { %11769 = vmatpush3.bf16.msra.mxu1 %v12800_v17  ;;  %v12853_v17 = vld [vmem:[#allocation9 + $0x11c] ss:$8 sps:$4 sm:$0xff]  }
 0x75a   : > { %11770 = vmatprep.subr.bf16.mxu1 %v17386_v0 }
 0x75d   : > { %11771 = vmatpush3.bf16.msra.mxu1 %v12801_v19  ;;  %v14120_v19 = vld [vmem:[%s13945_s25] sm:$0xff] }
 0x75e   : > { %2436 = vmatprep.subr.bf16.mxu1 %v1249_v20  ;;  %v2186_v20 = vpack.c.bf16 %v14120_v19, %v14120_v19 }
 0x823   : > { %v2020_v26 = vpop.f32.mrb[24].mxu1 }
 0x824   : > { %v2021_v27 = vadd.f32 %v2020_v26, %v1970_v24  ;;  %v11750_v31 = vpop.f32.mrb[25].mxu1 }
 0x825   : > { %v2023_v33 = vpop.f32.mrb[26].mxu1  ;;  %v2221_v31 = vld [vmem:[#allocation10 + $0x1] ss:$8 sm:$0x3] }
 0x826   : > { %vm2026_vm8 = vcmp.ge.f32.partialorder %v2021_v27, 0.0  ;;  %v2027_v35 = vmul.f32 0.01, %v2021_v27  ;;  %v11751_v36 = vpop.f32.mrb[27].mxu1  ;;  %v2226_v33 = vrot.slane %v2221_v31, %v13997_v30  ;;  %v2230_v34 = vrot.slane %v2221_v31, %v14000_v32  ;;  %v12887_v31 = vld [vmem:[#allocation9 + $0x3d8] ss:$8 sps:$4 sm:$0xff]  }
 0x828   : > { %v2028_v39 = vsel %vm2026_vm8, %v2021_v27, %v2027_v35 }
 0x829   : > { %v2029_v41 = vpack.c.bf16 %v2028_v39, %v2028_v39 }
 0x82b   : > { %11761 = vmatmul.mubr.msk.bf16.vlgmr.msra.gmra.mrb[28].mxu0 %vm17394_vm9, %v2029_v41  ;;  %11773 = vmatmul.mubr.msk.bf16.vlgmr.msra.gmra.mrb[28].mxu1 %vm17394_vm9, %v2029_v41  ;;  %v1250_v41 = vpack.c.bf16 %v14027_v60, %v14027_v60 }
 0x82c   : > { %2394 = vmatpush1.bf16.msra.mxu0 %v12806_v40  ;;  %2437 = vmatpush1.bf16.xpose.msra.mxu1 %v1248_v43 }
 0x82d   : > { %10576 = vmatprep.subr.msk.bf16.mxu1 %vm2493_vm10, %v1251_v5  ;;  %2395 = vmatprep.subr.bf16.mxu0 %v12811_v42  ;;  %v2495_v5 = vsel %vm2493_vm10, %v1250_v41, 0  ;;  %v12899_v41 = vld [vmem:[#allocation9 + $0x418] ss:$8 sps:$4 sm:$0xff]  }
 0x82e   : > { %2425 = vmatprep.mubr.bf16.mxu0 %v2187_v56 }
 0x830   : > { %2396 = vmatpush1.bf16.msra.mxu0 %v12809_v58 }
 0x831   : > { %2397 = vmatprep.subr.bf16.mxu0 %v12814_v62 }
 0x834   : > { %2398 = vmatpush1.bf16.msra.mxu0 %v12812_v44 }
 0x835   : > { %2399 = vmatprep.subr.bf16.mxu0 %v12817_v47 }
 0x838   : > { %2400 = vmatpush1.bf16.msra.mxu0 %v12815_v48 }
 0x839   : > { %2401 = vmatprep.subr.bf16.mxu0 %v12820_v49 }
 0x83c   : > { %2402 = vmatpush1.bf16.msra.mxu0 %v12818_v50 }
 0x83d   : > { %2403 = vmatprep.subr.bf16.mxu0 %v12823_v51 }
 0x840   : > { %2404 = vmatpush1.bf16.msra.mxu0 %v12821_v54 }
 0x841   : > { %2405 = vmatprep.subr.bf16.mxu0 %v12826_v55 }
 0x844   : > { %2406 = vmatpush1.bf16.msra.mxu0 %v12824_v57  ;;  %v12856_v57 = vld [vmem:[#allocation9 + $0x32c] ss:$8 sps:$4 sm:$0xff]  }
 0x845   : > { %2407 = vmatprep.subr.bf16.mxu0 %v12829_v59 }
 0x848   : > { %2408 = vmatpush1.bf16.msra.mxu0 %v12827_v63 }
 0x849   : > { %2409 = vmatprep.subr.bf16.mxu0 %v12832_v1  ;;  %v12854_v1 = vld [vmem:[#allocation9 + $0x328] ss:$8 sps:$4 sm:$0xff]  }
 0x84c   : > { %2410 = vmatpush1.bf16.msra.mxu0 %v12830_v2 }
 0x84d   : > { %2411 = vmatprep.subr.bf16.mxu0 %v12835_v3  ;;  %v12859_v3 = vld [vmem:[#allocation9 + $0x33c] ss:$8 sps:$4 sm:$0xff]  }
 0x850   : > { %2412 = vmatpush1.bf16.msra.mxu0 %v12833_v4  ;;  %v12857_v4 = vld [vmem:[#allocation9 + $0x338] ss:$8 sps:$4 sm:$0xff]  }
 0x851   : > { %2413 = vmatprep.subr.bf16.mxu0 %v12838_v6  ;;  %v12862_v6 = vld [vmem:[#allocation9 + $0x34c] ss:$8 sps:$4 sm:$0xff]  }
 0x854   : > { %2414 = vmatpush1.bf16.msra.mxu0 %v12836_v7  ;;  %v12860_v7 = vld [vmem:[#allocation9 + $0x348] ss:$8 sps:$4 sm:$0xff]  }
 0x855   : > { %2415 = vmatprep.subr.bf16.mxu0 %v12841_v8  ;;  %v12865_v8 = vld [vmem:[#allocation9 + $0x35c] ss:$8 sps:$4 sm:$0xff]  }
 0x858   : > { %2416 = vmatpush1.bf16.msra.mxu0 %v12839_v9  ;;  %v12863_v9 = vld [vmem:[#allocation9 + $0x358] ss:$8 sps:$4 sm:$0xff]  }
 0x859   : > { %2417 = vmatprep.subr.bf16.mxu0 %v12844_v11  ;;  %v12868_v11 = vld [vmem:[#allocation9 + $0x36c] ss:$8 sps:$4 sm:$0xff]  }
 0x85c   : > { %2418 = vmatpush1.bf16.msra.mxu0 %v12842_v12  ;;  %v12866_v12 = vld [vmem:[#allocation9 + $0x368] ss:$8 sps:$4 sm:$0xff]  }
 0x85d   : > { %2419 = vmatprep.subr.bf16.mxu0 %v12847_v13  ;;  %v12871_v13 = vld [vmem:[#allocation9 + $0x37c] ss:$8 sps:$4 sm:$0xff]  }
 0x860   : > { %2420 = vmatpush1.bf16.msra.mxu0 %v12845_v14  ;;  %v12869_v14 = vld [vmem:[#allocation9 + $0x378] ss:$8 sps:$4 sm:$0xff]  }
 0x861   : > { %2421 = vmatprep.subr.bf16.mxu0 %v12850_v15  ;;  %v12874_v15 = vld [vmem:[#allocation9 + $0x38c] ss:$8 sps:$4 sm:$0xff]  }
 0x864   : > { %2422 = vmatpush1.bf16.msra.mxu0 %v12848_v16  ;;  %v12872_v16 = vld [vmem:[#allocation9 + $0x388] ss:$8 sps:$4 sm:$0xff]  }
 0x865   : > { %2423 = vmatprep.subr.bf16.mxu0 %v12853_v17  ;;  %v12877_v17 = vld [vmem:[#allocation9 + $0x39c] ss:$8 sps:$4 sm:$0xff]  }
 0x868   : > { %2424 = vmatpush1.bf16.msra.mxu0 %v12851_v18  ;;  %v12875_v18 = vld [vmem:[#allocation9 + $0x398] ss:$8 sps:$4 sm:$0xff]  }
 0x86b   : > { %2426 = vmatmul.mubr.bf16.vlgmr.msra.gmra.mrb[32].mxu0 %v2186_v20  ;;  %v12880_v20 = vld [vmem:[#allocation9 + $0x3ac] ss:$8 sps:$4 sm:$0xff]  }
 0x8fe   : > { %v14124_v21 = vpop.f32.mrb[28].mxu0  ;;  %v14126_v22 = vpop.f32.mrb[28].mxu1 }
 0x8ff   : > { %v11762_v23 = vpop.f32.mrb[29].mxu0  ;;  %v11774_v24 = vpop.f32.mrb[29].mxu1 }
 0x900   : > { %v2104_v25 = vpop.f32.mrb[30].mxu0  ;;  %v2177_v61 = vpop.f32.mrb[30].mxu1  ;;  %v12878_v23 = vld [vmem:[#allocation9 + $0x3a8] ss:$8 sps:$4 sm:$0xff]   ;;  %v12883_v24 = vld [vmem:[#allocation9 + $0x3bc] ss:$8 sps:$4 sm:$0xff]  }
 0x901   : > { %v11763_v26 = vpop.f32.mrb[31].mxu0  ;;  %v11775_v27 = vpop.f32.mrb[31].mxu1  ;;  %v12881_v25 = vld [vmem:[#allocation9 + $0x3b8] ss:$8 sps:$4 sm:$0xff]   ;;  %v12886_v61 = vld [vmem:[#allocation9 + $0x3cc] ss:$8 sps:$4 sm:$0xff]  }
 0x902   : > { %v12884_v26 = vld [vmem:[#allocation9 + $0x3c8] ss:$8 sps:$4 sm:$0xff]   ;;  %v12889_v27 = vld [vmem:[#allocation9 + $0x3dc] ss:$8 sps:$4 sm:$0xff]  }
 0x93e   : > { %v2427_v35 = vpop.f32.mrb[32].mxu0 }
 0x93f   : > { %v2428_v36 = vadd.f32 %v2427_v35, %v2226_v33  ;;  %v2429_v37 = vpop.f32.mrb[33].mxu0  ;;  %v12892_v33 = vld [vmem:[#allocation9 + $0x3ec] ss:$8 sps:$4 sm:$0xff]   ;;  %v12895_v35 = vld [vmem:[#allocation9 + $0x3fc] ss:$8 sps:$4 sm:$0xff]  }
 0x940   : > { %v2430_v39 = vadd.f32 %v2429_v37, %v2230_v34  ;;  %v2431_v40 = vpop.f32.mrb[34].mxu0  ;;  %v12890_v34 = vld [vmem:[#allocation9 + $0x3e8] ss:$8 sps:$4 sm:$0xff]   ;;  %v12898_v37 = vld [vmem:[#allocation9 + $0x40c] ss:$8 sps:$4 sm:$0xff]  }
 0x941   : > { %v2432_v42 = vpop.f32.mrb[35].mxu0  ;;  %v2434_v56 = vpack.c.bf16 %v2428_v36, %v2428_v36  ;;  %v12893_v36 = vld [vmem:[#allocation9 + $0x3f8] ss:$8 sps:$4 sm:$0xff]   ;;  %v12901_v40 = vld [vmem:[#allocation9 + $0x41c] ss:$8 sps:$4 sm:$0xff]  }
 0x942   : > { %v2435_v43 = vpack.c.bf16 %v2430_v39, %v2430_v39  ;;  %v12896_v39 = vld [vmem:[#allocation9 + $0x408] ss:$8 sps:$4 sm:$0xff]  }
 0x944   : > { %2468 = vmatprep.mubr.bf16.mxu1 %v2435_v43 }
 0x945   : > { %2469 = vmatmul.mubr.bf16.vlgmr.msra.gmra.mrb[32].mxu1 %v2434_v56 }
 0x946   : > { %2501 = vmatpush1.bf16.msra.mxu1 %v2495_v5  ;;  %2532 = vmatprep.mubr.bf16.mxu1 %v13610_v10 }
 0x947   : > { %2748 = vmatprep.subr.bf16.mxu1 %v12856_v57  ;;  %v2185_v57 = vld [vmem:[%s13952_s13 + $0x8] sm:$0xff] }
 0xa18   : > { %v2470_v58 = vpop.f32.mrb[32].mxu1 }
 0xa19   : > { %v2472_v62 = vpop.f32.mrb[33].mxu1  ;;  %v2476_v44 = vmul.f32 0.0625, %v2470_v58  ;;  %v12902_v58 = vld [vmem:[#allocation9 + $0x528] ss:$8 sps:$4 sm:$0xff]  }
 0xa1a   : > { %v2473_v47 = vpop.f32.mrb[34].mxu1 }
 0xa1b   : > { %v2474_v48 = vpop.f32.mrb[35].mxu1  ;;  %v2478_v49 = vsel %vm2477_vm11, %v2476_v44, -inf  ;;  %v12903_v47 = vld [vmem:[#allocation9 + $0x538] ss:$8 sps:$4 sm:$0xff]  }
 0xa1c   : > { %2479 = vmax.xlane.f32.xlu0 %v2478_v49  ;;  %v12904_v48 = vld [vmem:[#allocation9 + $0x548] ss:$8 sps:$4 sm:$0xff]   ;;  %v12905_v49 = vld [vmem:[#allocation9 + $0x558] ss:$8 sps:$4 sm:$0xff]  }
 0xaa9   : > { %v2480_v60 = vpop.xlane.xlu0 %2479 }
 0xaaa   : > { %v2481_v50 = vsub.f32 %v2476_v44, %v2480_v60  ;;  %v12906_v60 = vld [vmem:[#allocation9 + $0x568] ss:$8 sps:$4 sm:$0xff]  }
 0xaac   : > { %v2482_v51 = vmul.f32 1.442695, %v2481_v50  ;;  %v12907_v50 = vld [vmem:[#allocation9 + $0x578] ss:$8 sps:$4 sm:$0xff]  }
 0xaae   : > { %13022 = vpow2.f32 %v2482_v51  ;;  %v12908_v51 = vld [vmem:[#allocation9 + $0x588] ss:$8 sps:$4 sm:$0xff]  }
 0xab8   : > { %v13023_v54 = vpop.eup %13022 }
 0xab9   : > { %v2484_v55 = vsel %vm2477_vm11, %v13023_v54, 0.0 }
 0xaba   : > { %2485 = vadd.xlane.f32.xlu0 %v2484_v55  ;;  %v2184_v55 = vld [vmem:[%s13952_s13] sm:$0xff]  ;;  %s15219_s13 = scalar_lea.vmem %s17835_s19, %s11187_s6 }
 0xb47   : > { %v2486_v10 = vpop.xlane.xlu0 %2485 }
 0xb48   : > { %13024 = vrcp.f32 %v2486_v10  ;;  %v3026_v10 = vpack.c.bf16 %v2185_v57, %v2184_v55 }
 0xb52   : > { %v13025_v59 = vpop.eup %13024 }
 0xb53   : > { %v2488_v63 = vmul.f32 %v13025_v59, %v13023_v54  ;;  %v12909_v54 = vld [vmem:[#allocation9 + $0x598] ss:$8 sps:$4 sm:$0xff]   ;;  %v1386_v59 = vld [vmem:[#allocation10 + $0x12] ss:$0 sm:$0xff] }
 0xb55   : > { %v2489_v2 = vpack.c.bf16 %v2488_v63, %v2488_v63  ;;  %v1470_v63 = vadd.f32 %v14063_v52, %v1386_v59 }
 0xb57   : > { %10577 = vmatmul.mubr.msk.bf16.vlgmr.msra.gmra.mrb[36].mxu1 %vm2477_vm11, %v2489_v2  ;;  %v2576_v2 = vld [vmem:[#allocation10 + $0x4] ss:$8 sm:$0x3] }
 0xb58   : > { %2749 = vmatpush1.bf16.msra.mxu1 %v12854_v1  ;;  %v1580_v1 = vpack.c.bf16 %v1470_v63, %v1470_v63 }
 0xb59   : > { %2750 = vmatprep.subr.bf16.mxu1 %v12859_v3  ;;  %v2581_v3 = vrot.slane %v2576_v2, %v13997_v30 }
 0xb5c   : > { %2751 = vmatpush1.bf16.msra.mxu1 %v12857_v4  ;;  %v2585_v4 = vrot.slane %v2576_v2, %v14000_v32 }
 0xb5d   : > { %2752 = vmatprep.subr.bf16.mxu1 %v12862_v6 }
 0xb60   : > { %2753 = vmatpush1.bf16.msra.mxu1 %v12860_v7 }
 0xb61   : > { %2754 = vmatprep.subr.bf16.mxu1 %v12865_v8 }
 0xb64   : > { %2755 = vmatpush1.bf16.msra.mxu1 %v12863_v9 }
 0xb65   : > { %2756 = vmatprep.subr.bf16.mxu1 %v12868_v11 }
 0xb68   : > { %2757 = vmatpush1.bf16.msra.mxu1 %v12866_v12 }
 0xb69   : > { %2758 = vmatprep.subr.bf16.mxu1 %v12871_v13  ;;  %v12910_v13 = vld [vmem:[#allocation9 + $0x4a8] ss:$8 sps:$4 sm:$0xff]  }
 0xb6a   : > { %11253 = vmatprep.subr.bf16.mxu0 %v12910_v13 }
 0xb6c   : > { %2759 = vmatpush1.bf16.msra.mxu1 %v12869_v14  ;;  %v12911_v14 = vld [vmem:[#allocation9 + $0x428] ss:$8 sps:$4 sm:$0xff]  }
 0xb6d   : > { %2760 = vmatprep.subr.bf16.mxu1 %v12874_v15  ;;  %v12912_v15 = vld [vmem:[#allocation9 + $0x4b8] ss:$8 sps:$4 sm:$0xff]   ;;  %11254 = vmatpush3.bf16.msra.mxu0 %v12911_v14 }
 0xb6e   : > { %11255 = vmatprep.subr.bf16.mxu0 %v12912_v15 }
 0xb70   : > { %2761 = vmatpush1.bf16.msra.mxu1 %v12872_v16  ;;  %v12913_v16 = vld [vmem:[#allocation9 + $0x438] ss:$8 sps:$4 sm:$0xff]  }
 0xb71   : > { %2762 = vmatprep.subr.bf16.mxu1 %v12877_v17  ;;  %11256 = vmatpush3.bf16.msra.mxu0 %v12913_v16 }
 0xb74   : > { %2763 = vmatpush1.bf16.msra.mxu1 %v12875_v18 }
 0xb75   : > { %2764 = vmatprep.subr.bf16.mxu1 %v12880_v20 }
 0xb78   : > { %2765 = vmatpush1.bf16.msra.mxu1 %v12878_v23 }
 0xb79   : > { %2766 = vmatprep.subr.bf16.mxu1 %v12883_v24 }
 0xb7c   : > { %2767 = vmatpush1.bf16.msra.mxu1 %v12881_v25 }
 0xb7d   : > { %2768 = vmatprep.subr.bf16.mxu1 %v12886_v61 }
 0xb80   : > { %2769 = vmatpush1.bf16.msra.mxu1 %v12884_v26  ;;  %v12914_v26 = vld [vmem:[#allocation9 + $0x4c8] ss:$8 sps:$4 sm:$0xff]  }
 0xb81   : > { %2770 = vmatprep.subr.bf16.mxu1 %v12889_v27  ;;  %v12915_v27 = vld [vmem:[#allocation9 + $0x448] ss:$8 sps:$4 sm:$0xff]   ;;  %11257 = vmatprep.subr.bf16.mxu0 %v12914_v26 }
 0xb82   : > { %11258 = vmatpush3.bf16.msra.mxu0 %v12915_v27  ;;  %v12933_v26 = vld [vmem:[#allocation9 + $0x640] ss:$8 sps:$4 sm:$0xff]  }
 0xb84   : > { %2771 = vmatpush1.bf16.msra.mxu1 %v12887_v31  ;;  %v12916_v31 = vld [vmem:[#allocation9 + $0x4d8] ss:$8 sps:$4 sm:$0xff]  }
 0xb85   : > { %2772 = vmatprep.subr.bf16.mxu1 %v12892_v33  ;;  %v12917_v33 = vld [vmem:[#allocation9 + $0x458] ss:$8 sps:$4 sm:$0xff]   ;;  %11259 = vmatprep.subr.bf16.mxu0 %v12916_v31  ;;  %v3214_v31 = vld [vmem:[#allocation10 + $0x7] ss:$0 sm:$0xff] }
 0xb86   : > { %11260 = vmatpush3.bf16.msra.mxu0 %v12917_v33 }
 0xb88   : > { %2773 = vmatpush1.bf16.msra.mxu1 %v12890_v34  ;;  %v12918_v34 = vld [vmem:[#allocation9 + $0x4e8] ss:$8 sps:$4 sm:$0xff]  }
 0xb89   : > { %2774 = vmatprep.subr.bf16.mxu1 %v12895_v35  ;;  %v12919_v35 = vld [vmem:[#allocation9 + $0x468] ss:$8 sps:$4 sm:$0xff]   ;;  %11261 = vmatprep.subr.bf16.mxu0 %v12918_v34 }
 0xb8a   : > { %11262 = vmatpush3.bf16.msra.mxu0 %v12919_v35 }
 0xb8c   : > { %2775 = vmatpush1.bf16.msra.mxu1 %v12893_v36  ;;  %v12920_v36 = vld [vmem:[#allocation9 + $0x4f8] ss:$8 sps:$4 sm:$0xff]  }
 0xb8d   : > { %2776 = vmatprep.subr.bf16.mxu1 %v12898_v37  ;;  %v12921_v37 = vld [vmem:[#allocation9 + $0x478] ss:$8 sps:$4 sm:$0xff]   ;;  %11263 = vmatprep.subr.bf16.mxu0 %v12920_v36 }
 0xb8e   : > { %11264 = vmatpush3.bf16.msra.mxu0 %v12921_v37 }
 0xb90   : > { %2777 = vmatpush1.bf16.msra.mxu1 %v12896_v39  ;;  %v12922_v39 = vld [vmem:[#allocation9 + $0x508] ss:$8 sps:$4 sm:$0xff]  }
 0xb91   : > { %2778 = vmatprep.subr.bf16.mxu1 %v12901_v40  ;;  %v12923_v40 = vld [vmem:[#allocation9 + $0x488] ss:$8 sps:$4 sm:$0xff]   ;;  %11265 = vmatprep.subr.bf16.mxu0 %v12922_v39 }
 0xb92   : > { %11266 = vmatpush3.bf16.msra.mxu0 %v12923_v40 }
 0xb94   : > { %2779 = vmatpush1.bf16.msra.mxu1 %v12899_v41  ;;  %v12924_v41 = vld [vmem:[#allocation9 + $0x518] ss:$8 sps:$4 sm:$0xff]  }
 0xb95   : > { %11776 = vmatprep.subr.bf16.mxu1 %v17386_v0  ;;  %11267 = vmatprep.subr.bf16.mxu0 %v12924_v41 }
 0xc2a   : > { %v2534_v42 = vpop.f32.mrb[36].mxu1 }
 0xc2b   : > { %v2536_v43 = vpop.f32.mrb[37].mxu1  ;;  %v2541_v62 = vpack.c.bf16 %v2534_v42, %v2534_v42  ;;  %v12925_v42 = vld [vmem:[#allocation9 + $0x498] ss:$8 sps:$4 sm:$0xff]  }
 0xc2c   : > { %v2542_v56 = vpack.c.bf16 %v2536_v43, %v2536_v43  ;;  %v2538_v5 = vpop.f32.mrb[38].mxu1  ;;  %11268 = vmatpush3.bf16.msra.mxu0 %v12925_v42  ;;  %v1491_v42 = vld [vmem:[#allocation10 + $0x13] ss:$0 sm:$0xff] }
 0xc2d   : > { %v2539_v44 = vpop.f32.mrb[39].mxu1 }
 0xc2e   : > { %2780 = vmatprep.mubr.bf16.mxu1 %v2542_v56 }
 0xc2f   : > { %2781 = vmatmul.mubr.bf16.vlgmr.msra.gmra.mrb[40].mxu1 %v2541_v62  ;;  %v2822_v62 = vld [vmem:[#allocation10 + $0x6] ss:$8 sm:$0x3] }
 0xc30   : > { %11777 = vmatpush3.bf16.msra.mxu1 %v12902_v58  ;;  %11792 = vmatprep.mubr.msk.bf16.mxu1 %vm13609_vm0, %v17386_v0  ;;  %v2807_v58 = vld [vmem:[#allocation10 + $0x5] ss:$8 sm:$0x3] }
 0xc31   : > { %11778 = vmatprep.subr.bf16.mxu1 %v17386_v0  ;;  %v2812_v44 = vrot.slane %v2807_v58, %v13997_v30 }
 0xc34   : > { %11779 = vmatpush3.bf16.msra.mxu1 %v12903_v47  ;;  %v2816_v47 = vrot.slane %v2807_v58, %v14000_v32 }
 0xc35   : > { %11780 = vmatprep.subr.bf16.mxu1 %v17386_v0 }
 0xc38   : > { %11781 = vmatpush3.bf16.msra.mxu1 %v12904_v48 }
 0xc39   : > { %11782 = vmatprep.subr.bf16.mxu1 %v17386_v0 }
 0xc3c   : > { %11783 = vmatpush3.bf16.msra.mxu1 %v12905_v49 }
 0xc3d   : > { %11784 = vmatprep.subr.bf16.mxu1 %v17386_v0 }
 0xc40   : > { %11785 = vmatpush3.bf16.msra.mxu1 %v12906_v60 }
 0xc41   : > { %11786 = vmatprep.subr.bf16.mxu1 %v17386_v0 }
 0xc44   : > { %11787 = vmatpush3.bf16.msra.mxu1 %v12907_v50  ;;  %v2827_v50 = vrot.slane %v2822_v62, %v13997_v30 }
 0xc45   : > { %11788 = vmatprep.subr.bf16.mxu1 %v17386_v0 }
 0xc48   : > { %11789 = vmatpush3.bf16.msra.mxu1 %v12908_v51  ;;  %v2831_v51 = vrot.slane %v2822_v62, %v14000_v32 }
 0xc49   : > { %11790 = vmatprep.subr.bf16.mxu1 %v17386_v0 }
 0xc4c   : > { %11791 = vmatpush3.bf16.msra.mxu1 %v12909_v54 }
 0xc4d   : > { %11821 = vmatprep.subr.bf16.mxu1 %v17386_v0 }
 0xc4f   : > { %11793 = vmatmul.mubr.bf16.vlgmr.msra.gmra.mrb[44].mxu1 %v3026_v10 }
 0xc50   : > { %11823 = vmatprep.mubr.msk.bf16.mxu1 %vm13609_vm0, %v17386_v0 }
 0xc55   : > { %11822 = vmatpush3.bf16.xpose.msra.mxu1 %v1580_v1 }
 0xc56   : > { %11827 = vmatprep.subr.bf16.mxu1 %v17386_v0 }
 0xd02   : > { %v2782_v6 = vpop.f32.mrb[40].mxu1 }
 0xd03   : > { %v2784_v7 = vpop.f32.mrb[41].mxu1  ;;  %v2783_v8 = vadd.f32 %v2782_v6, %v2581_v3  ;;  %v14163_v3 = vand.u32 127, %v673_v28 }
 0xd04   : > { %v2786_v9 = vpop.f32.mrb[42].mxu1  ;;  %v2785_v11 = vadd.f32 %v2784_v7, %v2585_v4 }
 0xd05   : > { %v2787_v12 = vpop.f32.mrb[43].mxu1  ;;  %v14166_v4 = vmul.u32 2, %v14163_v3 }
 0xd06   : > { %v2789_v52 = vadd.f32 %v2785_v11, %v2783_v8 }
 0xd07   : > { %17638 = vst [vmem:[#allocation20_spill] sm:$0xff] %v14166_v4  ;;  %v3014_v30 = vsub.s32 %v13994_v29, %v14166_v4 }
 0xd08   : > { %2790 = vadd.xlane.f32.xlu1 %v2789_v52 }
 0xd09   : > { %vm3016_vm12 = vcmp.ge.s32.totalorder %v3014_v30, 0  ;;  %vm3018_vm13 = vcmp.lt.s32.totalorder %v3014_v30, 2 }
 0xd0a   : > { %vm14170_vm14 = vmand %vm3016_vm12, %vm3018_vm13 }
 0xd22   : > { %v3125_v28 = vpop.f32.mrb[44].mxu1 }
 0xd95   : > { %v2791_v17 = vpop.xlane.xlu1 %2790 }
 0xd96   : > { %v2793_v18 = vmul.f32 0.00390625, %v2791_v17  ;;  %v12926_v17 = vld [vmem:[#allocation9 + $0x5d0] ss:$8 sps:$4 sm:$0xff]  }
 0xd98   : > { %v2794_v20 = vsub.f32 %v2783_v8, %v2793_v18  ;;  %v2795_v23 = vsub.f32 %v2785_v11, %v2793_v18  ;;  %v14182_v8 = vadd.s32 8, %v13994_v29  ;;  %v12927_v18 = vld [vmem:[#allocation9 + $0x5e0] ss:$8 sps:$4 sm:$0xff]  }
 0xd9a   : > { %v2796_v24 = vmul.f32 %v2794_v20, %v2794_v20  ;;  %v2797_v25 = vmul.f32 %v2795_v23, %v2795_v23  ;;  %v3015_v9 = vsub.s32 %v14182_v8, %v14166_v4 }
 0xd9c   : > { %v2798_v61 = vadd.f32 %v2797_v25, %v2796_v24  ;;  %vm3017_vm1 = vcmp.ge.s32.totalorder %v3015_v9, 0  ;;  %vm3019_vm2 = vcmp.lt.s32.totalorder %v3015_v9, 2  ;;  %v12930_v24 = vld [vmem:[#allocation9 + $0x610] ss:$8 sps:$4 sm:$0xff]   ;;  %v12931_v25 = vld [vmem:[#allocation9 + $0x620] ss:$8 sps:$4 sm:$0xff]  }
 0xd9d   : > { %vm14186_vm4 = vmand %vm3017_vm1, %vm3019_vm2 }
 0xd9e   : > { %2799 = vadd.xlane.f32.xlu1 %v2798_v61  ;;  %v14193_v16 = vsel %vm14186_vm4, 1.0, %v17386_v0  ;;  %v12932_v61 = vld [vmem:[#allocation9 + $0x630] ss:$8 sps:$4 sm:$0xff]  }
 0xe2b   : > { %v2800_v43 = vpop.xlane.xlu1 %2799 }
 0xe2c   : > { %v2801_v56 = vmul.f32 0.00390625, %v2800_v43  ;;  %v1575_v43 = vadd.f32 %v14065_v53, %v1491_v42  ;;  %v3220_v42 = vld [vmem:[%s13958_s21 + $0x8] sm:$0xff] }
 0xe2e   : > { %v2802_v5 = vadd.f32 1e-05, %v2801_v56  ;;  %v3240_v56 = vld [vmem:[#allocation10 + $0x11] ss:$0 sm:$0xff] }
 0xe30   : > { %13026 = vrsqrt.f32 %v2802_v5 }
 0xe3a   : > { %v13027_v48 = vpop.eup %13026 }
 0xe3b   : > { %v2804_v49 = vmul.f32 %v13027_v48, %v2794_v20  ;;  %v2805_v60 = vmul.f32 %v13027_v48, %v2795_v23  ;;  %v12928_v20 = vld [vmem:[#allocation9 + $0x5f0] ss:$8 sps:$4 sm:$0xff]   ;;  %v12929_v23 = vld [vmem:[#allocation9 + $0x600] ss:$8 sps:$4 sm:$0xff]  }
 0xe3d   : > { %v2820_v54 = vmul.f32 %v2816_v47, %v2805_v60  ;;  %v2819_v55 = vmul.f32 %v2812_v44, %v2804_v49  ;;  %v1581_v44 = vpack.c.bf16 %v1575_v43, %v1575_v43 }
 0xe3f   : > { %v2835_v57 = vadd.f32 %v2831_v51, %v2820_v54  ;;  %v2834_v10 = vadd.f32 %v2827_v50, %v2819_v55  ;;  %v3401_v50 = vsel %vm2493_vm10, %v1581_v44, 0 }
 0xe41   : > { %v2837_v59 = vadd.f32 %v2835_v57, %v14112_v38  ;;  %v2836_v63 = vadd.f32 %v2834_v10, %v14120_v19  ;;  %v14177_v38 = vsel %vm14170_vm14, 1.0, %v17386_v0  ;;  %v11794_v19 = vpop.f32.mrb[45].mxu1 }
 0xe42   : > { %v3128_v6 = vpop.f32.mrb[46].mxu1 }
 0xe43   : > { %v2839_v1 = vpack.c.bf16 %v2837_v59, %v2837_v59  ;;  %v2838_v2 = vpack.c.bf16 %v2836_v63, %v2836_v63  ;;  %v11795_v7 = vpop.f32.mrb[47].mxu1 }
 0xe45   : > { %3000 = vmatprep.mubr.bf16.mxu0 %v2839_v1 }
 0xe46   : > { %3001 = vmatmul.mubr.bf16.vlgmr.msra.gmra.mrb[36].mxu0 %v2838_v2 }
 0xe47   : > { %11798 = vmatprep.mubr.msk.f32.mxu0 %vm17385_vm15, %v14177_v38 }
 0xf19   : > { %v11269_v11 = vpop.f32.mrb[36].mxu0 }
 0xf1a   : > { %v11270_v52 = vpop.f32.mrb[37].mxu0 }
 0xf1b   : > { %v11271_v13 = vadd.f32 %v11270_v52, %v11269_v11  ;;  %v11272_v14 = vpop.f32.mrb[38].mxu0 }
 0xf1c   : > { %v11273_v15 = vpop.f32.mrb[39].mxu0 }
 0xf1d   : > { %11796 = vmatprep.subr.mxu0 %v11271_v13 }
 0xf1e   : > { %11797 = vmatpush3.msra.mxu0 %v11271_v13 }
 0xf1f   : > { %11799 = vmatmul.mubr.msk.f32.vlgmr.msra.gmra.mrb[40].mxu0 %vm17385_vm15, %v14193_v16  ;;  %11801 = vmatprep.subr.bf16.mxu0 %v17386_v0 }
 0xf20   : > { %11802 = vmatpush3.bf16.msra.mxu0 %v12926_v17  ;;  %11817 = vmatprep.mubr.msk.bf16.mxu0 %vm13609_vm0, %v17386_v0 }
 0xf21   : > { %11803 = vmatprep.subr.bf16.mxu0 %v17386_v0 }
 0xf24   : > { %11804 = vmatpush3.bf16.msra.mxu0 %v12927_v18 }
 0xf25   : > { %11805 = vmatprep.subr.bf16.mxu0 %v17386_v0 }
 0xf28   : > { %11806 = vmatpush3.bf16.msra.mxu0 %v12928_v20 }
 0xf29   : > { %11807 = vmatprep.subr.bf16.mxu0 %v17386_v0 }
 0xf2c   : > { %11808 = vmatpush3.bf16.msra.mxu0 %v12929_v23  ;;  %v12934_v23 = vld [vmem:[#allocation9 + $0x750] ss:$8 sps:$4 sm:$0xff]  }
 0xf2d   : > { %11809 = vmatprep.subr.bf16.mxu0 %v17386_v0 }
 0xf30   : > { %11810 = vmatpush3.bf16.msra.mxu0 %v12930_v24 }
 0xf31   : > { %11811 = vmatprep.subr.bf16.mxu0 %v17386_v0 }
 0xf34   : > { %11812 = vmatpush3.bf16.msra.mxu0 %v12931_v25  ;;  %v12935_v25 = vld [vmem:[#allocation9 + $0x760] ss:$8 sps:$4 sm:$0xff]  }
 0xf35   : > { %11813 = vmatprep.subr.bf16.mxu0 %v17386_v0 }
 0xf38   : > { %11814 = vmatpush3.bf16.msra.mxu0 %v12932_v61  ;;  %v12936_v61 = vld [vmem:[#allocation9 + $0x770] ss:$8 sps:$4 sm:$0xff]  }
 0xf39   : > { %11815 = vmatprep.subr.bf16.mxu0 %v17386_v0 }
 0xf3c   : > { %11816 = vmatpush3.bf16.msra.mxu0 %v12933_v26  ;;  %v12937_v26 = vld [vmem:[#allocation9 + $0x780] ss:$8 sps:$4 sm:$0xff]  }
 0xf3d   : > { %11853 = vmatprep.subr.bf16.mxu0 %v17386_v0 }
 0xff2   : > { %v11800_v27 = vpop.f32.mrb[40].mxu0 }
 0xff3   : > { %v3211_v33 = vadd.f32 %v11800_v27, %v3128_v6  ;;  %v3205_v34 = vpop.f32.mrb[41].mxu0  ;;  %v12938_v27 = vld [vmem:[#allocation9 + $0x790] ss:$8 sps:$4 sm:$0xff]  }
 0xff4   : > { %v3206_v35 = vadd.f32 %v3205_v34, %v3125_v28  ;;  %v12941_v34 = vld [vmem:[#allocation9 + $0x7c0] ss:$8 sps:$4 sm:$0xff]  }
 0xff5   : > { %v14208_v36 = vadd.f32 %v3214_v31, %v3211_v33  ;;  %v12940_v33 = vld [vmem:[#allocation9 + $0x7b0] ss:$8 sps:$4 sm:$0xff]  }
 0xff6   : > { %v14210_v37 = vadd.f32 %v3214_v31, %v3206_v35  ;;  %v12939_v31 = vld [vmem:[#allocation9 + $0x7a0] ss:$8 sps:$4 sm:$0xff]   ;;  %v12942_v35 = vld [vmem:[#allocation9 + $0x850] ss:$8 sps:$4 sm:$0xff]  }
 0xff7   : > { %v3218_v39 = vmax.f32 %v14208_v36, 0.0 }
 0xff8   : > { %v3217_v40 = vmax.f32 %v14210_v37, 0.0 }
 0xffa   : > { %v3223_v41 = vpack.c.bf16 %v3218_v39, %v3217_v40 }
 0xffc   : > { %11818 = vmatmul.mubr.bf16.vlgmr.msra.gmra.mrb[44].mxu0 %v3223_v41  ;;  %v3219_v41 = vld [vmem:[%s13958_s21] sm:$0xff] }
 0xffd   : > { %11869 = vmatprep.mubr.msk.bf16.mxu0 %vm13609_vm0, %v17386_v0 }
0x10cf   : > { %v3323_v5 = vpop.f32.mrb[44].mxu0 }
0x10d0   : > { %v11819_v58 = vpop.f32.mrb[45].mxu0  ;;  %v3324_v47 = vadd.f32 %v3323_v5, %v3240_v56 }
0x10d1   : > { %v3326_v62 = vpop.f32.mrb[46].mxu0  ;;  %v3702_v58 = vpack.c.bf16 %v3220_v42, %v3219_v41 }
0x10d2   : > { %v3327_v48 = vadd.f32 %v3326_v62, %v3240_v56  ;;  %v11820_v49 = vpop.f32.mrb[47].mxu0 }
0x10d3   : > { %v12945_v49 = vld [vmem:[#allocation9 + $0x880] ss:$8 sps:$4 sm:$0xff]  }
0x10d4   : > { %v3330_v60 = vpack.c.bf16 %v3327_v48, %v3324_v47  ;;  %v12943_v47 = vld [vmem:[#allocation9 + $0x860] ss:$8 sps:$4 sm:$0xff]   ;;  %v12944_v48 = vld [vmem:[#allocation9 + $0x870] ss:$8 sps:$4 sm:$0xff]  }
0x10d6   : > { %11824 = vmatmul.mubr.bf16.vlgmr.msra.gmra.mrb[48].mxu1 %v3330_v60  ;;  %v12946_v60 = vld [vmem:[#allocation9 + $0x890] ss:$8 sps:$4 sm:$0xff]  }
0x10d7   : > { %11828 = vmatpush3.bf16.msra.mxu1 %v3401_v50  ;;  %11829 = vmatprep.mubr.msk.bf16.mxu1 %vm13609_vm0, %v17386_v0  ;;  %v12947_v50 = vld [vmem:[#allocation9 + $0x8a0] ss:$8 sps:$4 sm:$0xff]  }
0x10d8   : > { %11833 = vmatprep.subr.bf16.mxu1 %v17386_v0 }
0x11a9   : > { %v3365_v51 = vpop.f32.mrb[48].mxu1 }
0x11aa   : > { %v3372_v53 = vmul.f32 0.088388346, %v3365_v51  ;;  %v11825_v54 = vpop.f32.mrb[49].mxu1  ;;  %v12948_v51 = vld [vmem:[#allocation9 + $0x8b0] ss:$8 sps:$4 sm:$0xff]  }
0x11ab   : > { %v3368_v55 = vpop.f32.mrb[50].mxu1  ;;  %v12949_v54 = vld [vmem:[#allocation9 + $0x8c0] ss:$8 sps:$4 sm:$0xff]  }
0x11ac   : > { %v3373_v57 = vmul.f32 0.088388346, %v3368_v55  ;;  %v11826_v10 = vpop.f32.mrb[51].mxu1  ;;  %v3374_v59 = vsel %vm2477_vm11, %v3372_v53, -inf }
0x11ad   : > { %3375 = vmax.xlane.f32.xlu0 %v3374_v59  ;;  %v3222_v10 = vld [vmem:[%s13958_s21 + $0x18] sm:$0xff] }
0x11ae   : > { %v3377_v63 = vsel %vm2477_vm11, %v3373_v57, -inf }
0x11af   : > { %3378 = vmax.xlane.f32.xlu1 %v3377_v63 }
0x123a   : > { %v3376_v1 = vpop.xlane.xlu0 %3375 }
0x123b   : > { %v3380_v2 = vsub.f32 %v3372_v53, %v3376_v1  ;;  %v1716_v53 = vld [vmem:[#allocation10 + $0x22] ss:$0 sm:$0xff]  ;;  %v1821_v1 = vld [vmem:[#allocation10 + $0x23] ss:$0 sm:$0xff] }
0x123c   : > { %v3379_v30 = vpop.xlane.xlu1 %3378  ;;  %v1800_v55 = vadd.f32 %v14093_v45, %v1716_v53  ;;  %v3461_v45 = vld [vmem:[#allocation10 + $0x14] ss:$0 sm:$0xff] }
0x123d   : > { %v3382_v28 = vmul.f32 1.442695, %v3380_v2  ;;  %v3381_v19 = vsub.f32 %v3373_v57, %v3379_v30  ;;  %v3221_v57 = vld [vmem:[%s13958_s21 + $0x10] sm:$0xff]  ;;  %v1905_v2 = vadd.f32 %v14095_v46, %v1821_v1  ;;  %v14263_v1 = vadd.s32 16, %v13994_v29  ;;  %s18140_s21 = sld [smem:[#allocation90_spill]] }
0x123e   : > { %v1910_v59 = vpack.c.bf16 %v1800_v55, %v1800_v55  ;;  %v3703_v63 = vpack.c.bf16 %v3222_v10, %v3221_v57 }
0x123f   : > { %13028 = vpow2.f32 %v3382_v28  ;;  %v3384_v6 = vmul.f32 1.442695, %v3381_v19  ;;  %v14245_v30 = vpack.c.bf16 %v1905_v2, %v1905_v2  ;;  %v14266_v2 = vadd.s32 24, %v13994_v29 }
0x1240   : > { %v3690_v36 = vsub.s32 %v14263_v1, %v14166_v4 }
0x1241   : > { %13030 = vpow2.f32 %v3384_v6 }
0x1242   : > { %vm3692_vm6 = vcmp.ge.s32.totalorder %v3690_v36, 0  ;;  %vm3694_vm7 = vcmp.lt.s32.totalorder %v3690_v36, 2 }
0x1243   : > { %vm14272_vm8 = vmand %vm3692_vm6, %vm3694_vm7  ;;  %s16741_s20 = scalar_lea.vmem %s18140_s21, %s11187_s6 }
0x1249   : > { %v13029_v7 = vpop.eup %13028 }
0x124a   : > { %v3386_v9 = vsel %vm2477_vm11, %v13029_v7, 0.0 }
0x124b   : > { %v13031_v11 = vpop.eup %13030  ;;  %3387 = vadd.xlane.f32.xlu0 %v3386_v9 }
0x124c   : > { %v3389_v52 = vsel %vm2477_vm11, %v13031_v11, 0.0 }
0x124d   : > { %3390 = vadd.xlane.f32.xlu1 %v3389_v52  ;;  %v12950_v52 = vld [vmem:[#allocation9 + $0x7d0] ss:$8 sps:$4 sm:$0xff]  }
0x124e   : > { %11854 = vmatpush3.bf16.msra.mxu0 %v12950_v52  ;;  %v12959_v52 = vld [vmem:[#allocation9 + $0x908] ss:$8 sps:$4 sm:$0xff]  }
0x124f   : > { %11855 = vmatprep.subr.bf16.mxu0 %v17386_v0 }
0x12d8   : > { %v3388_v13 = vpop.xlane.xlu0 %3387 }
0x12d9   : > { %13032 = vrcp.f32 %v3388_v13 }
0x12da   : > { %v3391_v14 = vpop.xlane.xlu1 %3390 }
0x12db   : > { %13034 = vrcp.f32 %v3391_v14 }
0x12e3   : > { %v13033_v15 = vpop.eup %13032 }
0x12e4   : > { %v3394_v18 = vmul.f32 %v13033_v15, %v13029_v7 }
0x12e5   : > { %v13035_v17 = vpop.eup %13034 }
0x12e6   : > { %v3395_v20 = vmul.f32 %v13035_v17, %v13031_v11 }
0x12e8   : > { %v3396_v24 = vpack.c.bf16 %v3395_v20, %v3394_v18 }
0x12ea   : > { %11830 = vmatmul.mubr.msk.bf16.vlgmr.msra.gmra.mrb[52].mxu1 %vm2477_vm11, %v3396_v24  ;;  %v12951_v24 = vld [vmem:[#allocation9 + $0x7e0] ss:$8 sps:$4 sm:$0xff]  }
0x12eb   : > { %11834 = vmatpush3.bf16.msra.mxu1 %v12934_v23  ;;  %11849 = vmatprep.mubr.msk.bf16.mxu1 %vm13609_vm0, %v17386_v0  ;;  %vm4153_vm0 = vcmask 1043456  }
0x12ec   : > { %11835 = vmatprep.subr.bf16.mxu1 %v17386_v0  ;;  %11856 = vmatpush3.bf16.msra.mxu0 %v12951_v24  ;;  %v3913_v24 = vld [vmem:[#allocation10 + $0x17] ss:$0 sm:$0xff] }
0x12ed   : > { %11857 = vmatprep.subr.bf16.mxu0 %v17386_v0 }
0x12ef   : > { %11836 = vmatpush3.bf16.msra.mxu1 %v12935_v25  ;;  %v12952_v25 = vld [vmem:[#allocation9 + $0x7f0] ss:$8 sps:$4 sm:$0xff]  }
0x12f0   : > { %11837 = vmatprep.subr.bf16.mxu1 %v17386_v0  ;;  %11858 = vmatpush3.bf16.msra.mxu0 %v12952_v25 }
0x12f1   : > { %11859 = vmatprep.subr.bf16.mxu0 %v17386_v0 }
0x12f3   : > { %11838 = vmatpush3.bf16.msra.mxu1 %v12936_v61  ;;  %v12953_v61 = vld [vmem:[#allocation9 + $0x800] ss:$8 sps:$4 sm:$0xff]  }
0x12f4   : > { %11839 = vmatprep.subr.bf16.mxu1 %v17386_v0  ;;  %11860 = vmatpush3.bf16.msra.mxu0 %v12953_v61 }
0x12f5   : > { %11861 = vmatprep.subr.bf16.mxu0 %v17386_v0 }
0x12f7   : > { %11840 = vmatpush3.bf16.msra.mxu1 %v12937_v26  ;;  %v12954_v26 = vld [vmem:[#allocation9 + $0x810] ss:$8 sps:$4 sm:$0xff]  }
0x12f8   : > { %11841 = vmatprep.subr.bf16.mxu1 %v17386_v0  ;;  %11862 = vmatpush3.bf16.msra.mxu0 %v12954_v26 }
0x12f9   : > { %11863 = vmatprep.subr.bf16.mxu0 %v17386_v0 }
0x12fb   : > { %11842 = vmatpush3.bf16.msra.mxu1 %v12938_v27  ;;  %v12955_v27 = vld [vmem:[#allocation9 + $0x820] ss:$8 sps:$4 sm:$0xff]  }
0x12fc   : > { %11843 = vmatprep.subr.bf16.mxu1 %v17386_v0  ;;  %11864 = vmatpush3.bf16.msra.mxu0 %v12955_v27 }
0x12fd   : > { %11865 = vmatprep.subr.bf16.mxu0 %v17386_v0 }
0x12ff   : > { %11844 = vmatpush3.bf16.msra.mxu1 %v12939_v31  ;;  %v12956_v31 = vld [vmem:[#allocation9 + $0x830] ss:$8 sps:$4 sm:$0xff]  }
0x1300   : > { %11845 = vmatprep.subr.bf16.mxu1 %v17386_v0  ;;  %11866 = vmatpush3.bf16.msra.mxu0 %v12956_v31 }
0x1301   : > { %11867 = vmatprep.subr.bf16.mxu0 %v17386_v0 }
0x1303   : > { %11846 = vmatpush3.bf16.msra.mxu1 %v12940_v33  ;;  %v12957_v33 = vld [vmem:[#allocation9 + $0x840] ss:$8 sps:$4 sm:$0xff]  }
0x1304   : > { %11847 = vmatprep.subr.bf16.mxu1 %v17386_v0  ;;  %11868 = vmatpush3.bf16.msra.mxu0 %v12957_v33 }
0x1307   : > { %11848 = vmatpush3.bf16.msra.mxu1 %v12941_v34 }
0x1308   : > { %11873 = vmatprep.subr.bf16.mxu1 %v12942_v35 }
0x13bd   : > { %v3437_v43 = vpop.f32.mrb[52].mxu1 }
0x13be   : > { %v11831_v56 = vpop.f32.mrb[53].mxu1 }
0x13bf   : > { %v3440_v5 = vpop.f32.mrb[54].mxu1 }
0x13c0   : > { %v3444_v62 = vpack.c.bf16 %v3440_v5, %v3437_v43  ;;  %v11832_v44 = vpop.f32.mrb[55].mxu1 }
0x13c2   : > { %11850 = vmatmul.mubr.bf16.vlgmr.msra.gmra.mrb[56].mxu1 %v3444_v62 }
0x13c3   : > { %11874 = vmatpush3.bf16.msra.mxu1 %v12942_v35  ;;  %11889 = vmatprep.mubr.bf16.mxu1 %v3702_v58  ;;  %v3574_v58 = vld [vmem:[#allocation10 + $0x15] ss:$0 sm:$0xff] }
0x13c4   : > { %11875 = vmatprep.subr.bf16.mxu1 %v12943_v47 }
0x13c7   : > { %11876 = vmatpush3.bf16.msra.mxu1 %v12943_v47  ;;  %v3577_v47 = vld [vmem:[#allocation10 + $0x16] ss:$0 sm:$0xff] }
0x13c8   : > { %11877 = vmatprep.subr.bf16.mxu1 %v12944_v48 }
0x13cb   : > { %11878 = vmatpush3.bf16.msra.mxu1 %v12944_v48 }
0x13cc   : > { %11879 = vmatprep.subr.bf16.mxu1 %v12945_v49 }
0x13cf   : > { %11880 = vmatpush3.bf16.msra.mxu1 %v12945_v49 }
0x13d0   : > { %11881 = vmatprep.subr.bf16.mxu1 %v12946_v60 }
0x13d3   : > { %11882 = vmatpush3.bf16.msra.mxu1 %v12946_v60 }
0x13d4   : > { %11883 = vmatprep.subr.bf16.mxu1 %v12947_v50 }
0x13d7   : > { %11884 = vmatpush3.bf16.msra.mxu1 %v12947_v50 }
0x13d8   : > { %11885 = vmatprep.subr.bf16.mxu1 %v12948_v51 }
0x13db   : > { %11886 = vmatpush3.bf16.msra.mxu1 %v12948_v51 }
0x13dc   : > { %11887 = vmatprep.subr.bf16.mxu1 %v12949_v54 }
0x13df   : > { %11888 = vmatpush3.bf16.msra.mxu1 %v12949_v54 }
0x13e0   : > { %11923 = vmatprep.subr.bf16.mxu1 %v1910_v59 }
0x13e2   : > { %11890 = vmatmul.mubr.bf16.vlgmr.msra.gmra.mrb[60].mxu1 %v3703_v63 }
0x13e8   : > { %11924 = vmatpush3.bf16.xpose.msra.mxu1 %v1910_v59 }
0x13e9   : > { %12571 = vmatprep.subr.msk.bf16.mxu1 %vm4153_vm0, %v14245_v30 }
0x1495   : > { %v3544_v28 = vpop.f32.mrb[56].mxu1 }
0x1496   : > { %v3545_v19 = vadd.f32 %v3544_v28, %v3461_v45  ;;  %v11851_v6 = vpop.f32.mrb[57].mxu1 }
0x1497   : > { %v3547_v7 = vpop.f32.mrb[58].mxu1  ;;  %v12958_v6 = vld [vmem:[#allocation9 + $0x8f8] ss:$8 sps:$4 sm:$0xff]  }
0x1498   : > { %v3548_v9 = vadd.f32 %v3547_v7, %v3461_v45  ;;  %3551 = vadd.xlane.f32.xlu0 %v3545_v19  ;;  %v11852_v11 = vpop.f32.mrb[59].mxu1  ;;  %v6840_v7 = vld [vmem:[%s15219_s13 + $0x138] sm:$0xff] }
0x149a   : > { %3553 = vadd.xlane.f32.xlu1 %v3548_v9 }
0x14b5   : > { %v11891_v57 = vpop.f32.mrb[60].mxu1 }
0x14b6   : > { %v3802_v10 = vpop.f32.mrb[61].mxu1 }
0x14b7   : > { %v11892_v59 = vpop.f32.mrb[62].mxu1 }
0x14b8   : > { %v3805_v63 = vpop.f32.mrb[63].mxu1 }
0x1525   : > { %v3552_v46 = vpop.xlane.xlu0 %3551 }
0x1526   : > { %v3556_v13 = vmul.f32 0.0078125, %v3552_v46 }
0x1527   : > { %v3554_v14 = vpop.xlane.xlu1 %3553 }
0x1528   : > { %v3557_v15 = vmul.f32 0.0078125, %v3554_v14  ;;  %v3558_v17 = vsub.f32 %v3545_v19, %v3556_v13  ;;  %v12960_v13 = vld [vmem:[#allocation9 + $0x918] ss:$8 sps:$4 sm:$0xff]   ;;  %v12961_v14 = vld [vmem:[#allocation9 + $0x928] ss:$8 sps:$4 sm:$0xff]  }
0x152a   : > { %v3560_v18 = vmul.f32 %v3558_v17, %v3558_v17  ;;  %v3559_v20 = vsub.f32 %v3548_v9, %v3557_v15  ;;  %v14279_v9 = vsel %vm14272_vm8, 1.0, %v17386_v0  ;;  %v12962_v15 = vld [vmem:[#allocation9 + $0x938] ss:$8 sps:$4 sm:$0xff]  }
0x152c   : > { %3562 = vadd.xlane.f32.xlu0 %v3560_v18  ;;  %v3561_v23 = vmul.f32 %v3559_v20, %v3559_v20  ;;  %v12964_v18 = vld [vmem:[#allocation9 + $0x958] ss:$8 sps:$4 sm:$0xff]  }
0x152e   : > { %3564 = vadd.xlane.f32.xlu1 %v3561_v23 }
0x15b9   : > { %v3563_v34 = vpop.xlane.xlu0 %3562 }
0x15ba   : > { %v3566_v35 = vmul.f32 0.0078125, %v3563_v34 }
0x15bb   : > { %v3565_v41 = vpop.xlane.xlu1 %3564 }
0x15bc   : > { %v3568_v42 = vadd.f32 1e-05, %v3566_v35  ;;  %v3567_v43 = vmul.f32 0.0078125, %v3565_v41 }
0x15be   : > { %13036 = vrsqrt.f32 %v3568_v42  ;;  %v3569_v56 = vadd.f32 1e-05, %v3567_v43 }
0x15c0   : > { %13038 = vrsqrt.f32 %v3569_v56 }
0x15c8   : > { %v13037_v5 = vpop.eup %13036 }
0x15c9   : > { %v3572_v62 = vmul.f32 %v13037_v5, %v3558_v17  ;;  %v12963_v17 = vld [vmem:[#allocation9 + $0x948] ss:$8 sps:$4 sm:$0xff]  }
0x15ca   : > { %v13039_v44 = vpop.eup %13038 }
0x15cb   : > { %v3573_v48 = vmul.f32 %v13039_v44, %v3559_v20  ;;  %v3575_v49 = vmul.f32 %v3574_v58, %v3572_v62  ;;  %v12965_v20 = vld [vmem:[#allocation9 + $0x968] ss:$8 sps:$4 sm:$0xff]  }
0x15cd   : > { %v3576_v60 = vmul.f32 %v3574_v58, %v3573_v48  ;;  %v3578_v50 = vadd.f32 %v3577_v47, %v3575_v49  ;;  %v3948_v49 = vld [vmem:[#allocation10 + $0x21] ss:$0 sm:$0xff] }
0x15cf   : > { %v3579_v51 = vadd.f32 %v3577_v47, %v3576_v60  ;;  %v3580_v53 = vadd.f32 %v3578_v50, %v3217_v40 }
0x15d1   : > { %v3581_v54 = vadd.f32 %v3579_v51, %v3218_v39  ;;  %v3691_v39 = vsub.s32 %v14266_v2, %v14166_v4 }
0x15d3   : > { %v3582_v55 = vpack.c.bf16 %v3581_v54, %v3580_v53  ;;  %vm3693_vm10 = vcmp.ge.s32.totalorder %v3691_v39, 0  ;;  %vm3695_vm11 = vcmp.lt.s32.totalorder %v3691_v39, 2 }
0x15d4   : > { %vm14281_vm12 = vmand %vm3693_vm10, %vm3695_vm11 }
0x15d5   : > { %11870 = vmatmul.mubr.bf16.vlgmr.msra.gmra.mrb[48].mxu0 %v3582_v55  ;;  %v14292_v46 = vsel %vm14281_vm12, 1.0, %v17386_v0 }
0x15d6   : > { %11897 = vmatprep.mubr.msk.f32.mxu0 %vm3817_vm5, %v14177_v38 }
0x16a8   : > { %v3681_v37 = vpop.f32.mrb[48].mxu0 }
0x16a9   : > { %v11871_v40 = vpop.f32.mrb[49].mxu0 }
0x16aa   : > { %v3684_v45 = vpop.f32.mrb[50].mxu0 }
0x16ab   : > { %v12455_v28 = vpack.c.bf16 %v3684_v45, %v3681_v37  ;;  %v11872_v19 = vpop.f32.mrb[51].mxu0 }
0x16ad   : > { %12456 = vmatprep.subr.bf16.mxu0 %v12455_v28 }
0x16ae   : > { %12458 = vmatpush3.bf16.msra.mxu0 %v12455_v28 }
0x16af   : > { %11903 = vmatprep.subr.bf16.mxu0 %v12958_v6 }
0x16b1   : > { %11898 = vmatmul.mubr.msk.f32.vlgmr.msra.gmra.mrb[42].mxu0 %vm3817_vm5, %v14193_v16 }
0x16b2   : > { %11900 = vmatprep.mubr.msk.f32.mxu0 %vm3817_vm5, %v14279_v9  ;;  %11904 = vmatpush3.bf16.msra.mxu0 %v12958_v6 }
0x16b3   : > { %11905 = vmatprep.subr.bf16.mxu0 %v12959_v52 }
0x16b5   : > { %11901 = vmatmul.mubr.msk.f32.gmra.mrb[52].mxu0 %vm3817_vm5, %v14292_v46 }
0x16b6   : > { %11906 = vmatpush3.bf16.msra.mxu0 %v12959_v52 }
0x16b7   : > { %11907 = vmatprep.subr.bf16.mxu0 %v12960_v13 }
0x16ba   : > { %11908 = vmatpush3.bf16.msra.mxu0 %v12960_v13 }
0x16bb   : > { %11909 = vmatprep.subr.bf16.mxu0 %v12961_v14 }
0x16be   : > { %11910 = vmatpush3.bf16.msra.mxu0 %v12961_v14 }
0x16bf   : > { %11911 = vmatprep.subr.bf16.mxu0 %v12962_v15 }
0x16c2   : > { %11912 = vmatpush3.bf16.msra.mxu0 %v12962_v15 }
0x16c3   : > { %11913 = vmatprep.subr.bf16.mxu0 %v12963_v17 }
0x16c6   : > { %11914 = vmatpush3.bf16.msra.mxu0 %v12963_v17 }
0x16c7   : > { %11915 = vmatprep.subr.bf16.mxu0 %v12964_v18 }
0x16ca   : > { %11916 = vmatpush3.bf16.msra.mxu0 %v12964_v18 }
0x16cb   : > { %11917 = vmatprep.subr.bf16.mxu0 %v12965_v20 }
0x16ce   : > { %11918 = vmatpush3.bf16.msra.mxu0 %v12965_v20 }
0x1784   : > { %v11899_v23 = vpop.f32.mrb[42].mxu0 }
0x1785   : > { %v3900_v25 = vadd.f32 %v11899_v23, %v3805_v63  ;;  %v3894_v61 = vpop.f32.mrb[43].mxu0  ;;  %v4155_v63 = vsel %vm4153_vm0, %v14245_v30, 0 }
0x1786   : > { %v3895_v26 = vadd.f32 %v3894_v61, %v3802_v10 }
0x1787   : > { %v14296_v27 = vadd.f32 %v3913_v24, %v3900_v25 }
0x1788   : > { %v14298_v31 = vadd.f32 %v3913_v24, %v3895_v26  ;;  %v11902_v33 = vpop.f32.mrb[52].mxu0 }
0x1789   : > { %v3919_v34 = vmax.f32 %v14296_v27, 0.0  ;;  %v3910_v35 = vadd.f32 %v11902_v33, %v11892_v59  ;;  %v3904_v41 = vpop.f32.mrb[53].mxu0  ;;  %v3927_v27 = vld [vmem:[%s13960_s27 + $0x28] sm:$0xff] }
0x178a   : > { %v3918_v42 = vmax.f32 %v14298_v31, 0.0  ;;  %v3905_v43 = vadd.f32 %v11891_v57, %v3904_v41  ;;  %v3926_v31 = vld [vmem:[%s13960_s27 + $0x20] sm:$0xff] }
0x178b   : > { %v14302_v56 = vadd.f32 %v3913_v24, %v3910_v35 }
0x178c   : > { %v14304_v5 = vadd.f32 %v3913_v24, %v3905_v43  ;;  %v3930_v58 = vpack.c.bf16 %v3919_v34, %v3918_v42 }
0x178d   : > { %v3921_v62 = vmax.f32 %v14302_v56, 0.0 }
0x178e   : > { %v3920_v44 = vmax.f32 %v14304_v5, 0.0  ;;  %11919 = vmatprep.mubr.bf16.mxu0 %v3930_v58 }
0x1790   : > { %v3931_v47 = vpack.c.bf16 %v3921_v62, %v3920_v44 }
0x1792   : > { %11920 = vmatmul.mubr.bf16.vlgmr.msra.gmra.mrb[56].mxu0 %v3931_v47 }
0x1865   : > { %v11921_v48 = vpop.f32.mrb[56].mxu0 }
0x1866   : > { %v4031_v60 = vpop.f32.mrb[57].mxu0  ;;  %v4040_v51 = vadd.f32 %v11921_v48, %v3948_v49 }
0x1867   : > { %v11922_v50 = vpop.f32.mrb[58].mxu0  ;;  %v4032_v55 = vadd.f32 %v4031_v60, %v3948_v49 }
0x1868   : > { %v4043_v53 = vadd.f32 %v11922_v50, %v3948_v49  ;;  %v4034_v54 = vpop.f32.mrb[59].mxu0 }
0x1869   : > { %v4035_v57 = vadd.f32 %v4034_v54, %v3948_v49  ;;  %v12967_v54 = vld [vmem:[#allocation9 + $0xa88] ss:$8 sps:$4 sm:$0xff]  }
0x186a   : > { %v4047_v10 = vpack.c.bf16 %v4043_v53, %v4040_v51  ;;  %v12966_v53 = vld [vmem:[#allocation9 + $0xa78] ss:$8 sps:$4 sm:$0xff]  }
0x186b   : > { %v4046_v59 = vpack.c.bf16 %v4035_v57, %v4032_v55  ;;  %11935 = vmatprep.subr.bf16.mxu0 %v12966_v53  ;;  %v12968_v55 = vld [vmem:[#allocation9 + $0xa98] ss:$8 sps:$4 sm:$0xff]   ;;  %v12969_v57 = vld [vmem:[#allocation9 + $0xaa8] ss:$8 sps:$4 sm:$0xff]  }
0x186c   : > { %11936 = vmatpush3.bf16.msra.mxu0 %v12966_v53 }
0x186d   : > { %11925 = vmatprep.mubr.bf16.mxu1 %v4046_v59  ;;  %11937 = vmatprep.subr.bf16.mxu0 %v12967_v54  ;;  %v12971_v59 = vld [vmem:[#allocation9 + $0xac8] ss:$8 sps:$4 sm:$0xff]  }
0x186e   : > { %11926 = vmatmul.mubr.bf16.vlgmr.msra.gmra.mrb[64].mxu1 %v4047_v10  ;;  %v12970_v10 = vld [vmem:[#allocation9 + $0xab8] ss:$8 sps:$4 sm:$0xff]  }
0x186f   : > { %11930 = vmatpush3.bf16.msra.mxu1 %v4155_v63  ;;  %v12972_v63 = vld [vmem:[#allocation9 + $0xad8] ss:$8 sps:$4 sm:$0xff]  }
0x1870   : > { %11938 = vmatpush3.bf16.msra.mxu0 %v12967_v54 }
0x1871   : > { %11939 = vmatprep.subr.bf16.mxu0 %v12968_v55 }
0x1874   : > { %11940 = vmatpush3.bf16.msra.mxu0 %v12968_v55 }
0x1875   : > { %11941 = vmatprep.subr.bf16.mxu0 %v12969_v57 }
0x1878   : > { %11942 = vmatpush3.bf16.msra.mxu0 %v12969_v57  ;;  %v4224_v57 = vld [vmem:[#allocation10 + $0x24] ss:$0 sm:$0xff] }
0x1879   : > { %11943 = vmatprep.subr.bf16.mxu0 %v12970_v10 }
0x187c   : > { %11944 = vmatpush3.bf16.msra.mxu0 %v12970_v10 }
0x187d   : > { %11945 = vmatprep.subr.bf16.mxu0 %v12971_v59 }
0x1880   : > { %11946 = vmatpush3.bf16.msra.mxu0 %v12971_v59 }
0x1881   : > { %11947 = vmatprep.subr.bf16.mxu0 %v12972_v63 }
0x1884   : > { %11948 = vmatpush3.bf16.msra.mxu0 %v12972_v63 }
0x1941   : > { %v11927_v36 = vpop.f32.mrb[64].mxu1 }
0x1942   : > { %v4082_v37 = vpop.f32.mrb[65].mxu1  ;;  %v4099_v28 = vmul.f32 0.088388346, %v11927_v36 }
0x1943   : > { %v4097_v39 = vmul.f32 0.088388346, %v4082_v37  ;;  %v11928_v40 = vpop.f32.mrb[66].mxu1 }
0x1944   : > { %v4085_v45 = vpop.f32.mrb[67].mxu1  ;;  %v4100_v52 = vmul.f32 0.088388346, %v11928_v40  ;;  %v4107_v14 = vsel %vm17385_vm15, %v4099_v28, -inf }
0x1945   : > { %v4098_v19 = vmul.f32 0.088388346, %v4085_v45  ;;  %v4101_v6 = vsel %vm17385_vm15, %v4097_v39, -inf }
0x1946   : > { %4102 = vmax.xlane.f32.xlu0 %v4101_v6  ;;  %v4110_v30 = vsel %vm17385_vm15, %v4100_v52, -inf }
0x1947   : > { %v4104_v13 = vsel %vm17385_vm15, %v4098_v19, -inf }
0x1948   : > { %4105 = vmax.xlane.f32.xlu1 %v4104_v13 }
0x194a   : > { %4108 = vmax.xlane.f32.xlu0 %v4107_v14 }
0x194c   : > { %4111 = vmax.xlane.f32.xlu1 %v4110_v30 }
0x19d3   : > { %v4103_v15 = vpop.xlane.xlu0 %4102 }
0x19d4   : > { %v4113_v17 = vsub.f32 %v4097_v39, %v4103_v15 }
0x19d5   : > { %v4106_v18 = vpop.xlane.xlu1 %4105 }
0x19d6   : > { %v4117_v20 = vmul.f32 1.442695, %v4113_v17  ;;  %v4114_v23 = vsub.f32 %v4098_v19, %v4106_v18  ;;  %v12973_v18 = vld [vmem:[#allocation9 + $0xae8] ss:$8 sps:$4 sm:$0xff]  }
0x19d7   : > { %v4109_v24 = vpop.xlane.xlu0 %4108  ;;  %11949 = vmatprep.subr.bf16.mxu0 %v12973_v18 }
0x19d8   : > { %13040 = vpow2.f32 %v4117_v20  ;;  %v4119_v25 = vmul.f32 1.442695, %v4114_v23  ;;  %v4115_v61 = vsub.f32 %v4099_v28, %v4109_v24  ;;  %11950 = vmatpush3.bf16.msra.mxu0 %v12973_v18  ;;  %v12974_v20 = vld [vmem:[#allocation9 + $0xb78] ss:$8 sps:$4 sm:$0xff]  }
0x19d9   : > { %v4112_v26 = vpop.xlane.xlu1 %4111  ;;  %11975 = vmatprep.subr.bf16.mxu0 %v12974_v20 }
0x19da   : > { %13042 = vpow2.f32 %v4119_v25  ;;  %v4121_v33 = vmul.f32 1.442695, %v4115_v61  ;;  %v4116_v35 = vsub.f32 %v4100_v52, %v4112_v26  ;;  %v3922_v25 = vld [vmem:[%s13960_s27] sm:$0xff]  ;;  %v3923_v61 = vld [vmem:[%s13960_s27 + $0x8] sm:$0xff] }
0x19dc   : > { %13044 = vpow2.f32 %v4121_v33  ;;  %v4123_v41 = vmul.f32 1.442695, %v4116_v35 }
0x19de   : > { %13046 = vpow2.f32 %v4123_v41 }
0x19e2   : > { %v13041_v43 = vpop.eup %13040 }
0x19e3   : > { %v4125_v58 = vsel %vm17385_vm15, %v13041_v43, 0.0 }
0x19e4   : > { %v13043_v47 = vpop.eup %13042  ;;  %4126 = vadd.xlane.f32.xlu0 %v4125_v58  ;;  %v12975_v58 = vld [vmem:[#allocation9 + $0xb88] ss:$8 sps:$4 sm:$0xff]  }
0x19e5   : > { %v4128_v48 = vsel %vm17385_vm15, %v13043_v47, 0.0 }
0x19e6   : > { %v13045_v49 = vpop.eup %13044  ;;  %4129 = vadd.xlane.f32.xlu1 %v4128_v48  ;;  %v2038_v48 = vld [vmem:[#allocation10 + $0x32] ss:$0 sm:$0xff] }
0x19e7   : > { %v4131_v60 = vsel %vm17385_vm15, %v13045_v49, 0.0 }
0x19e8   : > { %v13047_v50 = vpop.eup %13046  ;;  %4132 = vadd.xlane.f32.xlu0 %v4131_v60  ;;  %v2102_v60 = vadd.f32 %v14124_v21, %v2038_v48  ;;  %v12985_v48 = vld [vmem:[#allocation9 + $0xb68] ss:$8 sps:$4 sm:$0xff]  }
0x19e9   : > { %v4134_v51 = vsel %vm17385_vm15, %v13047_v50, 0.0 }
0x19ea   : > { %4135 = vadd.xlane.f32.xlu1 %v4134_v51  ;;  %v3925_v51 = vld [vmem:[%s13960_s27 + $0x18] sm:$0xff]  ;;  %v2180_v53 = vpack.c.bf16 %v2102_v60, %v2102_v60 }
0x19ec   : > { %v4925_v55 = vsel %vm17394_vm9, %v2180_v53, 0 }
0x1a71   : > { %v4127_v36 = vpop.xlane.xlu0 %4126 }
0x1a72   : > { %13048 = vrcp.f32 %v4127_v36 }
0x1a73   : > { %v4130_v37 = vpop.xlane.xlu1 %4129 }
0x1a74   : > { %13050 = vrcp.f32 %v4130_v37 }
0x1a75   : > { %v4133_v39 = vpop.xlane.xlu0 %4132 }
0x1a76   : > { %13052 = vrcp.f32 %v4133_v39 }
0x1a77   : > { %v4136_v40 = vpop.xlane.xlu1 %4135 }
0x1a78   : > { %13054 = vrcp.f32 %v4136_v40 }
0x1a7c   : > { %v13049_v45 = vpop.eup %13048 }
0x1a7d   : > { %v4141_v19 = vmul.f32 %v13049_v45, %v13041_v43  ;;  %v4523_v43 = vpack.c.bf16 %v3923_v61, %v3922_v25  ;;  %v12978_v45 = vld [vmem:[#allocation9 + $0xaf8] ss:$8 sps:$4 sm:$0xff]  }
0x1a7e   : > { %v13051_v28 = vpop.eup %13050  ;;  %11955 = vmatprep.subr.bf16.mxu1 %v12978_v45 }
0x1a7f   : > { %v4142_v6 = vmul.f32 %v13051_v28, %v13043_v47  ;;  %v12976_v47 = vld [vmem:[#allocation9 + $0xb98] ss:$8 sps:$4 sm:$0xff]  }
0x1a80   : > { %v13053_v52 = vpop.eup %13052 }
0x1a81   : > { %v4145_v13 = vpack.c.bf16 %v4142_v6, %v4141_v19  ;;  %v4143_v30 = vmul.f32 %v13053_v52, %v13045_v49  ;;  %v12977_v49 = vld [vmem:[#allocation9 + $0xba8] ss:$8 sps:$4 sm:$0xff]  }
0x1a82   : > { %v13055_v14 = vpop.eup %13054 }
0x1a83   : > { %v4144_v15 = vmul.f32 %v13055_v14, %v13047_v50  ;;  %11931 = vmatprep.mubr.msk.bf16.mxu1 %vm17385_vm15, %v4145_v13  ;;  %v3924_v50 = vld [vmem:[%s13960_s27 + $0x10] sm:$0xff] }
0x1a84   : > { %v4524_v54 = vpack.c.bf16 %v3925_v51, %v3924_v50 }
0x1a85   : > { %v4146_v17 = vpack.c.bf16 %v4144_v15, %v4143_v30 }
0x1a87   : > { %11932 = vmatmul.mubr.msk.bf16.vlgmr.msra.gmra.mrb[68].mxu1 %vm17385_vm15, %v4146_v17 }
0x1a88   : > { %11956 = vmatpush3.bf16.msra.mxu1 %v12978_v45  ;;  %v4371_v45 = vld [vmem:[#allocation10 + $0x26] ss:$0 sm:$0xff] }
0x1b5a   : > { %v11933_v23 = vpop.f32.mrb[68].mxu1 }
0x1b5b   : > { %v4191_v24 = vpop.f32.mrb[69].mxu1 }
0x1b5c   : > { %v11934_v26 = vpop.f32.mrb[70].mxu1 }
0x1b5d   : > { %v4207_v33 = vpack.c.bf16 %v11934_v26, %v11933_v23  ;;  %v4194_v35 = vpop.f32.mrb[71].mxu1 }
0x1b5e   : > { %v4206_v41 = vpack.c.bf16 %v4194_v35, %v4191_v24  ;;  %v12980_v35 = vld [vmem:[#allocation9 + $0xb18] ss:$8 sps:$4 sm:$0xff]  }
0x1b60   : > { %11951 = vmatprep.mubr.bf16.mxu0 %v4206_v41  ;;  %v12981_v41 = vld [vmem:[#allocation9 + $0xb28] ss:$8 sps:$4 sm:$0xff]  }
0x1b61   : > { %11952 = vmatmul.mubr.bf16.vlgmr.msra.gmra.mrb[60].mxu0 %v4207_v33  ;;  %v12979_v33 = vld [vmem:[#allocation9 + $0xb08] ss:$8 sps:$4 sm:$0xff]  }
0x1b62   : > { %11976 = vmatpush3.bf16.msra.mxu0 %v12974_v20  ;;  %11983 = vmatprep.mubr.msk.bf16.mxu0 %vm17394_vm9, %v4523_v43  ;;  %v12982_v43 = vld [vmem:[#allocation9 + $0xb38] ss:$8 sps:$4 sm:$0xff]  }
0x1b63   : > { %11977 = vmatprep.subr.bf16.mxu0 %v12975_v58  ;;  %11957 = vmatprep.subr.bf16.mxu1 %v12979_v33 }
0x1b64   : > { %11958 = vmatpush3.bf16.msra.mxu1 %v12979_v33 }
0x1b65   : > { %11959 = vmatprep.subr.bf16.mxu1 %v12980_v35 }
0x1b66   : > { %11978 = vmatpush3.bf16.msra.mxu0 %v12975_v58  ;;  %v12983_v58 = vld [vmem:[#allocation9 + $0xb48] ss:$8 sps:$4 sm:$0xff]  }
0x1b67   : > { %11979 = vmatprep.subr.bf16.mxu0 %v12976_v47 }
0x1b68   : > { %11960 = vmatpush3.bf16.msra.mxu1 %v12980_v35 }
0x1b69   : > { %11961 = vmatprep.subr.bf16.mxu1 %v12981_v41 }
0x1b6a   : > { %11980 = vmatpush3.bf16.msra.mxu0 %v12976_v47  ;;  %v12984_v47 = vld [vmem:[#allocation9 + $0xb58] ss:$8 sps:$4 sm:$0xff]  }
0x1b6b   : > { %11981 = vmatprep.subr.bf16.mxu0 %v12977_v49 }
0x1b6c   : > { %11962 = vmatpush3.bf16.msra.mxu1 %v12981_v41 }
0x1b6d   : > { %11963 = vmatprep.subr.bf16.mxu1 %v12982_v43 }
0x1b6e   : > { %11982 = vmatpush3.bf16.msra.mxu0 %v12977_v49 }
0x1b6f   : > { %12572 = vmatprep.subr.msk.bf16.mxu0 %vm17394_vm9, %v2180_v53 }
0x1b70   : > { %11964 = vmatpush3.bf16.msra.mxu1 %v12982_v43  ;;  %v3929_v43 = vld [vmem:[%s13960_s27 + $0x38] sm:$0xff] }
0x1b71   : > { %11984 = vmatmul.mubr.msk.bf16.vlgmr.msra.gmra.mrb[64].mxu0 %vm17394_vm9, %v4524_v54  ;;  %11965 = vmatprep.subr.bf16.mxu1 %v12983_v58 }
0x1b74   : > { %11966 = vmatpush3.bf16.msra.mxu1 %v12983_v58 }
0x1b75   : > { %11967 = vmatprep.subr.bf16.mxu1 %v12984_v47 }
0x1b77   : > { %12028 = vmatpush3.bf16.xpose.msra.mxu0 %v4925_v55 }
0x1b78   : > { %11968 = vmatpush3.bf16.msra.mxu1 %v12984_v47 }
0x1b79   : > { %11969 = vmatprep.subr.bf16.mxu1 %v12985_v48 }
0x1b7c   : > { %11970 = vmatpush3.bf16.msra.mxu1 %v12985_v48 }
0x1c34   : > { %v11953_v10 = vpop.f32.mrb[60].mxu0 }
0x1c35   : > { %v4307_v59 = vpop.f32.mrb[61].mxu0  ;;  %v4316_v39 = vadd.f32 %v11953_v10, %v4224_v57 }
0x1c36   : > { %v4308_v63 = vadd.f32 %v4307_v59, %v4224_v57  ;;  %v11954_v36 = vpop.f32.mrb[62].mxu0 }
0x1c37   : > { %v4310_v21 = vpop.f32.mrb[63].mxu0  ;;  %v4319_v40 = vadd.f32 %v11954_v36, %v4224_v57 }
0x1c38   : > { %v4311_v37 = vadd.f32 %v4310_v21, %v4224_v57  ;;  %4322 = vadd.xlane.f32.xlu0 %v4308_v63 }
0x1c3a   : > { %4324 = vadd.xlane.f32.xlu1 %v4311_v37 }
0x1c3c   : > { %4326 = vadd.xlane.f32.xlu0 %v4316_v39 }
0x1c3e   : > { %4328 = vadd.xlane.f32.xlu1 %v4319_v40 }
0x1c44   : > { %v14353_v5 = vpop.f32.mrb[64].mxu0 }
0x1cc5   : > { %v4323_v28 = vpop.xlane.xlu0 %4322 }
0x1cc6   : > { %v4330_v19 = vmul.f32 0.0078125, %v4323_v28 }
0x1cc7   : > { %v4325_v6 = vpop.xlane.xlu1 %4324 }
0x1cc8   : > { %v4331_v52 = vmul.f32 0.0078125, %v4325_v6  ;;  %v4334_v13 = vsub.f32 %v4308_v63, %v4330_v19 }
0x1cc9   : > { %v4327_v14 = vpop.xlane.xlu0 %4326 }
0x1cca   : > { %v4332_v30 = vmul.f32 0.0078125, %v4327_v14  ;;  %v4338_v15 = vmul.f32 %v4334_v13, %v4334_v13  ;;  %v4335_v17 = vsub.f32 %v4311_v37, %v4331_v52  ;;  %v4366_v37 = vld [vmem:[#allocation10 + $0x25] ss:$0 sm:$0xff] }
0x1ccb   : > { %v4329_v18 = vpop.xlane.xlu1 %4328 }
0x1ccc   : > { %v4333_v20 = vmul.f32 0.0078125, %v4329_v18  ;;  %4342 = vadd.xlane.f32.xlu0 %v4338_v15  ;;  %v4339_v23 = vmul.f32 %v4335_v17, %v4335_v17  ;;  %v4336_v24 = vsub.f32 %v4316_v39, %v4332_v30 }
0x1cce   : > { %4344 = vadd.xlane.f32.xlu1 %v4339_v23  ;;  %v4340_v25 = vmul.f32 %v4336_v24, %v4336_v24  ;;  %v4337_v61 = vsub.f32 %v4319_v40, %v4333_v20 }
0x1cd0   : > { %4346 = vadd.xlane.f32.xlu0 %v4340_v25  ;;  %v4341_v26 = vmul.f32 %v4337_v61, %v4337_v61 }
0x1cd2   : > { %4348 = vadd.xlane.f32.xlu1 %v4341_v26 }
0x1d59   : > { %v4343_v49 = vpop.xlane.xlu0 %4342 }
0x1d5a   : > { %v4350_v60 = vmul.f32 0.0078125, %v4343_v49 }
0x1d5b   : > { %v4345_v50 = vpop.xlane.xlu1 %4344 }
0x1d5c   : > { %v4354_v51 = vadd.f32 1e-05, %v4350_v60  ;;  %v4351_v53 = vmul.f32 0.0078125, %v4345_v50  ;;  %v14362_v60 = vadd.s32 32, %v13994_v29 }
0x1d5d   : > { %v4347_v54 = vpop.xlane.xlu0 %4346 }
0x1d5e   : > { %13056 = vrsqrt.f32 %v4354_v51  ;;  %v4355_v55 = vadd.f32 1e-05, %v4351_v53  ;;  %v4352_v57 = vmul.f32 0.0078125, %v4347_v54  ;;  %v14365_v54 = vadd.s32 40, %v13994_v29 }
0x1d5f   : > { %v4349_v10 = vpop.xlane.xlu1 %4348 }
0x1d60   : > { %13058 = vrsqrt.f32 %v4355_v55  ;;  %v4356_v59 = vadd.f32 1e-05, %v4352_v57  ;;  %v4353_v63 = vmul.f32 0.0078125, %v4349_v10  ;;  %v4499_v55 = vsub.s32 %v14362_v60, %v14166_v4  ;;  %v12986_v10 = vld [vmem:[#allocation9 + $0xbe0] ss:$8 sps:$4 sm:$0xff]  }
0x1d61   : > { %v14370_v57 = vadd.s32 48, %v13994_v29 }
0x1d62   : > { %13060 = vrsqrt.f32 %v4356_v59  ;;  %v4357_v36 = vadd.f32 1e-05, %v4353_v63  ;;  %v4500_v59 = vsub.s32 %v14365_v54, %v14166_v4  ;;  %v14375_v63 = vadd.s32 56, %v13994_v29 }
0x1d63   : > { %vm4503_vm13 = vcmp.ge.s32.totalorder %v4499_v55, 0  ;;  %vm4507_vm1 = vcmp.lt.s32.totalorder %v4499_v55, 2 }
0x1d64   : > { %13062 = vrsqrt.f32 %v4357_v36  ;;  %v4501_v36 = vsub.s32 %v14370_v57, %v14166_v4  ;;  %vm14379_vm2 = vmand %vm4503_vm13, %vm4507_vm1  ;;  %vm4504_vm5 = vcmp.ge.s32.totalorder %v4500_v59, 0  ;;  %vm4508_vm6 = vcmp.lt.s32.totalorder %v4500_v59, 2 }
0x1d65   : > { %vm14394_vm11 = vmand %vm4504_vm5, %vm4508_vm6 }
0x1d66   : > { %vm4505_vm7 = vcmp.ge.s32.totalorder %v4501_v36, 0  ;;  %vm4509_vm10 = vcmp.lt.s32.totalorder %v4501_v36, 2 }
0x1d67   : > { %vm14398_vm13 = vmand %vm4505_vm7, %vm4509_vm10 }
0x1d68   : > { %v13057_v21 = vpop.eup %13056 }
0x1d69   : > { %v4362_v39 = vmul.f32 %v13057_v21, %v4334_v13  ;;  %v12987_v21 = vld [vmem:[#allocation9 + $0xbf0] ss:$8 sps:$4 sm:$0xff]  }
0x1d6a   : > { %v13059_v40 = vpop.eup %13058 }
0x1d6b   : > { %v4363_v28 = vmul.f32 %v13059_v40, %v4335_v17  ;;  %v4367_v19 = vmul.f32 %v4366_v37, %v4362_v39  ;;  %v4502_v39 = vsub.s32 %v14375_v63, %v14166_v4  ;;  %v14392_v40 = vsel %vm14379_vm2, 1.0, %v17386_v0 }
0x1d6c   : > { %v13061_v6 = vpop.eup %13060 }
0x1d6d   : > { %v4364_v52 = vmul.f32 %v13061_v6, %v4336_v24  ;;  %v4368_v14 = vmul.f32 %v4366_v37, %v4363_v28  ;;  %v4372_v30 = vadd.f32 %v4371_v45, %v4367_v19  ;;  %v12988_v28 = vld [vmem:[#allocation9 + $0xc00] ss:$8 sps:$4 sm:$0xff]   ;;  %v17653_v19 = vmov 0  ;;  %v2115_v6 = vld [vmem:[#allocation10 + $0x33] ss:$0 sm:$0xff] }
0x1d6e   : > { %v13063_v15 = vpop.eup %13062  ;;  %v17654_v19 = vsel %vm14398_vm13, 4294967295, %v17653_v19  ;;  %vm4506_vm1 = vcmp.ge.s32.totalorder %v4502_v39, 0  ;;  %vm4510_vm15 = vcmp.lt.s32.totalorder %v4502_v39, 2 }
0x1d6f   : > { %v4365_v18 = vmul.f32 %v13063_v15, %v4337_v61  ;;  %v4373_v20 = vadd.f32 %v4371_v45, %v4368_v14  ;;  %v4369_v23 = vmul.f32 %v4366_v37, %v4364_v52  ;;  %v4376_v25 = vadd.f32 %v4372_v30, %v3918_v42  ;;  %17655 = vst [vmem:[#allocation23_spill] sm:$0xff] %v17654_v19  ;;  %vm14416_vm5 = vmand %vm4506_vm1, %vm4510_vm15  ;;  %v12989_v15 = vld [vmem:[#allocation9 + $0xc10] ss:$8 sps:$4 sm:$0xff]  }
0x1d70   : > { %v4525_v42 = vpack.c.bf16 %v3927_v27, %v3926_v31  ;;  %v14409_v52 = vsel %vm14394_vm11, 1.0, %v17386_v0  ;;  %v14414_v14 = vsel %vm14398_vm13, 1.0, %v17386_v0  ;;  %v17656_v30 = vmov 0 }
0x1d71   : > { %v4377_v13 = vadd.f32 %v4373_v20, %v3919_v34  ;;  %v4370_v17 = vmul.f32 %v4366_v37, %v4365_v18  ;;  %v4374_v26 = vadd.f32 %v4371_v45, %v4369_v23  ;;  %v3928_v34 = vld [vmem:[%s13960_s27 + $0x30] sm:$0xff]  ;;  %v17647_v37 = vmov 0 }
0x1d72   : > { %v4526_v58 = vpack.c.bf16 %v3929_v43, %v3928_v34  ;;  %11987 = vmatprep.mubr.msk.bf16.mxu0 %vm17394_vm9, %v4525_v42  ;;  %v17648_v37 = vsel %vm14379_vm2, 4294967295, %v17647_v37  ;;  %v17657_v30 = vsel %vm14416_vm5, 4294967295, %v17656_v30  ;;  %v2175_v18 = vadd.f32 %v14126_v22, %v2115_v6 }
0x1d73   : > { %v4380_v33 = vpack.c.bf16 %v4377_v13, %v4376_v25  ;;  %v4375_v24 = vadd.f32 %v4371_v45, %v4370_v17  ;;  %v4378_v35 = vadd.f32 %v4374_v26, %v3920_v44  ;;  %v14355_v44 = vpop.f32.mrb[65].mxu0  ;;  %17649 = vst [vmem:[#allocation21_spill] sm:$0xff] %v17648_v37  ;;  %v17650_v45 = vmov 0  ;;  %17658 = vst [vmem:[#allocation24_spill] sm:$0xff] %v17657_v30 }
0x1d74   : > { %11988 = vmatmul.mubr.msk.bf16.gmra.mrb[68].mxu0 %vm17394_vm9, %v4526_v58  ;;  %v14357_v56 = vpop.f32.mrb[66].mxu0  ;;  %v17651_v45 = vsel %vm14394_vm11, 4294967295, %v17650_v45  ;;  %v14428_v20 = vsel %vm14416_vm5, 1.0, %v17386_v0  ;;  %v2181_v23 = vpack.c.bf16 %v2175_v18, %v2175_v18  ;;  %vm17659_vm15 = vcmask 64512  }
0x1d75   : > { %11971 = vmatprep.mubr.bf16.mxu1 %v4380_v33  ;;  %v4379_v61 = vadd.f32 %v4375_v24, %v3921_v62  ;;  %v14359_v62 = vpop.f32.mrb[67].mxu0  ;;  %17652 = vst [vmem:[#allocation22_spill] sm:$0xff] %v17651_v45  ;;  %v4761_v33 = vld [vmem:[#allocation10 + $0x27] ss:$0 sm:$0xff] }
0x1d76   : > { %v5105_v18 = vsel %vm4153_vm0, %v2181_v23, 0 }
0x1d77   : > { %v4381_v41 = vpack.c.bf16 %v4379_v61, %v4378_v35 }
0x1d79   : > { %11972 = vmatmul.mubr.bf16.vlgmr.msra.gmra.mrb[72].mxu1 %v4381_v41 }
0x1d7a   : > { %11999 = vmatprep.mubr.msk.f32.mxu1 %vm17393_vm3, %v14177_v38 }
0x1e47   : > { %v11989_v22 = vpop.f32.mrb[68].mxu0 }
0x1e48   : > { %v4621_v25 = vpop.f32.mrb[69].mxu0 }
0x1e49   : > { %v11990_v13 = vpop.f32.mrb[70].mxu0 }
0x1e4a   : > { %v4624_v17 = vpop.f32.mrb[71].mxu0 }
0x1e4c   : > { %v11973_v47 = vpop.f32.mrb[72].mxu1 }
0x1e4d   : > { %v4480_v48 = vpop.f32.mrb[73].mxu1 }
0x1e4e   : > { %v11974_v49 = vpop.f32.mrb[74].mxu1 }
0x1e4f   : > { %v12463_v50 = vpack.c.bf16 %v11974_v49, %v11973_v47  ;;  %v4483_v51 = vpop.f32.mrb[75].mxu1 }
0x1e50   : > { %v12459_v53 = vpack.c.bf16 %v4483_v51, %v4480_v48 }
0x1e52   : > { %12460 = vmatprep.subr.bf16.mxu1 %v12459_v53 }
0x1e53   : > { %12462 = vmatpush3.bf16.msra.mxu1 %v12459_v53 }
0x1e54   : > { %12464 = vmatprep.subr.bf16.mxu1 %v12463_v50 }
0x1e57   : > { %12466 = vmatpush3.bf16.msra.mxu1 %v12463_v50 }
0x1e58   : > { %12011 = vmatprep.subr.bf16.mxu1 %v12986_v10 }
0x1e5a   : > { %12000 = vmatmul.mubr.msk.f32.vlgmr.msra.gmra.mrb[76].mxu1 %vm17393_vm3, %v14193_v16 }
0x1e5b   : > { %12012 = vmatpush3.bf16.msra.mxu1 %v12986_v10  ;;  %12002 = vmatprep.mubr.msk.f32.mxu1 %vm17393_vm3, %v14279_v9 }
0x1e5c   : > { %12013 = vmatprep.subr.bf16.mxu1 %v12987_v21 }
0x1e5e   : > { %12003 = vmatmul.mubr.msk.f32.gmra.mrb[78].mxu1 %vm17393_vm3, %v14292_v46 }
0x1e5f   : > { %12014 = vmatpush3.bf16.msra.mxu1 %v12987_v21  ;;  %12005 = vmatprep.mubr.msk.f32.mxu1 %vm17393_vm3, %v14392_v40 }
0x1e60   : > { %12015 = vmatprep.subr.bf16.mxu1 %v12988_v28 }
0x1e62   : > { %12006 = vmatmul.mubr.msk.f32.gmra.mrb[80].mxu1 %vm17393_vm3, %v14409_v52 }
0x1e63   : > { %12016 = vmatpush3.bf16.msra.mxu1 %v12988_v28  ;;  %12008 = vmatprep.mubr.msk.f32.mxu1 %vm17393_vm3, %v14414_v14 }
0x1e64   : > { %12017 = vmatprep.subr.bf16.mxu1 %v12989_v15 }
0x1e66   : > { %12009 = vmatmul.mubr.msk.f32.gmra.mrb[82].mxu1 %vm17393_vm3, %v14428_v20 }
0x1e67   : > { %12018 = vmatpush3.bf16.msra.mxu1 %v12989_v15 }
0x1e68   : > { %12573 = vmatprep.subr.msk.bf16.mxu1 %vm4153_vm0, %v2181_v23  ;;  %vm17660_vm0 = vmmov %vm17659_vm15 }
0x1e69   : > { %vm17661_vm6 = vmmov %vm17660_vm0 }
0x1e6a   : > { %vm17662_vm7 = vmmov %vm17660_vm0 }
0x1e6b   : > { %vm17663_vm10 = vmmov %vm17660_vm0 }
0x1e6c   : > { %vm17664_vm1 = vmmov %vm17660_vm0 }
0x1f2d   : > { %v12001_v26 = vpop.f32.mrb[76].mxu1 }
0x1f2e   : > { %v4728_v24 = vadd.f32 %v12001_v26, %v14359_v62  ;;  %v4722_v35 = vpop.f32.mrb[77].mxu1 }
0x1f2f   : > { %v4723_v61 = vadd.f32 %v4722_v35, %v14355_v44  ;;  %v4806_v35 = vld [vmem:[#allocation10 + $0x31] ss:$0 sm:$0xff] }
0x1f30   : > { %v14435_v41 = vadd.f32 %v4761_v33, %v4728_v24 }
0x1f31   : > { %v14437_v31 = vadd.f32 %v4761_v33, %v4723_v61  ;;  %v12004_v27 = vpop.f32.mrb[78].mxu1 }
0x1f32   : > { %v4771_v42 = vmax.f32 %v14435_v41, 0.0  ;;  %v4738_v34 = vadd.f32 %v12004_v27, %v14357_v56  ;;  %v4732_v43 = vpop.f32.mrb[79].mxu1 }
0x1f33   : > { %v4770_v58 = vmax.f32 %v14437_v31, 0.0  ;;  %v4733_v47 = vadd.f32 %v14353_v5, %v4732_v43 }
0x1f34   : > { %v14443_v48 = vadd.f32 %v4761_v33, %v4738_v34 }
0x1f35   : > { %v4794_v44 = vpack.c.bf16 %v4771_v42, %v4770_v58  ;;  %v14449_v62 = vadd.f32 %v4761_v33, %v4733_v47  ;;  %v12007_v49 = vpop.f32.mrb[80].mxu1 }
0x1f36   : > { %v17392_v50 = vmax.f32 %v14443_v48, 0.0  ;;  %v4742_v51 = vpop.f32.mrb[81].mxu1  ;;  %v4748_v53 = vadd.f32 %v12007_v49, %v4624_v17 }
0x1f37   : > { %v4772_v56 = vmax.f32 %v14449_v62, 0.0  ;;  %12019 = vmatprep.mubr.msk.bf16.mxu1 %vm17394_vm9, %v4794_v44  ;;  %v4743_v55 = vadd.f32 %v4742_v51, %v4621_v25 }
0x1f38   : > { %v14454_v5 = vadd.f32 %v4761_v33, %v4748_v53 }
0x1f39   : > { %v4795_v10 = vpack.c.bf16 %v17392_v50, %v4772_v56  ;;  %v14460_v59 = vadd.f32 %v4761_v33, %v4743_v55  ;;  %v12010_v36 = vpop.f32.mrb[82].mxu1 }
0x1f3a   : > { %v17390_v21 = vmax.f32 %v14454_v5, 0.0  ;;  %v4758_v39 = vadd.f32 %v12010_v36, %v11990_v13  ;;  %v4752_v28 = vpop.f32.mrb[83].mxu1 }
0x1f3b   : > { %v17391_v6 = vmax.f32 %v14460_v59, 0.0  ;;  %v4753_v15 = vadd.f32 %v11989_v22, %v4752_v28  ;;  %12020 = vmatmul.mubr.msk.bf16.vlgmr.msra.gmra.mrb[84].mxu1 %vm17394_vm9, %v4795_v10 }
0x1f3c   : > { %v14466_v25 = vadd.f32 %v4761_v33, %v4758_v39  ;;  %12038 = vmatpush3.bf16.msra.mxu1 %v5105_v18 }
0x1f3d   : > { %v4796_v17 = vpack.c.bf16 %v17390_v21, %v17391_v6  ;;  %v14472_v26 = vadd.f32 %v4761_v33, %v4753_v15 }
0x1f3e   : > { %v17388_v13 = vmax.f32 %v14466_v25, 0.0 }
0x1f3f   : > { %v17389_v24 = vmax.f32 %v14472_v26, 0.0  ;;  %12023 = vmatprep.mubr.msk.bf16.mxu1 %vm17394_vm9, %v4796_v17 }
0x1f41   : > { %v4797_v23 = vpack.c.bf16 %v17388_v13, %v17389_v24 }
0x1f43   : > { %12024 = vmatmul.mubr.msk.bf16.gmra.mrb[88].mxu1 %vm17394_vm9, %v4797_v23 }
0x200e   : > { %v12021_v22 = vpop.f32.mrb[84].mxu1 }
0x200f   : > { %v4877_v61 = vpop.f32.mrb[85].mxu1  ;;  %v4886_v34 = vadd.f32 %v12021_v22, %v4806_v35 }
0x2010   : > { %v12022_v27 = vpop.f32.mrb[86].mxu1  ;;  %v4878_v47 = vadd.f32 %v4877_v61, %v4806_v35 }
0x2011   : > { %v4889_v33 = vadd.f32 %v12022_v27, %v4806_v35  ;;  %v4880_v43 = vpop.f32.mrb[87].mxu1 }
0x2012   : > { %v4881_v44 = vadd.f32 %v4880_v43, %v4806_v35 }
0x2013   : > { %v4909_v49 = vpack.c.bf16 %v4889_v33, %v4886_v34 }
0x2014   : > { %v4908_v51 = vpack.c.bf16 %v4881_v44, %v4878_v47 }
0x2016   : > { %v12025_v53 = vpop.f32.mrb[88].mxu1  ;;  %12029 = vmatprep.mubr.msk.bf16.mxu0 %vm17394_vm9, %v4908_v51 }
0x2017   : > { %v4893_v55 = vpop.f32.mrb[89].mxu1  ;;  %12030 = vmatmul.mubr.msk.bf16.vlgmr.msra.gmra.mrb[72].mxu0 %vm17394_vm9, %v4909_v49  ;;  %v4902_v36 = vadd.f32 %v12025_v53, %v4806_v35 }
0x2018   : > { %v12026_v10 = vpop.f32.mrb[90].mxu1  ;;  %v4894_v15 = vadd.f32 %v4893_v55, %v4806_v35 }
0x2019   : > { %v4905_v39 = vadd.f32 %v12026_v10, %v4806_v35  ;;  %v4896_v28 = vpop.f32.mrb[91].mxu1 }
0x201a   : > { %v4897_v18 = vadd.f32 %v4896_v28, %v4806_v35 }
0x201b   : > { %v4911_v17 = vpack.c.bf16 %v4905_v39, %v4902_v36 }
0x201c   : > { %v4910_v23 = vpack.c.bf16 %v4897_v18, %v4894_v15 }
0x201e   : > { %12033 = vmatprep.mubr.msk.bf16.mxu0 %vm17394_vm9, %v4910_v23 }
0x201f   : > { %12034 = vmatmul.mubr.msk.bf16.gmra.mrb[76].mxu0 %vm17394_vm9, %v4911_v17 }
0x20ea   : > { %v12031_v22 = vpop.f32.mrb[72].mxu0 }
0x20eb   : > { %v4961_v61 = vpop.f32.mrb[73].mxu0  ;;  %v4994_v43 = vmul.f32 0.125, %v12031_v22 }
0x20ec   : > { %v4992_v27 = vmul.f32 0.125, %v4961_v61  ;;  %v12032_v34 = vpop.f32.mrb[74].mxu0 }
0x20ed   : > { %v4964_v33 = vpop.f32.mrb[75].mxu0  ;;  %v4995_v49 = vmul.f32 0.125, %v12032_v34  ;;  %v5006_v53 = vsel %vm17661_vm6, %v4994_v43, -inf  ;;  %vm17666_vm6 = vmmov %vm17660_vm0 }
0x20ee   : > { %v4993_v47 = vmul.f32 0.125, %v4964_v33  ;;  %v5000_v44 = vsel %vm17659_vm15, %v4992_v27, -inf  ;;  %vm17665_vm15 = vmmov %vm17660_vm0 }
0x20ef   : > { %5001 = vmax.xlane.f32.xlu0 %v5000_v44  ;;  %v5009_v39 = vsel %vm17662_vm7, %v4995_v49, -inf  ;;  %vm17667_vm7 = vmmov %vm17660_vm0 }
0x20f0   : > { %v5003_v51 = vsel %vm17660_vm0, %v4993_v47, -inf }
0x20f1   : > { %5004 = vmax.xlane.f32.xlu1 %v5003_v51 }
0x20f2   : > { %v12035_v35 = vpop.f32.mrb[76].mxu0 }
0x20f3   : > { %5007 = vmax.xlane.f32.xlu0 %v5006_v53  ;;  %v4977_v55 = vpop.f32.mrb[77].mxu0  ;;  %v4998_v15 = vmul.f32 0.125, %v12035_v35 }
0x20f4   : > { %v4996_v10 = vmul.f32 0.125, %v4977_v55  ;;  %v12036_v36 = vpop.f32.mrb[78].mxu0 }
0x20f5   : > { %5010 = vmax.xlane.f32.xlu1 %v5009_v39  ;;  %v4980_v28 = vpop.f32.mrb[79].mxu0  ;;  %v4999_v23 = vmul.f32 0.125, %v12036_v36  ;;  %v5018_v61 = vsel %vm17665_vm15, %v4998_v15, -inf  ;;  %vm17670_vm15 = vmmov %vm17660_vm0 }
0x20f6   : > { %v4997_v18 = vmul.f32 0.125, %v4980_v28  ;;  %v5012_v17 = vsel %vm17663_vm10, %v4996_v10, -inf  ;;  %vm17668_vm10 = vmmov %vm17660_vm0 }
0x20f7   : > { %5013 = vmax.xlane.f32.xlu0 %v5012_v17  ;;  %v5021_v34 = vsel %vm17660_vm0, %v4999_v23, -inf }
0x20f8   : > { %v5015_v22 = vsel %vm17664_vm1, %v4997_v18, -inf  ;;  %vm17669_vm1 = vmmov %vm17660_vm0 }
0x20f9   : > { %5016 = vmax.xlane.f32.xlu1 %v5015_v22 }
0x20fb   : > { %5019 = vmax.xlane.f32.xlu0 %v5018_v61 }
0x20fd   : > { %5022 = vmax.xlane.f32.xlu1 %v5021_v34 }
0x217c   : > { %v5002_v33 = vpop.xlane.xlu0 %5001 }
0x217d   : > { %v5024_v44 = vsub.f32 %v4992_v27, %v5002_v33 }
0x217e   : > { %v5005_v51 = vpop.xlane.xlu1 %5004 }
0x217f   : > { %v5032_v53 = vmul.f32 1.442695, %v5024_v44  ;;  %v5025_v55 = vsub.f32 %v4993_v47, %v5005_v51 }
0x2180   : > { %v5008_v35 = vpop.xlane.xlu0 %5007 }
0x2181   : > { %13064 = vpow2.f32 %v5032_v53  ;;  %v5034_v39 = vmul.f32 1.442695, %v5025_v55  ;;  %v5026_v28 = vsub.f32 %v4994_v43, %v5008_v35 }
0x2182   : > { %v5011_v17 = vpop.xlane.xlu1 %5010 }
0x2183   : > { %13066 = vpow2.f32 %v5034_v39  ;;  %v5036_v36 = vmul.f32 1.442695, %v5026_v28  ;;  %v5027_v0 = vsub.f32 %v4995_v49, %v5011_v17 }
0x2184   : > { %v5014_v22 = vpop.xlane.xlu0 %5013 }
0x2185   : > { %13068 = vpow2.f32 %v5036_v36  ;;  %v5038_v13 = vmul.f32 1.442695, %v5027_v0  ;;  %v5028_v61 = vsub.f32 %v4996_v10, %v5014_v22 }
0x2186   : > { %v5017_v24 = vpop.xlane.xlu1 %5016 }
0x2187   : > { %13070 = vpow2.f32 %v5038_v13  ;;  %v5040_v34 = vmul.f32 1.442695, %v5028_v61  ;;  %v5029_v21 = vsub.f32 %v4997_v18, %v5017_v24  ;;  %v12990_v61 = vld [vmem:[#allocation9 + $0xca0] ss:$8 sps:$4 sm:$0xff]  }
0x2188   : > { %v5020_v27 = vpop.xlane.xlu0 %5019  ;;  %12047 = vmatprep.subr.bf16.mxu0 %v12990_v61 }
0x2189   : > { %13072 = vpow2.f32 %v5040_v34  ;;  %v5042_v33 = vmul.f32 1.442695, %v5029_v21  ;;  %v5030_v47 = vsub.f32 %v4998_v15, %v5020_v27  ;;  %v12991_v34 = vld [vmem:[#allocation9 + $0xcb0] ss:$8 sps:$4 sm:$0xff]   ;;  %12048 = vmatpush3.bf16.msra.mxu0 %v12990_v61  ;;  %v12992_v27 = vld [vmem:[#allocation9 + $0xcc0] ss:$8 sps:$4 sm:$0xff]  }
0x218a   : > { %v5023_v44 = vpop.xlane.xlu1 %5022  ;;  %12049 = vmatprep.subr.bf16.mxu0 %v12991_v34 }
0x218b   : > { %v13065_v51 = vpop.eup %13064  ;;  %13074 = vpow2.f32 %v5042_v33  ;;  %v5044_v43 = vmul.f32 1.442695, %v5030_v47  ;;  %v5031_v53 = vsub.f32 %v4999_v23, %v5023_v44 }
0x218c   : > { %v5048_v55 = vsel %vm17666_vm6, %v13065_v51, 0.0  ;;  %vm17671_vm6 = vmmov %vm17660_vm0 }
0x218d   : > { %v13067_v49 = vpop.eup %13066  ;;  %13076 = vpow2.f32 %v5044_v43  ;;  %v5046_v35 = vmul.f32 1.442695, %v5031_v53  ;;  %5049 = vadd.xlane.f32.xlu0 %v5048_v55  ;;  %12050 = vmatpush3.bf16.msra.mxu0 %v12991_v34 }
0x218e   : > { %v5051_v0 = vsel %vm17667_vm7, %v13067_v49, 0.0  ;;  %vm17672_vm7 = vmmov %vm17660_vm0  ;;  %12051 = vmatprep.subr.bf16.mxu0 %v12992_v27 }
0x218f   : > { %v13069_v13 = vpop.eup %13068  ;;  %13078 = vpow2.f32 %v5046_v35  ;;  %5052 = vadd.xlane.f32.xlu1 %v5051_v0 }
0x2190   : > { %v5054_v24 = vsel %vm17668_vm10, %v13069_v13, 0.0  ;;  %vm17673_vm10 = vmmov %vm17660_vm0 }
0x2191   : > { %v13071_v21 = vpop.eup %13070  ;;  %5055 = vadd.xlane.f32.xlu0 %v5054_v24  ;;  %12052 = vmatpush3.bf16.msra.mxu0 %v12992_v27 }
0x2192   : > { %v5057_v10 = vsel %vm17669_vm1, %v13071_v21, 0.0  ;;  %vm17674_vm1 = vmmov %vm17660_vm0 }
0x2193   : > { %v13073_v15 = vpop.eup %13072  ;;  %5058 = vadd.xlane.f32.xlu1 %v5057_v10 }
0x2194   : > { %v5060_v18 = vsel %vm17670_vm15, %v13073_v15, 0.0  ;;  %vm17675_vm15 = vmmov %vm17660_vm0 }
0x2195   : > { %v13075_v23 = vpop.eup %13074  ;;  %5061 = vadd.xlane.f32.xlu0 %v5060_v18 }
0x2196   : > { %v5063_v39 = vsel %vm17660_vm0, %v13075_v23, 0.0 }
0x2197   : > { %v13077_v28 = vpop.eup %13076  ;;  %5064 = vadd.xlane.f32.xlu1 %v5063_v39 }
0x2198   : > { %v5066_v17 = vsel %vm17671_vm6, %v13077_v28, 0.0 }
0x2199   : > { %v13079_v36 = vpop.eup %13078  ;;  %5067 = vadd.xlane.f32.xlu0 %v5066_v17 }
0x219a   : > { %v5069_v22 = vsel %vm17672_vm7, %v13079_v36, 0.0 }
0x219b   : > { %5070 = vadd.xlane.f32.xlu1 %v5069_v22 }
0x221a   : > { %v5050_v33 = vpop.xlane.xlu0 %5049 }
0x221b   : > { %13080 = vrcp.f32 %v5050_v33 }
0x221c   : > { %v5053_v47 = vpop.xlane.xlu1 %5052 }
0x221d   : > { %13082 = vrcp.f32 %v5053_v47 }
0x221e   : > { %v5056_v44 = vpop.xlane.xlu0 %5055 }
0x221f   : > { %13084 = vrcp.f32 %v5056_v44 }
0x2220   : > { %v5059_v43 = vpop.xlane.xlu1 %5058 }
0x2221   : > { %13086 = vrcp.f32 %v5059_v43 }
0x2222   : > { %v5062_v53 = vpop.xlane.xlu0 %5061 }
0x2223   : > { %13088 = vrcp.f32 %v5062_v53 }
0x2224   : > { %v5065_v55 = vpop.xlane.xlu1 %5064 }
0x2225   : > { %v13081_v35 = vpop.eup %13080  ;;  %13090 = vrcp.f32 %v5065_v55 }
0x2226   : > { %v5068_v0 = vpop.xlane.xlu0 %5067  ;;  %v5080_v18 = vmul.f32 %v13081_v35, %v13065_v51 }
0x2227   : > { %v13083_v24 = vpop.eup %13082  ;;  %13092 = vrcp.f32 %v5068_v0 }
0x2228   : > { %v5071_v10 = vpop.xlane.xlu1 %5070  ;;  %v5081_v39 = vmul.f32 %v13083_v24, %v13067_v49 }
0x2229   : > { %v13085_v17 = vpop.eup %13084  ;;  %13094 = vrcp.f32 %v5071_v10 }
0x222a   : > { %v5088_v22 = vpack.c.bf16 %v5081_v39, %v5080_v18  ;;  %v5082_v34 = vmul.f32 %v13085_v17, %v13069_v13  ;;  %v12993_v13 = vld [vmem:[#allocation9 + $0xcd0] ss:$8 sps:$4 sm:$0xff]  }
0x222b   : > { %v13087_v61 = vpop.eup %13086  ;;  %12053 = vmatprep.subr.bf16.mxu0 %v12993_v13 }
0x222c   : > { %v5083_v27 = vmul.f32 %v13087_v61, %v13071_v21  ;;  %12039 = vmatprep.mubr.msk.bf16.mxu1 %vm17673_vm10, %v5088_v22  ;;  %12054 = vmatpush3.bf16.msra.mxu0 %v12993_v13  ;;  %v5184_v61 = vld [vmem:[#allocation10 + $0x34] ss:$0 sm:$0xff] }
0x222d   : > { %v13089_v33 = vpop.eup %13088 }
0x222e   : > { %v5089_v47 = vpack.c.bf16 %v5083_v27, %v5082_v34  ;;  %v5084_v43 = vmul.f32 %v13089_v33, %v13073_v15 }
0x222f   : > { %v13091_v44 = vpop.eup %13090 }
0x2230   : > { %12040 = vmatmul.mubr.msk.bf16.vlgmr.msra.gmra.mrb[92].mxu1 %vm17674_vm1, %v5089_v47  ;;  %v5085_v53 = vmul.f32 %v13091_v44, %v13075_v23 }
0x2231   : > { %v13093_v55 = vpop.eup %13092 }
0x2232   : > { %v5090_v0 = vpack.c.bf16 %v5085_v53, %v5084_v43  ;;  %v5086_v51 = vmul.f32 %v13093_v55, %v13077_v28 }
0x2233   : > { %v13095_v6 = vpop.eup %13094 }
0x2234   : > { %12043 = vmatprep.mubr.msk.bf16.mxu1 %vm17675_vm15, %v5090_v0  ;;  %v5087_v49 = vmul.f32 %v13095_v6, %v13079_v36 }
0x2236   : > { %v5091_v35 = vpack.c.bf16 %v5087_v49, %v5086_v51 }
0x2238   : > { %12044 = vmatmul.mubr.msk.bf16.gmra.mrb[96].mxu1 %vm17660_vm0, %v5091_v35 }
0x2303   : > { %v12041_v21 = vpop.f32.mrb[92].mxu1 }
0x2304   : > { %v5141_v24 = vpop.f32.mrb[93].mxu1 }
0x2305   : > { %v12042_v10 = vpop.f32.mrb[94].mxu1 }
0x2306   : > { %v5173_v18 = vpack.c.bf16 %v12042_v10, %v12041_v21  ;;  %v5144_v39 = vpop.f32.mrb[95].mxu1 }
0x2307   : > { %v5172_v15 = vpack.c.bf16 %v5144_v39, %v5141_v24 }
0x2309   : > { %12055 = vmatprep.mubr.msk.bf16.mxu0 %vm17394_vm9, %v5172_v15 }
0x230a   : > { %12056 = vmatmul.mubr.msk.bf16.vlgmr.msra.gmra.mrb[80].mxu0 %vm17394_vm9, %v5173_v18 }
0x230b   : > { %v12045_v23 = vpop.f32.mrb[96].mxu1 }
0x230c   : > { %v5157_v17 = vpop.f32.mrb[97].mxu1 }
0x230d   : > { %v12046_v28 = vpop.f32.mrb[98].mxu1 }
0x230e   : > { %v5175_v6 = vpack.c.bf16 %v12046_v28, %v12045_v23  ;;  %v5160_v36 = vpop.f32.mrb[99].mxu1 }
0x230f   : > { %v5174_v22 = vpack.c.bf16 %v5160_v36, %v5157_v17 }
0x2311   : > { %12059 = vmatprep.mubr.msk.bf16.mxu0 %vm17394_vm9, %v5174_v22 }
0x2312   : > { %12060 = vmatmul.mubr.msk.bf16.gmra.mrb[84].mxu0 %vm17394_vm9, %v5175_v6 }
0x23dd   : > { %v12057_v34 = vpop.f32.mrb[80].mxu0 }
0x23de   : > { %v5255_v27 = vpop.f32.mrb[81].mxu0  ;;  %v5264_v43 = vadd.f32 %v12057_v34, %v5184_v61 }
0x23df   : > { %v5256_v33 = vadd.f32 %v5255_v27, %v5184_v61  ;;  %v12058_v47 = vpop.f32.mrb[82].mxu0 }
0x23e0   : > { %v5258_v44 = vpop.f32.mrb[83].mxu0  ;;  %v5267_v0 = vadd.f32 %v12058_v47, %v5184_v61  ;;  %v5292_v35 = vsel %vm17394_vm9, %v5264_v43, 0.0 }
0x23e1   : > { %v5259_v53 = vadd.f32 %v5258_v44, %v5184_v61  ;;  %v5286_v55 = vsel %vm17394_vm9, %v5256_v33, 0.0 }
0x23e2   : > { %5287 = vadd.xlane.f32.xlu0 %v5286_v55  ;;  %v5295_v10 = vsel %vm17394_vm9, %v5267_v0, 0.0 }
0x23e3   : > { %v5289_v51 = vsel %vm17394_vm9, %v5259_v53, 0.0 }
0x23e4   : > { %5290 = vadd.xlane.f32.xlu1 %v5289_v51 }
0x23e5   : > { %v12061_v49 = vpop.f32.mrb[84].mxu0 }
0x23e6   : > { %5293 = vadd.xlane.f32.xlu0 %v5292_v35  ;;  %v5271_v13 = vpop.f32.mrb[85].mxu0  ;;  %v5280_v39 = vadd.f32 %v12061_v49, %v5184_v61 }
0x23e7   : > { %v5272_v21 = vadd.f32 %v5271_v13, %v5184_v61  ;;  %v12062_v24 = vpop.f32.mrb[86].mxu0 }
0x23e8   : > { %5296 = vadd.xlane.f32.xlu1 %v5295_v10  ;;  %v5274_v18 = vpop.f32.mrb[87].mxu0  ;;  %v5283_v17 = vadd.f32 %v12062_v24, %v5184_v61  ;;  %v5304_v6 = vsel %vm17394_vm9, %v5280_v39, 0.0 }
0x23e9   : > { %v5275_v15 = vadd.f32 %v5274_v18, %v5184_v61  ;;  %v5298_v23 = vsel %vm17394_vm9, %v5272_v21, 0.0 }
0x23ea   : > { %5299 = vadd.xlane.f32.xlu0 %v5298_v23  ;;  %v5307_v36 = vsel %vm17394_vm9, %v5283_v17, 0.0 }
0x23eb   : > { %v5301_v28 = vsel %vm17394_vm9, %v5275_v15, 0.0 }
0x23ec   : > { %5302 = vadd.xlane.f32.xlu1 %v5301_v28 }
0x23ee   : > { %5305 = vadd.xlane.f32.xlu0 %v5304_v6 }
0x23f0   : > { %5308 = vadd.xlane.f32.xlu1 %v5307_v36 }
0x246f   : > { %v5288_v22 = vpop.xlane.xlu0 %5287 }
0x2470   : > { %v5311_v34 = vmul.f32 0.015625, %v5288_v22 }
0x2471   : > { %v5291_v27 = vpop.xlane.xlu1 %5290 }
0x2472   : > { %v14518_v47 = vsub.f32 %v5256_v33, %v5311_v34  ;;  %v5312_v44 = vmul.f32 0.015625, %v5291_v27 }
0x2473   : > { %v5294_v55 = vpop.xlane.xlu0 %5293 }
0x2474   : > { %v14520_v51 = vsub.f32 %v5259_v53, %v5312_v44  ;;  %v5313_v49 = vmul.f32 0.015625, %v5294_v55  ;;  %v5327_v61 = vmul.f32 %v14518_v47, %v14518_v47 }
0x2475   : > { %v5297_v35 = vpop.xlane.xlu1 %5296 }
0x2476   : > { %v14524_v13 = vsub.f32 %v5264_v43, %v5313_v49  ;;  %v5314_v24 = vmul.f32 0.015625, %v5297_v35  ;;  %v5335_v10 = vsel %vm17394_vm9, %v5327_v61, 0.0  ;;  %v5328_v18 = vmul.f32 %v14520_v51, %v14520_v51 }
0x2477   : > { %5336 = vadd.xlane.f32.xlu0 %v5335_v10  ;;  %v5300_v33 = vpop.xlane.xlu0 %5299 }
0x2478   : > { %v14529_v23 = vsub.f32 %v5267_v0, %v5314_v24  ;;  %v5315_v28 = vmul.f32 0.015625, %v5300_v33  ;;  %v5338_v53 = vsel %vm17394_vm9, %v5328_v18, 0.0  ;;  %v5329_v6 = vmul.f32 %v14524_v13, %v14524_v13 }
0x2479   : > { %5339 = vadd.xlane.f32.xlu1 %v5338_v53  ;;  %v5303_v36 = vpop.xlane.xlu1 %5302 }
0x247a   : > { %v14534_v43 = vsub.f32 %v5272_v21, %v5315_v28  ;;  %v5316_v22 = vmul.f32 0.015625, %v5303_v36  ;;  %v5341_v34 = vsel %vm17394_vm9, %v5329_v6, 0.0  ;;  %v5330_v27 = vmul.f32 %v14529_v23, %v14529_v23  ;;  %v12994_v36 = vld [vmem:[#allocation9 + $0xce0] ss:$8 sps:$4 sm:$0xff]  }
0x247b   : > { %5342 = vadd.xlane.f32.xlu0 %v5341_v34  ;;  %v5306_v44 = vpop.xlane.xlu0 %5305  ;;  %12063 = vmatprep.subr.bf16.mxu1 %v12994_v36  ;;  %v12997_v34 = vld [vmem:[#allocation9 + $0xd10] ss:$8 sps:$4 sm:$0xff]  }
0x247c   : > { %v14539_v0 = vsub.f32 %v5275_v15, %v5316_v22  ;;  %v5317_v55 = vmul.f32 0.015625, %v5306_v44  ;;  %v5344_v49 = vsel %vm17394_vm9, %v5330_v27, 0.0  ;;  %v5331_v61 = vmul.f32 %v14534_v43, %v14534_v43  ;;  %12064 = vmatpush3.bf16.msra.mxu1 %v12994_v36  ;;  %v12996_v22 = vld [vmem:[#allocation9 + $0xd00] ss:$8 sps:$4 sm:$0xff]   ;;  %v12999_v44 = vld [vmem:[#allocation9 + $0xd30] ss:$8 sps:$4 sm:$0xff]  }
0x247d   : > { %5345 = vadd.xlane.f32.xlu1 %v5344_v49  ;;  %v5309_v35 = vpop.xlane.xlu1 %5308  ;;  %v12998_v27 = vld [vmem:[#allocation9 + $0xd20] ss:$8 sps:$4 sm:$0xff]   ;;  %v4785_v36 = vld [vmem:[%s14562_s16 + $0x38] sm:$0xff] }
0x247e   : > { %v14544_v21 = vsub.f32 %v5280_v39, %v5317_v55  ;;  %v5318_v24 = vmul.f32 0.015625, %v5309_v35  ;;  %v5347_v10 = vsel %vm17394_vm9, %v5331_v61, 0.0  ;;  %v5332_v18 = vmul.f32 %v14539_v0, %v14539_v0  ;;  %v4778_v55 = vld [vmem:[%s14562_s16] sm:$0xff]  ;;  %v4779_v49 = vld [vmem:[%s14562_s16 + $0x8] sm:$0xff]  ;;  %12079 = vmatprep.subr.bf16.mxu0 %v12998_v27 }
0x247f   : > { %5348 = vadd.xlane.f32.xlu0 %v5347_v10  ;;  %v5586_v61 = vpack.c.bf16 %v4779_v49, %v4778_v55  ;;  %12080 = vmatpush3.bf16.msra.mxu0 %v12998_v27  ;;  %v13000_v35 = vld [vmem:[#allocation9 + $0xd40] ss:$8 sps:$4 sm:$0xff]   ;;  %v4780_v10 = vld [vmem:[%s14562_s16 + $0x10] sm:$0xff] }
0x2480   : > { %v14549_v33 = vsub.f32 %v5283_v17, %v5318_v24  ;;  %v5350_v15 = vsel %vm17394_vm9, %v5332_v18, 0.0  ;;  %v5333_v28 = vmul.f32 %v14544_v21, %v14544_v21  ;;  %v12995_v17 = vld [vmem:[#allocation9 + $0xcf0] ss:$8 sps:$4 sm:$0xff]   ;;  %12081 = vmatprep.subr.bf16.mxu0 %v12999_v44 }
0x2481   : > { %5351 = vadd.xlane.f32.xlu1 %v5350_v15  ;;  %12065 = vmatprep.subr.bf16.mxu1 %v12995_v17  ;;  %v13001_v24 = vld [vmem:[#allocation9 + $0xd50] ss:$8 sps:$4 sm:$0xff]   ;;  %v4782_v15 = vld [vmem:[%s14562_s16 + $0x20] sm:$0xff] }
0x2482   : > { %v5353_v53 = vsel %vm17394_vm9, %v5333_v28, 0.0  ;;  %v5334_v39 = vmul.f32 %v14549_v33, %v14549_v33  ;;  %12066 = vmatpush3.bf16.msra.mxu1 %v12995_v17  ;;  %12087 = vmatprep.mubr.msk.bf16.mxu0 %vm17394_vm9, %v5586_v61  ;;  %v4781_v18 = vld [vmem:[%s14562_s16 + $0x18] sm:$0xff]  ;;  %v4783_v28 = vld [vmem:[%s14562_s16 + $0x28] sm:$0xff] }
0x2483   : > { %5354 = vadd.xlane.f32.xlu0 %v5353_v53  ;;  %12067 = vmatprep.subr.bf16.mxu1 %v12996_v22  ;;  %v5587_v53 = vpack.c.bf16 %v4781_v18, %v4780_v10 }
0x2484   : > { %v5356_v6 = vsel %vm17394_vm9, %v5334_v39, 0.0  ;;  %12082 = vmatpush3.bf16.msra.mxu0 %v12999_v44  ;;  %v5588_v39 = vpack.c.bf16 %v4783_v28, %v4782_v15 }
0x2485   : > { %5357 = vadd.xlane.f32.xlu1 %v5356_v6  ;;  %12083 = vmatprep.subr.bf16.mxu0 %v13000_v35  ;;  %v4784_v6 = vld [vmem:[%s14562_s16 + $0x30] sm:$0xff] }
0x2486   : > { %12068 = vmatpush3.bf16.msra.mxu1 %v12996_v22  ;;  %v5589_v17 = vpack.c.bf16 %v4785_v36, %v4784_v6 }
0x2487   : > { %12069 = vmatprep.subr.bf16.mxu1 %v12997_v34 }
0x2488   : > { %12084 = vmatpush3.bf16.msra.mxu0 %v13000_v35 }
0x2489   : > { %12085 = vmatprep.subr.bf16.mxu0 %v13001_v24 }
0x248a   : > { %12070 = vmatpush3.bf16.msra.mxu1 %v12997_v34 }
0x248c   : > { %12086 = vmatpush3.bf16.msra.mxu0 %v13001_v24 }
0x248f   : > { %12088 = vmatmul.mubr.msk.bf16.vlgmr.msra.gmra.mrb[88].mxu0 %vm17394_vm9, %v5587_v53 }
0x2490   : > { %12091 = vmatprep.mubr.msk.bf16.mxu0 %vm17394_vm9, %v5588_v39 }
0x2497   : > { %12092 = vmatmul.mubr.msk.bf16.gmra.mrb[92].mxu0 %vm17394_vm9, %v5589_v17 }
0x2504   : > { %v5337_v22 = vpop.xlane.xlu0 %5336 }
0x2505   : > { %v5359_v34 = vmul.f32 0.015625, %v5337_v22 }
0x2506   : > { %v5340_v27 = vpop.xlane.xlu1 %5339 }
0x2507   : > { %v5367_v44 = vadd.f32 1e-05, %v5359_v34  ;;  %v5360_v55 = vmul.f32 0.015625, %v5340_v27 }
0x2508   : > { %v5343_v49 = vpop.xlane.xlu0 %5342 }
0x2509   : > { %13096 = vrsqrt.f32 %v5367_v44  ;;  %v5368_v61 = vadd.f32 1e-05, %v5360_v55  ;;  %v5361_v35 = vmul.f32 0.015625, %v5343_v49  ;;  %v5391_v55 = vld [vmem:[#allocation10 + $0x35] ss:$0 sm:$0xff] }
0x250a   : > { %v5346_v24 = vpop.xlane.xlu1 %5345 }
0x250b   : > { %13098 = vrsqrt.f32 %v5368_v61  ;;  %v5369_v10 = vadd.f32 1e-05, %v5361_v35  ;;  %v5362_v18 = vmul.f32 0.015625, %v5346_v24 }
0x250c   : > { %v5349_v15 = vpop.xlane.xlu0 %5348 }
0x250d   : > { %13100 = vrsqrt.f32 %v5369_v10  ;;  %v5370_v28 = vadd.f32 1e-05, %v5362_v18  ;;  %v5363_v53 = vmul.f32 0.015625, %v5349_v15  ;;  %v5400_v10 = vld [vmem:[#allocation10 + $0x36] ss:$0 sm:$0xff] }
0x250e   : > { %v5352_v39 = vpop.xlane.xlu1 %5351 }
0x250f   : > { %13102 = vrsqrt.f32 %v5370_v28  ;;  %v5371_v6 = vadd.f32 1e-05, %v5363_v53  ;;  %v5364_v36 = vmul.f32 0.015625, %v5352_v39 }
0x2510   : > { %v5355_v17 = vpop.xlane.xlu0 %5354 }
0x2511   : > { %13104 = vrsqrt.f32 %v5371_v6  ;;  %v5372_v22 = vadd.f32 1e-05, %v5364_v36  ;;  %v5365_v34 = vmul.f32 0.015625, %v5355_v17 }
0x2512   : > { %v5358_v27 = vpop.xlane.xlu1 %5357 }
0x2513   : > { %v13097_v44 = vpop.eup %13096  ;;  %13106 = vrsqrt.f32 %v5372_v22  ;;  %v5373_v49 = vadd.f32 1e-05, %v5365_v34  ;;  %v5366_v61 = vmul.f32 0.015625, %v5358_v27 }
0x2514   : > { %v5383_v35 = vmul.f32 %v13097_v44, %v14518_v47 }
0x2515   : > { %v13099_v24 = vpop.eup %13098  ;;  %13108 = vrsqrt.f32 %v5373_v49  ;;  %v5374_v18 = vadd.f32 1e-05, %v5366_v61 }
0x2516   : > { %v5384_v15 = vmul.f32 %v13099_v24, %v14520_v51  ;;  %v5392_v28 = vmul.f32 %v5391_v55, %v5383_v35 }
0x2517   : > { %v13101_v53 = vpop.eup %13100  ;;  %13110 = vrsqrt.f32 %v5374_v18 }
0x2518   : > { %v5385_v39 = vmul.f32 %v13101_v53, %v14524_v13  ;;  %v5393_v6 = vmul.f32 %v5391_v55, %v5384_v15  ;;  %v5401_v36 = vadd.f32 %v5400_v10, %v5392_v28 }
0x2519   : > { %v13103_v17 = vpop.eup %13102 }
0x251a   : > { %v5394_v50 = vmul.f32 %v5391_v55, %v5385_v39  ;;  %v5386_v22 = vmul.f32 %v13103_v17, %v14529_v23  ;;  %v5402_v34 = vadd.f32 %v5400_v10, %v5393_v6  ;;  %v5409_v47 = vadd.f32 %v5401_v36, %v4770_v58 }
0x251b   : > { %v13105_v27 = vpop.eup %13104  ;;  %v17676_v58 = vmax.f32 %v14443_v48, 0.0  ;;  %v17678_v48 = vmax.f32 %v14454_v5, 0.0  ;;  %v4786_v5 = vld [vmem:[%s14562_s16 + $0x40] sm:$0xff] }
0x251c   : > { %v5403_v44 = vadd.f32 %v5400_v10, %v5394_v50  ;;  %v5395_v49 = vmul.f32 %v5391_v55, %v5386_v22  ;;  %v5387_v51 = vmul.f32 %v13105_v27, %v14534_v43  ;;  %v5410_v61 = vadd.f32 %v5402_v34, %v4771_v42 }
0x251d   : > { %v13107_v35 = vpop.eup %13106  ;;  %v17679_v34 = vmax.f32 %v14472_v26, 0.0  ;;  %v4790_v26 = vld [vmem:[%s14562_s16 + $0x60] sm:$0xff] }
0x251e   : > { %v5404_v13 = vadd.f32 %v5400_v10, %v5395_v49  ;;  %v5388_v24 = vmul.f32 %v13107_v35, %v14539_v0  ;;  %v5417_v18 = vpack.c.bf16 %v5410_v61, %v5409_v47  ;;  %v5396_v28 = vmul.f32 %v5391_v55, %v5387_v51  ;;  %v4788_v51 = vld [vmem:[%s14562_s16 + $0x50] sm:$0xff]  ;;  %v4789_v61 = vld [vmem:[%s14562_s16 + $0x58] sm:$0xff] }
0x251f   : > { %v13109_v15 = vpop.eup %13108  ;;  %v5411_v31 = vadd.f32 %v5403_v44, %v4772_v56  ;;  %v17680_v47 = vmax.f32 %v14466_v25, 0.0  ;;  %v5591_v35 = vpack.c.bf16 %v4789_v61, %v4788_v51  ;;  %v4793_v25 = vld [vmem:[%s14562_s16 + $0x78] sm:$0xff]  ;;  %v17689_v61 = vmov 0 }
0x2520   : > { %v5389_v23 = vmul.f32 %v13109_v15, %v14544_v21  ;;  %12071 = vmatprep.mubr.msk.bf16.mxu1 %vm17394_vm9, %v5417_v18  ;;  %v5412_v50 = vadd.f32 %v5404_v13, %v17676_v58  ;;  %v5397_v43 = vmul.f32 %v5391_v55, %v5388_v24  ;;  %v5405_v42 = vadd.f32 %v5400_v10, %v5396_v28  ;;  %v4792_v24 = vld [vmem:[%s14562_s16 + $0x70] sm:$0xff] }
0x2521   : > { %v13111_v41 = vpop.eup %13110  ;;  %v17677_v21 = vmax.f32 %v14460_v59, 0.0  ;;  %v5593_v18 = vpack.c.bf16 %v4793_v25, %v4792_v24  ;;  %v14619_v15 = vadd.s32 96, %v13994_v29  ;;  %v17696_v25 = vmov 0 }
0x2522   : > { %v5390_v53 = vmul.f32 %v13111_v41, %v14549_v33  ;;  %v5418_v0 = vpack.c.bf16 %v5412_v50, %v5411_v31  ;;  %v5406_v39 = vadd.f32 %v5400_v10, %v5397_v43  ;;  %v5398_v6 = vmul.f32 %v5391_v55, %v5389_v23 }
0x2523   : > { %v5413_v62 = vadd.f32 %v5405_v42, %v17677_v21  ;;  %17681 = vst [vmem:[#allocation25_spill] sm:$0xff] %v14619_v15  ;;  %v5542_v28 = vsub.s32 %v14619_v15, %v14166_v4  ;;  %v17682_v23 = vmov 0  ;;  %v17685_v31 = vmov 0.0  }
0x2524   : > { %12072 = vmatmul.mubr.msk.bf16.vlgmr.msra.gmra.mrb[100].mxu1 %vm17394_vm9, %v5418_v0  ;;  %v5414_v56 = vadd.f32 %v5406_v39, %v17678_v48  ;;  %v5399_v36 = vmul.f32 %v5391_v55, %v5390_v53  ;;  %v5407_v17 = vadd.f32 %v5400_v10, %v5398_v6  ;;  %v4787_v55 = vld [vmem:[%s14562_s16 + $0x48] sm:$0xff] }
0x2525   : > { %v5590_v49 = vpack.c.bf16 %v4787_v55, %v4786_v5  ;;  %vm5550_vm6 = vcmp.ge.s32.totalorder %v5542_v28, 0  ;;  %vm5558_vm7 = vcmp.lt.s32.totalorder %v5542_v28, 2 }
0x2526   : > { %v5419_v22 = vpack.c.bf16 %v5414_v56, %v5413_v62  ;;  %v5408_v33 = vadd.f32 %v5400_v10, %v5399_v36  ;;  %v5415_v27 = vadd.f32 %v5407_v17, %v17679_v34  ;;  %v4791_v10 = vld [vmem:[%s14562_s16 + $0x68] sm:$0xff]  ;;  %vm14623_vm10 = vmand %vm5550_vm6, %vm5558_vm7  ;;  %v14648_v17 = vadd.s32 104, %v13994_v29 }
0x2527   : > { %12095 = vmatprep.mubr.msk.bf16.mxu0 %vm17394_vm9, %v5590_v49  ;;  %v5592_v13 = vpack.c.bf16 %v4791_v10, %v4790_v26  ;;  %v17683_v23 = vsel %vm14623_vm10, 4294967295, %v17682_v23  ;;  %v10759_v58 = vsel %vm14623_vm10, 1.0, %v17685_v31  ;;  %v17692_v26 = vmov 0 }
0x2528   : > { %12075 = vmatprep.mubr.msk.bf16.mxu1 %vm17394_vm9, %v5419_v22  ;;  %v5416_v59 = vadd.f32 %v5408_v33, %v17680_v47  ;;  %12096 = vmatmul.mubr.msk.bf16.gmra.mrb[96].mxu0 %vm17394_vm9, %v5591_v35  ;;  %17684 = vst [vmem:[#allocation26_spill] sm:$0xff] %v17683_v23  ;;  %17686 = vst [vmem:[#allocation27_spill] sm:$0xff] %v14648_v17  ;;  %v14651_v22 = vadd.s32 112, %v13994_v29  ;;  %v14656_v47 = vadd.s32 120, %v13994_v29  ;;  %v13002_v35 = vld [vmem:[#allocation9 + $0xd60] ss:$8 sps:$4 sm:$0xff]  }
0x2529   : > { %12099 = vmatprep.mubr.msk.bf16.mxu0 %vm17394_vm9, %v5592_v13  ;;  %v14671_v10 = vadd.s32 64, %v13994_v29 }
0x252a   : > { %v5420_v44 = vpack.c.bf16 %v5416_v59, %v5415_v27  ;;  %17687 = vst [vmem:[#allocation28_spill] sm:$0xff] %v14651_v22  ;;  %v5543_v27 = vsub.s32 %v14648_v17, %v14166_v4  ;;  %17688 = vst [vmem:[#allocation29_spill] sm:$0xff] %v14656_v47  ;;  %v5545_v51 = vsub.s32 %v14656_v47, %v14166_v4 }
0x252b   : > { %17695 = vst [vmem:[#allocation32_spill] sm:$0xff] %v14671_v10  ;;  %v5538_v28 = vsub.s32 %v14671_v10, %v14166_v4 }
0x252c   : > { %12076 = vmatmul.mubr.msk.bf16.gmra.mrb[104].mxu1 %vm17394_vm9, %v5420_v44  ;;  %v5544_v44 = vsub.s32 %v14651_v22, %v14166_v4  ;;  %vm5551_vm1 = vcmp.ge.s32.totalorder %v5543_v27, 0  ;;  %vm5559_vm15 = vcmp.lt.s32.totalorder %v5543_v27, 2  ;;  %vm5561_vm10 = vcmp.lt.s32.totalorder %v5545_v51, 2 }
0x252d   : > { %12137 = vmatprep.mubr.msk.f32.mxu1 %vm17394_vm9, %v10759_v58  ;;  %vm14662_vm7 = vmand %vm5551_vm1, %vm5559_vm15  ;;  %vm17700_vm15 = vcmask 523264   ;;  %v14692_v58 = vadd.s32 80, %v13994_v29 }
0x252e   : > { %vm5552_vm0 = vcmp.ge.s32.totalorder %v5544_v44, 0  ;;  %vm5560_vm6 = vcmp.lt.s32.totalorder %v5544_v44, 2  ;;  %v17690_v61 = vsel %vm14662_vm7, 4294967295, %v17689_v61  ;;  %v10760_v13 = vsel %vm14662_vm7, 1.0, %v17685_v31 }
0x252f   : > { %17691 = vst [vmem:[#allocation30_spill] sm:$0xff] %v17690_v61  ;;  %vm14666_vm3 = vmand %vm5552_vm0, %vm5560_vm6 }
0x2530   : > { %12100 = vmatmul.mubr.msk.bf16.gmra.mrb[100].mxu0 %vm17394_vm9, %v5593_v18  ;;  %v17693_v26 = vsel %vm14666_vm3, 4294967295, %v17692_v26  ;;  %v10761_v24 = vsel %vm14666_vm3, 1.0, %v17685_v31  ;;  %v14684_v18 = vadd.s32 72, %v13994_v29  ;;  %vm17701_vm0 = vmmov %vm17700_vm15  ;;  %17702 = vst [vmem:[#allocation35_spill] sm:$0xff] %v14692_v58 }
0x2531   : > { %12119 = vmatprep.mubr.msk.f32.mxu0 %vm17394_vm9, %v14177_v38  ;;  %17694 = vst [vmem:[#allocation31_spill] sm:$0xff] %v17693_v26  ;;  %vm5553_vm9 = vcmp.ge.s32.totalorder %v5545_v51, 0  ;;  %vm17706_vm6 = vmmov %vm17701_vm0  ;;  %v13003_v51 = vld [vmem:[#allocation9 + $0xd70] ss:$8 sps:$4 sm:$0xff]  }
0x2532   : > { %vm14679_vm1 = vmand %vm5553_vm9, %vm5561_vm10  ;;  %17699 = vst [vmem:[#allocation34_spill] sm:$0xff] %v14684_v18  ;;  %v17855_v11 = vld [vmem:[#allocation32_spill] sm:$0xff] }
0x2533   : > { %v17697_v25 = vsel %vm14679_vm1, 4294967295, %v17696_v25  ;;  %vm17703_vm9 = vmmov %vm17701_vm0 }
0x2534   : > { %17698 = vst [vmem:[#allocation33_spill] sm:$0xff] %v17697_v25  ;;  %vm17704_vm10 = vmmov %vm17701_vm0 }
0x2535   : > { %vm17712_vm13 = vmmov %vm17706_vm6 }
0x2536   : > { %vm17719_vm2 = vmmov %vm17706_vm6 }
0x2562   : > { %v14631_v50 = vpop.f32.mrb[88].mxu0 }
0x2563   : > { %v14633_v38 = vpop.f32.mrb[89].mxu0 }
0x2564   : > { %v14635_v43 = vpop.f32.mrb[90].mxu0 }
0x2565   : > { %v14637_v41 = vpop.f32.mrb[91].mxu0 }
0x256a   : > { %v14639_v42 = vpop.f32.mrb[92].mxu0 }
0x256b   : > { %v14641_v53 = vpop.f32.mrb[93].mxu0 }
0x256c   : > { %v14643_v0 = vpop.f32.mrb[94].mxu0 }
0x256d   : > { %v14645_v39 = vpop.f32.mrb[95].mxu0 }
0x25f7   : > { %v12073_v6 = vpop.f32.mrb[100].mxu1 }
0x25f8   : > { %v5499_v21 = vpop.f32.mrb[101].mxu1 }
0x25f9   : > { %v12074_v62 = vpop.f32.mrb[102].mxu1 }
0x25fa   : > { %v12471_v48 = vpack.c.bf16 %v12074_v62, %v12073_v6  ;;  %v5502_v56 = vpop.f32.mrb[103].mxu1  ;;  %v10762_v6 = vsel %vm14679_vm1, 1.0, %v17685_v31  ;;  %v17709_v62 = vmov 0 }
0x25fb   : > { %v12467_v36 = vpack.c.bf16 %v5502_v56, %v5499_v21  ;;  %v14703_v21 = vadd.s32 88, %v13994_v29  ;;  %v17716_v56 = vmov 0 }
0x25fd   : > { %12468 = vmatprep.subr.bf16.mxu0 %v12467_v36  ;;  %12563 = vmatprep.subr.bf16.mxu1 %v12467_v36  ;;  %17705 = vst [vmem:[#allocation36_spill] sm:$0xff] %v14703_v21 }
0x25fe   : > { %12470 = vmatpush3.bf16.msra.mxu0 %v12467_v36  ;;  %12567 = vmatpush3.bf16.msra.mxu1 %v12467_v36  ;;  %v17720_v36 = vmov 0 }
0x25ff   : > { %v12077_v33 = vpop.f32.mrb[104].mxu1  ;;  %12472 = vmatprep.subr.bf16.mxu0 %v12471_v48  ;;  %12564 = vmatprep.subr.bf16.mxu1 %v12471_v48 }
0x2600   : > { %v5515_v34 = vpop.f32.mrb[105].mxu1 }
0x2601   : > { %v12078_v59 = vpop.f32.mrb[106].mxu1 }
0x2602   : > { %v12479_v5 = vpack.c.bf16 %v12078_v59, %v12077_v33  ;;  %v5518_v55 = vpop.f32.mrb[107].mxu1  ;;  %12474 = vmatpush3.bf16.msra.mxu0 %v12471_v48  ;;  %12568 = vmatpush3.bf16.msra.mxu1 %v12471_v48  ;;  %v5541_v48 = vsub.s32 %v14703_v21, %v14166_v4  ;;  %v14752_v33 = vpop.f32.mrb[96].mxu0 }
0x2603   : > { %v12475_v49 = vpack.c.bf16 %v5518_v55, %v5515_v34  ;;  %v14754_v34 = vpop.f32.mrb[97].mxu0 }
0x2604   : > { %vm5557_vm11 = vcmp.lt.s32.totalorder %v5541_v48, 2  ;;  %v14756_v27 = vpop.f32.mrb[98].mxu0 }
0x2605   : > { %12476 = vmatprep.subr.bf16.mxu0 %v12475_v49  ;;  %12565 = vmatprep.subr.bf16.mxu1 %v12475_v49  ;;  %v14758_v59 = vpop.f32.mrb[99].mxu0 }
0x2606   : > { %12478 = vmatpush3.bf16.msra.mxu0 %v12475_v49  ;;  %12569 = vmatpush3.bf16.msra.mxu1 %v12475_v49  ;;  %v12101_v44 = vpop.f32.mrb[100].mxu0 }
0x2607   : > { %12480 = vmatprep.subr.bf16.mxu0 %v12479_v5  ;;  %12566 = vmatprep.subr.bf16.mxu1 %v12479_v5 }
0x260a   : > { %12482 = vmatpush3.bf16.msra.mxu0 %v12479_v5  ;;  %12570 = vmatpush3.bf16.msra.mxu1 %v12479_v5  ;;  %v5732_v5 = vpop.f32.mrb[101].mxu0 }
0x260b   : > { %12143 = vmatprep.subr.bf16.mxu0 %v13002_v35  ;;  %v12102_v55 = vpop.f32.mrb[102].mxu0 }
0x260c   : > { %v5735_v49 = vpop.f32.mrb[103].mxu0 }
0x260d   : > { %12120 = vmatmul.mubr.msk.f32.vlgmr.msra.gmra.mrb[54].mxu0 %vm17700_vm15, %v14193_v16  ;;  %12138 = vmatmul.mubr.msk.f32.vlgmr.msra.gmra.mrb[108].mxu1 %vm17701_vm0, %v10760_v13  ;;  %v5539_v16 = vsub.s32 %v14684_v18, %v14166_v4  ;;  %vm17707_vm15 = vmmov %vm17701_vm0  ;;  %vm5546_vm0 = vcmp.ge.s32.totalorder %v5538_v28, 0 }
0x260e   : > { %12122 = vmatprep.mubr.msk.f32.mxu0 %vm17703_vm9, %v14279_v9  ;;  %12140 = vmatprep.mubr.msk.f32.mxu1 %vm17704_vm10, %v10761_v24  ;;  %vm5554_vm9 = vcmp.lt.s32.totalorder %v5538_v28, 2  ;;  %v5540_v9 = vsub.s32 %v14692_v58, %v14166_v4  ;;  %vm17708_vm10 = vmmov %vm17706_vm6  ;;  %v14760_v24 = vld [vmem:[#allocation10 + $0x37] ss:$0 sm:$0xff] }
0x260f   : > { %12144 = vmatpush3.bf16.msra.mxu0 %v13002_v35  ;;  %vm14712_vm1 = vmand %vm5546_vm0, %vm5554_vm9  ;;  %vm5547_vm3 = vcmp.ge.s32.totalorder %v5539_v16, 0  ;;  %vm5555_vm7 = vcmp.lt.s32.totalorder %v5539_v16, 2  ;;  %v13004_v35 = vld [vmem:[#allocation9 + $0xd80] ss:$8 sps:$4 sm:$0xff]  }
0x2610   : > { %v17710_v62 = vsel %vm14712_vm1, 4294967295, %v17709_v62  ;;  %vm5556_vm5 = vcmp.lt.s32.totalorder %v5540_v9, 2  ;;  %vm14725_vm0 = vmand %vm5547_vm3, %vm5555_vm7  ;;  %12145 = vmatprep.subr.bf16.mxu0 %v13003_v51 }
0x2611   : > { %12123 = vmatmul.mubr.msk.f32.gmra.mrb[104].mxu0 %vm17706_vm6, %v14292_v46  ;;  %12141 = vmatmul.mubr.msk.f32.gmra.mrb[110].mxu1 %vm17707_vm15, %v10762_v6  ;;  %17711 = vst [vmem:[#allocation37_spill] sm:$0xff] %v17710_v62  ;;  %vm5548_vm15 = vcmp.ge.s32.totalorder %v5540_v9, 0  ;;  %v10755_v46 = vsel %vm14712_vm1, 1.0, %v17685_v31  ;;  %vm17726_vm7 = vmmov %vm17719_vm2 }
0x2612   : > { %12125 = vmatprep.mubr.msk.f32.mxu0 %vm17708_vm10, %v14392_v40  ;;  %v17713_v40 = vmov 0  ;;  %vm14729_vm9 = vmand %vm5548_vm15, %vm5556_vm5  ;;  %vm5549_vm10 = vcmp.ge.s32.totalorder %v5541_v48, 0 }
0x2613   : > { %v17714_v40 = vsel %vm14725_vm0, 4294967295, %v17713_v40  ;;  %v17717_v56 = vsel %vm14729_vm9, 4294967295, %v17716_v56  ;;  %vm14742_vm3 = vmand %vm5549_vm10, %vm5557_vm11  ;;  %12146 = vmatpush3.bf16.msra.mxu0 %v13003_v51 }
0x2614   : > { %17715 = vst [vmem:[#allocation38_spill] sm:$0xff] %v17714_v40  ;;  %17718 = vst [vmem:[#allocation39_spill] sm:$0xff] %v17717_v56  ;;  %v17721_v36 = vsel %vm14742_vm3, 4294967295, %v17720_v36  ;;  %12147 = vmatprep.subr.bf16.mxu0 %v13004_v35 }
0x2615   : > { %12126 = vmatmul.mubr.msk.f32.gmra.mrb[106].mxu0 %vm17706_vm6, %v14409_v52  ;;  %v10756_v52 = vsel %vm14725_vm0, 1.0, %v17685_v31  ;;  %17722 = vst [vmem:[#allocation40_spill] sm:$0xff] %v17721_v36  ;;  %vm17724_vm5 = vmmov %vm17719_vm2 }
0x2616   : > { %12128 = vmatprep.mubr.msk.f32.mxu0 %vm17712_vm13, %v14414_v14  ;;  %v10757_v14 = vsel %vm14729_vm9, 1.0, %v17685_v31  ;;  %vm17723_vm13 = vmmov %vm17719_vm2 }
0x2617   : > { %12148 = vmatpush3.bf16.msra.mxu0 %v13004_v35  ;;  %vm17725_vm11 = vmmov %vm17719_vm2 }
0x2618   : > { %vm17727_vm15 = vmmov %vm17719_vm2 }
0x2619   : > { %12129 = vmatmul.mubr.msk.f32.gmra.mrb[108].mxu0 %vm17706_vm6, %v14428_v20  ;;  %v10758_v20 = vsel %vm14742_vm3, 1.0, %v17685_v31  ;;  %v13005_v31 = vld [vmem:[#allocation9 + $0xd90] ss:$8 sps:$4 sm:$0xff]   ;;  %vm17728_vm10 = vmmov %vm17719_vm2 }
0x261a   : > { %12131 = vmatprep.mubr.msk.f32.mxu0 %vm17719_vm2, %v10755_v46  ;;  %12149 = vmatprep.subr.bf16.mxu0 %v13005_v31  ;;  %vm17729_vm6 = vmmov %vm17719_vm2 }
0x261b   : > { %12150 = vmatpush3.bf16.msra.mxu0 %v13005_v31 }
0x261d   : > { %12132 = vmatmul.mubr.msk.f32.gmra.mrb[110].mxu0 %vm17723_vm13, %v10756_v52  ;;  %vm17730_vm13 = vmmov %vm17719_vm2 }
0x261e   : > { %12134 = vmatprep.mubr.msk.f32.mxu0 %vm17724_vm5, %v10757_v14  ;;  %vm17731_vm5 = vmmov %vm17719_vm2 }
0x2621   : > { %12135 = vmatmul.mubr.msk.f32.gmra.mrb[112].mxu0 %vm17719_vm2, %v10758_v20 }
0x26e0   : > { %v12121_v13 = vpop.f32.mrb[54].mxu0  ;;  %v12139_v28 = vpop.f32.mrb[108].mxu1 }
0x26e1   : > { %v5859_v6 = vadd.f32 %v12121_v13, %v14637_v41  ;;  %v5853_v16 = vpop.f32.mrb[55].mxu0  ;;  %v5919_v9 = vadd.f32 %v12139_v28, %v5735_v49  ;;  %v5913_v48 = vpop.f32.mrb[109].mxu1 }
0x26e2   : > { %v5854_v46 = vadd.f32 %v5853_v16, %v14633_v38  ;;  %v5914_v52 = vadd.f32 %v5913_v48, %v5732_v5 }
0x26e3   : > { %v5934_v14 = vadd.f32 %v14760_v24, %v5859_v6  ;;  %v5946_v20 = vadd.f32 %v14760_v24, %v5919_v9 }
0x26e4   : > { %v5933_v51 = vadd.f32 %v14760_v24, %v5854_v46  ;;  %v12124_v35 = vpop.f32.mrb[104].mxu0  ;;  %v5945_v31 = vadd.f32 %v14760_v24, %v5914_v52  ;;  %v12142_v47 = vpop.f32.mrb[110].mxu1 }
0x26e5   : > { %v5950_v22 = vmax.f32 %v5934_v14, 0.0  ;;  %v5869_v17 = vadd.f32 %v12124_v35, %v14635_v43  ;;  %v5863_v41 = vpop.f32.mrb[105].mxu0  ;;  %v5962_v13 = vmax.f32 %v5946_v20, 0.0  ;;  %v5929_v49 = vadd.f32 %v12142_v47, %v12102_v55  ;;  %v5923_v28 = vpop.f32.mrb[111].mxu1 }
0x26e6   : > { %v5949_v15 = vmax.f32 %v5933_v51, 0.0  ;;  %v5864_v38 = vadd.f32 %v14631_v50, %v5863_v41  ;;  %v5961_v5 = vmax.f32 %v5945_v31, 0.0  ;;  %v5924_v6 = vadd.f32 %v12101_v44, %v5923_v28 }
0x26e7   : > { %v5936_v16 = vadd.f32 %v14760_v24, %v5869_v17  ;;  %v5948_v9 = vadd.f32 %v14760_v24, %v5929_v49 }
0x26e8   : > { %v5997_v48 = vpack.c.bf16 %v5950_v22, %v5949_v15  ;;  %v5935_v46 = vadd.f32 %v14760_v24, %v5864_v38  ;;  %v6003_v52 = vpack.c.bf16 %v5962_v13, %v5961_v5  ;;  %v12127_v14 = vpop.f32.mrb[106].mxu0  ;;  %v5947_v43 = vadd.f32 %v14760_v24, %v5924_v6 }
0x26e9   : > { %v5952_v35 = vmax.f32 %v5936_v16, 0.0  ;;  %v5964_v20 = vmax.f32 %v5948_v9, 0.0  ;;  %v5879_v47 = vadd.f32 %v12127_v14, %v14645_v39  ;;  %v5873_v55 = vpop.f32.mrb[107].mxu0 }
0x26ea   : > { %v5951_v51 = vmax.f32 %v5935_v46, 0.0  ;;  %v5963_v50 = vmax.f32 %v5947_v43, 0.0  ;;  %v5874_v44 = vadd.f32 %v5873_v55, %v14641_v53  ;;  %12151 = vmatprep.mubr.msk.bf16.mxu0 %vm17725_vm11, %v5997_v48  ;;  %vm17733_vm11 = vcmask 261120  }
0x26eb   : > { %v5938_v17 = vadd.f32 %v14760_v24, %v5879_v47 }
0x26ec   : > { %v5998_v15 = vpack.c.bf16 %v5952_v35, %v5951_v51  ;;  %v6004_v22 = vpack.c.bf16 %v5964_v20, %v5963_v50  ;;  %v5937_v31 = vadd.f32 %v14760_v24, %v5874_v44  ;;  %v12130_v41 = vpop.f32.mrb[108].mxu0 }
0x26ed   : > { %v5954_v13 = vmax.f32 %v5938_v17, 0.0  ;;  %v5889_v49 = vadd.f32 %v12130_v41, %v14643_v0  ;;  %v5883_v28 = vpop.f32.mrb[109].mxu0 }
0x26ee   : > { %v5953_v38 = vmax.f32 %v5937_v31, 0.0  ;;  %v5884_v39 = vadd.f32 %v14639_v42, %v5883_v28  ;;  %12152 = vmatmul.mubr.msk.bf16.vlgmr.msra.gmra.mrb[116].mxu0 %vm17726_vm7, %v5998_v15  ;;  %vm17734_vm7 = vmmov %vm17733_vm11 }
0x26ef   : > { %v5940_v53 = vadd.f32 %v14760_v24, %v5889_v49  ;;  %v5968_v49 = vld [vmem:[%s14802_s18 + $0x18] sm:$0xff] }
0x26f0   : > { %v5999_v5 = vpack.c.bf16 %v5954_v13, %v5953_v38  ;;  %v5939_v6 = vadd.f32 %v14760_v24, %v5884_v39  ;;  %v12133_v16 = vpop.f32.mrb[110].mxu0  ;;  %v5967_v13 = vld [vmem:[%s14802_s18 + $0x10] sm:$0xff]  ;;  %v17443_v38 = vmov 1.0   ;;  %v5969_v39 = vld [vmem:[%s14802_s18 + $0x20] sm:$0xff] }
0x26f1   : > { %v5956_v9 = vmax.f32 %v5940_v53, 0.0  ;;  %v5899_v48 = vadd.f32 %v12133_v16, %v14758_v59  ;;  %v5893_v46 = vpop.f32.mrb[111].mxu0  ;;  %v6271_v28 = vpack.c.bf16 %v5968_v49, %v5967_v13  ;;  %v5970_v53 = vld [vmem:[%s14802_s18 + $0x28] sm:$0xff]  ;;  %v5972_v16 = vld [vmem:[%s14802_s18 + $0x38] sm:$0xff]  ;;  %v5989_v13 = vld [vmem:[%s14802_s18 + $0xc0] sm:$0xff] }
0x26f2   : > { %v5955_v14 = vmax.f32 %v5939_v6, 0.0  ;;  %v5894_v43 = vadd.f32 %v5893_v46, %v14754_v34  ;;  %12155 = vmatprep.mubr.msk.bf16.mxu0 %vm17727_vm15, %v5999_v5  ;;  %v6272_v5 = vpack.c.bf16 %v5970_v53, %v5969_v39  ;;  %v5971_v6 = vld [vmem:[%s14802_s18 + $0x30] sm:$0xff]  ;;  %vm17735_vm15 = vmmov %vm17734_vm7  ;;  %v5974_v46 = vld [vmem:[%s14802_s18 + $0x48] sm:$0xff] }
0x26f3   : > { %v5942_v0 = vadd.f32 %v14760_v24, %v5899_v48  ;;  %v5973_v48 = vld [vmem:[%s14802_s18 + $0x40] sm:$0xff]  ;;  %v5990_v49 = vld [vmem:[%s14802_s18 + $0xc8] sm:$0xff]  ;;  %v5991_v39 = vld [vmem:[%s14802_s18 + $0xd0] sm:$0xff] }
0x26f4   : > { %v6000_v42 = vpack.c.bf16 %v5956_v9, %v5955_v14  ;;  %v5941_v35 = vadd.f32 %v14760_v24, %v5894_v43  ;;  %v12136_v20 = vpop.f32.mrb[112].mxu0  ;;  %v6273_v9 = vpack.c.bf16 %v5972_v16, %v5971_v6  ;;  %v6274_v14 = vpack.c.bf16 %v5974_v46, %v5973_v48  ;;  %v5975_v43 = vld [vmem:[%s14802_s18 + $0x50] sm:$0xff]  ;;  %v5992_v53 = vld [vmem:[%s14802_s18 + $0xd8] sm:$0xff]  ;;  %v5993_v6 = vld [vmem:[%s14802_s18 + $0xe0] sm:$0xff] }
0x26f5   : > { %v5958_v47 = vmax.f32 %v5942_v0, 0.0  ;;  %v5909_v55 = vadd.f32 %v12136_v20, %v14756_v27  ;;  %v5903_v51 = vpop.f32.mrb[113].mxu0  ;;  %v13007_v27 = vld [vmem:[#allocation9 + $0xdb0] ss:$8 sps:$4 sm:$0xff]   ;;  %v5978_v20 = vld [vmem:[%s14802_s18 + $0x68] sm:$0xff] }
0x26f6   : > { %v5957_v50 = vmax.f32 %v5941_v35, 0.0  ;;  %v5904_v59 = vadd.f32 %v14752_v33, %v5903_v51  ;;  %12156 = vmatmul.mubr.msk.bf16.gmra.mrb[120].mxu0 %vm17728_vm10, %v6000_v42  ;;  %v13006_v33 = vld [vmem:[#allocation9 + $0xda0] ss:$8 sps:$4 sm:$0xff]   ;;  %vm17736_vm10 = vmmov %vm17734_vm7  ;;  %v5976_v0 = vld [vmem:[%s14802_s18 + $0x58] sm:$0xff] }
0x26f7   : > { %v5944_v34 = vadd.f32 %v14760_v24, %v5909_v55  ;;  %12167 = vmatprep.subr.bf16.mxu1 %v13006_v33  ;;  %v6275_v42 = vpack.c.bf16 %v5976_v0, %v5975_v43  ;;  %v5977_v35 = vld [vmem:[%s14802_s18 + $0x60] sm:$0xff]  ;;  %v5979_v55 = vld [vmem:[%s14802_s18 + $0x70] sm:$0xff]  ;;  %v5980_v51 = vld [vmem:[%s14802_s18 + $0x78] sm:$0xff] }
0x26f8   : > { %v6001_v44 = vpack.c.bf16 %v5958_v47, %v5957_v50  ;;  %v5943_v17 = vadd.f32 %v14760_v24, %v5904_v59  ;;  %12168 = vmatpush3.bf16.msra.mxu1 %v13006_v33  ;;  %v5965_v24 = vld [vmem:[%s14802_s18] sm:$0xff]  ;;  %v6276_v47 = vpack.c.bf16 %v5978_v20, %v5977_v35  ;;  %v6277_v50 = vpack.c.bf16 %v5980_v51, %v5979_v55  ;;  %v5986_v33 = vld [vmem:[%s14802_s18 + $0xa8] sm:$0xff]  ;;  %v5995_v48 = vld [vmem:[%s14802_s18 + $0xf0] sm:$0xff] }
0x26f9   : > { %v5960_v15 = vmax.f32 %v5944_v34, 0.0  ;;  %12169 = vmatprep.subr.bf16.mxu1 %v13007_v27  ;;  %v5981_v59 = vld [vmem:[%s14802_s18 + $0x80] sm:$0xff]  ;;  %v5982_v34 = vld [vmem:[%s14802_s18 + $0x88] sm:$0xff]  ;;  %v5996_v46 = vld [vmem:[%s14802_s18 + $0xf8] sm:$0xff] }
0x26fa   : > { %v5959_v31 = vmax.f32 %v5943_v17, 0.0  ;;  %12159 = vmatprep.mubr.msk.bf16.mxu0 %vm17729_vm6, %v6001_v44  ;;  %vm17737_vm6 = vmmov %vm17734_vm7  ;;  %v6278_v44 = vpack.c.bf16 %v5982_v34, %v5981_v59  ;;  %v5983_v17 = vld [vmem:[%s14802_s18 + $0x90] sm:$0xff]  ;;  %v5994_v16 = vld [vmem:[%s14802_s18 + $0xe8] sm:$0xff] }
0x26fb   : > { %v13008_v43 = vld [vmem:[#allocation9 + $0xdc0] ss:$8 sps:$4 sm:$0xff]   ;;  %v13009_v0 = vld [vmem:[#allocation9 + $0xdd0] ss:$8 sps:$4 sm:$0xff]  }
0x26fc   : > { %v6002_v41 = vpack.c.bf16 %v5960_v15, %v5959_v31  ;;  %12170 = vmatpush3.bf16.msra.mxu1 %v13007_v27  ;;  %v5984_v15 = vld [vmem:[%s14802_s18 + $0x98] sm:$0xff] }
0x26fd   : > { %v6279_v31 = vpack.c.bf16 %v5984_v15, %v5983_v17  ;;  %12283 = vmatprep.subr.bf16.mxu1 %v13008_v43 }
0x26fe   : > { %12160 = vmatmul.mubr.msk.bf16.gmra.mrb[124].mxu0 %vm17730_vm13, %v6002_v41  ;;  %vm17738_vm13 = vmmov %vm17737_vm6  ;;  %v5985_v41 = vld [vmem:[%s14802_s18 + $0xa0] sm:$0xff] }
0x26ff   : > { %12163 = vmatprep.mubr.msk.bf16.mxu0 %vm17731_vm5, %v6003_v52  ;;  %v5966_v52 = vld [vmem:[%s14802_s18 + $0x8] sm:$0xff]  ;;  %vm17739_vm5 = vmmov %vm17737_vm6  ;;  %v6280_v27 = vpack.c.bf16 %v5986_v33, %v5985_v41 }
0x2706   : > { %12164 = vmatmul.mubr.msk.bf16.gmra.mrb[128].mxu0 %vm17719_vm2, %v6004_v22  ;;  %v6270_v22 = vpack.c.bf16 %v5966_v52, %v5965_v24  ;;  %vm17740_vm2 = vmmov %vm17739_vm5  ;;  %v5987_v24 = vld [vmem:[%s14802_s18 + $0xb0] sm:$0xff]  ;;  %v5988_v52 = vld [vmem:[%s14802_s18 + $0xb8] sm:$0xff] }
0x2707   : > { %12235 = vmatprep.mubr.msk.f32.mxu0 %vm14170_vm14, %v17443_v38 }
0x2708   : > { %12171 = vmatprep.mubr.msk.bf16.mxu1 %vm17733_vm11, %v6270_v22  ;;  %vm17741_vm11 = vmmov %vm17740_vm2  ;;  %v6281_v22 = vpack.c.bf16 %v5988_v52, %v5987_v24 }
0x2709   : > { %12172 = vmatmul.mubr.msk.bf16.vlgmr.msra.gmra.mrb[112].mxu1 %vm17734_vm7, %v6271_v28  ;;  %vm17742_vm7 = vmmov %vm17740_vm2  ;;  %v6282_v28 = vpack.c.bf16 %v5990_v49, %v5989_v13 }
0x270a   : > { %12175 = vmatprep.mubr.msk.bf16.mxu1 %vm17735_vm15, %v6272_v5  ;;  %vm17743_vm15 = vmmov %vm17740_vm2  ;;  %v6283_v5 = vpack.c.bf16 %v5992_v53, %v5991_v39  ;;  %12284 = vmatpush3.bf16.msra.mxu1 %v13008_v43  ;;  %v14910_v43 = vadd.s32 160, %v13994_v29 }
0x270b   : > { %12285 = vmatprep.subr.bf16.mxu1 %v13009_v0 }
0x270c   : > { %17757 = vst [vmem:[#allocation45_spill] sm:$0xff] %v14910_v43 }
0x270e   : > { %12286 = vmatpush3.bf16.msra.mxu1 %v13009_v0  ;;  %v17760_v0 = vmov 0 }
0x2711   : > { %12176 = vmatmul.mubr.msk.bf16.gmra.mrb[116].mxu1 %vm17736_vm10, %v6273_v9  ;;  %vm17744_vm10 = vmmov %vm17740_vm2  ;;  %v6284_v9 = vpack.c.bf16 %v5994_v16, %v5993_v6  ;;  %v14889_v6 = vadd.s32 136, %v13994_v29 }
0x2712   : > { %12179 = vmatprep.mubr.msk.bf16.mxu1 %vm17737_vm6, %v6274_v14  ;;  %vm17745_vm6 = vmmov %vm17740_vm2  ;;  %v6285_v14 = vpack.c.bf16 %v5996_v46, %v5995_v48  ;;  %v14905_v46 = vadd.s32 152, %v13994_v29 }
0x2713   : > { %17753 = vst [vmem:[#allocation42_spill] sm:$0xff] %v14889_v6  ;;  %v6175_v48 = vsub.s32 %v14889_v6, %v14166_v4 }
0x2714   : > { %17756 = vst [vmem:[#allocation44_spill] sm:$0xff] %v14905_v46 }
0x2719   : > { %12180 = vmatmul.mubr.msk.bf16.gmra.mrb[120].mxu1 %vm17738_vm13, %v6275_v42  ;;  %vm17746_vm13 = vmmov %vm17740_vm2 }
0x271a   : > { %12183 = vmatprep.mubr.msk.bf16.mxu1 %vm17739_vm5, %v6276_v47  ;;  %vm17747_vm5 = vmmov %vm17740_vm2 }
0x2721   : > { %12184 = vmatmul.mubr.msk.bf16.gmra.mrb[124].mxu1 %vm17740_vm2, %v6277_v50 }
0x2722   : > { %12187 = vmatprep.mubr.msk.bf16.mxu1 %vm17741_vm11, %v6278_v44  ;;  %vm17748_vm11 = vnez %v17648_v37 }
0x2729   : > { %12188 = vmatmul.mubr.msk.bf16.gmra.mrb[128].mxu1 %vm17742_vm7, %v6279_v31  ;;  %vm17749_vm7 = vnez %v17651_v45 }
0x272a   : > { %12191 = vmatprep.mubr.msk.bf16.mxu1 %vm17743_vm15, %v6280_v27  ;;  %vm17750_vm15 = vnez %v17654_v19 }
0x2731   : > { %12192 = vmatmul.mubr.msk.bf16.gmra.mrb[132].mxu1 %vm17744_vm10, %v6281_v22  ;;  %vm17751_vm10 = vnez %v17657_v30 }
0x2732   : > { %12195 = vmatprep.mubr.msk.bf16.mxu1 %vm17745_vm6, %v6282_v28  ;;  %vm17755_vm6 = vnez %v17683_v23 }
0x2739   : > { %12196 = vmatmul.mubr.msk.bf16.gmra.mrb[136].mxu1 %vm17746_vm13, %v6283_v5  ;;  %v14880_v5 = vadd.s32 128, %v13994_v29 }
0x273a   : > { %12199 = vmatprep.mubr.msk.bf16.mxu1 %vm17747_vm5, %v6284_v9  ;;  %v14894_v9 = vadd.s32 144, %v13994_v29 }
0x273b   : > { %17752 = vst [vmem:[#allocation41_spill] sm:$0xff] %v14880_v5  ;;  %v6174_v16 = vsub.s32 %v14880_v5, %v14166_v4 }
0x273c   : > { %17754 = vst [vmem:[#allocation43_spill] sm:$0xff] %v14894_v9 }
0x273d   : > { %vm6190_vm13 = vcmp.ge.s32.totalorder %v6174_v16, 0  ;;  %vm6206_vm5 = vcmp.lt.s32.totalorder %v6174_v16, 2 }
0x2741   : > { %12200 = vmatmul.mubr.msk.bf16.gmra.mrb[140].mxu1 %vm17740_vm2, %v6285_v14  ;;  %v6176_v14 = vsub.s32 %v14894_v9, %v14166_v4  ;;  %vm17758_vm2 = vnez %v17690_v61  ;;  %v15138_v9 = vld [vmem:[#allocation10 + $0x40] ss:$0 sm:$0xff] }
0x27c1   : > { %v12153_v42 = vpop.f32.mrb[116].mxu0 }
0x27c2   : > { %v6095_v35 = vpop.f32.mrb[117].mxu0 }
0x27c3   : > { %v12154_v20 = vpop.f32.mrb[118].mxu0 }
0x27c4   : > { %v12487_v47 = vpack.c.bf16 %v12154_v20, %v12153_v42  ;;  %v6098_v55 = vpop.f32.mrb[119].mxu0  ;;  %v6177_v42 = vsub.s32 %v14905_v46, %v14166_v4  ;;  %v6178_v20 = vsub.s32 %v14910_v43, %v14166_v4 }
0x27c5   : > { %v12483_v51 = vpack.c.bf16 %v6098_v55, %v6095_v35  ;;  %v14925_v35 = vadd.s32 168, %v13994_v29  ;;  %v17766_v55 = vmov 0 }
0x27c7   : > { %12484 = vmatprep.subr.bf16.mxu0 %v12483_v51  ;;  %17763 = vst [vmem:[#allocation47_spill] sm:$0xff] %v14925_v35 }
0x27c8   : > { %12486 = vmatpush3.bf16.msra.mxu0 %v12483_v51  ;;  %v17769_v51 = vmov 0 }
0x27c9   : > { %v12157_v50 = vpop.f32.mrb[120].mxu0  ;;  %12488 = vmatprep.subr.bf16.mxu0 %v12487_v47 }
0x27ca   : > { %v6111_v59 = vpop.f32.mrb[121].mxu0 }
0x27cb   : > { %v12158_v34 = vpop.f32.mrb[122].mxu0 }
0x27cc   : > { %v12495_v44 = vpack.c.bf16 %v12158_v34, %v12157_v50  ;;  %v6114_v17 = vpop.f32.mrb[123].mxu0  ;;  %12490 = vmatpush3.bf16.msra.mxu0 %v12487_v47  ;;  %v14930_v47 = vadd.s32 176, %v13994_v29  ;;  %v6179_v50 = vsub.s32 %v14925_v35, %v14166_v4 }
0x27cd   : > { %v12491_v15 = vpack.c.bf16 %v6114_v17, %v6111_v59  ;;  %v14949_v59 = vadd.s32 184, %v13994_v29  ;;  %v17774_v17 = vmov 0 }
0x27ce   : > { %17764 = vst [vmem:[#allocation48_spill] sm:$0xff] %v14930_v47  ;;  %v6180_v34 = vsub.s32 %v14930_v47, %v14166_v4 }
0x27cf   : > { %12492 = vmatprep.subr.bf16.mxu0 %v12491_v15  ;;  %17772 = vst [vmem:[#allocation51_spill] sm:$0xff] %v14949_v59 }
0x27d0   : > { %12494 = vmatpush3.bf16.msra.mxu0 %v12491_v15  ;;  %v17777_v15 = vmov 0 }
0x27d1   : > { %v12161_v31 = vpop.f32.mrb[124].mxu0  ;;  %12496 = vmatprep.subr.bf16.mxu0 %v12495_v44 }
0x27d2   : > { %v6127_v41 = vpop.f32.mrb[125].mxu0 }
0x27d3   : > { %v12162_v33 = vpop.f32.mrb[126].mxu0 }
0x27d4   : > { %v12503_v27 = vpack.c.bf16 %v12162_v33, %v12161_v31  ;;  %v6130_v24 = vpop.f32.mrb[127].mxu0  ;;  %12498 = vmatpush3.bf16.msra.mxu0 %v12495_v44  ;;  %v14954_v44 = vadd.s32 192, %v13994_v29  ;;  %v6181_v31 = vsub.s32 %v14949_v59, %v14166_v4 }
0x27d5   : > { %v12499_v52 = vpack.c.bf16 %v6130_v24, %v6127_v41  ;;  %v14973_v41 = vadd.s32 200, %v13994_v29  ;;  %v17782_v24 = vmov 0 }
0x27d6   : > { %17773 = vst [vmem:[#allocation52_spill] sm:$0xff] %v14954_v44  ;;  %v6182_v33 = vsub.s32 %v14954_v44, %v14166_v4 }
0x27d7   : > { %12500 = vmatprep.subr.bf16.mxu0 %v12499_v52  ;;  %17780 = vst [vmem:[#allocation55_spill] sm:$0xff] %v14973_v41 }
0x27d8   : > { %12502 = vmatpush3.bf16.msra.mxu0 %v12499_v52  ;;  %v17785_v52 = vmov 0 }
0x27d9   : > { %v12165_v22 = vpop.f32.mrb[128].mxu0  ;;  %12504 = vmatprep.subr.bf16.mxu0 %v12503_v27 }
0x27da   : > { %v6143_v13 = vpop.f32.mrb[129].mxu0 }
0x27db   : > { %v12166_v49 = vpop.f32.mrb[130].mxu0 }
0x27dc   : > { %v12511_v28 = vpack.c.bf16 %v12166_v49, %v12165_v22  ;;  %v6146_v39 = vpop.f32.mrb[131].mxu0  ;;  %12506 = vmatpush3.bf16.msra.mxu0 %v12503_v27  ;;  %v14978_v27 = vadd.s32 208, %v13994_v29  ;;  %v6183_v22 = vsub.s32 %v14973_v41, %v14166_v4 }
0x27dd   : > { %v12507_v53 = vpack.c.bf16 %v6146_v39, %v6143_v13  ;;  %v14997_v13 = vadd.s32 216, %v13994_v29  ;;  %v17790_v39 = vmov 0 }
0x27de   : > { %17781 = vst [vmem:[#allocation56_spill] sm:$0xff] %v14978_v27  ;;  %v6184_v49 = vsub.s32 %v14978_v27, %v14166_v4 }
0x27df   : > { %12508 = vmatprep.subr.bf16.mxu0 %v12507_v53  ;;  %17788 = vst [vmem:[#allocation59_spill] sm:$0xff] %v14997_v13  ;;  %v6185_v16 = vsub.s32 %v14997_v13, %v14166_v4 }
0x27e0   : > { %12510 = vmatpush3.bf16.msra.mxu0 %v12507_v53  ;;  %v17793_v53 = vmov 0 }
0x27e1   : > { %12512 = vmatprep.subr.bf16.mxu0 %v12511_v28 }
0x27e4   : > { %12514 = vmatpush3.bf16.msra.mxu0 %v12511_v28  ;;  %v15002_v28 = vadd.s32 224, %v13994_v29 }
0x27e6   : > { %17789 = vst [vmem:[#allocation60_spill] sm:$0xff] %v15002_v28 }
0x27e7   : > { %12236 = vmatmul.mubr.msk.f32.vlgmr.msra.gmra.mrb[114].mxu0 %vm14186_vm4, %v17443_v38 }
0x27e8   : > { %12238 = vmatprep.mubr.msk.f32.mxu0 %vm14272_vm8, %v17443_v38 }
0x27eb   : > { %12239 = vmatmul.mubr.msk.f32.gmra.mrb[132].mxu0 %vm14281_vm12, %v17443_v38 }
0x27ec   : > { %12241 = vmatprep.mubr.msk.f32.mxu0 %vm17748_vm11, %v17443_v38 }
0x27ef   : > { %12242 = vmatmul.mubr.msk.f32.gmra.mrb[134].mxu0 %vm17749_vm7, %v17443_v38  ;;  %vm6210_vm7 = vcmp.lt.s32.totalorder %v6178_v20, 2 }
0x27f0   : > { %12244 = vmatprep.mubr.msk.f32.mxu0 %vm17750_vm15, %v17443_v38  ;;  %vm6209_vm15 = vcmp.lt.s32.totalorder %v6177_v42, 2 }
0x27f3   : > { %12245 = vmatmul.mubr.msk.f32.gmra.mrb[136].mxu0 %vm17751_vm10, %v17443_v38  ;;  %vm6208_vm10 = vcmp.lt.s32.totalorder %v6176_v14, 2 }
0x27f4   : > { %12247 = vmatprep.mubr.msk.f32.mxu0 %vm14712_vm1, %v17443_v38  ;;  %vm6192_vm1 = vcmp.ge.s32.totalorder %v6176_v14, 0  ;;  %v6186_v14 = vsub.s32 %v15002_v28, %v14166_v4 }
0x27f7   : > { %12248 = vmatmul.mubr.msk.f32.gmra.mrb[138].mxu0 %vm14725_vm0, %v17443_v38  ;;  %vm6207_vm0 = vcmp.lt.s32.totalorder %v6175_v48, 2 }
0x27f8   : > { %12250 = vmatprep.mubr.msk.f32.mxu0 %vm14729_vm9, %v17443_v38  ;;  %vm6191_vm9 = vcmp.ge.s32.totalorder %v6175_v48, 0  ;;  %v15021_v48 = vadd.s32 232, %v13994_v29 }
0x27fa   : > { %17796 = vst [vmem:[#allocation63_spill] sm:$0xff] %v15021_v48 }
0x27fb   : > { %12251 = vmatmul.mubr.msk.f32.gmra.mrb[140].mxu0 %vm14742_vm3, %v17443_v38  ;;  %vm14918_vm3 = vmand %vm6190_vm13, %vm6206_vm5  ;;  %vm17765_vm13 = vnez %v17697_v25 }
0x27fc   : > { %12253 = vmatprep.mubr.msk.f32.mxu0 %vm17755_vm6, %v17443_v38  ;;  %vm17759_vm6 = vnez %v17693_v26  ;;  %v17761_v0 = vsel %vm14918_vm3, 4294967295, %v17760_v0  ;;  %vm14938_vm5 = vmand %vm6191_vm9, %vm6207_vm0  ;;  %vm6195_vm9 = vcmp.ge.s32.totalorder %v6179_v50, 0 }
0x27fd   : > { %17762 = vst [vmem:[#allocation46_spill] sm:$0xff] %v17761_v0  ;;  %v17767_v55 = vsel %vm14938_vm5, 4294967295, %v17766_v55 }
0x27fe   : > { %17768 = vst [vmem:[#allocation49_spill] sm:$0xff] %v17767_v55 }
0x27ff   : > { %12254 = vmatmul.mubr.msk.f32.gmra.mrb[142].mxu0 %vm17758_vm2, %v17443_v38  ;;  %vm6193_vm2 = vcmp.ge.s32.totalorder %v6177_v42, 0  ;;  %v15026_v42 = vadd.s32 240, %v13994_v29 }
0x2800   : > { %12256 = vmatprep.mubr.msk.f32.mxu0 %vm17759_vm6, %v17443_v38  ;;  %vm14942_vm6 = vmand %vm6192_vm1, %vm6208_vm10  ;;  %vm6211_vm10 = vcmp.lt.s32.totalorder %v6179_v50, 2  ;;  %v17801_v50 = vmov 0 }
0x2801   : > { %v17770_v51 = vsel %vm14942_vm6, 4294967295, %v17769_v51  ;;  %vm14962_vm1 = vmand %vm6193_vm2, %vm6209_vm15  ;;  %vm6197_vm2 = vcmp.ge.s32.totalorder %v6181_v31, 0  ;;  %17797 = vst [vmem:[#allocation64_spill] sm:$0xff] %v15026_v42 }
0x2802   : > { %17771 = vst [vmem:[#allocation50_spill] sm:$0xff] %v17770_v51  ;;  %v17775_v17 = vsel %vm14962_vm1, 4294967295, %v17774_v17 }
0x2803   : > { %12257 = vmatmul.mubr.msk.f32.gmra.mrb[144].mxu0 %vm17765_vm13, %v17443_v38  ;;  %vm6194_vm13 = vcmp.ge.s32.totalorder %v6178_v20, 0  ;;  %17776 = vst [vmem:[#allocation53_spill] sm:$0xff] %v17775_v17  ;;  %v17798_v20 = vmov 0 }
0x2804   : > { %12259 = vmatprep.mubr.msk.f32.mxu0 %vm14918_vm3, %v17443_v38  ;;  %vm14966_vm0 = vmand %vm6194_vm13, %vm6210_vm7  ;;  %vm6212_vm3 = vcmp.lt.s32.totalorder %v6180_v34, 2  ;;  %vm6213_vm13 = vcmp.lt.s32.totalorder %v6181_v31, 2  ;;  %v15045_v31 = vadd.s32 248, %v13994_v29 }
0x2805   : > { %v17778_v15 = vsel %vm14966_vm0, 4294967295, %v17777_v15  ;;  %vm14986_vm7 = vmand %vm6195_vm9, %vm6211_vm10  ;;  %vm6199_vm9 = vcmp.ge.s32.totalorder %v6183_v22, 0  ;;  %vm6215_vm10 = vcmp.lt.s32.totalorder %v6183_v22, 2  ;;  %v17805_v22 = vmov 0 }
0x2806   : > { %17779 = vst [vmem:[#allocation54_spill] sm:$0xff] %v17778_v15  ;;  %v17783_v24 = vsel %vm14986_vm7, 4294967295, %v17782_v24  ;;  %17804 = vst [vmem:[#allocation67_spill] sm:$0xff] %v15045_v31 }
0x2807   : > { %12260 = vmatmul.mubr.msk.f32.gmra.mrb[146].mxu0 %vm14938_vm5, %v17443_v38  ;;  %vm6196_vm5 = vcmp.ge.s32.totalorder %v6180_v34, 0  ;;  %17784 = vst [vmem:[#allocation57_spill] sm:$0xff] %v17783_v24  ;;  %v6187_v34 = vsub.s32 %v15021_v48, %v14166_v4 }
0x2808   : > { %12262 = vmatprep.mubr.msk.f32.mxu0 %vm14942_vm6, %v17443_v38  ;;  %vm14990_vm15 = vmand %vm6196_vm5, %vm6212_vm3  ;;  %vm6214_vm6 = vcmp.lt.s32.totalorder %v6182_v33, 2 }
0x2809   : > { %v17786_v52 = vsel %vm14990_vm15, 4294967295, %v17785_v52  ;;  %vm15010_vm3 = vmand %vm6197_vm2, %vm6213_vm13  ;;  %vm6201_vm2 = vcmp.ge.s32.totalorder %v6185_v16, 0  ;;  %vm6217_vm13 = vcmp.lt.s32.totalorder %v6185_v16, 2  ;;  %v6189_v16 = vsub.s32 %v15045_v31, %v14166_v4 }
0x280a   : > { %17787 = vst [vmem:[#allocation58_spill] sm:$0xff] %v17786_v52  ;;  %v17791_v39 = vsel %vm15010_vm3, 4294967295, %v17790_v39 }
0x280b   : > { %12263 = vmatmul.mubr.msk.f32.gmra.mrb[148].mxu0 %vm14962_vm1, %v17443_v38  ;;  %vm6198_vm1 = vcmp.ge.s32.totalorder %v6182_v33, 0  ;;  %17792 = vst [vmem:[#allocation61_spill] sm:$0xff] %v17791_v39  ;;  %v6188_v33 = vsub.s32 %v15026_v42, %v14166_v4  ;;  %v17814_v42 = vmov 0 }
0x280c   : > { %12265 = vmatprep.mubr.msk.f32.mxu0 %vm14966_vm0, %v17443_v38  ;;  %vm15014_vm5 = vmand %vm6198_vm1, %vm6214_vm6  ;;  %vm6216_vm0 = vcmp.lt.s32.totalorder %v6184_v49, 2 }
0x280d   : > { %v17794_v53 = vsel %vm15014_vm5, 4294967295, %v17793_v53  ;;  %vm15034_vm6 = vmand %vm6199_vm9, %vm6215_vm10  ;;  %vm6203_vm9 = vcmp.ge.s32.totalorder %v6187_v34, 0  ;;  %vm6219_vm10 = vcmp.lt.s32.totalorder %v6187_v34, 2  ;;  %vm6220_vm11 = vcmp.lt.s32.totalorder %v6188_v33, 2 }
0x280e   : > { %17795 = vst [vmem:[#allocation62_spill] sm:$0xff] %v17794_v53  ;;  %v17799_v20 = vsel %vm15034_vm6, 4294967295, %v17798_v20  ;;  %v17817_v34 = vmov 0 }
0x280f   : > { %12266 = vmatmul.mubr.msk.f32.gmra.mrb[150].mxu0 %vm14986_vm7, %v17443_v38  ;;  %vm6200_vm7 = vcmp.ge.s32.totalorder %v6184_v49, 0  ;;  %17800 = vst [vmem:[#allocation65_spill] sm:$0xff] %v17799_v20  ;;  %v17808_v49 = vmov 0 }
0x2810   : > { %12268 = vmatprep.mubr.msk.f32.mxu0 %vm14990_vm15, %v17443_v38  ;;  %vm15038_vm1 = vmand %vm6200_vm7, %vm6216_vm0  ;;  %vm6218_vm15 = vcmp.lt.s32.totalorder %v6186_v14, 2 }
0x2811   : > { %v17802_v50 = vsel %vm15038_vm1, 4294967295, %v17801_v50  ;;  %vm15055_vm0 = vmand %vm6201_vm2, %vm6217_vm13  ;;  %vm6221_vm13 = vcmp.lt.s32.totalorder %v6189_v16, 2 }
0x2812   : > { %17803 = vst [vmem:[#allocation66_spill] sm:$0xff] %v17802_v50  ;;  %v17806_v22 = vsel %vm15055_vm0, 4294967295, %v17805_v22  ;;  %vm15071_vm2 = vmand %vm6203_vm9, %vm6219_vm10 }
0x2813   : > { %12269 = vmatmul.mubr.msk.f32.gmra.mrb[152].mxu0 %vm15010_vm3, %v17443_v38  ;;  %vm6202_vm3 = vcmp.ge.s32.totalorder %v6186_v14, 0  ;;  %17807 = vst [vmem:[#allocation68_spill] sm:$0xff] %v17806_v22  ;;  %v17811_v14 = vmov 0 }
0x2814   : > { %12271 = vmatprep.mubr.msk.f32.mxu0 %vm15014_vm5, %v17443_v38  ;;  %vm15059_vm7 = vmand %vm6202_vm3, %vm6218_vm15  ;;  %vm6204_vm5 = vcmp.ge.s32.totalorder %v6188_v33, 0  ;;  %v17812_v14 = vsel %vm15071_vm2, 4294967295, %v17811_v14  ;;  %vm6205_vm3 = vcmp.ge.s32.totalorder %v6189_v16, 0  ;;  %v12173_v33 = vpop.f32.mrb[112].mxu1 }
0x2815   : > { %v17809_v49 = vsel %vm15059_vm7, 4294967295, %v17808_v49  ;;  %17813 = vst [vmem:[#allocation70_spill] sm:$0xff] %v17812_v14  ;;  %vm15075_vm15 = vmand %vm6204_vm5, %vm6220_vm11  ;;  %v6384_v4 = vpop.f32.mrb[113].mxu1  ;;  %vm17820_vm11 = vcmask 261120  }
0x2816   : > { %17810 = vst [vmem:[#allocation69_spill] sm:$0xff] %v17809_v49  ;;  %v17815_v42 = vsel %vm15075_vm15, 4294967295, %v17814_v42  ;;  %v12174_v49 = vpop.f32.mrb[114].mxu1  ;;  %vm17821_vm5 = vmmov %vm17820_vm11 }
0x2817   : > { %12272 = vmatmul.mubr.msk.f32.gmra.mrb[154].mxu0 %vm15034_vm6, %v17443_v38  ;;  %17816 = vst [vmem:[#allocation71_spill] sm:$0xff] %v17815_v42  ;;  %v6387_v16 = vpop.f32.mrb[115].mxu1  ;;  %vm17822_vm9 = vmmov %vm17821_vm5 }
0x2818   : > { %12274 = vmatprep.mubr.msk.f32.mxu0 %vm15038_vm1, %v17443_v38  ;;  %v12177_v31 = vpop.f32.mrb[116].mxu1  ;;  %vm17823_vm10 = vmmov %vm17821_vm5 }
0x2819   : > { %v6400_v22 = vpop.f32.mrb[117].mxu1 }
0x281a   : > { %v12178_v14 = vpop.f32.mrb[118].mxu1 }
0x281b   : > { %12275 = vmatmul.mubr.msk.f32.gmra.mrb[156].mxu0 %vm15055_vm0, %v17443_v38  ;;  %vm15085_vm0 = vmand %vm6205_vm3, %vm6221_vm13  ;;  %v6403_v50 = vpop.f32.mrb[119].mxu1 }
0x281c   : > { %12277 = vmatprep.mubr.msk.f32.mxu0 %vm15059_vm7, %v17443_v38  ;;  %v17818_v34 = vsel %vm15085_vm0, 4294967295, %v17817_v34  ;;  %v15092_v48 = vpop.f32.mrb[120].mxu1  ;;  %vm17824_vm3 = vmmov %vm17821_vm5 }
0x281d   : > { %17819 = vst [vmem:[#allocation72_spill] sm:$0xff] %v17818_v34  ;;  %v15094_v42 = vpop.f32.mrb[121].mxu1  ;;  %vm17825_vm13 = vmmov %vm17824_vm3 }
0x281e   : > { %v15096_v20 = vpop.f32.mrb[122].mxu1 }
0x281f   : > { %12278 = vmatmul.mubr.msk.f32.gmra.mrb[158].mxu0 %vm15071_vm2, %v17443_v38  ;;  %v6419_v28 = vpop.f32.mrb[123].mxu1 }
0x2820   : > { %12280 = vmatprep.mubr.msk.f32.mxu0 %vm15075_vm15, %v17443_v38  ;;  %v15098_v53 = vpop.f32.mrb[124].mxu1 }
0x2821   : > { %v15100_v13 = vpop.f32.mrb[125].mxu1 }
0x2823   : > { %12281 = vmatmul.mubr.msk.f32.gmra.mrb[160].mxu0 %vm15085_vm0, %v17443_v38  ;;  %v15102_v38 = vpop.f32.mrb[126].mxu1 }
0x2824   : > { %v15104_v34 = vpop.f32.mrb[127].mxu1 }
0x2825   : > { %v15106_v39 = vpop.f32.mrb[128].mxu1 }
0x2826   : > { %v15108_v27 = vpop.f32.mrb[129].mxu1 }
0x2827   : > { %v15110_v52 = vpop.f32.mrb[130].mxu1 }
0x2828   : > { %v15112_v41 = vpop.f32.mrb[131].mxu1 }
0x2829   : > { %v15114_v24 = vpop.f32.mrb[132].mxu1 }
0x282a   : > { %v15116_v44 = vpop.f32.mrb[133].mxu1 }
0x282b   : > { %v15118_v15 = vpop.f32.mrb[134].mxu1 }
0x282c   : > { %v15120_v59 = vpop.f32.mrb[135].mxu1 }
0x282d   : > { %v15122_v17 = vpop.f32.mrb[136].mxu1 }
0x282e   : > { %v15124_v47 = vpop.f32.mrb[137].mxu1 }
0x282f   : > { %v15126_v51 = vpop.f32.mrb[138].mxu1 }
0x2830   : > { %v15128_v35 = vpop.f32.mrb[139].mxu1 }
0x2831   : > { %v15130_v55 = vpop.f32.mrb[140].mxu1 }
0x2832   : > { %v15132_v43 = vpop.f32.mrb[141].mxu1 }
0x2833   : > { %v15134_v0 = vpop.f32.mrb[142].mxu1 }
0x2834   : > { %v15136_v46 = vpop.f32.mrb[143].mxu1 }
0x28ba   : > { %v12237_v25 = vpop.f32.mrb[114].mxu0 }
0x28bb   : > { %v6577_v26 = vpop.f32.mrb[115].mxu0  ;;  %v6583_v6 = vadd.f32 %v12237_v25, %v6387_v16 }
0x28bc   : > { %v6578_v61 = vadd.f32 %v6577_v26, %v6384_v4 }
0x28bd   : > { %v6738_v5 = vadd.f32 %v15138_v9, %v6583_v6 }
0x28be   : > { %v6737_v23 = vadd.f32 %v15138_v9, %v6578_v61  ;;  %v12240_v36 = vpop.f32.mrb[132].mxu0 }
0x28bf   : > { %v6770_v56 = vmax.f32 %v6738_v5, 0.0  ;;  %v6593_v40 = vadd.f32 %v12240_v36, %v12174_v49  ;;  %v6587_v62 = vpop.f32.mrb[133].mxu0 }
0x28c0   : > { %v6769_v21 = vmax.f32 %v6737_v23, 0.0  ;;  %v6588_v30 = vadd.f32 %v12173_v33, %v6587_v62 }
0x28c1   : > { %v6740_v58 = vadd.f32 %v15138_v9, %v6593_v40 }
0x28c2   : > { %v6865_v19 = vpack.c.bf16 %v6770_v56, %v6769_v21  ;;  %v6739_v18 = vadd.f32 %v15138_v9, %v6588_v30  ;;  %v12243_v45 = vpop.f32.mrb[134].mxu0 }
0x28c3   : > { %v6772_v10 = vmax.f32 %v6740_v58, 0.0  ;;  %v6597_v37 = vpop.f32.mrb[135].mxu0  ;;  %v6603_v25 = vadd.f32 %v12243_v45, %v6403_v50 }
0x28c4   : > { %v6771_v4 = vmax.f32 %v6739_v18, 0.0  ;;  %v6598_v26 = vadd.f32 %v6597_v37, %v6400_v22  ;;  %12287 = vmatprep.mubr.msk.bf16.mxu1 %vm17820_vm11, %v6865_v19  ;;  %vm17826_vm11 = vmmov %vm17824_vm3 }
0x28c5   : > { %v6742_v61 = vadd.f32 %v15138_v9, %v6603_v25 }
0x28c6   : > { %v6866_v5 = vpack.c.bf16 %v6772_v10, %v6771_v4  ;;  %v6741_v36 = vadd.f32 %v15138_v9, %v6598_v26  ;;  %v12246_v23 = vpop.f32.mrb[136].mxu0 }
0x28c7   : > { %v6774_v62 = vmax.f32 %v6742_v61, 0.0  ;;  %v6613_v6 = vadd.f32 %v12246_v23, %v12178_v14  ;;  %v6607_v40 = vpop.f32.mrb[137].mxu0 }
0x28c8   : > { %v6773_v21 = vmax.f32 %v6741_v36, 0.0  ;;  %v6608_v56 = vadd.f32 %v12177_v31, %v6607_v40  ;;  %12288 = vmatmul.mubr.msk.bf16.vlgmr.msra.gmra.mrb[144].mxu1 %vm17821_vm5, %v6866_v5  ;;  %vm17827_vm5 = vmmov %vm17824_vm3 }
0x28c9   : > { %v6744_v30 = vadd.f32 %v15138_v9, %v6613_v6 }
0x28ca   : > { %v6867_v45 = vpack.c.bf16 %v6774_v62, %v6773_v21  ;;  %v6743_v37 = vadd.f32 %v15138_v9, %v6608_v56  ;;  %v12249_v18 = vpop.f32.mrb[138].mxu0 }
0x28cb   : > { %v6776_v19 = vmax.f32 %v6744_v30, 0.0  ;;  %v6617_v58 = vpop.f32.mrb[139].mxu0  ;;  %v6623_v50 = vadd.f32 %v12249_v18, %v6419_v28 }
0x28cc   : > { %v6775_v10 = vmax.f32 %v6743_v37, 0.0  ;;  %v6618_v22 = vadd.f32 %v6617_v58, %v15094_v42  ;;  %12291 = vmatprep.mubr.msk.bf16.mxu1 %vm17822_vm9, %v6867_v45  ;;  %vm17828_vm9 = vmmov %vm17824_vm3 }
0x28cd   : > { %v6746_v49 = vadd.f32 %v15138_v9, %v6623_v50 }
0x28ce   : > { %v6868_v14 = vpack.c.bf16 %v6776_v19, %v6775_v10  ;;  %v6745_v31 = vadd.f32 %v15138_v9, %v6618_v22  ;;  %v12252_v33 = vpop.f32.mrb[140].mxu0 }
0x28cf   : > { %v6778_v16 = vmax.f32 %v6746_v49, 0.0  ;;  %v6633_v25 = vadd.f32 %v12252_v33, %v15096_v20  ;;  %v6627_v4 = vpop.f32.mrb[141].mxu0 }
0x28d0   : > { %v6777_v26 = vmax.f32 %v6745_v31, 0.0  ;;  %v6628_v61 = vadd.f32 %v15092_v48, %v6627_v4  ;;  %12292 = vmatmul.mubr.msk.bf16.gmra.mrb[148].mxu1 %vm17823_vm10, %v6868_v14  ;;  %vm17829_vm10 = vmmov %vm17824_vm3 }
0x28d1   : > { %v6748_v28 = vadd.f32 %v15138_v9, %v6633_v25 }
0x28d2   : > { %v6869_v42 = vpack.c.bf16 %v6778_v16, %v6777_v26  ;;  %v6747_v5 = vadd.f32 %v15138_v9, %v6628_v61  ;;  %v12255_v36 = vpop.f32.mrb[142].mxu0 }
0x28d3   : > { %v6780_v23 = vmax.f32 %v6748_v28, 0.0  ;;  %v6637_v62 = vpop.f32.mrb[143].mxu0  ;;  %v6643_v6 = vadd.f32 %v12255_v36, %v15104_v34 }
0x28d4   : > { %v6779_v40 = vmax.f32 %v6747_v5, 0.0  ;;  %v6638_v21 = vadd.f32 %v6637_v62, %v15100_v13  ;;  %12295 = vmatprep.mubr.msk.bf16.mxu1 %vm17824_vm3, %v6869_v42 }
0x28d5   : > { %v6750_v20 = vadd.f32 %v15138_v9, %v6643_v6 }
0x28d6   : > { %v6870_v48 = vpack.c.bf16 %v6780_v23, %v6779_v40  ;;  %v6749_v56 = vadd.f32 %v15138_v9, %v6638_v21  ;;  %v12258_v30 = vpop.f32.mrb[144].mxu0 }
0x28d7   : > { %v6782_v45 = vmax.f32 %v6750_v20, 0.0  ;;  %v6653_v37 = vadd.f32 %v12258_v30, %v15102_v38  ;;  %v6647_v18 = vpop.f32.mrb[145].mxu0 }
0x28d8   : > { %v6781_v19 = vmax.f32 %v6749_v56, 0.0  ;;  %v6648_v58 = vadd.f32 %v15098_v53, %v6647_v18  ;;  %12296 = vmatmul.mubr.msk.bf16.gmra.mrb[152].mxu1 %vm17825_vm13, %v6870_v48  ;;  %vm17830_vm13 = vmmov %vm17824_vm3 }
0x28d9   : > { %v6752_v34 = vadd.f32 %v15138_v9, %v6653_v37 }
0x28da   : > { %v6871_v13 = vpack.c.bf16 %v6782_v45, %v6781_v19  ;;  %v6751_v50 = vadd.f32 %v15138_v9, %v6648_v58  ;;  %v12261_v10 = vpop.f32.mrb[146].mxu0 }
0x28db   : > { %v6784_v22 = vmax.f32 %v6752_v34, 0.0  ;;  %v6657_v49 = vpop.f32.mrb[147].mxu0  ;;  %v6663_v14 = vadd.f32 %v12261_v10, %v15112_v41 }
0x28dc   : > { %v6783_v31 = vmax.f32 %v6751_v50, 0.0  ;;  %v6658_v33 = vadd.f32 %v6657_v49, %v15108_v27  ;;  %12299 = vmatprep.mubr.msk.bf16.mxu1 %vm17826_vm11, %v6871_v13  ;;  %vm17831_vm11 = vmmov %vm17824_vm3 }
0x28dd   : > { %v6754_v38 = vadd.f32 %v15138_v9, %v6663_v14 }
0x28de   : > { %v6872_v53 = vpack.c.bf16 %v6784_v22, %v6783_v31  ;;  %v6753_v16 = vadd.f32 %v15138_v9, %v6658_v33  ;;  %v12264_v25 = vpop.f32.mrb[148].mxu0 }
0x28df   : > { %v6786_v4 = vmax.f32 %v6754_v38, 0.0  ;;  %v6673_v26 = vadd.f32 %v12264_v25, %v15110_v52  ;;  %v6667_v61 = vpop.f32.mrb[149].mxu0 }
0x28e0   : > { %v6785_v28 = vmax.f32 %v6753_v16, 0.0  ;;  %v6668_v42 = vadd.f32 %v15106_v39, %v6667_v61  ;;  %12300 = vmatmul.mubr.msk.bf16.gmra.mrb[156].mxu1 %vm17827_vm5, %v6872_v53  ;;  %vm17832_vm5 = vmmov %vm17824_vm3 }
0x28e1   : > { %v6756_v41 = vadd.f32 %v15138_v9, %v6673_v26 }
0x28e2   : > { %v6873_v27 = vpack.c.bf16 %v6786_v4, %v6785_v28  ;;  %v6755_v5 = vadd.f32 %v15138_v9, %v6668_v42  ;;  %v12267_v36 = vpop.f32.mrb[150].mxu0 }
0x28e3   : > { %v6788_v23 = vmax.f32 %v6756_v41, 0.0  ;;  %v6677_v62 = vpop.f32.mrb[151].mxu0  ;;  %v6683_v6 = vadd.f32 %v12267_v36, %v15120_v59 }
0x28e4   : > { %v6787_v40 = vmax.f32 %v6755_v5, 0.0  ;;  %v6678_v21 = vadd.f32 %v6677_v62, %v15116_v44  ;;  %12303 = vmatprep.mubr.msk.bf16.mxu1 %vm17828_vm9, %v6873_v27  ;;  %vm17833_vm9 = vmmov %vm17824_vm3 }
0x28e5   : > { %v6758_v52 = vadd.f32 %v15138_v9, %v6683_v6 }
0x28e6   : > { %v6874_v39 = vpack.c.bf16 %v6788_v23, %v6787_v40  ;;  %v6757_v20 = vadd.f32 %v15138_v9, %v6678_v21  ;;  %v12270_v48 = vpop.f32.mrb[152].mxu0 }
0x28e7   : > { %v6790_v56 = vmax.f32 %v6758_v52, 0.0  ;;  %v6693_v30 = vadd.f32 %v12270_v48, %v15118_v15  ;;  %v6687_v45 = vpop.f32.mrb[153].mxu0  ;;  %v13010_v48 = vld [vmem:[#allocation9 + $0xde0] ss:$8 sps:$4 sm:$0xff]  }
0x28e8   : > { %v6789_v37 = vmax.f32 %v6757_v20, 0.0  ;;  %v6688_v18 = vadd.f32 %v15114_v24, %v6687_v45  ;;  %12304 = vmatmul.mubr.msk.bf16.gmra.mrb[160].mxu1 %vm17829_vm10, %v6874_v39  ;;  %vm17834_vm10 = vmmov %vm17824_vm3  ;;  %12319 = vmatprep.subr.bf16.mxu0 %v13010_v48  ;;  %v6801_v45 = vld [vmem:[%s15219_s13] sm:$0xff] }
0x28e9   : > { %v6760_v59 = vadd.f32 %v15138_v9, %v6693_v30  ;;  %12320 = vmatpush3.bf16.msra.mxu0 %v13010_v48  ;;  %v6821_v48 = vld [vmem:[%s15219_s13 + $0xa0] sm:$0xff] }
0x28ea   : > { %v6875_v44 = vpack.c.bf16 %v6790_v56, %v6789_v37  ;;  %v6759_v19 = vadd.f32 %v15138_v9, %v6688_v18  ;;  %v12273_v58 = vpop.f32.mrb[154].mxu0  ;;  %v6802_v37 = vld [vmem:[%s15219_s13 + $0x8] sm:$0xff] }
0x28eb   : > { %v6792_v34 = vmax.f32 %v6760_v59, 0.0  ;;  %v6697_v13 = vpop.f32.mrb[155].mxu0  ;;  %v6703_v50 = vadd.f32 %v12273_v58, %v15128_v35  ;;  %v7716_v18 = vpack.c.bf16 %v6802_v37, %v6801_v45  ;;  %v6803_v59 = vld [vmem:[%s15219_s13 + $0x10] sm:$0xff]  ;;  %v17836_v58 = vmov 1.0   ;;  %v6824_v37 = vld [vmem:[%s15219_s13 + $0xb8] sm:$0xff] }
0x28ec   : > { %v6791_v10 = vmax.f32 %v6759_v19, 0.0  ;;  %v6698_v22 = vadd.f32 %v6697_v13, %v15124_v47  ;;  %12307 = vmatprep.mubr.msk.bf16.mxu1 %vm17824_vm3, %v6875_v44  ;;  %v6804_v44 = vld [vmem:[%s15219_s13 + $0x18] sm:$0xff]  ;;  %v6806_v13 = vld [vmem:[%s15219_s13 + $0x28] sm:$0xff]  ;;  %v6823_v45 = vld [vmem:[%s15219_s13 + $0xb0] sm:$0xff] }
0x28ed   : > { %v6762_v15 = vadd.f32 %v15138_v9, %v6703_v50  ;;  %v7717_v19 = vpack.c.bf16 %v6804_v44, %v6803_v59  ;;  %12323 = vmatprep.mubr.msk.bf16.mxu0 %vm17832_vm5, %v7716_v18  ;;  %v7727_v44 = vpack.c.bf16 %v6824_v37, %v6823_v45 }
0x28ee   : > { %v6876_v24 = vpack.c.bf16 %v6792_v34, %v6791_v10  ;;  %v6761_v49 = vadd.f32 %v15138_v9, %v6698_v22  ;;  %v12276_v14 = vpop.f32.mrb[156].mxu0  ;;  %v6805_v34 = vld [vmem:[%s15219_s13 + $0x20] sm:$0xff]  ;;  %v6807_v10 = vld [vmem:[%s15219_s13 + $0x30] sm:$0xff]  ;;  %v6808_v22 = vld [vmem:[%s15219_s13 + $0x38] sm:$0xff] }
0x28ef   : > { %v6794_v31 = vmax.f32 %v6762_v15, 0.0  ;;  %v6713_v33 = vadd.f32 %v12276_v14, %v15126_v51  ;;  %v6707_v38 = vpop.f32.mrb[157].mxu0  ;;  %v7718_v50 = vpack.c.bf16 %v6806_v13, %v6805_v34  ;;  %v7719_v15 = vpack.c.bf16 %v6808_v22, %v6807_v10 }
0x28f0   : > { %v6793_v53 = vmax.f32 %v6761_v49, 0.0  ;;  %v6708_v16 = vadd.f32 %v15122_v17, %v6707_v38  ;;  %12308 = vmatmul.mubr.msk.bf16.gmra.mrb[164].mxu1 %vm17830_vm13, %v6876_v24  ;;  %v6809_v24 = vld [vmem:[%s15219_s13 + $0x40] sm:$0xff]  ;;  %v6810_v49 = vld [vmem:[%s15219_s13 + $0x48] sm:$0xff] }
0x28f1   : > { %v6764_v35 = vadd.f32 %v15138_v9, %v6713_v33  ;;  %v7720_v14 = vpack.c.bf16 %v6810_v49, %v6809_v24  ;;  %v6812_v33 = vld [vmem:[%s15219_s13 + $0x58] sm:$0xff] }
0x28f2   : > { %v6877_v47 = vpack.c.bf16 %v6794_v31, %v6793_v53  ;;  %v6763_v25 = vadd.f32 %v15138_v9, %v6708_v16  ;;  %v12279_v4 = vpop.f32.mrb[158].mxu0  ;;  %v6811_v31 = vld [vmem:[%s15219_s13 + $0x50] sm:$0xff]  ;;  %v6813_v53 = vld [vmem:[%s15219_s13 + $0x60] sm:$0xff]  ;;  %v6814_v16 = vld [vmem:[%s15219_s13 + $0x68] sm:$0xff] }
0x28f3   : > { %v6796_v26 = vmax.f32 %v6764_v35, 0.0  ;;  %v6717_v61 = vpop.f32.mrb[159].mxu0  ;;  %v6723_v28 = vadd.f32 %v12279_v4, %v15136_v46  ;;  %v7721_v38 = vpack.c.bf16 %v6812_v33, %v6811_v31  ;;  %v7722_v35 = vpack.c.bf16 %v6814_v16, %v6813_v53  ;;  %v6826_v31 = vld [vmem:[%s15219_s13 + $0xc8] sm:$0xff]  ;;  %v6827_v53 = vld [vmem:[%s15219_s13 + $0xd0] sm:$0xff]  ;;  %v6828_v16 = vld [vmem:[%s15219_s13 + $0xd8] sm:$0xff] }
0x28f4   : > { %v6795_v42 = vmax.f32 %v6763_v25, 0.0  ;;  %v6718_v41 = vadd.f32 %v6717_v61, %v15132_v43  ;;  %12311 = vmatprep.mubr.msk.bf16.mxu1 %vm17831_vm11, %v6877_v47  ;;  %v6815_v47 = vld [vmem:[%s15219_s13 + $0x70] sm:$0xff]  ;;  %v6816_v25 = vld [vmem:[%s15219_s13 + $0x78] sm:$0xff] }
0x28f5   : > { %v6766_v51 = vadd.f32 %v15138_v9, %v6723_v28  ;;  %v7723_v4 = vpack.c.bf16 %v6816_v25, %v6815_v47  ;;  %v6817_v28 = vld [vmem:[%s15219_s13 + $0x80] sm:$0xff]  ;;  %v7729_v25 = vpack.c.bf16 %v6828_v16, %v6827_v53  ;;  %v6842_v16 = vld [vmem:[%s15219_s13 + $0x148] sm:$0xff] }
0x28f6   : > { %v6878_v17 = vpack.c.bf16 %v6796_v26, %v6795_v42  ;;  %v6765_v27 = vadd.f32 %v15138_v9, %v6718_v41  ;;  %v12282_v5 = vpop.f32.mrb[160].mxu0  ;;  %v6818_v42 = vld [vmem:[%s15219_s13 + $0x88] sm:$0xff]  ;;  %v6841_v53 = vld [vmem:[%s15219_s13 + $0x140] sm:$0xff] }
0x28f7   : > { %v6798_v36 = vmax.f32 %v6766_v51, 0.0  ;;  %v6733_v23 = vadd.f32 %v12282_v5, %v15134_v0  ;;  %v6727_v62 = vpop.f32.mrb[161].mxu0  ;;  %v13612_v0 = vmov 0.0|0.0   ;;  %v7724_v51 = vpack.c.bf16 %v6818_v42, %v6817_v28 }
0x28f8   : > { %v6797_v6 = vmax.f32 %v6765_v27, 0.0  ;;  %v6728_v40 = vadd.f32 %v15130_v55, %v6727_v62  ;;  %12312 = vmatmul.mubr.msk.bf16.gmra.mrb[168].mxu1 %vm17832_vm5, %v6878_v17  ;;  %12515 = vmatprep.subr.bf16.mxu1 %v13612_v0  ;;  %v7138_v55 = vadd.s32 128, %v14163_v3  ;;  %v6819_v17 = vld [vmem:[%s15219_s13 + $0x90] sm:$0xff]  ;;  %v6820_v27 = vld [vmem:[%s15219_s13 + $0x98] sm:$0xff] }
0x28f9   : > { %v6768_v46 = vadd.f32 %v15138_v9, %v6733_v23  ;;  %v7725_v23 = vpack.c.bf16 %v6820_v27, %v6819_v17 }
0x28fa   : > { %v6879_v43 = vpack.c.bf16 %v6798_v36, %v6797_v6  ;;  %v6767_v21 = vadd.f32 %v15138_v9, %v6728_v40  ;;  %v13011_v9 = vld [vmem:[#allocation9 + $0xdf0] ss:$8 sps:$4 sm:$0xff]   ;;  %v15221_v56 = vmul.u32 2, %v7138_v55  ;;  %v6822_v55 = vld [vmem:[%s15219_s13 + $0xa8] sm:$0xff] }
0x28fb   : > { %v6800_v52 = vmax.f32 %v6768_v46, 0.0  ;;  %12321 = vmatprep.subr.bf16.mxu0 %v13011_v9 }
0x28fc   : > { %v6799_v39 = vmax.f32 %v6767_v21, 0.0  ;;  %12315 = vmatprep.mubr.msk.bf16.mxu1 %vm17833_vm9, %v6879_v43  ;;  %v7140_v30 = vsub.s32 %v13994_v29, %v15221_v56  ;;  %12322 = vmatpush3.bf16.msra.mxu0 %v13011_v9  ;;  %vm17837_vm9 = vmmov %vm17832_vm5  ;;  %v7141_v45 = vsub.s32 %v14182_v8, %v15221_v56  ;;  %v7142_v37 = vsub.s32 %v14263_v1, %v15221_v56 }
0x28fd   : > { %v7143_v8 = vsub.s32 %v14266_v2, %v15221_v56  ;;  %v7144_v1 = vsub.s32 %v14362_v60, %v15221_v56  ;;  %v7145_v32 = vsub.s32 %v14365_v54, %v15221_v56  ;;  %v7146_v12 = vsub.s32 %v14370_v57, %v15221_v56  ;;  %v6837_v2 = vld [vmem:[%s15219_s13 + $0x120] sm:$0xff]  ;;  %v6838_v60 = vld [vmem:[%s15219_s13 + $0x128] sm:$0xff]  ;;  %v17852_v57 = vld [vmem:[#allocation21_spill] sm:$0xff] }
0x28fe   : > { %v6880_v20 = vpack.c.bf16 %v6800_v52, %v6799_v39  ;;  %vm7236_vm3 = vcmp.ge.s32.totalorder %v7140_v30, 0  ;;  %vm7332_vm13 = vcmp.lt.s32.totalorder %v7140_v30, 2  ;;  %v7726_v30 = vpack.c.bf16 %v6822_v55, %v6821_v48 }
0x28ff   : > { %vm7428_vm11 = vmand %vm7236_vm3, %vm7332_vm13  ;;  %12324 = vmatmul.mubr.msk.bf16.vlgmr.msra.gmra.mrb[164].mxu0 %vm17837_vm9, %v7717_v19  ;;  %v7734_v54 = vpack.c.bf16 %v6838_v60, %v6837_v2 }
0x2900   : > { %12316 = vmatmul.mubr.msk.bf16.gmra.mrb[172].mxu1 %vm17834_vm10, %v6880_v20  ;;  %vm17838_vm10 = vmmov %vm17832_vm5 }
0x2901   : > { %11017 = vmatprep.mubr.msk.f32.mxu1 %vm7428_vm11, %v17836_v58  ;;  %12327 = vmatprep.mubr.msk.bf16.mxu0 %vm17838_vm10, %v7718_v50  ;;  %vm17839_vm3 = vmmov %vm17832_vm5 }
0x2902   : > { %vm17840_vm13 = vmmov %vm17839_vm3 }
0x2903   : > { %vm17841_vm11 = vmmov %vm17839_vm3 }
0x2904   : > { %vm17842_vm5 = vmmov %vm17839_vm3 }
0x2905   : > { %vm17843_vm9 = vmmov %vm17839_vm3 }
0x2906   : > { %vm17844_vm10 = vmmov %vm17839_vm3 }
0x2907   : > { %12328 = vmatmul.mubr.msk.bf16.gmra.mrb[168].mxu0 %vm17839_vm3, %v7719_v15  ;;  %vm17850_vm0 = vmmov %vm17839_vm3 }
0x2908   : > { %12331 = vmatprep.mubr.msk.bf16.mxu0 %vm17840_vm13, %v7720_v14  ;;  %vm17845_vm13 = vmmov %vm17839_vm3  ;;  %v6825_v14 = vld [vmem:[%s15219_s13 + $0xc0] sm:$0xff] }
0x290f   : > { %12332 = vmatmul.mubr.msk.bf16.gmra.mrb[172].mxu0 %vm17841_vm11, %v7721_v38  ;;  %vm17846_vm11 = vmmov %vm17839_vm3  ;;  %v7728_v38 = vpack.c.bf16 %v6826_v31, %v6825_v14  ;;  %v17859_v14 = vld [vmem:[#allocation23_spill] sm:$0xff] }
0x2910   : > { %12335 = vmatprep.mubr.msk.bf16.mxu0 %vm17842_vm5, %v7722_v35  ;;  %vm17847_vm5 = vmmov %vm17839_vm3  ;;  %v17861_v31 = vld [vmem:[#allocation35_spill] sm:$0xff] }
0x2917   : > { %12336 = vmatmul.mubr.msk.bf16.gmra.mrb[176].mxu0 %vm17843_vm9, %v7723_v4  ;;  %vm17848_vm9 = vmmov %vm17839_vm3 }
0x2918   : > { %12339 = vmatprep.mubr.msk.bf16.mxu0 %vm17844_vm10, %v7724_v51  ;;  %vm17849_vm10 = vmmov %vm17839_vm3 }
0x291f   : > { %12340 = vmatmul.mubr.msk.bf16.gmra.mrb[180].mxu0 %vm17839_vm3, %v7725_v23 }
0x2920   : > { %12343 = vmatprep.mubr.msk.bf16.mxu0 %vm17845_vm13, %v7726_v30  ;;  %vm7237_vm13 = vcmp.ge.s32.totalorder %v7141_v45, 0 }
0x2927   : > { %12344 = vmatmul.mubr.msk.bf16.gmra.mrb[184].mxu0 %vm17846_vm11, %v7727_v44  ;;  %vm7333_vm11 = vcmp.lt.s32.totalorder %v7141_v45, 2  ;;  %v6834_v44 = vld [vmem:[%s15219_s13 + $0x108] sm:$0xff]  ;;  %v17886_v45 = vld [vmem:[#allocation42_spill] sm:$0xff] }
0x2928   : > { %12347 = vmatprep.mubr.msk.bf16.mxu0 %vm17847_vm5, %v7728_v38  ;;  %vm7429_vm5 = vmand %vm7237_vm13, %vm7333_vm11  ;;  %vm7239_vm13 = vcmp.ge.s32.totalorder %v7143_v8, 0  ;;  %vm7335_vm11 = vcmp.lt.s32.totalorder %v7143_v8, 2  ;;  %v17862_v38 = vld [vmem:[#allocation24_spill] sm:$0xff] }
0x2929   : > { %v6851_v8 = vld [vmem:[%s15219_s13 + $0x190] sm:$0xff] }
0x292f   : > { %12348 = vmatmul.mubr.msk.bf16.gmra.mrb[188].mxu0 %vm17848_vm9, %v7729_v25  ;;  %vm7238_vm9 = vcmp.ge.s32.totalorder %v7142_v37, 0  ;;  %v6844_v25 = vld [vmem:[%s15219_s13 + $0x158] sm:$0xff] }
0x299b   : > { %v12289_v26 = vpop.f32.mrb[144].mxu1 }
0x299c   : > { %v6979_v61 = vpop.f32.mrb[145].mxu1 }
0x299d   : > { %v12290_v41 = vpop.f32.mrb[146].mxu1 }
0x299e   : > { %v12519_v5 = vpack.c.bf16 %v12290_v41, %v12289_v26  ;;  %v6982_v36 = vpop.f32.mrb[147].mxu1 }
0x299f   : > { %v12516_v62 = vpack.c.bf16 %v6982_v36, %v6979_v61  ;;  %v6830_v36 = vld [vmem:[%s15219_s13 + $0xe8] sm:$0xff] }
0x29a1   : > { %12517 = vmatpush1.bf16.msra.mxu1 %v12516_v62 }
0x29a2   : > { %12518 = vmatprep.subr.bf16.mxu1 %v13612_v0 }
0x29a3   : > { %v12293_v6 = vpop.f32.mrb[148].mxu1 }
0x29a4   : > { %v6995_v40 = vpop.f32.mrb[149].mxu1 }
0x29a5   : > { %v12294_v46 = vpop.f32.mrb[150].mxu1  ;;  %12520 = vmatpush1.bf16.msra.mxu1 %v12519_v5  ;;  %v6829_v5 = vld [vmem:[%s15219_s13 + $0xe0] sm:$0xff] }
0x29a6   : > { %v12525_v43 = vpack.c.bf16 %v12294_v46, %v12293_v6  ;;  %v6998_v21 = vpop.f32.mrb[151].mxu1  ;;  %12521 = vmatprep.subr.bf16.mxu1 %v13612_v0  ;;  %v7730_v62 = vpack.c.bf16 %v6830_v36, %v6829_v5  ;;  %v6831_v6 = vld [vmem:[%s15219_s13 + $0xf0] sm:$0xff]  ;;  %v17873_v5 = vld [vmem:[#allocation39_spill] sm:$0xff] }
0x29a7   : > { %v12522_v52 = vpack.c.bf16 %v6998_v21, %v6995_v40  ;;  %v6832_v40 = vld [vmem:[%s15219_s13 + $0xf8] sm:$0xff]  ;;  %v17875_v36 = vld [vmem:[#allocation28_spill] sm:$0xff] }
0x29a8   : > { %v7731_v21 = vpack.c.bf16 %v6832_v40, %v6831_v6  ;;  %12351 = vmatprep.mubr.msk.bf16.mxu0 %vm17849_vm10, %v7730_v62  ;;  %vm7334_vm10 = vcmp.lt.s32.totalorder %v7142_v37, 2  ;;  %v17876_v62 = vld [vmem:[#allocation40_spill] sm:$0xff]  ;;  %v6845_v6 = vld [vmem:[%s15219_s13 + $0x160] sm:$0xff]  ;;  %v6846_v40 = vld [vmem:[%s15219_s13 + $0x168] sm:$0xff]  ;;  %v7157_v37 = vsub.s32 %v17886_v45, %v15221_v56 }
0x29a9   : > { %12523 = vmatpush1.bf16.msra.mxu1 %v12522_v52  ;;  %vm7430_vm15 = vmand %vm7238_vm9, %vm7334_vm10  ;;  %vm7241_vm9 = vcmp.ge.s32.totalorder %v7145_v32, 0  ;;  %vm7337_vm10 = vcmp.lt.s32.totalorder %v7145_v32, 2  ;;  %v17892_v32 = vld [vmem:[#allocation44_spill] sm:$0xff] }
0x29aa   : > { %12524 = vmatprep.subr.bf16.mxu1 %v13612_v0  ;;  %12352 = vmatmul.mubr.msk.bf16.gmra.mrb[192].mxu0 %vm17839_vm3, %v7731_v21  ;;  %v6848_v21 = vld [vmem:[%s15219_s13 + $0x178] sm:$0xff] }
0x29ab   : > { %v12297_v39 = vpop.f32.mrb[152].mxu1 }
0x29ac   : > { %v7011_v20 = vpop.f32.mrb[153].mxu1 }
0x29ad   : > { %v12298_v9 = vpop.f32.mrb[154].mxu1  ;;  %12526 = vmatpush1.bf16.msra.mxu1 %v12525_v43 }
0x29ae   : > { %v12531_v18 = vpack.c.bf16 %v12298_v9, %v12297_v39  ;;  %v7014_v59 = vpop.f32.mrb[155].mxu1  ;;  %12527 = vmatprep.subr.bf16.mxu1 %v13612_v0 }
0x29af   : > { %v12528_v19 = vpack.c.bf16 %v7014_v59, %v7011_v20  ;;  %v6833_v59 = vld [vmem:[%s15219_s13 + $0x100] sm:$0xff] }
0x29b1   : > { %12529 = vmatpush1.bf16.msra.mxu1 %v12528_v19  ;;  %v7732_v19 = vpack.c.bf16 %v6834_v44, %v6833_v59  ;;  %v17889_v59 = vld [vmem:[#allocation43_spill] sm:$0xff] }
0x29b2   : > { %12530 = vmatprep.subr.bf16.mxu1 %v13612_v0  ;;  %v7158_v44 = vsub.s32 %v17889_v59, %v15221_v56 }
0x29b3   : > { %v12301_v34 = vpop.f32.mrb[156].mxu1  ;;  %12355 = vmatprep.mubr.msk.bf16.mxu0 %vm17839_vm3, %v7732_v19  ;;  %vm7336_vm3 = vcmp.lt.s32.totalorder %v7144_v1, 2  ;;  %v17890_v19 = vld [vmem:[#allocation33_spill] sm:$0xff] }
0x29b4   : > { %v7027_v13 = vpop.f32.mrb[157].mxu1 }
0x29b5   : > { %v12302_v50 = vpop.f32.mrb[158].mxu1  ;;  %12532 = vmatpush1.bf16.msra.mxu1 %v12531_v18  ;;  %v13012_v18 = vld [vmem:[#allocation9 + $0xe00] ss:$8 sps:$4 sm:$0xff]  }
0x29b6   : > { %v12537_v10 = vpack.c.bf16 %v12302_v50, %v12301_v34  ;;  %v7030_v22 = vpop.f32.mrb[159].mxu1  ;;  %12533 = vmatprep.subr.bf16.mxu1 %v13612_v0  ;;  %v6835_v34 = vld [vmem:[%s15219_s13 + $0x110] sm:$0xff]  ;;  %12387 = vmatprep.subr.bf16.mxu0 %v13012_v18 }
0x29b7   : > { %v12534_v15 = vpack.c.bf16 %v7030_v22, %v7027_v13  ;;  %v6836_v13 = vld [vmem:[%s15219_s13 + $0x118] sm:$0xff]  ;;  %12388 = vmatpush3.bf16.msra.mxu0 %v13012_v18  ;;  %v7147_v22 = vsub.s32 %v14375_v63, %v15221_v56  ;;  %v17856_v63 = vld [vmem:[#allocation22_spill] sm:$0xff]  ;;  %v17887_v18 = vld [vmem:[#allocation31_spill] sm:$0xff] }
0x29b8   : > { %v7733_v50 = vpack.c.bf16 %v6836_v13, %v6835_v34  ;;  %v13013_v34 = vld [vmem:[#allocation9 + $0xe10] ss:$8 sps:$4 sm:$0xff]   ;;  %v6849_v13 = vld [vmem:[%s15219_s13 + $0x180] sm:$0xff] }
0x29b9   : > { %12535 = vmatpush1.bf16.msra.mxu1 %v12534_v15  ;;  %v7148_v15 = vsub.s32 %v17855_v11, %v15221_v56  ;;  %12389 = vmatprep.subr.bf16.mxu0 %v13013_v34  ;;  %v17901_v11 = vld [vmem:[#allocation50_spill] sm:$0xff] }
0x29ba   : > { %12536 = vmatprep.subr.bf16.mxu1 %v13612_v0  ;;  %12356 = vmatmul.mubr.msk.bf16.gmra.mrb[196].mxu0 %vm17850_vm0, %v7733_v50  ;;  %vm7240_vm0 = vcmp.ge.s32.totalorder %v7144_v1, 0  ;;  %v6850_v50 = vld [vmem:[%s15219_s13 + $0x188] sm:$0xff]  ;;  %v6852_v1 = vld [vmem:[%s15219_s13 + $0x198] sm:$0xff] }
0x29bb   : > { %v12305_v24 = vpop.f32.mrb[160].mxu1  ;;  %12390 = vmatpush3.bf16.msra.mxu0 %v13013_v34  ;;  %v7740_v2 = vpack.c.bf16 %v6850_v50, %v6849_v13  ;;  %v7741_v60 = vpack.c.bf16 %v6852_v1, %v6851_v8  ;;  %v17928_v13 = vld [vmem:[#allocation63_spill] sm:$0xff] }
0x29bc   : > { %v7043_v49 = vpop.f32.mrb[161].mxu1  ;;  %v7169_v50 = vsub.s32 %v17928_v13, %v15221_v56  ;;  %v7116_v13 = vadd.s32 336, %v13994_v29 }
0x29bd   : > { %v12306_v33 = vpop.f32.mrb[162].mxu1  ;;  %12538 = vmatpush1.bf16.msra.mxu1 %v12537_v10 }
0x29be   : > { %v12543_v35 = vpack.c.bf16 %v12306_v33, %v12305_v24  ;;  %v7046_v47 = vpop.f32.mrb[163].mxu1  ;;  %12539 = vmatprep.subr.bf16.mxu1 %v13612_v0  ;;  %v17858_v24 = vld [vmem:[#allocation34_spill] sm:$0xff]  ;;  %v7150_v33 = vsub.s32 %v17861_v31, %v15221_v56 }
0x29bf   : > { %v12540_v4 = vpack.c.bf16 %v7046_v47, %v7043_v49  ;;  %v7149_v49 = vsub.s32 %v17858_v24, %v15221_v56  ;;  %v6843_v47 = vld [vmem:[%s15219_s13 + $0x150] sm:$0xff]  ;;  %v17904_v24 = vld [vmem:[#allocation53_spill] sm:$0xff] }
0x29c1   : > { %12541 = vmatpush1.bf16.msra.mxu1 %v12540_v4  ;;  %v17864_v4 = vld [vmem:[#allocation36_spill] sm:$0xff] }
0x29c2   : > { %12542 = vmatprep.subr.bf16.mxu1 %v13612_v0 }
0x29c3   : > { %v12309_v26 = vpop.f32.mrb[164].mxu1 }
0x29c4   : > { %v7059_v61 = vpop.f32.mrb[165].mxu1 }
0x29c5   : > { %v12310_v28 = vpop.f32.mrb[166].mxu1  ;;  %12544 = vmatpush1.bf16.msra.mxu1 %v12543_v35  ;;  %v7736_v35 = vpack.c.bf16 %v6842_v16, %v6841_v53  ;;  %v17906_v16 = vld [vmem:[#allocation51_spill] sm:$0xff] }
0x29c6   : > { %v12549_v42 = vpack.c.bf16 %v12310_v28, %v12309_v26  ;;  %v7062_v41 = vpop.f32.mrb[167].mxu1  ;;  %12545 = vmatprep.subr.bf16.mxu1 %v13612_v0  ;;  %v7151_v26 = vsub.s32 %v17864_v4, %v15221_v56  ;;  %v17866_v28 = vld [vmem:[#allocation37_spill] sm:$0xff] }
0x29c7   : > { %v12546_v51 = vpack.c.bf16 %v7062_v41, %v7059_v61  ;;  %v7737_v61 = vpack.c.bf16 %v6844_v25, %v6843_v47  ;;  %v17908_v47 = vld [vmem:[#allocation54_spill] sm:$0xff]  ;;  %v17911_v25 = vld [vmem:[#allocation52_spill] sm:$0xff] }
0x29c8   : > { %v7164_v4 = vsub.s32 %v17911_v25, %v15221_v56  ;;  %v17939_v25 = vld [vmem:[#allocation72_spill] sm:$0xff] }
0x29c9   : > { %12547 = vmatpush1.bf16.msra.mxu1 %v12546_v51  ;;  %v17870_v51 = vld [vmem:[#allocation38_spill] sm:$0xff] }
0x29ca   : > { %12548 = vmatprep.subr.bf16.mxu1 %v13612_v0 }
0x29cb   : > { %v12313_v17 = vpop.f32.mrb[168].mxu1 }
0x29cc   : > { %v7075_v27 = vpop.f32.mrb[169].mxu1 }
0x29cd   : > { %v12314_v23 = vpop.f32.mrb[170].mxu1  ;;  %12550 = vmatpush1.bf16.msra.mxu1 %v12549_v42  ;;  %v17869_v42 = vld [vmem:[#allocation25_spill] sm:$0xff] }
0x29ce   : > { %v12555_v46 = vpack.c.bf16 %v12314_v23, %v12313_v17  ;;  %v7078_v43 = vpop.f32.mrb[171].mxu1  ;;  %12551 = vmatprep.subr.bf16.mxu1 %v13612_v0  ;;  %v7152_v41 = vsub.s32 %v17869_v42, %v15221_v56  ;;  %v17872_v17 = vld [vmem:[#allocation27_spill] sm:$0xff]  ;;  %v7154_v23 = vsub.s32 %v17875_v36, %v15221_v56 }
0x29cf   : > { %v12552_v52 = vpack.c.bf16 %v7078_v43, %v7075_v27  ;;  %v7153_v27 = vsub.s32 %v17872_v17, %v15221_v56  ;;  %v6847_v43 = vld [vmem:[%s15219_s13 + $0x170] sm:$0xff]  ;;  %v6858_v42 = vld [vmem:[%s15219_s13 + $0x1c8] sm:$0xff] }
0x29d0   : > { %v6859_v17 = vld [vmem:[%s15219_s13 + $0x1d0] sm:$0xff]  ;;  %v17914_v36 = vld [vmem:[#allocation55_spill] sm:$0xff] }
0x29d1   : > { %12553 = vmatpush1.bf16.msra.mxu1 %v12552_v52  ;;  %v17878_v52 = vld [vmem:[#allocation29_spill] sm:$0xff] }
0x29d2   : > { %12554 = vmatprep.subr.bf16.mxu1 %v13612_v0 }
0x29d3   : > { %v12317_v39 = vpop.f32.mrb[172].mxu1 }
0x29d4   : > { %v7091_v20 = vpop.f32.mrb[173].mxu1 }
0x29d5   : > { %v12318_v48 = vpop.f32.mrb[174].mxu1  ;;  %12556 = vmatpush1.bf16.msra.mxu1 %v12555_v46  ;;  %v7738_v46 = vpack.c.bf16 %v6846_v40, %v6845_v6  ;;  %v17916_v6 = vld [vmem:[#allocation58_spill] sm:$0xff] }
0x29d6   : > { %v12561_v55 = vpack.c.bf16 %v12318_v48, %v12317_v39  ;;  %v7094_v9 = vpop.f32.mrb[175].mxu1  ;;  %12557 = vmatprep.subr.bf16.mxu1 %v13612_v0  ;;  %v7155_v39 = vsub.s32 %v17878_v52, %v15221_v56  ;;  %v17880_v48 = vld [vmem:[#allocation26_spill] sm:$0xff] }
0x29d7   : > { %v12558_v30 = vpack.c.bf16 %v7094_v9, %v7091_v20  ;;  %v7739_v20 = vpack.c.bf16 %v6848_v21, %v6847_v43  ;;  %v17920_v21 = vld [vmem:[#allocation61_spill] sm:$0xff]  ;;  %v6861_v52 = vld [vmem:[%s15219_s13 + $0x1e0] sm:$0xff] }
0x29d9   : > { %12559 = vmatpush1.bf16.msra.mxu1 %v12558_v30  ;;  %v17884_v30 = vld [vmem:[#allocation30_spill] sm:$0xff] }
0x29da   : > { %12560 = vmatprep.subr.bf16.mxu1 %v13612_v0  ;;  %v6839_v0 = vld [vmem:[%s15219_s13 + $0x130] sm:$0xff] }
0x29db   : > { %v7735_v10 = vpack.c.bf16 %v6840_v7, %v6839_v0  ;;  %v17897_v0 = vld [vmem:[#allocation45_spill] sm:$0xff] }
0x29dc   : > { %v7160_v7 = vsub.s32 %v17897_v0, %v15221_v56 }
0x29dd   : > { %12562 = vmatpush1.bf16.msra.mxu1 %v12561_v55  ;;  %v17883_v55 = vld [vmem:[#allocation41_spill] sm:$0xff] }
0x29de   : > { %v7156_v9 = vsub.s32 %v17883_v55, %v15221_v56  ;;  %v6864_v55 = vld [vmem:[%s15219_s13 + $0x1f8] sm:$0xff] }
0x29e0   : > { %11018 = vmatmul.mubr.msk.f32.vlgmr.msra.gmra.mrb[176].mxu1 %vm14170_vm14, %v17836_v58  ;;  %vm7431_vm14 = vmand %vm7239_vm13, %vm7335_vm11  ;;  %vm17851_vm13 = vcmask 261120   ;;  %vm17853_vm11 = vnez %v17852_v57 }
0x29e1   : > { %11019 = vmatprep.mubr.msk.f32.mxu1 %vm7429_vm5, %v17836_v58  ;;  %vm7432_vm5 = vmand %vm7240_vm0, %vm7336_vm3  ;;  %12359 = vmatprep.mubr.msk.bf16.mxu0 %vm17851_vm13, %v7734_v54  ;;  %vm7243_vm0 = vcmp.ge.s32.totalorder %v7147_v22, 0  ;;  %vm7339_vm3 = vcmp.lt.s32.totalorder %v7147_v22, 2  ;;  %v17893_v54 = vld [vmem:[#allocation46_spill] sm:$0xff]  ;;  %v17900_v22 = vld [vmem:[#allocation47_spill] sm:$0xff] }
0x29e2   : > { %v7161_v57 = vsub.s32 %v17900_v22, %v15221_v56 }
0x29e4   : > { %11020 = vmatmul.mubr.msk.f32.gmra.mrb[178].mxu1 %vm14186_vm4, %v17836_v58  ;;  %vm7433_vm4 = vmand %vm7241_vm9, %vm7337_vm10  ;;  %vm7244_vm10 = vcmp.ge.s32.totalorder %v7148_v15, 0 }
0x29e5   : > { %11021 = vmatprep.mubr.msk.f32.mxu1 %vm7430_vm15, %v17836_v58  ;;  %vm7338_vm15 = vcmp.lt.s32.totalorder %v7146_v12, 2  ;;  %vm7435_vm9 = vmand %vm7243_vm0, %vm7339_vm3  ;;  %vm7246_vm0 = vcmp.ge.s32.totalorder %v7150_v33, 0  ;;  %vm7342_vm3 = vcmp.lt.s32.totalorder %v7150_v33, 2  ;;  %v6855_v33 = vld [vmem:[%s15219_s13 + $0x1b0] sm:$0xff] }
0x29e8   : > { %11022 = vmatmul.mubr.msk.f32.gmra.mrb[180].mxu1 %vm14272_vm8, %v17836_v58  ;;  %vm7242_vm8 = vcmp.ge.s32.totalorder %v7146_v12, 0  ;;  %v7159_v12 = vsub.s32 %v17892_v32, %v15221_v56 }
0x29e9   : > { %11023 = vmatprep.mubr.msk.f32.mxu1 %vm7431_vm14, %v17836_v58  ;;  %vm7434_vm14 = vmand %vm7242_vm8, %vm7338_vm15  ;;  %vm7245_vm15 = vcmp.ge.s32.totalorder %v7149_v49, 0 }
0x29ec   : > { %11024 = vmatmul.mubr.msk.f32.gmra.mrb[182].mxu1 %vm14281_vm12, %v17836_v58  ;;  %vm17854_vm12 = vmmov %vm17851_vm13  ;;  %vm7340_vm13 = vcmp.lt.s32.totalorder %v7148_v15, 2  ;;  %v17903_v15 = vld [vmem:[#allocation48_spill] sm:$0xff] }
0x29ed   : > { %11025 = vmatprep.mubr.msk.f32.mxu1 %vm7432_vm5, %v17836_v58  ;;  %12360 = vmatmul.mubr.msk.bf16.gmra.mrb[200].mxu0 %vm17854_vm12, %v7735_v10  ;;  %vm17857_vm5 = vnez %v17856_v63  ;;  %vm7436_vm8 = vmand %vm7244_vm10, %vm7340_vm13  ;;  %vm17863_vm12 = vnez %v17862_v38  ;;  %v17898_v10 = vld [vmem:[#allocation49_spill] sm:$0xff]  ;;  %v7162_v63 = vsub.s32 %v17903_v15, %v15221_v56 }
0x29ee   : > { %vm7438_vm13 = vmand %vm7246_vm0, %vm7342_vm3  ;;  %vm17874_vm0 = vnez %v17873_v5  ;;  %v6856_v38 = vld [vmem:[%s15219_s13 + $0x1b8] sm:$0xff] }
0x29ef   : > { %v7743_v53 = vpack.c.bf16 %v6856_v38, %v6855_v33  ;;  %v17937_v38 = vld [vmem:[#allocation71_spill] sm:$0xff] }
0x29f0   : > { %11026 = vmatmul.mubr.msk.f32.gmra.mrb[184].mxu1 %vm17853_vm11, %v17836_v58  ;;  %vm7341_vm11 = vcmp.lt.s32.totalorder %v7149_v49, 2  ;;  %v6853_v49 = vld [vmem:[%s15219_s13 + $0x1a0] sm:$0xff] }
0x29f1   : > { %11027 = vmatprep.mubr.msk.f32.mxu1 %vm7433_vm4, %v17836_v58  ;;  %vm17860_vm4 = vnez %v17859_v14  ;;  %v6854_v14 = vld [vmem:[%s15219_s13 + $0x1a8] sm:$0xff] }
0x29f2   : > { %v7742_v31 = vpack.c.bf16 %v6854_v14, %v6853_v49 }
0x29f4   : > { %11028 = vmatmul.mubr.msk.f32.gmra.mrb[186].mxu1 %vm17857_vm5, %v17836_v58  ;;  %vm17865_vm5 = vcmask 261120  }
0x29f5   : > { %11029 = vmatprep.mubr.msk.f32.mxu1 %vm7434_vm14, %v17836_v58  ;;  %vm7437_vm14 = vmand %vm7245_vm15, %vm7341_vm11  ;;  %12363 = vmatprep.mubr.msk.bf16.mxu0 %vm17865_vm5, %v7736_v35  ;;  %vm17871_vm15 = vnez %v17870_v51  ;;  %v7163_v35 = vsub.s32 %v17906_v16, %v15221_v56 }
0x29f6   : > { %vm17868_vm10 = vmmov %vm17865_vm5  ;;  %vm7249_vm5 = vcmp.ge.s32.totalorder %v7153_v27, 0 }
0x29f7   : > { %12364 = vmatmul.mubr.msk.bf16.gmra.mrb[204].mxu0 %vm17868_vm10, %v7737_v61  ;;  %vm17877_vm10 = vnez %v17876_v62  ;;  %v17912_v61 = vld [vmem:[#allocation57_spill] sm:$0xff] }
0x29f8   : > { %11030 = vmatmul.mubr.msk.f32.gmra.mrb[188].mxu1 %vm17860_vm4, %v17836_v58  ;;  %vm7247_vm4 = vcmp.ge.s32.totalorder %v7151_v26, 0 }
0x29f9   : > { %11031 = vmatprep.mubr.msk.f32.mxu1 %vm7435_vm9, %v17836_v58  ;;  %vm17867_vm9 = vnez %v17866_v28  ;;  %v6857_v28 = vld [vmem:[%s15219_s13 + $0x1c0] sm:$0xff] }
0x29fa   : > { %v7744_v51 = vpack.c.bf16 %v6858_v42, %v6857_v28  ;;  %v7110_v28 = vadd.s32 288, %v13994_v29 }
0x29fc   : > { %11032 = vmatmul.mubr.msk.f32.gmra.mrb[190].mxu1 %vm17863_vm12, %v17836_v58  ;;  %vm7248_vm12 = vcmp.ge.s32.totalorder %v7152_v41, 0 }
0x29fd   : > { %11033 = vmatprep.mubr.msk.f32.mxu1 %vm7436_vm8, %v17836_v58  ;;  %vm7343_vm8 = vcmp.lt.s32.totalorder %v7151_v26, 2  ;;  %v15457_v26 = vpop.f32.mrb[164].mxu0 }
0x29fe   : > { %vm7439_vm11 = vmand %vm7247_vm4, %vm7343_vm8  ;;  %vm7250_vm4 = vcmp.ge.s32.totalorder %v7154_v23, 0  ;;  %vm7346_vm8 = vcmp.lt.s32.totalorder %v7154_v23, 2  ;;  %v7165_v23 = vsub.s32 %v17914_v36, %v15221_v56 }
0x2a00   : > { %11034 = vmatmul.mubr.msk.f32.gmra.mrb[192].mxu1 %vm17867_vm9, %v17836_v58  ;;  %vm7345_vm9 = vcmp.lt.s32.totalorder %v7153_v27, 2  ;;  %v6860_v27 = vld [vmem:[%s15219_s13 + $0x1d8] sm:$0xff] }
0x2a01   : > { %11035 = vmatprep.mubr.msk.f32.mxu1 %vm7437_vm14, %v17836_v58  ;;  %vm7344_vm14 = vcmp.lt.s32.totalorder %v7152_v41, 2  ;;  %v15464_v41 = vpop.f32.mrb[165].mxu0  ;;  %v7745_v5 = vpack.c.bf16 %v6860_v27, %v6859_v17  ;;  %v7111_v17 = vadd.s32 296, %v13994_v29 }
0x2a02   : > { %vm7440_vm3 = vmand %vm7248_vm12, %vm7344_vm14  ;;  %v15472_v62 = vpop.f32.mrb[166].mxu0 }
0x2a03   : > { %vm7442_vm14 = vmand %vm7250_vm4, %vm7346_vm8  ;;  %vm17888_vm4 = vnez %v17887_v18  ;;  %v15478_v40 = vpop.f32.mrb[167].mxu0  ;;  %v17926_v18 = vld [vmem:[#allocation60_spill] sm:$0xff] }
0x2a04   : > { %11036 = vmatmul.mubr.msk.f32.gmra.mrb[194].mxu1 %vm17871_vm15, %v17836_v58  ;;  %vm17879_vm15 = vcmask 261120   ;;  %v7168_v59 = vsub.s32 %v17926_v18, %v15221_v56 }
0x2a05   : > { %11037 = vmatprep.mubr.msk.f32.mxu1 %vm7438_vm13, %v17836_v58  ;;  %vm7441_vm13 = vmand %vm7249_vm5, %vm7345_vm9  ;;  %12367 = vmatprep.mubr.msk.bf16.mxu0 %vm17879_vm15, %v7738_v46  ;;  %vm17885_vm5 = vnez %v17884_v30  ;;  %v17919_v46 = vld [vmem:[#allocation56_spill] sm:$0xff]  ;;  %v17922_v30 = vld [vmem:[#allocation59_spill] sm:$0xff] }
0x2a06   : > { %vm17882_vm12 = vmmov %vm17879_vm15  ;;  %vm7253_vm15 = vcmp.ge.s32.totalorder %v7157_v37, 0  ;;  %v7166_v43 = vsub.s32 %v17919_v46, %v15221_v56  ;;  %v7167_v45 = vsub.s32 %v17922_v30, %v15221_v56 }
0x2a07   : > { %12368 = vmatmul.mubr.msk.bf16.gmra.mrb[208].mxu0 %vm17882_vm12, %v7739_v20  ;;  %vm17891_vm12 = vnez %v17890_v19 }
0x2a08   : > { %11038 = vmatmul.mubr.msk.f32.gmra.mrb[196].mxu1 %vm17874_vm0, %v17836_v58  ;;  %vm7251_vm0 = vcmp.ge.s32.totalorder %v7155_v39, 0 }
0x2a09   : > { %11039 = vmatprep.mubr.msk.f32.mxu1 %vm7439_vm11, %v17836_v58  ;;  %vm17881_vm11 = vnez %v17880_v48  ;;  %v6863_v48 = vld [vmem:[%s15219_s13 + $0x1f0] sm:$0xff] }
0x2a0c   : > { %11040 = vmatmul.mubr.msk.f32.gmra.mrb[198].mxu1 %vm17877_vm10, %v17836_v58  ;;  %vm7252_vm10 = vcmp.ge.s32.totalorder %v7156_v9, 0 }
0x2a0d   : > { %11041 = vmatprep.mubr.msk.f32.mxu1 %vm7440_vm3, %v17836_v58  ;;  %vm7347_vm3 = vcmp.lt.s32.totalorder %v7155_v39, 2  ;;  %v6862_v39 = vld [vmem:[%s15219_s13 + $0x1e8] sm:$0xff] }
0x2a0e   : > { %vm7443_vm9 = vmand %vm7251_vm0, %vm7347_vm3  ;;  %vm7254_vm0 = vcmp.ge.s32.totalorder %v7158_v44, 0  ;;  %vm7350_vm3 = vcmp.lt.s32.totalorder %v7158_v44, 2  ;;  %v7746_v20 = vpack.c.bf16 %v6862_v39, %v6861_v52  ;;  %v15501_v44 = vpop.f32.mrb[168].mxu0  ;;  %v7113_v39 = vadd.s32 312, %v13994_v29 }
0x2a0f   : > { %v15506_v34 = vpop.f32.mrb[169].mxu0 }
0x2a10   : > { %11042 = vmatmul.mubr.msk.f32.gmra.mrb[200].mxu1 %vm17881_vm11, %v17836_v58  ;;  %vm7349_vm11 = vcmp.lt.s32.totalorder %v7157_v37, 2  ;;  %v17924_v37 = vld [vmem:[#allocation62_spill] sm:$0xff]  ;;  %v15511_v8 = vpop.f32.mrb[170].mxu0 }
0x2a11   : > { %11043 = vmatprep.mubr.msk.f32.mxu1 %vm7441_vm13, %v17836_v58  ;;  %vm7348_vm13 = vcmp.lt.s32.totalorder %v7156_v9, 2  ;;  %v7747_v9 = vpack.c.bf16 %v6864_v55, %v6863_v48  ;;  %v15516_v32 = vpop.f32.mrb[171].mxu0  ;;  %v7187_v48 = vsub.s32 %v7113_v39, %v15221_v56  ;;  %v7114_v55 = vadd.s32 320, %v13994_v29 }
0x2a12   : > { %vm7444_vm8 = vmand %vm7252_vm10, %vm7348_vm13 }
0x2a13   : > { %vm7446_vm10 = vmand %vm7254_vm0, %vm7350_vm3  ;;  %vm17902_vm0 = vnez %v17901_v11  ;;  %v15534_v11 = vpop.f32.mrb[172].mxu0  ;;  %v7189_v30 = vsub.s32 %v7114_v55, %v15221_v56 }
0x2a14   : > { %11044 = vmatmul.mubr.msk.f32.gmra.mrb[202].mxu1 %vm17885_vm5, %v17836_v58  ;;  %vm17894_vm5 = vnez %v17893_v54  ;;  %v17933_v54 = vld [vmem:[#allocation67_spill] sm:$0xff] }
0x2a15   : > { %11045 = vmatprep.mubr.msk.f32.mxu1 %vm7442_vm14, %v17836_v58  ;;  %vm7445_vm14 = vmand %vm7253_vm15, %vm7349_vm11  ;;  %vm17899_vm15 = vnez %v17898_v10  ;;  %v7171_v0 = vsub.s32 %v17933_v54, %v15221_v56 }
0x2a18   : > { %11046 = vmatmul.mubr.msk.f32.gmra.mrb[204].mxu1 %vm17888_vm4, %v17836_v58  ;;  %vm7255_vm4 = vcmp.ge.s32.totalorder %v7159_v12, 0 }
0x2a19   : > { %11047 = vmatprep.mubr.msk.f32.mxu1 %vm7443_vm9, %v17836_v58  ;;  %vm17895_vm9 = vcmask 261120  }
0x2a1a   : > { %12371 = vmatprep.mubr.msk.bf16.mxu0 %vm17895_vm9, %v7740_v2  ;;  %vm17896_vm13 = vmmov %vm17895_vm9  ;;  %vm7353_vm9 = vcmp.lt.s32.totalorder %v7161_v57, 2 }
0x2a1b   : > { %12372 = vmatmul.mubr.msk.bf16.gmra.mrb[212].mxu0 %vm17896_vm13, %v7741_v60  ;;  %v17931_v60 = vld [vmem:[#allocation68_spill] sm:$0xff] }
0x2a1c   : > { %11048 = vmatmul.mubr.msk.f32.gmra.mrb[206].mxu1 %vm17891_vm12, %v17836_v58  ;;  %vm7256_vm12 = vcmp.ge.s32.totalorder %v7160_v7, 0 }
0x2a1d   : > { %11049 = vmatprep.mubr.msk.f32.mxu1 %vm7444_vm8, %v17836_v58  ;;  %vm7351_vm8 = vcmp.lt.s32.totalorder %v7159_v12, 2  ;;  %v17930_v12 = vld [vmem:[#allocation64_spill] sm:$0xff] }
0x2a1e   : > { %vm7447_vm11 = vmand %vm7255_vm4, %vm7351_vm8  ;;  %vm7258_vm4 = vcmp.ge.s32.totalorder %v7162_v63, 0  ;;  %vm7354_vm8 = vcmp.lt.s32.totalorder %v7162_v63, 2  ;;  %v7170_v2 = vsub.s32 %v17930_v12, %v15221_v56  ;;  %v15539_v63 = vpop.f32.mrb[173].mxu0 }
0x2a1f   : > { %v15545_v33 = vpop.f32.mrb[174].mxu0 }
0x2a20   : > { %11050 = vmatmul.mubr.msk.f32.gmra.mrb[208].mxu1 %vm17894_vm5, %v17836_v58  ;;  %vm7257_vm5 = vcmp.ge.s32.totalorder %v7161_v57, 0  ;;  %v7107_v57 = vadd.s32 264, %v13994_v29 }
0x2a21   : > { %11051 = vmatprep.mubr.msk.f32.mxu1 %vm7445_vm14, %v17836_v58  ;;  %vm7352_vm14 = vcmp.lt.s32.totalorder %v7160_v7, 2  ;;  %vm7449_vm13 = vmand %vm7257_vm5, %vm7353_vm9  ;;  %vm17913_vm5 = vnez %v17912_v61  ;;  %v7106_v7 = vadd.s32 256, %v13994_v29 }
0x2a22   : > { %vm7448_vm3 = vmand %vm7256_vm12, %vm7352_vm14  ;;  %v7175_v14 = vsub.s32 %v7107_v57, %v15221_v56 }
0x2a23   : > { %vm7450_vm14 = vmand %vm7258_vm4, %vm7354_vm8  ;;  %vm17917_vm8 = vnez %v17916_v6  ;;  %v7173_v22 = vsub.s32 %v7106_v7, %v15221_v56  ;;  %v7112_v6 = vadd.s32 304, %v13994_v29 }
0x2a24   : > { %11052 = vmatmul.mubr.msk.f32.gmra.mrb[210].mxu1 %vm17899_vm15, %v17836_v58  ;;  %vm17907_vm15 = vcmask 261120  }
0x2a25   : > { %11053 = vmatprep.mubr.msk.f32.mxu1 %vm7446_vm10, %v17836_v58  ;;  %vm17905_vm10 = vnez %v17904_v24  ;;  %12375 = vmatprep.mubr.msk.bf16.mxu0 %vm17907_vm15, %v7742_v31  ;;  %vm17910_vm12 = vmmov %vm17907_vm15  ;;  %v17936_v24 = vld [vmem:[#allocation20_spill] sm:$0xff]  ;;  %v7108_v31 = vadd.s32 272, %v13994_v29  ;;  %v7185_v52 = vsub.s32 %v7112_v6, %v15221_v56 }
0x2a26   : > { %12376 = vmatmul.mubr.msk.bf16.gmra.mrb[216].mxu0 %vm17910_vm12, %v7743_v53  ;;  %vm17915_vm4 = vmmov %vm17910_vm12  ;;  %vm7261_vm12 = vcmp.ge.s32.totalorder %v7165_v23, 0  ;;  %v7172_v49 = vsub.s32 %v7106_v7, %v17936_v24  ;;  %v15550_v53 = vpop.f32.mrb[175].mxu0  ;;  %v7174_v16 = vsub.s32 %v7107_v57, %v17936_v24  ;;  %v7180_v36 = vsub.s32 %v7110_v28, %v17936_v24 }
0x2a27   : > { %12379 = vmatprep.mubr.msk.bf16.mxu0 %vm17915_vm4, %v7744_v51  ;;  %vm17918_vm15 = vmmov %vm17915_vm4  ;;  %v7181_v51 = vsub.s32 %v7110_v28, %v15221_v56  ;;  %v15568_v27 = vpop.f32.mrb[176].mxu0  ;;  %v7192_v54 = vsub.s32 %v7116_v13, %v17936_v24  ;;  %v7118_v7 = vadd.s32 352, %v13994_v29  ;;  %v7119_v57 = vadd.s32 360, %v13994_v29 }
0x2a28   : > { %11054 = vmatmul.mubr.msk.f32.gmra.mrb[212].mxu1 %vm17902_vm0, %v17836_v58  ;;  %vm7259_vm0 = vcmp.ge.s32.totalorder %v7163_v35, 0 }
0x2a29   : > { %11055 = vmatprep.mubr.msk.f32.mxu1 %vm7447_vm11, %v17836_v58  ;;  %vm17909_vm11 = vnez %v17908_v47  ;;  %v7109_v47 = vadd.s32 280, %v13994_v29 }
0x2a2b   : > { %v7179_v61 = vsub.s32 %v7109_v47, %v15221_v56  ;;  %v7178_v42 = vsub.s32 %v7109_v47, %v17936_v24  ;;  %v7198_v47 = vsub.s32 %v7119_v57, %v17936_v24 }
0x2a2c   : > { %11056 = vmatmul.mubr.msk.f32.gmra.mrb[214].mxu1 %vm17905_vm10, %v17836_v58  ;;  %vm7260_vm10 = vcmp.ge.s32.totalorder %v7164_v4, 0 }
0x2a2d   : > { %11057 = vmatprep.mubr.msk.f32.mxu1 %vm7448_vm3, %v17836_v58  ;;  %vm7355_vm3 = vcmp.lt.s32.totalorder %v7163_v35, 2  ;;  %v7177_v35 = vsub.s32 %v7108_v31, %v15221_v56 }
0x2a2e   : > { %vm7451_vm9 = vmand %vm7259_vm0, %vm7355_vm3  ;;  %12380 = vmatmul.mubr.msk.bf16.gmra.mrb[220].mxu0 %vm17918_vm15, %v7745_v5  ;;  %vm17921_vm0 = vnez %v17920_v21  ;;  %vm7263_vm15 = vcmp.ge.s32.totalorder %v7167_v45, 0  ;;  %v15571_v5 = vpop.f32.mrb[177].mxu0  ;;  %v7182_v21 = vsub.s32 %v7111_v17, %v17936_v24 }
0x2a2f   : > { %v15577_v46 = vpop.f32.mrb[178].mxu0 }
0x2a30   : > { %11058 = vmatmul.mubr.msk.f32.gmra.mrb[216].mxu1 %vm17909_vm11, %v17836_v58 }
0x2a31   : > { %11059 = vmatprep.mubr.msk.f32.mxu1 %vm7449_vm13, %v17836_v58  ;;  %vm7356_vm13 = vcmp.lt.s32.totalorder %v7164_v4, 2  ;;  %v7176_v4 = vsub.s32 %v7108_v31, %v17936_v24  ;;  %v7199_v31 = vsub.s32 %v7119_v57, %v15221_v56 }
0x2a32   : > { %vm7452_vm11 = vmand %vm7260_vm10, %vm7356_vm13  ;;  %vm17925_vm13 = vnez %v17924_v37 }
0x2a33   : > { %vm17923_vm10 = vmmov %vm17915_vm4 }
0x2a34   : > { %11060 = vmatmul.mubr.msk.f32.gmra.mrb[218].mxu1 %vm17913_vm5, %v17836_v58  ;;  %vm7262_vm5 = vcmp.ge.s32.totalorder %v7166_v43, 0  ;;  %12383 = vmatprep.mubr.msk.bf16.mxu0 %vm17923_vm10, %v7746_v20  ;;  %v7184_v20 = vsub.s32 %v7112_v6, %v17936_v24 }
0x2a35   : > { %11061 = vmatprep.mubr.msk.f32.mxu1 %vm7450_vm14, %v17836_v58  ;;  %vm7357_vm14 = vcmp.lt.s32.totalorder %v7165_v23, 2  ;;  %v7183_v23 = vsub.s32 %v7111_v17, %v15221_v56 }
0x2a36   : > { %vm7453_vm3 = vmand %vm7261_vm12, %vm7357_vm14  ;;  %12384 = vmatmul.mubr.msk.bf16.gmra.mrb[224].mxu0 %vm17915_vm4, %v7747_v9  ;;  %vm7264_vm14 = vcmp.ge.s32.totalorder %v7168_v59, 0  ;;  %vm7362_vm4 = vcmp.lt.s32.totalorder %v7170_v2, 2  ;;  %v7186_v9 = vsub.s32 %v7113_v39, %v17936_v24  ;;  %v7124_v39 = vadd.s32 400, %v13994_v29 }
0x2a38   : > { %11062 = vmatmul.mubr.msk.f32.gmra.mrb[220].mxu1 %vm17917_vm8, %v17836_v58 }
0x2a39   : > { %11063 = vmatprep.mubr.msk.f32.mxu1 %vm7451_vm9, %v17836_v58  ;;  %vm7358_vm9 = vcmp.lt.s32.totalorder %v7166_v43, 2  ;;  %v15580_v43 = vpop.f32.mrb[179].mxu0 }
0x2a3a   : > { %vm7454_vm8 = vmand %vm7262_vm5, %vm7358_vm9  ;;  %vm7361_vm5 = vcmp.lt.s32.totalorder %v7169_v50, 2  ;;  %vm17932_vm9 = vnez %v17931_v60  ;;  %v15596_v37 = vpop.f32.mrb[180].mxu0  ;;  %v7117_v60 = vadd.s32 344, %v13994_v29 }
0x2a3b   : > { %v15599_v18 = vpop.f32.mrb[181].mxu0 }
0x2a3c   : > { %11064 = vmatmul.mubr.msk.f32.gmra.mrb[222].mxu1 %vm17921_vm0, %v17836_v58  ;;  %vm7360_vm0 = vcmp.lt.s32.totalorder %v7168_v59, 2  ;;  %v7188_v59 = vsub.s32 %v7114_v55, %v17936_v24  ;;  %v7194_v10 = vsub.s32 %v7117_v60, %v17936_v24 }
0x2a3d   : > { %11065 = vmatprep.mubr.msk.f32.mxu1 %vm7452_vm11, %v17836_v58  ;;  %vm7359_vm11 = vcmp.lt.s32.totalorder %v7167_v45, 2  ;;  %v7115_v45 = vadd.s32 328, %v13994_v29 }
0x2a3e   : > { %vm7455_vm12 = vmand %vm7263_vm15, %vm7359_vm11  ;;  %vm7363_vm15 = vcmp.lt.s32.totalorder %v7171_v0, 2  ;;  %vm7269_vm11 = vcmp.ge.s32.totalorder %v7173_v22, 0 }
0x2a3f   : > { %v7191_v19 = vsub.s32 %v7115_v45, %v15221_v56  ;;  %v7190_v12 = vsub.s32 %v7115_v45, %v17936_v24  ;;  %v7208_v45 = vsub.s32 %v7124_v39, %v17936_v24 }
0x2a40   : > { %11066 = vmatmul.mubr.msk.f32.gmra.mrb[224].mxu1 %vm17925_vm13, %v17836_v58  ;;  %vm7266_vm13 = vcmp.ge.s32.totalorder %v7170_v2, 0  ;;  %v7193_v2 = vsub.s32 %v7116_v13, %v15221_v56 }
0x2a41   : > { %11067 = vmatprep.mubr.msk.f32.mxu1 %vm7453_vm3, %v17836_v58  ;;  %vm7265_vm3 = vcmp.ge.s32.totalorder %v7169_v50, 0  ;;  %v15605_v50 = vpop.f32.mrb[182].mxu0 }
0x2a42   : > { %vm7457_vm10 = vmand %vm7265_vm3, %vm7361_vm5  ;;  %vm7271_vm3 = vcmp.ge.s32.totalorder %v7175_v14, 0  ;;  %vm7367_vm5 = vcmp.lt.s32.totalorder %v7175_v14, 2  ;;  %v15608_v1 = vpop.f32.mrb[183].mxu0  ;;  %v7196_v14 = vsub.s32 %v7118_v7, %v17936_v24 }
0x2a43   : > { %v15624_v15 = vpop.f32.mrb[184].mxu0 }
0x2a44   : > { %11068 = vmatmul.mubr.msk.f32.gmra.mrb[226].mxu1 %vm15034_vm6, %v17836_v58  ;;  %vm7456_vm6 = vmand %vm7264_vm14, %vm7360_vm0  ;;  %vm17938_vm14 = vnez %v17937_v38  ;;  %vm7268_vm0 = vcmp.ge.s32.totalorder %v7172_v49, 0  ;;  %v7120_v38 = vadd.s32 368, %v13994_v29 }
0x2a45   : > { %11069 = vmatprep.mubr.msk.f32.mxu1 %vm7454_vm8, %v17836_v58  ;;  %vm7267_vm8 = vcmp.ge.s32.totalorder %v7171_v0, 0  ;;  %v7195_v0 = vsub.s32 %v7117_v60, %v15221_v56 }
0x2a48   : > { %11070 = vmatmul.mubr.msk.f32.gmra.mrb[228].mxu1 %vm15038_vm1, %v17836_v58  ;;  %vm7458_vm1 = vmand %vm7266_vm13, %vm7362_vm4  ;;  %vm7270_vm4 = vcmp.ge.s32.totalorder %v7174_v16, 0 }
0x2a49   : > { %11071 = vmatprep.mubr.msk.f32.mxu1 %vm7455_vm12, %v17836_v58  ;;  %vm7365_vm12 = vcmp.lt.s32.totalorder %v7173_v22, 2  ;;  %vm7463_vm13 = vmand %vm7271_vm3, %vm7367_vm5  ;;  %vm7274_vm5 = vcmp.ge.s32.totalorder %v7178_v42, 0  ;;  %v7197_v22 = vsub.s32 %v7118_v7, %v15221_v56 }
0x2a4c   : > { %11072 = vmatmul.mubr.msk.f32.gmra.mrb[230].mxu1 %vm17932_vm9, %v17836_v58  ;;  %vm17940_vm9 = vnez %v17939_v25  ;;  %v7201_v25 = vsub.s32 %v7120_v38, %v15221_v56 }
0x2a4d   : > { %11073 = vmatprep.mubr.msk.f32.mxu1 %vm7456_vm6, %v17836_v58  ;;  %vm7364_vm6 = vcmp.lt.s32.totalorder %v7172_v49, 2  ;;  %v15627_v49 = vpop.f32.mrb[185].mxu0 }
0x2a50   : > { %11074 = vmatmul.mubr.msk.f32.gmra.mrb[232].mxu1 %vm15059_vm7, %v17836_v58  ;;  %vm7459_vm7 = vmand %vm7267_vm8, %vm7363_vm15  ;;  %vm7273_vm8 = vcmp.ge.s32.totalorder %v7177_v35, 0  ;;  %vm7369_vm15 = vcmp.lt.s32.totalorder %v7177_v35, 2 }
0x2a51   : > { %11075 = vmatprep.mubr.msk.f32.mxu1 %vm7457_vm10, %v17836_v58  ;;  %vm7460_vm10 = vmand %vm7268_vm0, %vm7364_vm6  ;;  %vm7371_vm0 = vcmp.lt.s32.totalorder %v7179_v61, 2 }
0x2a54   : > { %11076 = vmatmul.mubr.msk.f32.gmra.mrb[234].mxu1 %vm15071_vm2, %v17836_v58  ;;  %vm7461_vm2 = vmand %vm7269_vm11, %vm7365_vm12  ;;  %vm7272_vm12 = vcmp.ge.s32.totalorder %v7176_v4, 0 }
0x2a55   : > { %11077 = vmatprep.mubr.msk.f32.mxu1 %vm7458_vm1, %v17836_v58  ;;  %vm7366_vm1 = vcmp.lt.s32.totalorder %v7174_v16, 2  ;;  %vm7465_vm11 = vmand %vm7273_vm8, %vm7369_vm15  ;;  %vm7276_vm8 = vcmp.ge.s32.totalorder %v7180_v36, 0  ;;  %vm7372_vm15 = vcmp.lt.s32.totalorder %v7180_v36, 2  ;;  %v15633_v16 = vpop.f32.mrb[186].mxu0  ;;  %v7123_v36 = vadd.s32 392, %v13994_v29 }
0x2a56   : > { %v15636_v35 = vpop.f32.mrb[187].mxu0 }
0x2a57   : > { %v7206_v55 = vsub.s32 %v7123_v36, %v17936_v24 }
0x2a58   : > { %11078 = vmatmul.mubr.msk.f32.gmra.mrb[236].mxu1 %vm17938_vm14, %v17836_v58  ;;  %vm7368_vm14 = vcmp.lt.s32.totalorder %v7176_v4, 2  ;;  %v7121_v4 = vadd.s32 376, %v13994_v29 }
0x2a59   : > { %11079 = vmatprep.mubr.msk.f32.mxu1 %vm7459_vm7, %v17836_v58  ;;  %vm7462_vm7 = vmand %vm7270_vm4, %vm7366_vm1 }
0x2a5a   : > { %vm7464_vm6 = vmand %vm7272_vm12, %vm7368_vm14  ;;  %v7203_v28 = vsub.s32 %v7121_v4, %v15221_v56 }
0x2a5b   : > { %vm7468_vm12 = vmand %vm7276_vm8, %vm7372_vm15 }
0x2a5c   : > { %11080 = vmatmul.mubr.msk.f32.gmra.mrb[238].mxu1 %vm17940_vm9, %v17836_v58  ;;  %vm7370_vm9 = vcmp.lt.s32.totalorder %v7178_v42, 2  ;;  %v7122_v42 = vadd.s32 384, %v13994_v29 }
0x2a5d   : > { %11081 = vmatprep.mubr.msk.f32.mxu1 %vm7461_vm2, %v17836_v58  ;;  %vm7275_vm2 = vcmp.ge.s32.totalorder %v7179_v61, 0  ;;  %vm7466_vm4 = vmand %vm7274_vm5, %vm7370_vm9  ;;  %v7200_v61 = vsub.s32 %v7120_v38, %v17936_v24  ;;  %v7129_v38 = vadd.s32 440, %v13994_v29 }
0x2a5e   : > { %vm7467_vm3 = vmand %vm7275_vm2, %vm7371_vm0  ;;  %vm7278_vm2 = vcmp.ge.s32.totalorder %v7182_v21, 0  ;;  %vm7374_vm0 = vcmp.lt.s32.totalorder %v7182_v21, 2  ;;  %v7205_v17 = vsub.s32 %v7122_v42, %v15221_v56  ;;  %v7204_v21 = vsub.s32 %v7122_v42, %v17936_v24 }
0x2a5f   : > { %vm7470_vm5 = vmand %vm7278_vm2, %vm7374_vm0 }
0x2a60   : > { %11082 = vmatmul.mubr.msk.f32.gmra.mrb[240].mxu1 %vm7460_vm10, %v17836_v58  ;;  %vm7277_vm10 = vcmp.ge.s32.totalorder %v7181_v51, 0 }
0x2a61   : > { %11083 = vmatprep.mubr.msk.f32.mxu1 %vm7463_vm13, %v17836_v58  ;;  %vm7373_vm13 = vcmp.lt.s32.totalorder %v7181_v51, 2  ;;  %v7202_v51 = vsub.s32 %v7121_v4, %v17936_v24  ;;  %v7130_v4 = vadd.s32 448, %v13994_v29 }
0x2a62   : > { %vm7469_vm1 = vmand %vm7277_vm10, %vm7373_vm13  ;;  %vm7280_vm10 = vcmp.ge.s32.totalorder %v7184_v20, 0  ;;  %vm7376_vm13 = vcmp.lt.s32.totalorder %v7184_v20, 2 }
0x2a63   : > { %vm7472_vm8 = vmand %vm7280_vm10, %vm7376_vm13  ;;  %v7221_v42 = vsub.s32 %v7130_v4, %v15221_v56 }
0x2a64   : > { %11084 = vmatmul.mubr.msk.f32.gmra.mrb[242].mxu1 %vm7462_vm7, %v17836_v58  ;;  %vm7279_vm7 = vcmp.ge.s32.totalorder %v7183_v23, 0 }
0x2a65   : > { %11085 = vmatprep.mubr.msk.f32.mxu1 %vm7465_vm11, %v17836_v58  ;;  %vm7375_vm11 = vcmp.lt.s32.totalorder %v7183_v23, 2  ;;  %v15652_v23 = vpop.f32.mrb[188].mxu0 }
0x2a66   : > { %vm7471_vm14 = vmand %vm7279_vm7, %vm7375_vm11  ;;  %vm7282_vm7 = vcmp.ge.s32.totalorder %v7186_v9, 0  ;;  %vm7378_vm11 = vcmp.lt.s32.totalorder %v7186_v9, 2  ;;  %v15655_v6 = vpop.f32.mrb[189].mxu0  ;;  %v7209_v9 = vsub.s32 %v7124_v39, %v15221_v56  ;;  %v15715_v39 = vld [vmem:[#allocation10 + $0x41] ss:$0 sm:$0xff] }
0x2a67   : > { %vm7474_vm2 = vmand %vm7282_vm7, %vm7378_vm11  ;;  %v15661_v20 = vpop.f32.mrb[190].mxu0 }
0x2a68   : > { %11086 = vmatmul.mubr.msk.f32.gmra.mrb[244].mxu1 %vm7464_vm6, %v17836_v58  ;;  %vm7281_vm6 = vcmp.ge.s32.totalorder %v7185_v52, 0 }
0x2a69   : > { %11087 = vmatprep.mubr.msk.f32.mxu1 %vm7467_vm3, %v17836_v58  ;;  %vm7377_vm3 = vcmp.lt.s32.totalorder %v7185_v52, 2  ;;  %v7207_v52 = vsub.s32 %v7123_v36, %v15221_v56 }
0x2a6a   : > { %vm7473_vm9 = vmand %vm7281_vm6, %vm7377_vm3  ;;  %vm7284_vm6 = vcmp.ge.s32.totalorder %v7188_v59, 0  ;;  %vm7380_vm3 = vcmp.lt.s32.totalorder %v7188_v59, 2 }
0x2a6b   : > { %vm7476_vm10 = vmand %vm7284_vm6, %vm7380_vm3 }
0x2a6c   : > { %11088 = vmatmul.mubr.msk.f32.gmra.mrb[246].mxu1 %vm7466_vm4, %v17836_v58  ;;  %vm7283_vm4 = vcmp.ge.s32.totalorder %v7187_v48, 0 }
0x2a6d   : > { %11089 = vmatprep.mubr.msk.f32.mxu1 %vm7469_vm1, %v17836_v58  ;;  %vm7379_vm1 = vcmp.lt.s32.totalorder %v7187_v48, 2  ;;  %v15664_v48 = vpop.f32.mrb[191].mxu0 }
0x2a6e   : > { %vm7475_vm15 = vmand %vm7283_vm4, %vm7379_vm1  ;;  %vm7286_vm4 = vcmp.ge.s32.totalorder %v7190_v12, 0  ;;  %vm7382_vm1 = vcmp.lt.s32.totalorder %v7190_v12, 2 }
0x2a6f   : > { %vm7478_vm7 = vmand %vm7286_vm4, %vm7382_vm1 }
0x2a70   : > { %11090 = vmatmul.mubr.msk.f32.gmra.mrb[248].mxu1 %vm7468_vm12, %v17836_v58  ;;  %vm7285_vm12 = vcmp.ge.s32.totalorder %v7189_v30, 0 }
0x2a71   : > { %11091 = vmatprep.mubr.msk.f32.mxu1 %vm7471_vm14, %v17836_v58  ;;  %vm7381_vm14 = vcmp.lt.s32.totalorder %v7189_v30, 2  ;;  %v7125_v30 = vadd.s32 408, %v13994_v29 }
0x2a72   : > { %vm7477_vm0 = vmand %vm7285_vm12, %vm7381_vm14  ;;  %vm7288_vm12 = vcmp.ge.s32.totalorder %v7192_v54, 0  ;;  %vm7384_vm14 = vcmp.lt.s32.totalorder %v7192_v54, 2 }
0x2a73   : > { %vm7480_vm6 = vmand %vm7288_vm12, %vm7384_vm14  ;;  %v7211_v59 = vsub.s32 %v7125_v30, %v15221_v56  ;;  %v7210_v13 = vsub.s32 %v7125_v30, %v17936_v24 }
0x2a74   : > { %11092 = vmatmul.mubr.msk.f32.gmra.mrb[250].mxu1 %vm7470_vm5, %v17836_v58  ;;  %vm7287_vm5 = vcmp.ge.s32.totalorder %v7191_v19, 0 }
0x2a75   : > { %11093 = vmatprep.mubr.msk.f32.mxu1 %vm7473_vm9, %v17836_v58  ;;  %vm7383_vm9 = vcmp.lt.s32.totalorder %v7191_v19, 2  ;;  %v7126_v19 = vadd.s32 416, %v13994_v29 }
0x2a76   : > { %vm7479_vm13 = vmand %vm7287_vm5, %vm7383_vm9  ;;  %vm7290_vm5 = vcmp.ge.s32.totalorder %v7194_v10, 0  ;;  %vm7386_vm9 = vcmp.lt.s32.totalorder %v7194_v10, 2  ;;  %v7128_v10 = vadd.s32 432, %v13994_v29 }
0x2a77   : > { %vm7482_vm4 = vmand %vm7290_vm5, %vm7386_vm9  ;;  %v7213_v12 = vsub.s32 %v7126_v19, %v15221_v56 }
0x2a78   : > { %11094 = vmatmul.mubr.msk.f32.gmra.mrb[252].mxu1 %vm7472_vm8, %v17836_v58  ;;  %vm7289_vm8 = vcmp.ge.s32.totalorder %v7193_v2, 0 }
0x2a79   : > { %11095 = vmatprep.mubr.msk.f32.mxu1 %vm7475_vm15, %v17836_v58  ;;  %vm7385_vm15 = vcmp.lt.s32.totalorder %v7193_v2, 2  ;;  %v7127_v2 = vadd.s32 424, %v13994_v29 }
0x2a7a   : > { %vm7481_vm11 = vmand %vm7289_vm8, %vm7385_vm15  ;;  %vm7292_vm8 = vcmp.ge.s32.totalorder %v7196_v14, 0  ;;  %vm7388_vm15 = vcmp.lt.s32.totalorder %v7196_v14, 2 }
0x2a7b   : > { %vm7484_vm12 = vmand %vm7292_vm8, %vm7388_vm15  ;;  %v7215_v7 = vsub.s32 %v7127_v2, %v15221_v56  ;;  %v7214_v14 = vsub.s32 %v7127_v2, %v17936_v24 }
0x2a7c   : > { %11096 = vmatmul.mubr.msk.f32.gmra.mrb[254].mxu1 %vm7474_vm2, %v17836_v58  ;;  %vm7291_vm2 = vcmp.ge.s32.totalorder %v7195_v0, 0 }
0x2a7d   : > { %11097 = vmatprep.mubr.msk.f32.mxu1 %vm7477_vm0, %v17836_v58  ;;  %vm7387_vm0 = vcmp.lt.s32.totalorder %v7195_v0, 2  ;;  %v15680_v60 = vpop.f32.mrb[192].mxu0  ;;  %v7212_v0 = vsub.s32 %v7126_v19, %v17936_v24 }
0x2a7e   : > { %vm7483_vm3 = vmand %vm7291_vm2, %vm7387_vm0  ;;  %vm7294_vm2 = vcmp.ge.s32.totalorder %v7198_v47, 0  ;;  %vm7390_vm0 = vcmp.lt.s32.totalorder %v7198_v47, 2  ;;  %v15683_v54 = vpop.f32.mrb[193].mxu0  ;;  %v7216_v47 = vsub.s32 %v7128_v10, %v17936_v24 }
0x2a7f   : > { %vm7486_vm5 = vmand %vm7294_vm2, %vm7390_vm0 }
0x2a80   : > { %11098 = vmatmul.mubr.msk.f32.gmra.mrb[0].mxu1 %vm7476_vm10, %v17836_v58  ;;  %vm7293_vm10 = vcmp.ge.s32.totalorder %v7197_v22, 0 }
0x2a81   : > { %11099 = vmatprep.mubr.msk.f32.mxu1 %vm7479_vm13, %v17836_v58  ;;  %vm7389_vm13 = vcmp.lt.s32.totalorder %v7197_v22, 2  ;;  %v15689_v22 = vpop.f32.mrb[194].mxu0 }
0x2a82   : > { %vm7485_vm1 = vmand %vm7293_vm10, %vm7389_vm13  ;;  %vm7296_vm10 = vcmp.ge.s32.totalorder %v7200_v61, 0  ;;  %vm7392_vm13 = vcmp.lt.s32.totalorder %v7200_v61, 2  ;;  %v15692_v57 = vpop.f32.mrb[195].mxu0  ;;  %v7218_v61 = vsub.s32 %v7129_v38, %v17936_v24 }
0x2a83   : > { %vm7488_vm8 = vmand %vm7296_vm10, %vm7392_vm13 }
0x2a84   : > { %11100 = vmatmul.mubr.msk.f32.gmra.mrb[2].mxu1 %vm7478_vm7, %v17836_v58  ;;  %vm7295_vm7 = vcmp.ge.s32.totalorder %v7199_v31, 0 }
0x2a85   : > { %11101 = vmatprep.mubr.msk.f32.mxu1 %vm7481_vm11, %v17836_v58  ;;  %vm7391_vm11 = vcmp.lt.s32.totalorder %v7199_v31, 2  ;;  %v7217_v31 = vsub.s32 %v7128_v10, %v15221_v56 }
0x2a86   : > { %vm7487_vm14 = vmand %vm7295_vm7, %vm7391_vm11  ;;  %vm7298_vm7 = vcmp.ge.s32.totalorder %v7202_v51, 0  ;;  %vm7394_vm11 = vcmp.lt.s32.totalorder %v7202_v51, 2  ;;  %v7131_v51 = vadd.s32 456, %v13994_v29 }
0x2a87   : > { %vm7490_vm2 = vmand %vm7298_vm7, %vm7394_vm11 }
0x2a88   : > { %11102 = vmatmul.mubr.msk.f32.gmra.mrb[4].mxu1 %vm7480_vm6, %v17836_v58  ;;  %vm7297_vm6 = vcmp.ge.s32.totalorder %v7201_v25, 0  ;;  %v7223_v30 = vsub.s32 %v7131_v51, %v15221_v56 }
0x2a89   : > { %11103 = vmatprep.mubr.msk.f32.mxu1 %vm7483_vm3, %v17836_v58  ;;  %vm7393_vm3 = vcmp.lt.s32.totalorder %v7201_v25, 2  ;;  %v7219_v25 = vsub.s32 %v7129_v38, %v15221_v56 }
0x2a8a   : > { %vm7489_vm9 = vmand %vm7297_vm6, %vm7393_vm3  ;;  %vm7300_vm6 = vcmp.ge.s32.totalorder %v7204_v21, 0  ;;  %vm7396_vm3 = vcmp.lt.s32.totalorder %v7204_v21, 2 }
0x2a8b   : > { %vm7492_vm10 = vmand %vm7300_vm6, %vm7396_vm3 }
0x2a8c   : > { %11104 = vmatmul.mubr.msk.f32.gmra.mrb[6].mxu1 %vm7482_vm4, %v17836_v58  ;;  %vm7299_vm4 = vcmp.ge.s32.totalorder %v7203_v28, 0 }
0x2a8d   : > { %11105 = vmatprep.mubr.msk.f32.mxu1 %vm7485_vm1, %v17836_v58  ;;  %vm7395_vm1 = vcmp.lt.s32.totalorder %v7203_v28, 2 }
0x2a8e   : > { %vm7491_vm15 = vmand %vm7299_vm4, %vm7395_vm1  ;;  %vm7302_vm4 = vcmp.ge.s32.totalorder %v7206_v55, 0  ;;  %vm7398_vm1 = vcmp.lt.s32.totalorder %v7206_v55, 2  ;;  %v7220_v55 = vsub.s32 %v7130_v4, %v17936_v24 }
0x2a8f   : > { %vm7494_vm7 = vmand %vm7302_vm4, %vm7398_vm1 }
0x2a90   : > { %11106 = vmatmul.mubr.msk.f32.gmra.mrb[8].mxu1 %vm7484_vm12, %v17836_v58  ;;  %vm7301_vm12 = vcmp.ge.s32.totalorder %v7205_v17, 0 }
0x2a91   : > { %11107 = vmatprep.mubr.msk.f32.mxu1 %vm7487_vm14, %v17836_v58  ;;  %vm7397_vm14 = vcmp.lt.s32.totalorder %v7205_v17, 2  ;;  %v15708_v17 = vpop.f32.mrb[196].mxu0 }
0x2a92   : > { %vm7493_vm0 = vmand %vm7301_vm12, %vm7397_vm14  ;;  %vm7304_vm12 = vcmp.ge.s32.totalorder %v7208_v45, 0  ;;  %vm7400_vm14 = vcmp.lt.s32.totalorder %v7208_v45, 2  ;;  %v7132_v45 = vadd.s32 464, %v13994_v29 }
0x2a93   : > { %vm7496_vm6 = vmand %vm7304_vm12, %vm7400_vm14 }
0x2a94   : > { %11108 = vmatmul.mubr.msk.f32.gmra.mrb[10].mxu1 %vm7486_vm5, %v17836_v58  ;;  %vm7303_vm5 = vcmp.ge.s32.totalorder %v7207_v52, 0  ;;  %v7225_v10 = vsub.s32 %v7132_v45, %v15221_v56  ;;  %v7224_v4 = vsub.s32 %v7132_v45, %v17936_v24  ;;  %v7135_v45 = vadd.s32 488, %v13994_v29 }
0x2a95   : > { %11109 = vmatprep.mubr.msk.f32.mxu1 %vm7489_vm9, %v17836_v58  ;;  %vm7399_vm9 = vcmp.lt.s32.totalorder %v7207_v52, 2  ;;  %v15712_v52 = vpop.f32.mrb[197].mxu0 }
0x2a96   : > { %vm7495_vm13 = vmand %vm7303_vm5, %vm7399_vm9  ;;  %vm7306_vm5 = vcmp.ge.s32.totalorder %v7210_v13, 0  ;;  %vm7402_vm9 = vcmp.lt.s32.totalorder %v7210_v13, 2 }
0x2a97   : > { %vm7498_vm4 = vmand %vm7306_vm5, %vm7402_vm9 }
0x2a98   : > { %11110 = vmatmul.mubr.msk.f32.gmra.mrb[12].mxu1 %vm7488_vm8, %v17836_v58  ;;  %vm7305_vm8 = vcmp.ge.s32.totalorder %v7209_v9, 0 }
0x2a99   : > { %11111 = vmatprep.mubr.msk.f32.mxu1 %vm7491_vm15, %v17836_v58  ;;  %vm7401_vm15 = vcmp.lt.s32.totalorder %v7209_v9, 2 }
0x2a9a   : > { %vm7497_vm11 = vmand %vm7305_vm8, %vm7401_vm15  ;;  %vm7308_vm8 = vcmp.ge.s32.totalorder %v7212_v0, 0  ;;  %vm7404_vm15 = vcmp.lt.s32.totalorder %v7212_v0, 2  ;;  %v7222_v0 = vsub.s32 %v7131_v51, %v17936_v24 }
0x2a9b   : > { %vm7500_vm12 = vmand %vm7308_vm8, %vm7404_vm15 }
0x2a9c   : > { %11112 = vmatmul.mubr.msk.f32.gmra.mrb[14].mxu1 %vm7490_vm2, %v17836_v58  ;;  %vm7307_vm2 = vcmp.ge.s32.totalorder %v7211_v59, 0 }
0x2a9d   : > { %11113 = vmatprep.mubr.msk.f32.mxu1 %vm7493_vm0, %v17836_v58  ;;  %vm7403_vm0 = vcmp.lt.s32.totalorder %v7211_v59, 2 }
0x2a9e   : > { %vm7499_vm3 = vmand %vm7307_vm2, %vm7403_vm0  ;;  %vm7310_vm2 = vcmp.ge.s32.totalorder %v7214_v14, 0  ;;  %vm7406_vm0 = vcmp.lt.s32.totalorder %v7214_v14, 2 }
0x2a9f   : > { %vm7502_vm5 = vmand %vm7310_vm2, %vm7406_vm0 }
0x2aa0   : > { %11114 = vmatmul.mubr.msk.f32.gmra.mrb[16].mxu1 %vm7492_vm10, %v17836_v58  ;;  %vm7309_vm10 = vcmp.ge.s32.totalorder %v7213_v12, 0 }
0x2aa1   : > { %11115 = vmatprep.mubr.msk.f32.mxu1 %vm7495_vm13, %v17836_v58  ;;  %vm7405_vm13 = vcmp.lt.s32.totalorder %v7213_v12, 2 }
0x2aa2   : > { %vm7501_vm1 = vmand %vm7309_vm10, %vm7405_vm13  ;;  %vm7312_vm10 = vcmp.ge.s32.totalorder %v7216_v47, 0  ;;  %vm7408_vm13 = vcmp.lt.s32.totalorder %v7216_v47, 2 }
0x2aa3   : > { %vm7504_vm8 = vmand %vm7312_vm10, %vm7408_vm13 }
0x2aa4   : > { %11116 = vmatmul.mubr.msk.f32.gmra.mrb[18].mxu1 %vm7494_vm7, %v17836_v58  ;;  %vm7311_vm7 = vcmp.ge.s32.totalorder %v7215_v7, 0 }
0x2aa5   : > { %11117 = vmatprep.mubr.msk.f32.mxu1 %vm7497_vm11, %v17836_v58  ;;  %vm7407_vm11 = vcmp.lt.s32.totalorder %v7215_v7, 2 }
0x2aa6   : > { %vm7503_vm14 = vmand %vm7311_vm7, %vm7407_vm11  ;;  %vm7314_vm7 = vcmp.ge.s32.totalorder %v7218_v61, 0  ;;  %vm7410_vm11 = vcmp.lt.s32.totalorder %v7218_v61, 2 }
0x2aa7   : > { %vm7506_vm2 = vmand %vm7314_vm7, %vm7410_vm11  ;;  %vm17941_vm7 = vcmask 261120  }
0x2aa8   : > { %11118 = vmatmul.mubr.msk.f32.gmra.mrb[20].mxu1 %vm7496_vm6, %v17836_v58  ;;  %vm7313_vm6 = vcmp.ge.s32.totalorder %v7217_v31, 0 }
0x2aa9   : > { %11119 = vmatprep.mubr.msk.f32.mxu1 %vm7499_vm3, %v17836_v58  ;;  %vm7409_vm3 = vcmp.lt.s32.totalorder %v7217_v31, 2 }
0x2aaa   : > { %vm7505_vm9 = vmand %vm7313_vm6, %vm7409_vm3  ;;  %vm7316_vm6 = vcmp.ge.s32.totalorder %v7220_v55, 0  ;;  %vm7412_vm3 = vcmp.lt.s32.totalorder %v7220_v55, 2 }
0x2aab   : > { %vm7508_vm10 = vmand %vm7316_vm6, %vm7412_vm3 }
0x2aac   : > { %11120 = vmatmul.mubr.msk.f32.gmra.mrb[22].mxu1 %vm7498_vm4, %v17836_v58  ;;  %vm7315_vm4 = vcmp.ge.s32.totalorder %v7219_v25, 0 }
0x2aad   : > { %11121 = vmatprep.mubr.msk.f32.mxu1 %vm7501_vm1, %v17836_v58  ;;  %vm7411_vm1 = vcmp.lt.s32.totalorder %v7219_v25, 2 }
0x2aae   : > { %vm7507_vm15 = vmand %vm7315_vm4, %vm7411_vm1  ;;  %vm7318_vm4 = vcmp.ge.s32.totalorder %v7222_v0, 0  ;;  %vm7414_vm1 = vcmp.lt.s32.totalorder %v7222_v0, 2 }
0x2aaf   : > { %vm7510_vm11 = vmand %vm7318_vm4, %vm7414_vm1 }
0x2ab0   : > { %11122 = vmatmul.mubr.msk.f32.gmra.mrb[24].mxu1 %vm7500_vm12, %v17836_v58  ;;  %vm7317_vm12 = vcmp.ge.s32.totalorder %v7221_v42, 0  ;;  %vm17946_vm1 = vmmov %vm17941_vm7 }
0x2ab1   : > { %11123 = vmatprep.mubr.msk.f32.mxu1 %vm7503_vm14, %v17836_v58  ;;  %vm7413_vm14 = vcmp.lt.s32.totalorder %v7221_v42, 2  ;;  %v7134_v42 = vadd.s32 480, %v13994_v29 }
0x2ab2   : > { %vm7509_vm0 = vmand %vm7317_vm12, %vm7413_vm14  ;;  %vm7320_vm14 = vcmp.ge.s32.totalorder %v7224_v4, 0 }
0x2ab3   : > { %v8215_v28 = vpop.f32.mrb[176].mxu1 }
0x2ab4   : > { %11124 = vmatmul.mubr.msk.f32.gmra.mrb[26].mxu1 %vm7502_vm5, %v17836_v58  ;;  %v8217_v36 = vpop.f32.mrb[177].mxu1  ;;  %v8216_v21 = vadd.f32 %v8215_v28, %v15464_v41  ;;  %v15720_v41 = vpop.f32.mrb[198].mxu0  ;;  %vm7319_vm5 = vcmp.ge.s32.totalorder %v7223_v30, 0 }
0x2ab5   : > { %11125 = vmatprep.mubr.msk.f32.mxu1 %vm7505_vm9, %v17836_v58  ;;  %v15725_v12 = vpop.f32.mrb[199].mxu0  ;;  %vm7415_vm9 = vcmp.lt.s32.totalorder %v7223_v30, 2 }
0x2ab6   : > { %v8535_v59 = vadd.f32 %v15715_v39, %v8216_v21  ;;  %vm7511_vm13 = vmand %vm7319_vm5, %vm7415_vm9 }
0x2ab7   : > { %v8220_v9 = vpop.f32.mrb[178].mxu1 }
0x2ab8   : > { %11126 = vmatmul.mubr.msk.f32.gmra.mrb[28].mxu1 %vm7504_vm8, %v17836_v58  ;;  %v8222_v19 = vpop.f32.mrb[179].mxu1  ;;  %v8221_v13 = vadd.f32 %v8220_v9, %v15478_v40  ;;  %v7133_v40 = vadd.s32 472, %v13994_v29  ;;  %v8599_v14 = vmax.f32 %v8535_v59, 0.0  ;;  %vm7321_vm8 = vcmp.ge.s32.totalorder %v7225_v10, 0 }
0x2ab9   : > { %11127 = vmatprep.mubr.msk.f32.mxu1 %vm7507_vm15, %v17836_v58  ;;  %vm7417_vm15 = vcmp.lt.s32.totalorder %v7225_v10, 2 }
0x2aba   : > { %v8536_v2 = vadd.f32 %v15715_v39, %v8221_v13  ;;  %v7227_v28 = vsub.s32 %v7133_v40, %v15221_v56  ;;  %vm15745_vm12 = vmand %vm7321_vm8, %vm7417_vm15  ;;  %v7226_v9 = vsub.s32 %v7133_v40, %v17936_v24 }
0x2abb   : > { %v8225_v7 = vpop.f32.mrb[180].mxu1 }
0x2abc   : > { %11128 = vmatmul.mubr.msk.f32.gmra.mrb[30].mxu1 %vm7506_vm2, %v17836_v58  ;;  %v8226_v31 = vadd.f32 %v15457_v26, %v8225_v7  ;;  %v8600_v38 = vmax.f32 %v8536_v2, 0.0  ;;  %v8227_v47 = vpop.f32.mrb[181].mxu1  ;;  %vm7416_vm2 = vcmp.lt.s32.totalorder %v7224_v4, 2  ;;  %vm7419_vm6 = vcmp.lt.s32.totalorder %v7227_v28, 2 }
0x2abd   : > { %11129 = vmatprep.mubr.msk.f32.mxu1 %vm7509_vm0, %v17836_v58  ;;  %vm7323_vm0 = vcmp.ge.s32.totalorder %v7227_v28, 0  ;;  %vm7512_vm3 = vmand %vm7320_vm14, %vm7416_vm2  ;;  %vm7322_vm9 = vcmp.ge.s32.totalorder %v7226_v9, 0 }
0x2abe   : > { %v8663_v25 = vpack.c.bf16 %v8600_v38, %v8599_v14  ;;  %v8537_v26 = vadd.f32 %v15715_v39, %v8226_v31  ;;  %vm15763_vm5 = vmand %vm7323_vm0, %vm7419_vm6  ;;  %v7228_v14 = vsub.s32 %v7134_v42, %v17936_v24  ;;  %v7136_v38 = vadd.s32 496, %v13994_v29 }
0x2abf   : > { %v8230_v61 = vpop.f32.mrb[182].mxu1 }
0x2ac0   : > { %v8231_v51 = vadd.f32 %v15472_v62, %v8230_v61  ;;  %11130 = vmatmul.mubr.msk.f32.gmra.mrb[32].mxu1 %vm7508_vm10, %v17836_v58  ;;  %12391 = vmatprep.mubr.msk.bf16.mxu0 %vm17941_vm7, %v8663_v25  ;;  %v8232_v36 = vpop.f32.mrb[183].mxu1  ;;  %v7229_v62 = vsub.s32 %v7134_v42, %v15221_v56  ;;  %v15752_v59 = vpop.f32.mrb[200].mxu0  ;;  %v8601_v19 = vmax.f32 %v8537_v26, 0.0  ;;  %vm7418_vm10 = vcmp.lt.s32.totalorder %v7226_v9, 2 }
0x2ac1   : > { %11131 = vmatprep.mubr.msk.f32.mxu1 %vm7511_vm13, %v17836_v58  ;;  %v15756_v7 = vpop.f32.mrb[201].mxu0  ;;  %vm7514_vm8 = vmand %vm7322_vm9, %vm7418_vm10  ;;  %vm7324_vm7 = vcmp.ge.s32.totalorder %v7228_v14, 0  ;;  %v7230_v26 = vsub.s32 %v7135_v45, %v17936_v24  ;;  %v7137_v36 = vadd.s32 504, %v13994_v29 }
0x2ac2   : > { %v8538_v21 = vadd.f32 %v15715_v39, %v8231_v51  ;;  %vm7325_vm13 = vcmp.ge.s32.totalorder %v7229_v62, 0  ;;  %vm7421_vm4 = vcmp.lt.s32.totalorder %v7229_v62, 2  ;;  %v15770_v47 = vpop.f32.mrb[202].mxu0  ;;  %vm17947_vm10 = vmmov %vm17946_vm1 }
0x2ac3   : > { %v8235_v30 = vpop.f32.mrb[184].mxu1  ;;  %v15776_v28 = vpop.f32.mrb[203].mxu0  ;;  %vm7517_vm15 = vmand %vm7325_vm13, %vm7421_vm4  ;;  %vm7326_vm6 = vcmp.ge.s32.totalorder %v7230_v26, 0  ;;  %v7235_v29 = vsub.s32 %v7137_v36, %v15221_v56 }
0x2ac4   : > { %v8602_v13 = vmax.f32 %v8538_v21, 0.0  ;;  %11132 = vmatmul.mubr.msk.f32.gmra.mrb[34].mxu1 %vm7510_vm11, %v17836_v58  ;;  %v8237_v2 = vpop.f32.mrb[185].mxu1  ;;  %v8236_v0 = vadd.f32 %v8235_v30, %v15506_v34  ;;  %v7231_v34 = vsub.s32 %v7135_v45, %v15221_v56  ;;  %vm7420_vm11 = vcmp.lt.s32.totalorder %v7228_v14, 2 }
0x2ac5   : > { %11133 = vmatprep.mubr.msk.f32.mxu1 %vm15745_vm12, %v17836_v58  ;;  %vm7516_vm2 = vmand %vm7324_vm7, %vm7420_vm11  ;;  %v7232_v45 = vsub.s32 %v7136_v38, %v17936_v24  ;;  %vm7427_vm7 = vcmp.lt.s32.totalorder %v7235_v29, 2 }
0x2ac6   : > { %v8664_v10 = vpack.c.bf16 %v8602_v13, %v8601_v19  ;;  %v8539_v25 = vadd.f32 %v15715_v39, %v8236_v0  ;;  %vm7327_vm12 = vcmp.ge.s32.totalorder %v7231_v34, 0  ;;  %vm7423_vm14 = vcmp.lt.s32.totalorder %v7231_v34, 2 }
0x2ac7   : > { %v8240_v31 = vpop.f32.mrb[186].mxu1  ;;  %vm7519_vm0 = vmand %vm7327_vm12, %vm7423_vm14 }
0x2ac8   : > { %11134 = vmatmul.mubr.msk.f32.gmra.mrb[36].mxu1 %vm7512_vm3, %v17836_v58  ;;  %12392 = vmatmul.mubr.msk.bf16.vlgmr.msra.gmra.mrb[228].mxu0 %vm17946_vm1, %v8664_v10  ;;  %v8242_v4 = vpop.f32.mrb[187].mxu1  ;;  %v8241_v61 = vadd.f32 %v8240_v31, %v15516_v32  ;;  %v7233_v32 = vsub.s32 %v7136_v38, %v15221_v56  ;;  %v8603_v21 = vmax.f32 %v8539_v25, 0.0  ;;  %vm7422_vm3 = vcmp.lt.s32.totalorder %v7230_v26, 2 }
0x2ac9   : > { %11135 = vmatprep.mubr.msk.f32.mxu1 %vm15763_vm5, %v17836_v58  ;;  %vm7518_vm13 = vmand %vm7326_vm6, %vm7422_vm3  ;;  %vm7328_vm1 = vcmp.ge.s32.totalorder %v7232_v45, 0  ;;  %v7234_v10 = vsub.s32 %v7137_v36, %v17936_v24 }
0x2aca   : > { %v8540_v42 = vadd.f32 %v15715_v39, %v8241_v61  ;;  %vm7329_vm5 = vcmp.ge.s32.totalorder %v7233_v32, 0  ;;  %vm7425_vm9 = vcmp.lt.s32.totalorder %v7233_v32, 2  ;;  %v15801_v34 = vpop.f32.mrb[204].mxu0 }
0x2acb   : > { %v8245_v51 = vpop.f32.mrb[188].mxu1  ;;  %vm7521_vm4 = vmand %vm7329_vm5, %vm7425_vm9  ;;  %v15804_v38 = vpop.f32.mrb[205].mxu0  ;;  %vm7330_vm14 = vcmp.ge.s32.totalorder %v7234_v10, 0 }
0x2acc   : > { %11136 = vmatmul.mubr.msk.f32.gmra.mrb[38].mxu1 %vm7514_vm8, %v17836_v58  ;;  %v8246_v55 = vadd.f32 %v15501_v44, %v8245_v51  ;;  %v8604_v9 = vmax.f32 %v8540_v42, 0.0  ;;  %v8247_v30 = vpop.f32.mrb[189].mxu1  ;;  %vm7424_vm8 = vcmp.lt.s32.totalorder %v7232_v45, 2  ;;  %v15806_v4 = vpop.f32.mrb[206].mxu0 }
0x2acd   : > { %11137 = vmatprep.mubr.msk.f32.mxu1 %vm7517_vm15, %v17836_v58  ;;  %vm7331_vm15 = vcmp.ge.s32.totalorder %v7235_v29, 0  ;;  %vm7520_vm11 = vmand %vm7328_vm1, %vm7424_vm8  ;;  %v15812_v26 = vpop.f32.mrb[207].mxu0 }
0x2ace   : > { %v8665_v62 = vpack.c.bf16 %v8604_v9, %v8603_v21  ;;  %v8541_v13 = vadd.f32 %v15715_v39, %v8246_v55  ;;  %vm7523_vm12 = vmand %vm7331_vm15, %vm7427_vm7 }
0x2acf   : > { %v8250_v19 = vpop.f32.mrb[190].mxu1 }
0x2ad0   : > { %v8251_v44 = vadd.f32 %v15511_v8, %v8250_v19  ;;  %11138 = vmatmul.mubr.msk.f32.gmra.mrb[40].mxu1 %vm7516_vm2, %v17836_v58  ;;  %12395 = vmatprep.mubr.msk.bf16.mxu0 %vm17947_vm10, %v8665_v62  ;;  %v8252_v2 = vpop.f32.mrb[191].mxu1  ;;  %v8605_v40 = vmax.f32 %v8541_v13, 0.0  ;;  %vm7426_vm2 = vcmp.lt.s32.totalorder %v7234_v10, 2 }
0x2ad1   : > { %11139 = vmatprep.mubr.msk.f32.mxu1 %vm7519_vm0, %v17836_v58  ;;  %vm17948_vm0 = vmmov %vm17947_vm10 }
0x2ad2   : > { %v8542_v0 = vadd.f32 %v15715_v39, %v8251_v44  ;;  %vm7522_vm6 = vmand %vm7330_vm14, %vm7426_vm2 }
0x2ad3   : > { %v8255_v56 = vpop.f32.mrb[192].mxu1  ;;  %vm17949_vm3 = vmmov %vm17948_vm0 }
0x2ad4   : > { %v8606_v8 = vmax.f32 %v8542_v0, 0.0  ;;  %11140 = vmatmul.mubr.msk.f32.gmra.mrb[42].mxu1 %vm7518_vm13, %v17836_v58  ;;  %v8257_v14 = vpop.f32.mrb[193].mxu1  ;;  %v8256_v31 = vadd.f32 %v8255_v56, %v15539_v63  ;;  %vm17950_vm5 = vmmov %vm17948_vm0 }
0x2ad5   : > { %11141 = vmatprep.mubr.msk.f32.mxu1 %vm7521_vm4, %v17836_v58  ;;  %vm17951_vm9 = vmmov %vm17948_vm0 }
0x2ad6   : > { %v8666_v25 = vpack.c.bf16 %v8606_v8, %v8605_v40  ;;  %v8543_v63 = vadd.f32 %v15715_v39, %v8256_v31  ;;  %vm17952_vm10 = vmmov %vm17948_vm0 }
0x2ad7   : > { %v8260_v24 = vpop.f32.mrb[194].mxu1  ;;  %vm17953_vm13 = vmmov %vm17948_vm0 }
0x2ad8   : > { %11142 = vmatmul.mubr.msk.f32.gmra.mrb[44].mxu1 %vm7520_vm11, %v17836_v58  ;;  %12396 = vmatmul.mubr.msk.bf16.gmra.mrb[232].mxu0 %vm17948_vm0, %v8666_v25  ;;  %v8262_v61 = vpop.f32.mrb[195].mxu1  ;;  %v8261_v42 = vadd.f32 %v8260_v24, %v15550_v53  ;;  %v8607_v36 = vmax.f32 %v8543_v63, 0.0  ;;  %vm17954_vm4 = vmmov %vm17948_vm0 }
0x2ad9   : > { %11143 = vmatprep.mubr.msk.f32.mxu1 %vm7523_vm12, %v17836_v58  ;;  %vm17955_vm1 = vmmov %vm17948_vm0 }
0x2ada   : > { %v8544_v51 = vadd.f32 %v15715_v39, %v8261_v42  ;;  %vm17956_vm8 = vmmov %vm17948_vm0 }
0x2adb   : > { %v8265_v32 = vpop.f32.mrb[196].mxu1  ;;  %vm17957_vm15 = vmmov %vm17948_vm0 }
0x2adc   : > { %11144 = vmatmul.mubr.msk.f32.gmra.mrb[46].mxu1 %vm7522_vm6, %v17836_v58  ;;  %v8266_v21 = vadd.f32 %v15534_v11, %v8265_v32  ;;  %v8608_v55 = vmax.f32 %v8544_v51, 0.0  ;;  %v8267_v9 = vpop.f32.mrb[197].mxu1  ;;  %v15823_v11 = vpop.f32.mrb[208].mxu0  ;;  %vm17958_vm7 = vmmov %vm17948_vm0 }
0x2add   : > { %v15825_v10 = vpop.f32.mrb[209].mxu0  ;;  %vm17959_vm11 = vmmov %vm17948_vm0 }
0x2ade   : > { %v8667_v30 = vpack.c.bf16 %v8608_v55, %v8607_v36  ;;  %v8545_v45 = vadd.f32 %v15715_v39, %v8266_v21  ;;  %v15827_v8 = vpop.f32.mrb[210].mxu0  ;;  %vm17960_vm12 = vmmov %vm17948_vm0 }
0x2adf   : > { %v8270_v62 = vpop.f32.mrb[198].mxu1  ;;  %v15832_v25 = vpop.f32.mrb[211].mxu0  ;;  %vm17961_vm14 = vmmov %vm17948_vm0 }
0x2ae0   : > { %v8271_v53 = vadd.f32 %v15545_v33, %v8270_v62  ;;  %12399 = vmatprep.mubr.msk.bf16.mxu0 %vm17949_vm3, %v8667_v30  ;;  %v8272_v19 = vpop.f32.mrb[199].mxu1  ;;  %v8609_v44 = vmax.f32 %v8545_v45, 0.0  ;;  %vm17962_vm2 = vmmov %vm17948_vm0 }
0x2ae1   : > { %vm17963_vm6 = vmmov %vm17948_vm0 }
0x2ae2   : > { %v8546_v29 = vadd.f32 %v15715_v39, %v8271_v53  ;;  %vm17964_vm3 = vmmov %vm17948_vm0 }
0x2ae3   : > { %v8275_v13 = vpop.f32.mrb[200].mxu1 }
0x2ae4   : > { %v8610_v2 = vmax.f32 %v8546_v29, 0.0  ;;  %v8277_v0 = vpop.f32.mrb[201].mxu1  ;;  %v8276_v58 = vadd.f32 %v8275_v13, %v15571_v5 }
0x2ae6   : > { %v8668_v56 = vpack.c.bf16 %v8610_v2, %v8609_v44  ;;  %v8547_v33 = vadd.f32 %v15715_v39, %v8276_v58 }
0x2ae7   : > { %v8280_v40 = vpop.f32.mrb[202].mxu1 }
0x2ae8   : > { %12400 = vmatmul.mubr.msk.bf16.gmra.mrb[236].mxu0 %vm17950_vm5, %v8668_v56  ;;  %v8282_v14 = vpop.f32.mrb[203].mxu1  ;;  %v8281_v31 = vadd.f32 %v8280_v40, %v15580_v43  ;;  %v8611_v63 = vmax.f32 %v8547_v33, 0.0  ;;  %vm17965_vm5 = vmmov %vm17948_vm0 }
0x2aea   : > { %v8548_v24 = vadd.f32 %v15715_v39, %v8281_v31 }
0x2aeb   : > { %v8285_v5 = vpop.f32.mrb[204].mxu1 }
0x2aec   : > { %v8286_v61 = vadd.f32 %v15568_v27, %v8285_v5  ;;  %v8612_v42 = vmax.f32 %v8548_v24, 0.0  ;;  %v8287_v51 = vpop.f32.mrb[205].mxu1 }
0x2aee   : > { %v8669_v32 = vpack.c.bf16 %v8612_v42, %v8611_v63  ;;  %v8549_v21 = vadd.f32 %v15715_v39, %v8286_v61  ;;  %v15841_v27 = vpop.f32.mrb[212].mxu0 }
0x2aef   : > { %v8290_v36 = vpop.f32.mrb[206].mxu1  ;;  %v15843_v13 = vpop.f32.mrb[213].mxu0 }
0x2af0   : > { %v8291_v55 = vadd.f32 %v15577_v46, %v8290_v36  ;;  %12403 = vmatprep.mubr.msk.bf16.mxu0 %vm17951_vm9, %v8669_v32  ;;  %v8292_v9 = vpop.f32.mrb[207].mxu1  ;;  %v8613_v62 = vmax.f32 %v8549_v21, 0.0  ;;  %v15845_v2 = vpop.f32.mrb[214].mxu0  ;;  %vm17966_vm9 = vmmov %vm17948_vm0 }
0x2af1   : > { %v15850_v56 = vpop.f32.mrb[215].mxu0 }
0x2af2   : > { %v8550_v43 = vadd.f32 %v15715_v39, %v8291_v55 }
0x2af3   : > { %v8295_v30 = vpop.f32.mrb[208].mxu1 }
0x2af4   : > { %v8614_v45 = vmax.f32 %v8550_v43, 0.0  ;;  %v8297_v53 = vpop.f32.mrb[209].mxu1  ;;  %v8296_v19 = vadd.f32 %v8295_v30, %v15599_v18 }
0x2af6   : > { %v8670_v29 = vpack.c.bf16 %v8614_v45, %v8613_v62  ;;  %v8551_v46 = vadd.f32 %v15715_v39, %v8296_v19 }
0x2af7   : > { %v8300_v44 = vpop.f32.mrb[210].mxu1 }
0x2af8   : > { %12404 = vmatmul.mubr.msk.bf16.gmra.mrb[240].mxu0 %vm17952_vm10, %v8670_v29  ;;  %v8302_v0 = vpop.f32.mrb[211].mxu1  ;;  %v8301_v58 = vadd.f32 %v8300_v44, %v15608_v1  ;;  %v8615_v33 = vmax.f32 %v8551_v46, 0.0  ;;  %vm17967_vm10 = vmmov %vm17948_vm0 }
0x2af9   : > { %v15858_v36 = vpop.f32.mrb[216].mxu0 }
0x2afa   : > { %v8552_v40 = vadd.f32 %v15715_v39, %v8301_v58  ;;  %v15861_v43 = vpop.f32.mrb[217].mxu0 }
0x2afb   : > { %v8305_v18 = vpop.f32.mrb[212].mxu1  ;;  %v15863_v45 = vpop.f32.mrb[218].mxu0 }
0x2afc   : > { %v8306_v14 = vadd.f32 %v15596_v37, %v8305_v18  ;;  %v8616_v31 = vmax.f32 %v8552_v40, 0.0  ;;  %v8307_v24 = vpop.f32.mrb[213].mxu1  ;;  %v15868_v29 = vpop.f32.mrb[219].mxu0 }
0x2afe   : > { %v8671_v5 = vpack.c.bf16 %v8616_v31, %v8615_v33  ;;  %v8553_v61 = vadd.f32 %v15715_v39, %v8306_v14 }
0x2aff   : > { %v8310_v63 = vpop.f32.mrb[214].mxu1 }
0x2b00   : > { %v8311_v42 = vadd.f32 %v15605_v50, %v8310_v63  ;;  %12407 = vmatprep.mubr.msk.bf16.mxu0 %vm17953_vm13, %v8671_v5  ;;  %v8312_v51 = vpop.f32.mrb[215].mxu1  ;;  %v8617_v21 = vmax.f32 %v8553_v61, 0.0  ;;  %vm17968_vm13 = vmmov %vm17948_vm0 }
0x2b01   : > { %v15872_v33 = vpop.f32.mrb[220].mxu0 }
0x2b02   : > { %v8554_v1 = vadd.f32 %v15715_v39, %v8311_v42  ;;  %v15874_v31 = vpop.f32.mrb[221].mxu0 }
0x2b03   : > { %v8315_v32 = vpop.f32.mrb[216].mxu1  ;;  %v15879_v63 = vpop.f32.mrb[222].mxu0 }
0x2b04   : > { %v8618_v55 = vmax.f32 %v8554_v1, 0.0  ;;  %v8317_v9 = vpop.f32.mrb[217].mxu1  ;;  %v8316_v37 = vadd.f32 %v8315_v32, %v15627_v49  ;;  %v15881_v61 = vpop.f32.mrb[223].mxu0 }
0x2b06   : > { %v8672_v30 = vpack.c.bf16 %v8618_v55, %v8617_v21  ;;  %v8555_v50 = vadd.f32 %v15715_v39, %v8316_v37 }
0x2b07   : > { %v8320_v62 = vpop.f32.mrb[218].mxu1 }
0x2b08   : > { %12408 = vmatmul.mubr.msk.bf16.gmra.mrb[244].mxu0 %vm17954_vm4, %v8672_v30  ;;  %v8322_v53 = vpop.f32.mrb[219].mxu1  ;;  %v8321_v19 = vadd.f32 %v8320_v62, %v15636_v35  ;;  %v8619_v0 = vmax.f32 %v8555_v50, 0.0  ;;  %vm17969_vm4 = vmmov %vm17948_vm0 }
0x2b09   : > { %v15885_v9 = vpop.f32.mrb[224].mxu0 }
0x2b0a   : > { %v8556_v44 = vadd.f32 %v15715_v39, %v8321_v19 }
0x2b0b   : > { %v8325_v46 = vpop.f32.mrb[220].mxu1 }
0x2b0c   : > { %v8326_v49 = vadd.f32 %v15624_v15, %v8325_v46  ;;  %v8620_v58 = vmax.f32 %v8556_v44, 0.0  ;;  %v8327_v40 = vpop.f32.mrb[221].mxu1 }
0x2b0e   : > { %v8673_v18 = vpack.c.bf16 %v8620_v58, %v8619_v0  ;;  %v8557_v24 = vadd.f32 %v15715_v39, %v8326_v49 }
0x2b0f   : > { %v8330_v14 = vpop.f32.mrb[222].mxu1 }
0x2b10   : > { %v8331_v35 = vadd.f32 %v15633_v16, %v8330_v14  ;;  %12411 = vmatprep.mubr.msk.bf16.mxu0 %vm17955_vm1, %v8673_v18  ;;  %v8332_v5 = vpop.f32.mrb[223].mxu1  ;;  %v8621_v51 = vmax.f32 %v8557_v24, 0.0  ;;  %v15887_v16 = vpop.f32.mrb[225].mxu0  ;;  %vm17970_vm1 = vmmov %vm17948_vm0 }
0x2b11   : > { %v15892_v53 = vpop.f32.mrb[226].mxu0 }
0x2b12   : > { %v8558_v15 = vadd.f32 %v15715_v39, %v8331_v35  ;;  %v15894_v19 = vpop.f32.mrb[227].mxu0 }
0x2b13   : > { %v8335_v42 = vpop.f32.mrb[224].mxu1 }
0x2b14   : > { %v8622_v1 = vmax.f32 %v8558_v15, 0.0  ;;  %v8337_v32 = vpop.f32.mrb[225].mxu1  ;;  %v8336_v21 = vadd.f32 %v8335_v42, %v15655_v6 }
0x2b16   : > { %v8674_v55 = vpack.c.bf16 %v8622_v1, %v8621_v51  ;;  %v8559_v30 = vadd.f32 %v15715_v39, %v8336_v21 }
0x2b17   : > { %v8340_v37 = vpop.f32.mrb[226].mxu1 }
0x2b18   : > { %12412 = vmatmul.mubr.msk.bf16.gmra.mrb[248].mxu0 %vm17956_vm8, %v8674_v55  ;;  %v8342_v62 = vpop.f32.mrb[227].mxu1  ;;  %v8341_v50 = vadd.f32 %v8340_v37, %v15664_v48  ;;  %v8623_v46 = vmax.f32 %v8559_v30, 0.0  ;;  %vm17971_vm8 = vmmov %vm17948_vm0 }
0x2b1a   : > { %v8560_v44 = vadd.f32 %v15715_v39, %v8341_v50 }
0x2b1b   : > { %v8345_v6 = vpop.f32.mrb[228].mxu1 }
0x2b1c   : > { %v8346_v0 = vadd.f32 %v15652_v23, %v8345_v6  ;;  %v8624_v49 = vmax.f32 %v8560_v44, 0.0  ;;  %v8347_v58 = vpop.f32.mrb[229].mxu1 }
0x2b1e   : > { %v8675_v40 = vpack.c.bf16 %v8624_v49, %v8623_v46  ;;  %v8561_v14 = vadd.f32 %v15715_v39, %v8346_v0 }
0x2b1f   : > { %v8350_v18 = vpop.f32.mrb[230].mxu1 }
0x2b20   : > { %v8351_v24 = vadd.f32 %v15661_v20, %v8350_v18  ;;  %12415 = vmatprep.mubr.msk.bf16.mxu0 %vm17957_vm15, %v8675_v40  ;;  %v8352_v48 = vpop.f32.mrb[231].mxu1  ;;  %v8625_v15 = vmax.f32 %v8561_v14, 0.0  ;;  %vm9097_vm15 = vcmp.lt.s32.totalorder %v14163_v3, 2 }
0x2b22   : > { %v8562_v35 = vadd.f32 %v15715_v39, %v8351_v24 }
0x2b23   : > { %v8355_v5 = vpop.f32.mrb[232].mxu1 }
0x2b24   : > { %v8626_v42 = vmax.f32 %v8562_v35, 0.0  ;;  %v8357_v51 = vpop.f32.mrb[233].mxu1  ;;  %v8356_v1 = vadd.f32 %v8355_v5, %v15683_v54 }
0x2b26   : > { %v8676_v23 = vpack.c.bf16 %v8626_v42, %v8625_v15  ;;  %v8563_v21 = vadd.f32 %v15715_v39, %v8356_v1 }
0x2b27   : > { %v8360_v32 = vpop.f32.mrb[234].mxu1 }
0x2b28   : > { %12416 = vmatmul.mubr.msk.bf16.gmra.mrb[252].mxu0 %vm17958_vm7, %v8676_v23  ;;  %v8362_v55 = vpop.f32.mrb[235].mxu1  ;;  %v8361_v20 = vadd.f32 %v8360_v32, %v15692_v57  ;;  %v8627_v62 = vmax.f32 %v8563_v21, 0.0  ;;  %vm17972_vm7 = vcmask 64512  }
0x2b2a   : > { %v8564_v37 = vadd.f32 %v15715_v39, %v8361_v20 }
0x2b2b   : > { %v8365_v30 = vpop.f32.mrb[236].mxu1 }
0x2b2c   : > { %v8366_v50 = vadd.f32 %v15680_v60, %v8365_v30  ;;  %v8628_v44 = vmax.f32 %v8564_v37, 0.0  ;;  %v8367_v6 = vpop.f32.mrb[237].mxu1 }
0x2b2e   : > { %v8677_v46 = vpack.c.bf16 %v8628_v44, %v8627_v62  ;;  %v8565_v54 = vadd.f32 %v15715_v39, %v8366_v50 }
0x2b2f   : > { %v8370_v0 = vpop.f32.mrb[238].mxu1 }
0x2b30   : > { %v8371_v49 = vadd.f32 %v15689_v22, %v8370_v0  ;;  %12419 = vmatprep.mubr.msk.bf16.mxu0 %vm17959_vm11, %v8677_v46  ;;  %v8372_v58 = vpop.f32.mrb[239].mxu1  ;;  %v8629_v18 = vmax.f32 %v8565_v54, 0.0  ;;  %vm17973_vm11 = vmmov %vm17948_vm0 }
0x2b32   : > { %v8566_v40 = vadd.f32 %v15715_v39, %v8371_v49 }
0x2b33   : > { %v8375_v57 = vpop.f32.mrb[240].mxu1 }
0x2b34   : > { %v8630_v14 = vmax.f32 %v8566_v40, 0.0  ;;  %v8377_v24 = vpop.f32.mrb[241].mxu1  ;;  %v8376_v48 = vadd.f32 %v8375_v57, %v15712_v52 }
0x2b36   : > { %v8678_v60 = vpack.c.bf16 %v8630_v14, %v8629_v18  ;;  %v8567_v5 = vadd.f32 %v15715_v39, %v8376_v48 }
0x2b37   : > { %v8380_v35 = vpop.f32.mrb[242].mxu1 }
0x2b38   : > { %12420 = vmatmul.mubr.msk.bf16.gmra.mrb[0].mxu0 %vm17960_vm12, %v8678_v60  ;;  %v8382_v15 = vpop.f32.mrb[243].mxu1  ;;  %v8381_v22 = vadd.f32 %v8380_v35, %v15725_v12  ;;  %v8631_v1 = vmax.f32 %v8567_v5, 0.0  ;;  %vm17974_vm12 = vmmov %vm17972_vm7 }
0x2b3a   : > { %v8568_v42 = vadd.f32 %v15715_v39, %v8381_v22 }
0x2b3b   : > { %v8385_v51 = vpop.f32.mrb[244].mxu1 }
0x2b3c   : > { %v8386_v23 = vadd.f32 %v15708_v17, %v8385_v51  ;;  %v8632_v32 = vmax.f32 %v8568_v42, 0.0  ;;  %v8387_v21 = vpop.f32.mrb[245].mxu1 }
0x2b3e   : > { %v8679_v55 = vpack.c.bf16 %v8632_v32, %v8631_v1  ;;  %v8569_v52 = vadd.f32 %v15715_v39, %v8386_v23 }
0x2b3f   : > { %v8390_v20 = vpop.f32.mrb[246].mxu1 }
0x2b40   : > { %v8391_v37 = vadd.f32 %v15720_v41, %v8390_v20  ;;  %12423 = vmatprep.mubr.msk.bf16.mxu0 %vm17961_vm14, %v8679_v55  ;;  %v8392_v30 = vpop.f32.mrb[247].mxu1  ;;  %v8633_v50 = vmax.f32 %v8569_v52, 0.0  ;;  %vm17975_vm14 = vmmov %vm17972_vm7 }
0x2b42   : > { %v8570_v62 = vadd.f32 %v15715_v39, %v8391_v37 }
0x2b43   : > { %v8395_v12 = vpop.f32.mrb[248].mxu1 }
0x2b44   : > { %v8634_v44 = vmax.f32 %v8570_v62, 0.0  ;;  %v8397_v6 = vpop.f32.mrb[249].mxu1  ;;  %v8396_v46 = vadd.f32 %v8395_v12, %v15756_v7 }
0x2b46   : > { %v8680_v17 = vpack.c.bf16 %v8634_v44, %v8633_v50  ;;  %v8571_v54 = vadd.f32 %v15715_v39, %v8396_v46 }
0x2b47   : > { %v8400_v0 = vpop.f32.mrb[250].mxu1 }
0x2b48   : > { %12424 = vmatmul.mubr.msk.bf16.gmra.mrb[4].mxu0 %vm17962_vm2, %v8680_v17  ;;  %v8402_v49 = vpop.f32.mrb[251].mxu1  ;;  %v8401_v41 = vadd.f32 %v8400_v0, %v15776_v28  ;;  %v8635_v57 = vmax.f32 %v8571_v54, 0.0  ;;  %vm17976_vm2 = vmmov %vm17972_vm7 }
0x2b4a   : > { %v8572_v58 = vadd.f32 %v15715_v39, %v8401_v41 }
0x2b4b   : > { %v8405_v40 = vpop.f32.mrb[252].mxu1 }
0x2b4c   : > { %v8406_v18 = vadd.f32 %v15752_v59, %v8405_v40  ;;  %v8636_v14 = vmax.f32 %v8572_v58, 0.0  ;;  %v8407_v24 = vpop.f32.mrb[253].mxu1 }
0x2b4e   : > { %v8681_v48 = vpack.c.bf16 %v8636_v14, %v8635_v57  ;;  %v8573_v7 = vadd.f32 %v15715_v39, %v8406_v18 }
0x2b4f   : > { %v8410_v60 = vpop.f32.mrb[254].mxu1 }
0x2b50   : > { %v8411_v35 = vadd.f32 %v15770_v47, %v8410_v60  ;;  %12427 = vmatprep.mubr.msk.bf16.mxu0 %vm17948_vm0, %v8681_v48  ;;  %v8412_v5 = vpop.f32.mrb[255].mxu1  ;;  %v8637_v22 = vmax.f32 %v8573_v7, 0.0 }
0x2b52   : > { %v8574_v15 = vadd.f32 %v15715_v39, %v8411_v35 }
0x2b53   : > { %v8415_v28 = vpop.f32.mrb[0].mxu1 }
0x2b54   : > { %v8638_v42 = vmax.f32 %v8574_v15, 0.0  ;;  %v8417_v51 = vpop.f32.mrb[1].mxu1  ;;  %v8416_v1 = vadd.f32 %v8415_v28, %v15804_v38 }
0x2b56   : > { %v8682_v59 = vpack.c.bf16 %v8638_v42, %v8637_v22  ;;  %v8575_v32 = vadd.f32 %v15715_v39, %v8416_v1 }
0x2b57   : > { %v8420_v23 = vpop.f32.mrb[2].mxu1 }
0x2b58   : > { %12428 = vmatmul.mubr.msk.bf16.gmra.mrb[8].mxu0 %vm17963_vm6, %v8682_v59  ;;  %v8422_v21 = vpop.f32.mrb[3].mxu1  ;;  %v8421_v47 = vadd.f32 %v8420_v23, %v15812_v26  ;;  %v8639_v52 = vmax.f32 %v8575_v32, 0.0  ;;  %vm17980_vm6 = vmmov %vm17976_vm2 }
0x2b5a   : > { %v8576_v55 = vadd.f32 %v15715_v39, %v8421_v47 }
0x2b5b   : > { %v8425_v20 = vpop.f32.mrb[4].mxu1 }
0x2b5c   : > { %v8426_v37 = vadd.f32 %v15801_v34, %v8425_v20  ;;  %v8640_v30 = vmax.f32 %v8576_v55, 0.0  ;;  %v8427_v62 = vpop.f32.mrb[5].mxu1 }
0x2b5e   : > { %v8683_v12 = vpack.c.bf16 %v8640_v30, %v8639_v52  ;;  %v8577_v38 = vadd.f32 %v15715_v39, %v8426_v37 }
0x2b5f   : > { %v8430_v50 = vpop.f32.mrb[6].mxu1 }
0x2b60   : > { %v8431_v44 = vadd.f32 %v15806_v4, %v8430_v50  ;;  %12431 = vmatprep.mubr.msk.bf16.mxu0 %vm17964_vm3, %v8683_v12  ;;  %v8432_v6 = vpop.f32.mrb[7].mxu1  ;;  %v8641_v17 = vmax.f32 %v8577_v38, 0.0  ;;  %vm17982_vm3 = vmmov %vm17948_vm0 }
0x2b62   : > { %v8578_v46 = vadd.f32 %v15715_v39, %v8431_v44 }
0x2b63   : > { %v8435_v26 = vpop.f32.mrb[8].mxu1 }
0x2b64   : > { %v8642_v0 = vmax.f32 %v8578_v46, 0.0  ;;  %v8437_v54 = vpop.f32.mrb[9].mxu1  ;;  %v8436_v49 = vadd.f32 %v8435_v26, %v15825_v10 }
0x2b66   : > { %v8684_v34 = vpack.c.bf16 %v8642_v0, %v8641_v17  ;;  %v8579_v58 = vadd.f32 %v15715_v39, %v8436_v49 }
0x2b67   : > { %v8440_v41 = vpop.f32.mrb[10].mxu1 }
0x2b68   : > { %12432 = vmatmul.mubr.msk.bf16.gmra.mrb[12].mxu0 %vm17965_vm5, %v8684_v34  ;;  %v8442_v40 = vpop.f32.mrb[11].mxu1  ;;  %v8441_v4 = vadd.f32 %v8440_v41, %v15832_v25  ;;  %v8643_v14 = vmax.f32 %v8579_v58, 0.0  ;;  %vm17983_vm5 = vmmov %vm17976_vm2 }
0x2b6a   : > { %v8580_v57 = vadd.f32 %v15715_v39, %v8441_v4 }
0x2b6b   : > { %v8445_v18 = vpop.f32.mrb[12].mxu1 }
0x2b6c   : > { %v8446_v24 = vadd.f32 %v15823_v11, %v8445_v18  ;;  %v8644_v48 = vmax.f32 %v8580_v57, 0.0  ;;  %v8447_v60 = vpop.f32.mrb[13].mxu1 }
0x2b6e   : > { %v8685_v7 = vpack.c.bf16 %v8644_v48, %v8643_v14  ;;  %v8581_v10 = vadd.f32 %v15715_v39, %v8446_v24 }
0x2b6f   : > { %v8450_v35 = vpop.f32.mrb[14].mxu1 }
0x2b70   : > { %v8451_v5 = vadd.f32 %v15827_v8, %v8450_v35  ;;  %12435 = vmatprep.mubr.msk.bf16.mxu0 %vm17966_vm9, %v8685_v7  ;;  %v8452_v15 = vpop.f32.mrb[15].mxu1  ;;  %v8645_v22 = vmax.f32 %v8581_v10, 0.0  ;;  %vm17984_vm9 = vmmov %vm17976_vm2 }
0x2b72   : > { %v8582_v28 = vadd.f32 %v15715_v39, %v8451_v5 }
0x2b73   : > { %v8455_v25 = vpop.f32.mrb[16].mxu1 }
0x2b74   : > { %v8646_v42 = vmax.f32 %v8582_v28, 0.0  ;;  %v8457_v51 = vpop.f32.mrb[17].mxu1  ;;  %v8456_v1 = vadd.f32 %v8455_v25, %v15843_v13  ;;  %v15976_v25 = vld [vmem:[#allocation10 + $0x42] ss:$0 sm:$0xff] }
0x2b76   : > { %v8686_v11 = vpack.c.bf16 %v8646_v42, %v8645_v22  ;;  %v8583_v23 = vadd.f32 %v15715_v39, %v8456_v1 }
0x2b77   : > { %v8460_v59 = vpop.f32.mrb[18].mxu1 }
0x2b78   : > { %12436 = vmatmul.mubr.msk.bf16.gmra.mrb[16].mxu0 %vm17967_vm10, %v8686_v11  ;;  %v8462_v32 = vpop.f32.mrb[19].mxu1  ;;  %v8461_v8 = vadd.f32 %v8460_v59, %v15850_v56  ;;  %v8647_v55 = vmax.f32 %v8583_v23, 0.0  ;;  %vm17985_vm10 = vmmov %vm17976_vm2 }
0x2b7a   : > { %v8584_v21 = vadd.f32 %v15715_v39, %v8461_v8 }
0x2b7b   : > { %v8465_v47 = vpop.f32.mrb[20].mxu1 }
0x2b7c   : > { %v8466_v20 = vadd.f32 %v15841_v27, %v8465_v47  ;;  %v8648_v52 = vmax.f32 %v8584_v21, 0.0  ;;  %v8467_v37 = vpop.f32.mrb[21].mxu1 }
0x2b7e   : > { %v8687_v30 = vpack.c.bf16 %v8648_v52, %v8647_v55  ;;  %v8585_v13 = vadd.f32 %v15715_v39, %v8466_v20 }
0x2b7f   : > { %v8470_v62 = vpop.f32.mrb[22].mxu1 }
0x2b80   : > { %v8471_v12 = vadd.f32 %v15845_v2, %v8470_v62  ;;  %12439 = vmatprep.mubr.msk.bf16.mxu0 %vm17968_vm13, %v8687_v30  ;;  %v8472_v50 = vpop.f32.mrb[23].mxu1  ;;  %v8649_v44 = vmax.f32 %v8585_v13, 0.0  ;;  %vm17986_vm13 = vmmov %vm17948_vm0 }
0x2b82   : > { %v8586_v38 = vadd.f32 %v15715_v39, %v8471_v12 }
0x2b83   : > { %v8475_v56 = vpop.f32.mrb[24].mxu1 }
0x2b84   : > { %v8650_v6 = vmax.f32 %v8586_v38, 0.0  ;;  %v8477_v46 = vpop.f32.mrb[25].mxu1  ;;  %v8476_v26 = vadd.f32 %v8475_v56, %v15861_v43 }
0x2b86   : > { %v8688_v27 = vpack.c.bf16 %v8650_v6, %v8649_v44  ;;  %v8587_v0 = vadd.f32 %v15715_v39, %v8476_v26 }
0x2b87   : > { %v8480_v17 = vpop.f32.mrb[26].mxu1 }
0x2b88   : > { %12440 = vmatmul.mubr.msk.bf16.gmra.mrb[20].mxu0 %vm17969_vm4, %v8688_v27  ;;  %v8482_v54 = vpop.f32.mrb[27].mxu1  ;;  %v8481_v2 = vadd.f32 %v8480_v17, %v15868_v29  ;;  %v8651_v41 = vmax.f32 %v8587_v0, 0.0  ;;  %vm17990_vm4 = vmmov %vm17976_vm2 }
0x2b8a   : > { %v8588_v49 = vadd.f32 %v15715_v39, %v8481_v2 }
0x2b8b   : > { %v8485_v34 = vpop.f32.mrb[28].mxu1 }
0x2b8c   : > { %v8486_v58 = vadd.f32 %v15858_v36, %v8485_v34  ;;  %v8652_v40 = vmax.f32 %v8588_v49, 0.0  ;;  %v8487_v4 = vpop.f32.mrb[29].mxu1 }
0x2b8e   : > { %v8689_v57 = vpack.c.bf16 %v8652_v40, %v8651_v41  ;;  %v8589_v43 = vadd.f32 %v15715_v39, %v8486_v58 }
0x2b8f   : > { %v8490_v18 = vpop.f32.mrb[30].mxu1 }
0x2b90   : > { %v8491_v14 = vadd.f32 %v15863_v45, %v8490_v18  ;;  %v8492_v24 = vpop.f32.mrb[31].mxu1  ;;  %12443 = vmatprep.mubr.msk.bf16.mxu0 %vm17970_vm1, %v8689_v57  ;;  %v8653_v60 = vmax.f32 %v8589_v43, 0.0  ;;  %vm17992_vm1 = vmmov %vm17976_vm2 }
0x2b92   : > { %v8590_v48 = vadd.f32 %v15715_v39, %v8491_v14 }
0x2b93   : > { %v8495_v29 = vpop.f32.mrb[32].mxu1 }
0x2b94   : > { %v8654_v7 = vmax.f32 %v8590_v48, 0.0  ;;  %v8496_v35 = vadd.f32 %v8495_v29, %v15874_v31  ;;  %v8497_v10 = vpop.f32.mrb[33].mxu1 }
0x2b96   : > { %v8690_v36 = vpack.c.bf16 %v8654_v7, %v8653_v60  ;;  %v8591_v15 = vadd.f32 %v15715_v39, %v8496_v35 }
0x2b97   : > { %v8500_v5 = vpop.f32.mrb[34].mxu1 }
0x2b98   : > { %v8501_v28 = vadd.f32 %v8500_v5, %v15881_v61  ;;  %12444 = vmatmul.mubr.msk.bf16.gmra.mrb[24].mxu0 %vm17971_vm8, %v8690_v36  ;;  %v8502_v45 = vpop.f32.mrb[35].mxu1  ;;  %v8655_v1 = vmax.f32 %v8591_v15, 0.0  ;;  %v13368_v36 = vld [vmem:[#allocation10 + $0x41] ss:$0 sm:$0xff]  ;;  %vm17993_vm8 = vmmov %vm17992_vm1 }
0x2b9a   : > { %v8592_v22 = vadd.f32 %v15715_v39, %v8501_v28 }
0x2b9b   : > { %v12393_v42 = vpop.f32.mrb[228].mxu0  ;;  %v8505_v51 = vpop.f32.mrb[36].mxu1 }
0x2b9c   : > { %v8656_v31 = vmax.f32 %v8592_v22, 0.0  ;;  %v15981_v11 = vadd.f32 %v12393_v42, %v15976_v25  ;;  %v8842_v59 = vpop.f32.mrb[229].mxu0  ;;  %v8506_v23 = vadd.f32 %v15872_v33, %v8505_v51  ;;  %v8507_v61 = vpop.f32.mrb[37].mxu1 }
0x2b9d   : > { %v15985_v32 = vadd.f32 %v8842_v59, %v15976_v25  ;;  %v12394_v8 = vpop.f32.mrb[230].mxu0 }
0x2b9e   : > { %v8691_v21 = vpack.c.bf16 %v8656_v31, %v8655_v1  ;;  %v15988_v47 = vadd.f32 %v12394_v8, %v15976_v25  ;;  %v9100_v55 = vsel %vm9097_vm15, %v15981_v11, -1e+30  ;;  %v8845_v20 = vpop.f32.mrb[231].mxu0  ;;  %v8593_v33 = vadd.f32 %v15715_v39, %v8506_v23 }
0x2b9f   : > { %v8510_v52 = vpop.f32.mrb[38].mxu1  ;;  %v9168_v37 = vsel %vm17972_vm7, %v9100_v55, -inf  ;;  %v15995_v30 = vadd.f32 %v8845_v20, %v15976_v25  ;;  %v9098_v12 = vsel %vm9097_vm15, %v15985_v32, -1e+30  ;;  %vm17994_vm7 = vmmov %vm17992_vm1 }
0x2ba0   : > { %v8511_v62 = vadd.f32 %v15879_v63, %v8510_v52  ;;  %9169 = vmax.xlane.f32.xlu0 %v9168_v37  ;;  %v9101_v13 = vsel %vm9097_vm15, %v15988_v47, -1e+30  ;;  %v8512_v50 = vpop.f32.mrb[39].mxu1  ;;  %12447 = vmatprep.mubr.msk.bf16.mxu0 %vm17973_vm11, %v8691_v21  ;;  %v9162_v44 = vsel %vm17975_vm14, %v9098_v12, -inf  ;;  %v8657_v46 = vmax.f32 %v8593_v33, 0.0  ;;  %vm17998_vm11 = vmmov %vm17992_vm1 }
0x2ba1   : > { %v9171_v38 = vsel %vm17974_vm12, %v9101_v13, -inf  ;;  %v9099_v63 = vsel %vm9097_vm15, %v15995_v30, -1e+30  ;;  %vm18000_vm12 = vmmov %vm17992_vm1 }
0x2ba2   : > { %v8594_v56 = vadd.f32 %v15715_v39, %v8511_v62  ;;  %9172 = vmax.xlane.f32.xlu1 %v9171_v38  ;;  %v9165_v0 = vsel %vm17976_vm2, %v9099_v63, -inf  ;;  %vm18001_vm14 = vmmov %vm17992_vm1 }
0x2ba3   : > { %v8515_v6 = vpop.f32.mrb[40].mxu1  ;;  %vm18002_vm2 = vmmov %vm17992_vm1 }
0x2ba4   : > { %v8658_v26 = vmax.f32 %v8594_v56, 0.0  ;;  %9163 = vmax.xlane.f32.xlu0 %v9162_v44  ;;  %v8516_v27 = vadd.f32 %v8515_v6, %v15887_v16  ;;  %v8517_v17 = vpop.f32.mrb[41].mxu1 }
0x2ba6   : > { %v8692_v54 = vpack.c.bf16 %v8658_v26, %v8657_v46  ;;  %9166 = vmax.xlane.f32.xlu1 %v9165_v0  ;;  %v8595_v49 = vadd.f32 %v15715_v39, %v8516_v27 }
0x2ba7   : > { %v8520_v2 = vpop.f32.mrb[42].mxu1 }
0x2ba8   : > { %12448 = vmatmul.mubr.msk.bf16.gmra.mrb[28].mxu0 %vm17948_vm0, %v8692_v54  ;;  %v8521_v34 = vadd.f32 %v8520_v2, %v15894_v19  ;;  %v8522_v41 = vpop.f32.mrb[43].mxu1  ;;  %v8659_v57 = vmax.f32 %v8595_v49, 0.0  ;;  %vm18006_vm0 = vmmov %vm17992_vm1 }
0x2baa   : > { %v8596_v58 = vadd.f32 %v15715_v39, %v8521_v34 }
0x2bab   : > { %v8525_v40 = vpop.f32.mrb[44].mxu1  ;;  %v12397_v4 = vpop.f32.mrb[232].mxu0 }
0x2bac   : > { %v8660_v18 = vmax.f32 %v8596_v58, 0.0  ;;  %v8526_v16 = vadd.f32 %v15885_v9, %v8525_v40  ;;  %v16020_v43 = vadd.f32 %v12397_v4, %v15976_v25  ;;  %v8858_v14 = vpop.f32.mrb[233].mxu0  ;;  %v8527_v24 = vpop.f32.mrb[45].mxu1 }
0x2bad   : > { %v16023_v48 = vadd.f32 %v8858_v14, %v15976_v25  ;;  %v12398_v29 = vpop.f32.mrb[234].mxu0 }
0x2bae   : > { %17977 = vst [vmem:[#allocation21_spill] sm:$0xff] %v16020_v43  ;;  %v8693_v60 = vpack.c.bf16 %v8660_v18, %v8659_v57  ;;  %v16026_v19 = vadd.f32 %v12398_v29, %v15976_v25  ;;  %v9104_v39 = vsel %vm9097_vm15, %v16020_v43, -1e+30  ;;  %v8861_v7 = vpop.f32.mrb[235].mxu0  ;;  %v8597_v5 = vadd.f32 %v13368_v36, %v8526_v16 }
0x2baf   : > { %17978 = vst [vmem:[#allocation32_spill] sm:$0xff] %v16023_v48  ;;  %v8530_v35 = vpop.f32.mrb[46].mxu1  ;;  %v9180_v9 = vsel %vm17980_vm6, %v9104_v39, -inf  ;;  %v16033_v10 = vadd.f32 %v8861_v7, %v15976_v25  ;;  %v9102_v45 = vsel %vm9097_vm15, %v16023_v48, -1e+30  ;;  %vm18008_vm6 = vmmov %vm18006_vm0 }
0x2bb0   : > { %17979 = vst [vmem:[#allocation22_spill] sm:$0xff] %v16026_v19  ;;  %v8531_v15 = vadd.f32 %v15892_v53, %v8530_v35  ;;  %9181 = vmax.xlane.f32.xlu0 %v9180_v9  ;;  %12451 = vmatprep.mubr.msk.bf16.mxu0 %vm17982_vm3, %v8693_v60  ;;  %v9105_v28 = vsel %vm9097_vm15, %v16026_v19, -1e+30  ;;  %v8532_v22 = vpop.f32.mrb[47].mxu1  ;;  %v9174_v1 = vsel %vm17984_vm9, %v9102_v45, -inf  ;;  %v8661_v31 = vmax.f32 %v8597_v5, 0.0  ;;  %vm18009_vm3 = vmmov %vm18006_vm0 }
0x2bb1   : > { %17981 = vst [vmem:[#allocation34_spill] sm:$0xff] %v16033_v10  ;;  %v9183_v42 = vsel %vm17983_vm5, %v9105_v28, -inf  ;;  %v9103_v53 = vsel %vm9097_vm15, %v16033_v10, -1e+30  ;;  %vm18010_vm5 = vmmov %vm18006_vm0 }
0x2bb2   : > { %v8598_v51 = vadd.f32 %v13368_v36, %v8531_v15  ;;  %9184 = vmax.xlane.f32.xlu1 %v9183_v42  ;;  %v9177_v23 = vsel %vm17985_vm10, %v9103_v53, -inf  ;;  %vm18014_vm9 = vmmov %vm18006_vm0 }
0x2bb3   : > { %vm18016_vm10 = vmmov %vm18006_vm0 }
0x2bb4   : > { %v8662_v59 = vmax.f32 %v8598_v51, 0.0  ;;  %9175 = vmax.xlane.f32.xlu0 %v9174_v1 }
0x2bb6   : > { %v8694_v61 = vpack.c.bf16 %v8662_v59, %v8661_v31  ;;  %9178 = vmax.xlane.f32.xlu1 %v9177_v23 }
0x2bb8   : > { %12452 = vmatmul.mubr.msk.bf16.gmra.mrb[32].mxu0 %vm17986_vm13, %v8694_v61  ;;  %vm18017_vm13 = vmmov %vm18006_vm0 }
0x2bbb   : > { %v12401_v8 = vpop.f32.mrb[236].mxu0 }
0x2bbc   : > { %v16051_v21 = vadd.f32 %v12401_v8, %v15976_v25  ;;  %v8874_v55 = vpop.f32.mrb[237].mxu0 }
0x2bbd   : > { %v16054_v20 = vadd.f32 %v8874_v55, %v15976_v25  ;;  %v12402_v52 = vpop.f32.mrb[238].mxu0 }
0x2bbe   : > { %17987 = vst [vmem:[#allocation23_spill] sm:$0xff] %v16051_v21  ;;  %v16057_v37 = vadd.f32 %v12402_v52, %v15976_v25  ;;  %v9108_v33 = vsel %vm9097_vm15, %v16051_v21, -1e+30  ;;  %v8877_v62 = vpop.f32.mrb[239].mxu0 }
0x2bbf   : > { %17988 = vst [vmem:[#allocation35_spill] sm:$0xff] %v16054_v20  ;;  %v9192_v13 = vsel %vm17990_vm4, %v9108_v33, -inf  ;;  %v16064_v12 = vadd.f32 %v8877_v62, %v15976_v25  ;;  %v9106_v38 = vsel %vm9097_vm15, %v16054_v20, -1e+30  ;;  %vm18018_vm4 = vmmov %vm18006_vm0 }
0x2bc0   : > { %17989 = vst [vmem:[#allocation24_spill] sm:$0xff] %v16057_v37  ;;  %9193 = vmax.xlane.f32.xlu0 %v9192_v13  ;;  %v9109_v50 = vsel %vm9097_vm15, %v16057_v37, -1e+30  ;;  %v9186_v44 = vsel %vm17993_vm8, %v9106_v38, -inf  ;;  %vm18023_vm8 = vmmov %vm18006_vm0 }
0x2bc1   : > { %17991 = vst [vmem:[#allocation36_spill] sm:$0xff] %v16064_v12  ;;  %v9195_v56 = vsel %vm17992_vm1, %v9109_v50, -inf  ;;  %v9107_v63 = vsel %vm9097_vm15, %v16064_v12, -1e+30  ;;  %vm18022_vm1 = vmmov %vm18006_vm0 }
0x2bc2   : > { %9196 = vmax.xlane.f32.xlu1 %v9195_v56  ;;  %v9189_v6 = vsel %vm17994_vm7, %v9107_v63, -inf  ;;  %vm18024_vm7 = vmmov %vm18006_vm0 }
0x2bc4   : > { %9187 = vmax.xlane.f32.xlu0 %v9186_v44 }
0x2bc6   : > { %9190 = vmax.xlane.f32.xlu1 %v9189_v6 }
0x2bcb   : > { %v12405_v46 = vpop.f32.mrb[240].mxu0 }
0x2bcc   : > { %v16079_v26 = vadd.f32 %v12405_v46, %v15976_v25  ;;  %v8890_v27 = vpop.f32.mrb[241].mxu0 }
0x2bcd   : > { %v16082_v17 = vadd.f32 %v8890_v27, %v15976_v25  ;;  %v12406_v0 = vpop.f32.mrb[242].mxu0 }
0x2bce   : > { %17995 = vst [vmem:[#allocation37_spill] sm:$0xff] %v16079_v26  ;;  %v16085_v54 = vadd.f32 %v12406_v0, %v15976_v25  ;;  %v9112_v2 = vsel %vm9097_vm15, %v16079_v26, -1e+30  ;;  %v8893_v49 = vpop.f32.mrb[243].mxu0 }
0x2bcf   : > { %17996 = vst [vmem:[#allocation25_spill] sm:$0xff] %v16082_v17  ;;  %v9204_v34 = vsel %vm17998_vm11, %v9112_v2, -inf  ;;  %v16092_v41 = vadd.f32 %v8893_v49, %v15976_v25  ;;  %v9110_v40 = vsel %vm9097_vm15, %v16082_v17, -1e+30  ;;  %vm18025_vm11 = vmmov %vm18006_vm0 }
0x2bd0   : > { %17997 = vst [vmem:[#allocation38_spill] sm:$0xff] %v16085_v54  ;;  %9205 = vmax.xlane.f32.xlu0 %v9204_v34  ;;  %v9113_v58 = vsel %vm9097_vm15, %v16085_v54, -1e+30  ;;  %v9198_v18 = vsel %vm18001_vm14, %v9110_v40, -inf  ;;  %vm18029_vm14 = vmmov %vm18006_vm0 }
0x2bd1   : > { %17999 = vst [vmem:[#allocation27_spill] sm:$0xff] %v16092_v41  ;;  %v9207_v4 = vsel %vm18000_vm12, %v9113_v58, -inf  ;;  %v9111_v57 = vsel %vm9097_vm15, %v16092_v41, -1e+30  ;;  %vm18028_vm12 = vmmov %vm18006_vm0 }
0x2bd2   : > { %9208 = vmax.xlane.f32.xlu1 %v9207_v4  ;;  %v9201_v16 = vsel %vm18002_vm2, %v9111_v57, -inf  ;;  %vm18030_vm2 = vmmov %vm18006_vm0 }
0x2bd4   : > { %9199 = vmax.xlane.f32.xlu0 %v9198_v18 }
0x2bd6   : > { %9202 = vmax.xlane.f32.xlu1 %v9201_v16 }
0x2bdb   : > { %v12409_v14 = vpop.f32.mrb[244].mxu0 }
0x2bdc   : > { %v16107_v24 = vadd.f32 %v12409_v14, %v15976_v25  ;;  %v8906_v29 = vpop.f32.mrb[245].mxu0 }
0x2bdd   : > { %v16110_v60 = vadd.f32 %v8906_v29, %v15976_v25  ;;  %v12410_v39 = vpop.f32.mrb[246].mxu0 }
0x2bde   : > { %18003 = vst [vmem:[#allocation39_spill] sm:$0xff] %v16107_v24  ;;  %v16113_v7 = vadd.f32 %v12410_v39, %v15976_v25  ;;  %v9116_v35 = vsel %vm9097_vm15, %v16107_v24, -1e+30  ;;  %v8909_v9 = vpop.f32.mrb[247].mxu0 }
0x2bdf   : > { %18004 = vst [vmem:[#allocation28_spill] sm:$0xff] %v16110_v60  ;;  %v9216_v36 = vsel %vm18006_vm0, %v9116_v35, -inf  ;;  %v16120_v5 = vadd.f32 %v8909_v9, %v15976_v25  ;;  %v9114_v28 = vsel %vm9097_vm15, %v16110_v60, -1e+30 }
0x2be0   : > { %18005 = vst [vmem:[#allocation40_spill] sm:$0xff] %v16113_v7  ;;  %9217 = vmax.xlane.f32.xlu0 %v9216_v36  ;;  %v9117_v15 = vsel %vm9097_vm15, %v16113_v7, -1e+30  ;;  %v9210_v42 = vsel %vm18009_vm3, %v9114_v28, -inf  ;;  %vm18034_vm3 = vmmov %vm18006_vm0 }
0x2be1   : > { %18007 = vst [vmem:[#allocation29_spill] sm:$0xff] %v16120_v5  ;;  %v9219_v45 = vsel %vm18008_vm6, %v9117_v15, -inf  ;;  %v9115_v22 = vsel %vm9097_vm15, %v16120_v5, -1e+30  ;;  %vm18033_vm6 = vmmov %vm18006_vm0 }
0x2be2   : > { %9220 = vmax.xlane.f32.xlu1 %v9219_v45  ;;  %v9213_v51 = vsel %vm18010_vm5, %v9115_v22, -inf  ;;  %vm18035_vm5 = vmmov %vm18006_vm0 }
0x2be4   : > { %9211 = vmax.xlane.f32.xlu0 %v9210_v42 }
0x2be6   : > { %9214 = vmax.xlane.f32.xlu1 %v9213_v51 }
0x2beb   : > { %v12413_v53 = vpop.f32.mrb[248].mxu0 }
0x2bec   : > { %v16135_v1 = vadd.f32 %v12413_v53, %v15976_v25  ;;  %v8922_v31 = vpop.f32.mrb[249].mxu0 }
0x2bed   : > { %v16138_v59 = vadd.f32 %v8922_v31, %v15976_v25  ;;  %v12414_v23 = vpop.f32.mrb[250].mxu0 }
0x2bee   : > { %18011 = vst [vmem:[#allocation26_spill] sm:$0xff] %v16135_v1  ;;  %v16141_v61 = vadd.f32 %v12414_v23, %v15976_v25  ;;  %v9120_v8 = vsel %vm9097_vm15, %v16135_v1, -1e+30  ;;  %v8925_v55 = vpop.f32.mrb[251].mxu0 }
0x2bef   : > { %18012 = vst [vmem:[#allocation41_spill] sm:$0xff] %v16138_v59  ;;  %v9228_v52 = vsel %vm18014_vm9, %v9120_v8, -inf  ;;  %v16148_v33 = vadd.f32 %v8925_v55, %v15976_v25  ;;  %v9118_v13 = vsel %vm9097_vm15, %v16138_v59, -1e+30  ;;  %vm18036_vm9 = vmmov %vm18006_vm0 }
0x2bf0   : > { %18013 = vst [vmem:[#allocation30_spill] sm:$0xff] %v16141_v61  ;;  %9229 = vmax.xlane.f32.xlu0 %v9228_v52  ;;  %v9121_v62 = vsel %vm9097_vm15, %v16141_v61, -1e+30  ;;  %v9222_v56 = vsel %vm18017_vm13, %v9118_v13, -inf  ;;  %vm18041_vm13 = vmmov %vm18006_vm0 }
0x2bf1   : > { %18015 = vst [vmem:[#allocation42_spill] sm:$0xff] %v16148_v33  ;;  %v9231_v50 = vsel %vm18016_vm10, %v9121_v62, -inf  ;;  %v9119_v38 = vsel %vm9097_vm15, %v16148_v33, -1e+30  ;;  %vm18040_vm10 = vmmov %vm18006_vm0 }
0x2bf2   : > { %9232 = vmax.xlane.f32.xlu1 %v9231_v50  ;;  %v9225_v63 = vsel %vm18018_vm4, %v9119_v38, -inf  ;;  %vm18042_vm4 = vmmov %vm18006_vm0 }
0x2bf4   : > { %9223 = vmax.xlane.f32.xlu0 %v9222_v56 }
0x2bf6   : > { %9226 = vmax.xlane.f32.xlu1 %v9225_v63 }
0x2bfb   : > { %v12417_v44 = vpop.f32.mrb[252].mxu0 }
0x2bfc   : > { %v16163_v6 = vadd.f32 %v12417_v44, %v15976_v25  ;;  %v8938_v46 = vpop.f32.mrb[253].mxu0 }
0x2bfd   : > { %v16166_v27 = vadd.f32 %v8938_v46, %v15976_v25  ;;  %v12418_v0 = vpop.f32.mrb[254].mxu0 }
0x2bfe   : > { %18019 = vst [vmem:[#allocation31_spill] sm:$0xff] %v16163_v6  ;;  %v16169_v2 = vadd.f32 %v12418_v0, %v15976_v25  ;;  %v9124_v49 = vsel %vm9097_vm15, %v16163_v6, -1e+30  ;;  %v8941_v34 = vpop.f32.mrb[255].mxu0 }
0x2bff   : > { %18020 = vst [vmem:[#allocation43_spill] sm:$0xff] %v16166_v27  ;;  %v9240_v58 = vsel %vm18022_vm1, %v9124_v49, -inf  ;;  %v16176_v40 = vadd.f32 %v8941_v34, %v15976_v25  ;;  %v9122_v57 = vsel %vm9097_vm15, %v16166_v27, -1e+30  ;;  %vm18043_vm1 = vmmov %vm18006_vm0 }
0x2c00   : > { %18021 = vst [vmem:[#allocation33_spill] sm:$0xff] %v16169_v2  ;;  %9241 = vmax.xlane.f32.xlu0 %v9240_v58  ;;  %v9125_v4 = vsel %vm9097_vm15, %v16169_v2, -1e+30  ;;  %v9234_v14 = vsel %vm18024_vm7, %v9122_v57, -inf  ;;  %vm18048_vm7 = vmmov %vm18006_vm0 }
0x2c01   : > { %v9243_v18 = vsel %vm18023_vm8, %v9125_v4, -inf  ;;  %v9123_v16 = vsel %vm9097_vm15, %v16176_v40, -1e+30  ;;  %vm18045_vm8 = vmmov %vm18006_vm0 }
0x2c02   : > { %9244 = vmax.xlane.f32.xlu1 %v9243_v18  ;;  %v9237_v29 = vsel %vm18025_vm11, %v9123_v16, -inf  ;;  %vm18050_vm11 = vmmov %vm18006_vm0 }
0x2c04   : > { %9235 = vmax.xlane.f32.xlu0 %v9234_v14 }
0x2c06   : > { %9238 = vmax.xlane.f32.xlu1 %v9237_v29 }
0x2c0b   : > { %v12421_v39 = vpop.f32.mrb[0].mxu0 }
0x2c0c   : > { %v16191_v35 = vadd.f32 %v12421_v39, %v15976_v25  ;;  %v8954_v9 = vpop.f32.mrb[1].mxu0 }
0x2c0d   : > { %v16194_v36 = vadd.f32 %v8954_v9, %v15976_v25  ;;  %v12422_v15 = vpop.f32.mrb[2].mxu0 }
0x2c0e   : > { %18026 = vst [vmem:[#allocation44_spill] sm:$0xff] %v16191_v35  ;;  %v16197_v28 = vadd.f32 %v12422_v15, %v15976_v25  ;;  %v9128_v45 = vsel %vm9097_vm15, %v16191_v35, -1e+30  ;;  %v8957_v22 = vpop.f32.mrb[3].mxu0 }
0x2c0f   : > { %v9252_v42 = vsel %vm18028_vm12, %v9128_v45, -inf  ;;  %v16204_v51 = vadd.f32 %v8957_v22, %v15976_v25  ;;  %v9126_v31 = vsel %vm9097_vm15, %v16194_v36, -1e+30  ;;  %vm18052_vm12 = vmmov %vm18006_vm0 }
0x2c10   : > { %18027 = vst [vmem:[#allocation46_spill] sm:$0xff] %v16197_v28  ;;  %9253 = vmax.xlane.f32.xlu0 %v9252_v42  ;;  %v9129_v53 = vsel %vm9097_vm15, %v16197_v28, -1e+30  ;;  %v9246_v55 = vsel %vm18030_vm2, %v9126_v31, -inf  ;;  %vm18054_vm2 = vmmov %vm18006_vm0 }
0x2c11   : > { %v9255_v23 = vsel %vm18029_vm14, %v9129_v53, -inf  ;;  %v9127_v8 = vsel %vm9097_vm15, %v16204_v51, -1e+30  ;;  %vm18053_vm14 = vmmov %vm18006_vm0 }
0x2c12   : > { %9256 = vmax.xlane.f32.xlu1 %v9255_v23  ;;  %v9249_v52 = vsel %vm18006_vm0, %v9127_v8, -inf }
0x2c14   : > { %9247 = vmax.xlane.f32.xlu0 %v9246_v55 }
0x2c16   : > { %9250 = vmax.xlane.f32.xlu1 %v9249_v52 }
0x2c1b   : > { %v12425_v62 = vpop.f32.mrb[4].mxu0 }
0x2c1c   : > { %v16219_v13 = vadd.f32 %v12425_v62, %v15976_v25  ;;  %v8970_v50 = vpop.f32.mrb[5].mxu0 }
0x2c1d   : > { %v16222_v38 = vadd.f32 %v8970_v50, %v15976_v25  ;;  %v12426_v56 = vpop.f32.mrb[6].mxu0 }
0x2c1e   : > { %v16225_v63 = vadd.f32 %v12426_v56, %v15976_v25  ;;  %v9132_v44 = vsel %vm9097_vm15, %v16219_v13, -1e+30  ;;  %v8973_v46 = vpop.f32.mrb[7].mxu0 }
0x2c1f   : > { %18031 = vst [vmem:[#allocation45_spill] sm:$0xff] %v16222_v38  ;;  %v9264_v0 = vsel %vm18033_vm6, %v9132_v44, -inf  ;;  %v16232_v49 = vadd.f32 %v8973_v46, %v15976_v25  ;;  %v9130_v58 = vsel %vm9097_vm15, %v16222_v38, -1e+30  ;;  %vm18055_vm6 = vmmov %vm18006_vm0 }
0x2c20   : > { %18032 = vst [vmem:[#allocation49_spill] sm:$0xff] %v16225_v63  ;;  %9265 = vmax.xlane.f32.xlu0 %v9264_v0  ;;  %v9133_v34 = vsel %vm9097_vm15, %v16225_v63, -1e+30  ;;  %v9258_v18 = vsel %vm18035_vm5, %v9130_v58, -inf  ;;  %vm18059_vm5 = vmmov %vm18006_vm0 }
0x2c21   : > { %v9267_v4 = vsel %vm18034_vm3, %v9133_v34, -inf  ;;  %v9131_v57 = vsel %vm9097_vm15, %v16232_v49, -1e+30  ;;  %vm18057_vm3 = vmmov %vm18006_vm0 }
0x2c22   : > { %9268 = vmax.xlane.f32.xlu1 %v9267_v4  ;;  %v9261_v16 = vsel %vm18036_vm9, %v9131_v57, -inf  ;;  %vm18061_vm9 = vmmov %vm18006_vm0 }
0x2c24   : > { %9259 = vmax.xlane.f32.xlu0 %v9258_v18 }
0x2c26   : > { %9262 = vmax.xlane.f32.xlu1 %v9261_v16 }
0x2c2b   : > { %v12429_v14 = vpop.f32.mrb[8].mxu0 }
0x2c2c   : > { %v16247_v29 = vadd.f32 %v12429_v14, %v15976_v25  ;;  %v8986_v39 = vpop.f32.mrb[9].mxu0 }
0x2c2d   : > { %v16250_v9 = vadd.f32 %v8986_v39, %v15976_v25  ;;  %v16252_v15 = vpop.xlane.xlu0 %9169  ;;  %v12430_v45 = vpop.f32.mrb[10].mxu0 }
0x2c2e   : > { %18037 = vst [vmem:[#allocation47_spill] sm:$0xff] %v16247_v29  ;;  %v9356_v22 = vsub.f32 %v15981_v11, %v16252_v15  ;;  %v16257_v42 = vadd.f32 %v12430_v45, %v15976_v25  ;;  %v9136_v53 = vsel %vm9097_vm15, %v16247_v29, -1e+30  ;;  %v8989_v31 = vpop.f32.mrb[11].mxu0 }
0x2c2f   : > { %18038 = vst [vmem:[#allocation50_spill] sm:$0xff] %v16250_v9  ;;  %v16262_v23 = vpop.xlane.xlu1 %9172  ;;  %v9276_v8 = vsel %vm18040_vm10, %v9136_v53, -inf  ;;  %v16266_v55 = vadd.f32 %v8989_v31, %v15976_v25  ;;  %v9134_v56 = vsel %vm9097_vm15, %v16250_v9, -1e+30  ;;  %vm18063_vm10 = vmmov %vm18006_vm0 }
0x2c30   : > { %18039 = vst [vmem:[#allocation48_spill] sm:$0xff] %v16257_v42  ;;  %v9422_v52 = vmul.f32 1.442695, %v9356_v22  ;;  %v9357_v62 = vsub.f32 %v15988_v47, %v16262_v23  ;;  %9277 = vmax.xlane.f32.xlu0 %v9276_v8  ;;  %v9137_v50 = vsel %vm9097_vm15, %v16257_v42, -1e+30  ;;  %v9270_v57 = vsel %vm18042_vm4, %v9134_v56, -inf  ;;  %vm18065_vm4 = vmmov %vm18006_vm0 }
0x2c31   : > { %v16276_v44 = vpop.xlane.xlu0 %9163  ;;  %v9279_v46 = vsel %vm18041_vm13, %v9137_v50, -inf  ;;  %v9135_v58 = vsel %vm9097_vm15, %v16266_v55, -1e+30  ;;  %vm18064_vm13 = vmmov %vm18006_vm0 }
0x2c32   : > { %13112 = vpow2.f32 %v9422_v52  ;;  %v9424_v0 = vmul.f32 1.442695, %v9357_v62  ;;  %v9354_v34 = vsub.f32 %v15985_v32, %v16276_v44  ;;  %9280 = vmax.xlane.f32.xlu1 %v9279_v46  ;;  %v9273_v14 = vsel %vm18043_vm1, %v9135_v58, -inf  ;;  %vm18066_vm1 = vmmov %vm18006_vm0 }
0x2c33   : > { %v16284_v4 = vpop.xlane.xlu1 %9166 }
0x2c34   : > { %13114 = vpow2.f32 %v9424_v0  ;;  %v9418_v18 = vmul.f32 1.442695, %v9354_v34  ;;  %v9355_v16 = vsub.f32 %v15995_v30, %v16284_v4  ;;  %9271 = vmax.xlane.f32.xlu0 %v9270_v57 }
0x2c36   : > { %13116 = vpow2.f32 %v9418_v18  ;;  %v9420_v39 = vmul.f32 1.442695, %v9355_v16  ;;  %9274 = vmax.xlane.f32.xlu1 %v9273_v14 }
0x2c38   : > { %13118 = vpow2.f32 %v9420_v39 }
0x2c3b   : > { %v12433_v45 = vpop.f32.mrb[12].mxu0 }
0x2c3c   : > { %v13113_v22 = vpop.eup %13112  ;;  %v16291_v53 = vadd.f32 %v12433_v45, %v15976_v25  ;;  %v9002_v31 = vpop.f32.mrb[13].mxu0 }
0x2c3d   : > { %v16293_v8 = vpop.xlane.xlu0 %9181  ;;  %v9548_v52 = vsel %vm9097_vm15, %v13113_v22, 0.0  ;;  %v12434_v62 = vpop.f32.mrb[14].mxu0 }
0x2c3e   : > { %18044 = vst [vmem:[#allocation53_spill] sm:$0xff] %v16291_v53  ;;  %v13115_v50 = vpop.eup %13114  ;;  %v9360_v56 = vsub.f32 %v16020_v43, %v16293_v8  ;;  %v9616_v46 = vsel %vm18045_vm8, %v9548_v52, 0.0  ;;  %v16301_v0 = vadd.f32 %v12434_v62, %v15976_v25  ;;  %v9005_v34 = vpop.f32.mrb[15].mxu0  ;;  %v9140_v18 = vsel %vm9097_vm15, %v16291_v53, -1e+30  ;;  %vm18067_vm8 = vmmov %vm18006_vm0 }
0x2c3f   : > { %v16303_v58 = vpop.xlane.xlu1 %9184  ;;  %9617 = vadd.xlane.f32.xlu0 %v9616_v46  ;;  %v9549_v57 = vsel %vm9097_vm15, %v13115_v50, 0.0  ;;  %v16322_v43 = vadd.f32 %v9002_v31, %v15976_v25 }
0x2c40   : > { %18046 = vst [vmem:[#allocation51_spill] sm:$0xff] %v16301_v0  ;;  %18047 = vst [vmem:[#allocation54_spill] sm:$0xff] %v16303_v58  ;;  %v13117_v16 = vpop.eup %13116  ;;  %v9430_v14 = vmul.f32 1.442695, %v9360_v56  ;;  %v9361_v39 = vsub.f32 %v16026_v19, %v16303_v58  ;;  %v9619_v45 = vsel %vm18048_vm7, %v9549_v57, 0.0  ;;  %v9288_v56 = vsel %vm18050_vm11, %v9140_v18, -inf }
0x2c41   : > { %9620 = vadd.xlane.f32.xlu1 %v9619_v45  ;;  %v16313_v22 = vpop.xlane.xlu0 %9175  ;;  %v9141_v52 = vsel %vm9097_vm15, %v16301_v0, -1e+30  ;;  %v9546_v57 = vsel %vm9097_vm15, %v13117_v16, 0.0  ;;  %v9138_v16 = vsel %vm9097_vm15, %v16322_v43, -1e+30  ;;  %vm18070_vm7 = vmmov %vm18006_vm0 }
0x2c42   : > { %18049 = vst [vmem:[#allocation52_spill] sm:$0xff] %v16313_v22  ;;  %v13119_v62 = vpop.eup %13118  ;;  %13120 = vpow2.f32 %v9430_v14  ;;  %v9432_v50 = vmul.f32 1.442695, %v9361_v39  ;;  %v9358_v46 = vsub.f32 %v16023_v48, %v16313_v22  ;;  %v9291_v39 = vsel %vm18052_vm12, %v9141_v52, -inf  ;;  %vm18073_vm11 = vmmov %vm18006_vm0 }
0x2c43   : > { %v16324_v19 = vpop.xlane.xlu1 %9178  ;;  %9289 = vmax.xlane.f32.xlu0 %v9288_v56  ;;  %v16332_v48 = vadd.f32 %v9005_v34, %v15976_v25  ;;  %v9547_v31 = vsel %vm9097_vm15, %v13119_v62, 0.0  ;;  %v9610_v56 = vsel %vm18053_vm14, %v9546_v57, 0.0  ;;  %v9282_v52 = vsel %vm18006_vm0, %v9138_v16, -inf  ;;  %vm18075_vm12 = vmmov %vm18006_vm0 }
0x2c44   : > { %18051 = vst [vmem:[#allocation57_spill] sm:$0xff] %v16324_v19  ;;  %13122 = vpow2.f32 %v9432_v50  ;;  %v9426_v45 = vmul.f32 1.442695, %v9358_v46  ;;  %v9359_v14 = vsub.f32 %v16033_v10, %v16324_v19  ;;  %v9613_v50 = vsel %vm18054_vm2, %v9547_v31, 0.0  ;;  %vm18078_vm14 = vmmov %vm18006_vm0 }
0x2c45   : > { %9292 = vmax.xlane.f32.xlu1 %v9291_v39  ;;  %v9139_v34 = vsel %vm9097_vm15, %v16332_v48, -1e+30  ;;  %vm18080_vm2 = vmmov %vm18006_vm0 }
0x2c46   : > { %13124 = vpow2.f32 %v9426_v45  ;;  %v9428_v18 = vmul.f32 1.442695, %v9359_v14  ;;  %v9285_v57 = vsel %vm18055_vm6, %v9139_v34, -inf  ;;  %vm18081_vm6 = vmmov %vm18006_vm0 }
0x2c47   : > { %9611 = vadd.xlane.f32.xlu0 %v9610_v56 }
0x2c48   : > { %13126 = vpow2.f32 %v9428_v18 }
0x2c49   : > { %9614 = vadd.xlane.f32.xlu1 %v9613_v50 }
0x2c4b   : > { %9283 = vmax.xlane.f32.xlu0 %v9282_v52  ;;  %v12437_v62 = vpop.f32.mrb[16].mxu0 }
0x2c4c   : > { %v13121_v46 = vpop.eup %13120  ;;  %v16347_v45 = vadd.f32 %v12437_v62, %v15976_v25  ;;  %v9018_v14 = vpop.f32.mrb[17].mxu0 }
0x2c4d   : > { %9286 = vmax.xlane.f32.xlu1 %v9285_v57  ;;  %v16349_v39 = vpop.xlane.xlu0 %9193  ;;  %v9552_v31 = vsel %vm9097_vm15, %v13121_v46, 0.0  ;;  %v12438_v18 = vpop.f32.mrb[18].mxu0  ;;  %v16378_v58 = vadd.f32 %v9018_v14, %v15976_v25 }
0x2c4e   : > { %18056 = vst [vmem:[#allocation55_spill] sm:$0xff] %v16349_v39  ;;  %v13123_v56 = vpop.eup %13122  ;;  %v9364_v16 = vsub.f32 %v16051_v21, %v16349_v39  ;;  %v9628_v50 = vsel %vm18057_vm3, %v9552_v31, 0.0  ;;  %v16357_v52 = vadd.f32 %v12438_v18, %v15976_v25  ;;  %v9021_v34 = vpop.f32.mrb[19].mxu0  ;;  %v9144_v46 = vsel %vm9097_vm15, %v16347_v45, -1e+30  ;;  %vm18082_vm3 = vmmov %vm18006_vm0 }
0x2c4f   : > { %v16359_v62 = vpop.xlane.xlu1 %9196  ;;  %9629 = vadd.xlane.f32.xlu0 %v9628_v50  ;;  %v9553_v57 = vsel %vm9097_vm15, %v13123_v56, 0.0 }
0x2c50   : > { %18058 = vst [vmem:[#allocation58_spill] sm:$0xff] %v16359_v62  ;;  %v13125_v10 = vpop.eup %13124  ;;  %v9438_v19 = vmul.f32 1.442695, %v9364_v16  ;;  %v9365_v21 = vsub.f32 %v16057_v37, %v16359_v62  ;;  %v9631_v31 = vsel %vm18059_vm5, %v9553_v57, 0.0  ;;  %v9145_v50 = vsel %vm9097_vm15, %v16357_v52, -1e+30  ;;  %vm18085_vm5 = vmmov %vm18006_vm0 }
0x2c51   : > { %9632 = vadd.xlane.f32.xlu1 %v9631_v31  ;;  %v16369_v18 = vpop.xlane.xlu0 %9187  ;;  %v9300_v16 = vsel %vm18061_vm9, %v9144_v46, -inf  ;;  %v9550_v57 = vsel %vm9097_vm15, %v13125_v10, 0.0  ;;  %v9142_v10 = vsel %vm9097_vm15, %v16378_v58, -1e+30  ;;  %vm18087_vm9 = vmmov %vm18006_vm0 }
0x2c52   : > { %18060 = vst [vmem:[#allocation56_spill] sm:$0xff] %v16369_v18  ;;  %v13127_v39 = vpop.eup %13126  ;;  %13128 = vpow2.f32 %v9438_v19  ;;  %v9440_v56 = vmul.f32 1.442695, %v9365_v21  ;;  %v9362_v22 = vsub.f32 %v16054_v20, %v16369_v18  ;;  %v9303_v21 = vsel %vm18063_vm10, %v9145_v50, -inf  ;;  %vm18089_vm10 = vmmov %vm18006_vm0 }
0x2c53   : > { %v16380_v37 = vpop.xlane.xlu1 %9190  ;;  %9301 = vmax.xlane.f32.xlu0 %v9300_v16  ;;  %v16388_v20 = vadd.f32 %v9021_v34, %v15976_v25  ;;  %v9551_v14 = vsel %vm9097_vm15, %v13127_v39, 0.0  ;;  %v9622_v16 = vsel %vm18064_vm13, %v9550_v57, 0.0  ;;  %v9294_v50 = vsel %vm18066_vm1, %v9142_v10, -inf  ;;  %vm18092_vm13 = vmmov %vm18006_vm0 }
0x2c54   : > { %18062 = vst [vmem:[#allocation61_spill] sm:$0xff] %v16380_v37  ;;  %13130 = vpow2.f32 %v9440_v56  ;;  %v9434_v31 = vmul.f32 1.442695, %v9362_v22  ;;  %v9363_v19 = vsub.f32 %v16064_v12, %v16380_v37  ;;  %v9625_v22 = vsel %vm18065_vm4, %v9551_v14, 0.0  ;;  %vm18093_vm4 = vmmov %vm18006_vm0 }
0x2c55   : > { %9304 = vmax.xlane.f32.xlu1 %v9303_v21  ;;  %v9143_v34 = vsel %vm9097_vm15, %v16388_v20, -1e+30  ;;  %vm18094_vm1 = vmmov %vm18006_vm0 }
0x2c56   : > { %13132 = vpow2.f32 %v9434_v31  ;;  %v9436_v46 = vmul.f32 1.442695, %v9363_v19  ;;  %v9297_v57 = vsel %vm18067_vm8, %v9143_v34, -inf  ;;  %vm18095_vm8 = vmmov %vm18006_vm0 }
0x2c57   : > { %9623 = vadd.xlane.f32.xlu0 %v9622_v16 }
0x2c58   : > { %13134 = vpow2.f32 %v9436_v46 }
0x2c59   : > { %9626 = vadd.xlane.f32.xlu1 %v9625_v22 }
0x2c5b   : > { %9295 = vmax.xlane.f32.xlu0 %v9294_v50  ;;  %v12441_v39 = vpop.f32.mrb[20].mxu0 }
0x2c5c   : > { %v13129_v56 = vpop.eup %13128  ;;  %v16403_v31 = vadd.f32 %v12441_v39, %v15976_v25  ;;  %v9034_v19 = vpop.f32.mrb[21].mxu0 }
0x2c5d   : > { %9298 = vmax.xlane.f32.xlu1 %v9297_v57  ;;  %v16405_v21 = vpop.xlane.xlu0 %9205  ;;  %v9556_v14 = vsel %vm9097_vm15, %v13129_v56, 0.0  ;;  %v12442_v46 = vpop.f32.mrb[22].mxu0  ;;  %v16434_v62 = vadd.f32 %v9034_v19, %v15976_v25 }
0x2c5e   : > { %18068 = vst [vmem:[#allocation59_spill] sm:$0xff] %v16403_v31  ;;  %18069 = vst [vmem:[#allocation62_spill] sm:$0xff] %v16405_v21  ;;  %v13131_v16 = vpop.eup %13130  ;;  %v9368_v10 = vsub.f32 %v16079_v26, %v16405_v21  ;;  %v9640_v22 = vsel %vm18070_vm7, %v9556_v14, 0.0  ;;  %v16413_v50 = vadd.f32 %v12442_v46, %v15976_v25  ;;  %v9037_v34 = vpop.f32.mrb[23].mxu0  ;;  %v9148_v56 = vsel %vm9097_vm15, %v16403_v31, -1e+30 }
0x2c5f   : > { %v16415_v39 = vpop.xlane.xlu1 %9208  ;;  %9641 = vadd.xlane.f32.xlu0 %v9640_v22  ;;  %v9557_v57 = vsel %vm9097_vm15, %v13131_v16, 0.0  ;;  %18076 = vst [vmem:[#allocation66_spill] sm:$0xff] %v16434_v62  ;;  %vm18097_vm7 = vmmov %vm18006_vm0 }
0x2c60   : > { %18071 = vst [vmem:[#allocation60_spill] sm:$0xff] %v16413_v50  ;;  %18072 = vst [vmem:[#allocation65_spill] sm:$0xff] %v16415_v39  ;;  %v13133_v12 = vpop.eup %13132  ;;  %v9446_v37 = vmul.f32 1.442695, %v9368_v10  ;;  %v9369_v26 = vsub.f32 %v16085_v54, %v16415_v39  ;;  %v9643_v14 = vsel %vm18073_vm11, %v9557_v57, 0.0  ;;  %v9312_v10 = vsel %vm18075_vm12, %v9148_v56, -inf }
0x2c61   : > { %9644 = vadd.xlane.f32.xlu1 %v9643_v14  ;;  %v16425_v46 = vpop.xlane.xlu0 %9199  ;;  %v9149_v22 = vsel %vm9097_vm15, %v16413_v50, -1e+30  ;;  %v9554_v57 = vsel %vm9097_vm15, %v13133_v12, 0.0  ;;  %v9146_v12 = vsel %vm9097_vm15, %v16434_v62, -1e+30  ;;  %vm18099_vm11 = vmmov %vm18006_vm0 }
0x2c62   : > { %18074 = vst [vmem:[#allocation63_spill] sm:$0xff] %v16425_v46  ;;  %v13135_v21 = vpop.eup %13134  ;;  %13136 = vpow2.f32 %v9446_v37  ;;  %v9448_v16 = vmul.f32 1.442695, %v9369_v26  ;;  %v9366_v18 = vsub.f32 %v16082_v17, %v16425_v46  ;;  %v9315_v26 = vsel %vm18078_vm14, %v9149_v22, -inf  ;;  %vm18100_vm12 = vmmov %vm18006_vm0 }
0x2c63   : > { %v16436_v54 = vpop.xlane.xlu1 %9202  ;;  %9313 = vmax.xlane.f32.xlu0 %v9312_v10  ;;  %v16444_v17 = vadd.f32 %v9037_v34, %v15976_v25  ;;  %v9555_v19 = vsel %vm9097_vm15, %v13135_v21, 0.0  ;;  %v9634_v10 = vsel %vm18080_vm2, %v9554_v57, 0.0  ;;  %v9306_v22 = vsel %vm18081_vm6, %v9146_v12, -inf  ;;  %vm18102_vm14 = vmmov %vm18006_vm0 }
0x2c64   : > { %18077 = vst [vmem:[#allocation64_spill] sm:$0xff] %v16436_v54  ;;  %13138 = vpow2.f32 %v9448_v16  ;;  %v9442_v14 = vmul.f32 1.442695, %v9366_v18  ;;  %v9367_v37 = vsub.f32 %v16092_v41, %v16436_v54  ;;  %v9637_v18 = vsel %vm18006_vm0, %v9555_v19, 0.0  ;;  %vm18104_vm2 = vmmov %vm18006_vm0 }
0x2c65   : > { %9316 = vmax.xlane.f32.xlu1 %v9315_v26  ;;  %18079 = vst [vmem:[#allocation68_spill] sm:$0xff] %v16444_v17  ;;  %v9147_v34 = vsel %vm9097_vm15, %v16444_v17, -1e+30  ;;  %vm18105_vm6 = vmmov %vm18006_vm0 }
0x2c66   : > { %13140 = vpow2.f32 %v9442_v14  ;;  %v9444_v56 = vmul.f32 1.442695, %v9367_v37  ;;  %v9309_v57 = vsel %vm18082_vm3, %v9147_v34, -inf  ;;  %vm18110_vm3 = vmmov %vm18006_vm0 }
0x2c67   : > { %9635 = vadd.xlane.f32.xlu0 %v9634_v10 }
0x2c68   : > { %13142 = vpow2.f32 %v9444_v56 }
0x2c69   : > { %9638 = vadd.xlane.f32.xlu1 %v9637_v18 }
0x2c6b   : > { %9307 = vmax.xlane.f32.xlu0 %v9306_v22  ;;  %v12445_v21 = vpop.f32.mrb[24].mxu0 }
0x2c6c   : > { %v13137_v16 = vpop.eup %13136  ;;  %v16459_v14 = vadd.f32 %v12445_v21, %v15976_v25  ;;  %v9050_v37 = vpop.f32.mrb[25].mxu0 }
0x2c6d   : > { %9310 = vmax.xlane.f32.xlu1 %v9309_v57  ;;  %v16461_v26 = vpop.xlane.xlu0 %9217  ;;  %v9560_v19 = vsel %vm9097_vm15, %v13137_v16, 0.0  ;;  %v12446_v56 = vpop.f32.mrb[26].mxu0  ;;  %v16486_v46 = vadd.f32 %v9050_v37, %v15976_v25 }
0x2c6e   : > { %18083 = vst [vmem:[#allocation67_spill] sm:$0xff] %v16459_v14  ;;  %18084 = vst [vmem:[#allocation69_spill] sm:$0xff] %v16461_v26  ;;  %v13139_v10 = vpop.eup %13138  ;;  %v9652_v18 = vsel %vm18085_vm5, %v9560_v19, 0.0  ;;  %v16467_v12 = vadd.f32 %v12446_v56, %v15976_v25  ;;  %v9053_v22 = vpop.f32.mrb[27].mxu0  ;;  %v9152_v21 = vsel %vm9097_vm15, %v16459_v14, -1e+30 }
0x2c6f   : > { %v16469_v41 = vpop.xlane.xlu1 %9220  ;;  %9653 = vadd.xlane.f32.xlu0 %v9652_v18  ;;  %v9561_v34 = vsel %vm9097_vm15, %v13139_v10, 0.0  ;;  %v9324_v10 = vsel %vm18089_vm10, %v9152_v21, -inf  ;;  %18090 = vst [vmem:[#allocation71_spill] sm:$0xff] %v16486_v46  ;;  %v16496_v17 = vadd.f32 %v9053_v22, %v15976_v25  ;;  %vm18112_vm5 = vmmov %vm18006_vm0 }
0x2c70   : > { %18086 = vst [vmem:[#allocation70_spill] sm:$0xff] %v16467_v12  ;;  %v13141_v57 = vpop.eup %13140  ;;  %v9655_v16 = vsel %vm18087_vm9, %v9561_v34, 0.0  ;;  %v9153_v19 = vsel %vm9097_vm15, %v16467_v12, -1e+30  ;;  %vm18113_vm9 = vmmov %vm18006_vm0 }
0x2c71   : > { %9656 = vadd.xlane.f32.xlu1 %v9655_v16  ;;  %v16477_v54 = vpop.xlane.xlu0 %9211  ;;  %v9558_v34 = vsel %vm9097_vm15, %v13141_v57, 0.0  ;;  %v9327_v12 = vsel %vm18092_vm13, %v9153_v19, -inf  ;;  %v9150_v57 = vsel %vm9097_vm15, %v16486_v46, -1e+30  ;;  %vm18114_vm10 = vmmov %vm18006_vm0 }
0x2c72   : > { %18088 = vst [vmem:[#allocation20_spill] sm:$0xff] %v16477_v54  ;;  %v13143_v56 = vpop.eup %13142  ;;  %v9370_v18 = vsub.f32 %v16110_v60, %v16477_v54  ;;  %v9318_v22 = vsel %vm18095_vm8, %v9150_v57, -inf  ;;  %vm18115_vm13 = vmmov %vm18006_vm0 }
0x2c73   : > { %v16488_v39 = vpop.xlane.xlu1 %9214  ;;  %9325 = vmax.xlane.f32.xlu0 %v9324_v10  ;;  %v9559_v37 = vsel %vm9097_vm15, %v13143_v56, 0.0  ;;  %v9646_v10 = vsel %vm18093_vm4, %v9558_v34, 0.0  ;;  %vm18116_vm4 = vmmov %vm18006_vm0 }
0x2c74   : > { %18091 = vst [vmem:[#allocation72_spill] sm:$0xff] %v16488_v39  ;;  %v9450_v16 = vmul.f32 1.442695, %v9370_v18  ;;  %v9371_v14 = vsub.f32 %v16120_v5, %v16488_v39  ;;  %v9649_v18 = vsel %vm18094_vm1, %v9559_v37, 0.0  ;;  %v9373_v5 = vsub.f32 %v16113_v7, %v16469_v41  ;;  %vm18117_vm1 = vmmov %vm18006_vm0 }
0x2c75   : > { %9328 = vmax.xlane.f32.xlu1 %v9327_v12  ;;  %v9151_v12 = vsel %vm9097_vm15, %v16496_v17, -1e+30  ;;  %vm18118_vm8 = vmmov %vm18006_vm0 }
0x2c76   : > { %13144 = vpow2.f32 %v9450_v16  ;;  %v9452_v21 = vmul.f32 1.442695, %v9371_v14  ;;  %v9321_v34 = vsel %vm18097_vm7, %v9151_v12, -inf  ;;  %vm18120_vm7 = vmmov %vm18006_vm0 }
0x2c77   : > { %9647 = vadd.xlane.f32.xlu0 %v9646_v10 }
0x2c78   : > { %13146 = vpow2.f32 %v9452_v21 }
0x2c79   : > { %9650 = vadd.xlane.f32.xlu1 %v9649_v18  ;;  %v9372_v18 = vsub.f32 %v16107_v24, %v16461_v26 }
0x2c7b   : > { %v12449_v19 = vpop.f32.mrb[28].mxu0  ;;  %9319 = vmax.xlane.f32.xlu0 %v9318_v22 }
0x2c7c   : > { %v16510_v14 = vadd.f32 %v12449_v19, %v15976_v25  ;;  %v9066_v56 = vpop.f32.mrb[29].mxu0 }
0x2c7d   : > { %v12450_v16 = vpop.f32.mrb[30].mxu0  ;;  %9322 = vmax.xlane.f32.xlu1 %v9321_v34  ;;  %v16513_v21 = vpop.xlane.xlu0 %9229  ;;  %v16527_v34 = vadd.f32 %v9066_v56, %v15976_v25 }
0x2c7e   : > { %18096 = vst [vmem:[#allocation73_spill] sm:$0xff] %v16510_v14  ;;  %v16516_v37 = vadd.f32 %v12450_v16, %v15976_v25  ;;  %v9069_v10 = vpop.f32.mrb[31].mxu0  ;;  %v9156_v57 = vsel %vm9097_vm15, %v16510_v14, -1e+30 }
0x2c7f   : > { %v16523_v22 = vpop.xlane.xlu1 %9232  ;;  %v9336_v19 = vsel %vm18099_vm11, %v9156_v57, -inf  ;;  %v16540_v60 = vadd.f32 %v9069_v10, %v15976_v25  ;;  %v9154_v10 = vsel %vm9097_vm15, %v16527_v34, -1e+30  ;;  %vm18121_vm11 = vmmov %vm18006_vm0 }
0x2c80   : > { %18098 = vst [vmem:[#allocation74_spill] sm:$0xff] %v16516_v37  ;;  %v13145_v12 = vpop.eup %13144  ;;  %9337 = vmax.xlane.f32.xlu0 %v9336_v19  ;;  %v9157_v16 = vsel %vm9097_vm15, %v16516_v37, -1e+30  ;;  %v9454_v19 = vmul.f32 1.442695, %v9372_v18  ;;  %v9376_v18 = vsub.f32 %v16135_v1, %v16513_v21 }
0x2c81   : > { %v16534_v39 = vpop.xlane.xlu0 %9223  ;;  %v9339_v24 = vsel %vm18100_vm12, %v9157_v16, -inf  ;;  %v9562_v26 = vsel %vm9097_vm15, %v13145_v12, 0.0  ;;  %18101 = vst [vmem:[#allocation75_spill] sm:$0xff] %v16540_v60  ;;  %v9456_v12 = vmul.f32 1.442695, %v9373_v5  ;;  %v9377_v5 = vsub.f32 %v16141_v61, %v16523_v22  ;;  %vm18122_vm12 = vmmov %vm18006_vm0 }
0x2c82   : > { %v13147_v57 = vpop.eup %13146  ;;  %9340 = vmax.xlane.f32.xlu1 %v9339_v24  ;;  %v9658_v56 = vsel %vm18102_vm14, %v9562_v26, 0.0  ;;  %v9374_v54 = vsub.f32 %v16138_v59, %v16534_v39  ;;  %v9155_v26 = vsel %vm9097_vm15, %v16540_v60, -1e+30  ;;  %13148 = vpow2.f32 %v9454_v19  ;;  %vm18123_vm14 = vmmov %vm18006_vm0 }
0x2c83   : > { %v16545_v37 = vpop.xlane.xlu1 %9226  ;;  %v9563_v7 = vsel %vm9097_vm15, %v13147_v57, 0.0  ;;  %13150 = vpow2.f32 %v9456_v12  ;;  %v9464_v1 = vmul.f32 1.442695, %v9377_v5 }
0x2c84   : > { %18103 = vst [vmem:[#allocation76_spill] sm:$0xff] %v16545_v37  ;;  %9659 = vadd.xlane.f32.xlu0 %v9658_v56  ;;  %v9661_v16 = vsel %vm18104_vm2, %v9563_v7, 0.0  ;;  %v9375_v24 = vsub.f32 %v16148_v33, %v16545_v37  ;;  %v9458_v57 = vmul.f32 1.442695, %v9374_v54  ;;  %v9330_v7 = vsel %vm18006_vm0, %v9154_v10, -inf  ;;  %vm18124_vm2 = vmmov %vm18006_vm0 }
0x2c85   : > { %v9333_v33 = vsel %vm18105_vm6, %v9155_v26, -inf  ;;  %v13369_v54 = vld [vmem:[#allocation10 + $0x42] ss:$0 sm:$0xff]  ;;  %vm18125_vm6 = vmmov %vm18006_vm0 }
0x2c86   : > { %9662 = vadd.xlane.f32.xlu1 %v9661_v16  ;;  %v9460_v56 = vmul.f32 1.442695, %v9375_v24  ;;  %v9462_v16 = vmul.f32 1.442695, %v9376_v18  ;;  %13152 = vpow2.f32 %v9458_v57 }
0x2c88   : > { %9331 = vmax.xlane.f32.xlu0 %v9330_v7  ;;  %13154 = vpow2.f32 %v9460_v56 }
0x2c89   : > { %13156 = vpow2.f32 %v9462_v16 }
0x2c8a   : > { %9334 = vmax.xlane.f32.xlu1 %v9333_v33  ;;  %13158 = vpow2.f32 %v9464_v1 }
0x2c8b   : > { %v12453_v37 = vpop.f32.mrb[32].mxu0 }
0x2c8c   : > { %v16565_v19 = vadd.f32 %v12453_v37, %v15976_v25  ;;  %v9082_v59 = vpop.f32.mrb[33].mxu0  ;;  %v13149_v16 = vpop.eup %13148 }
0x2c8d   : > { %v16567_v10 = vadd.f32 %v13369_v54, %v9082_v59  ;;  %v12454_v12 = vpop.f32.mrb[34].mxu0  ;;  %v16569_v7 = vpop.xlane.xlu0 %9241 }
0x2c8e   : > { %18106 = vst [vmem:[#allocation77_spill] sm:$0xff] %v16565_v19  ;;  %v16571_v61 = vadd.f32 %v13369_v54, %v12454_v12  ;;  %v9380_v33 = vsub.f32 %v16163_v6, %v16569_v7  ;;  %v9085_v24 = vpop.f32.mrb[35].mxu0  ;;  %v9160_v25 = vsel %vm9097_vm15, %v16565_v19, -1e+30 }
0x2c8f   : > { %v16578_v37 = vadd.f32 %v13369_v54, %v9085_v24  ;;  %v16580_v26 = vpop.xlane.xlu1 %9244  ;;  %v9348_v59 = vsel %vm18110_vm3, %v9160_v25, -inf  ;;  %v9158_v56 = vsel %vm9097_vm15, %v16567_v10, -1e+30  ;;  %vm18126_vm3 = vmmov %vm18006_vm0 }
0x2c90   : > { %18107 = vst [vmem:[#allocation78_spill] sm:$0xff] %v16571_v61  ;;  %18109 = vst [vmem:[#allocation80_spill] sm:$0xff] %v16580_v26  ;;  %v9470_v18 = vmul.f32 1.442695, %v9380_v33  ;;  %v9381_v57 = vsub.f32 %v16169_v2, %v16580_v26  ;;  %9349 = vmax.xlane.f32.xlu0 %v9348_v59  ;;  %v9161_v5 = vsel %vm9097_vm15, %v16571_v61, -1e+30  ;;  %v13151_v59 = vpop.eup %13150 }
0x2c91   : > { %18108 = vst [vmem:[#allocation79_spill] sm:$0xff] %v16578_v37  ;;  %v16591_v54 = vpop.xlane.xlu0 %9235  ;;  %v9351_v12 = vsel %vm18112_vm5, %v9161_v5, -inf  ;;  %v9159_v25 = vsel %vm9097_vm15, %v16578_v37, -1e+30  ;;  %v9342_v26 = vsel %vm18113_vm9, %v9158_v56, -inf  ;;  %v13153_v5 = vpop.eup %13152  ;;  %vm18127_vm5 = vmmov %vm18006_vm0 }
0x2c92   : > { %18111 = vst [vmem:[#allocation81_spill] sm:$0xff] %v16591_v54  ;;  %v9472_v24 = vmul.f32 1.442695, %v9381_v57  ;;  %v9378_v33 = vsub.f32 %v16166_v27, %v16591_v54  ;;  %9352 = vmax.xlane.f32.xlu1 %v9351_v12  ;;  %13160 = vpow2.f32 %v9470_v18  ;;  %v9564_v57 = vsel %vm9097_vm15, %v13149_v16, 0.0  ;;  %v13155_v54 = vpop.eup %13154  ;;  %vm18128_vm9 = vmmov %vm18006_vm0 }
0x2c93   : > { %v16599_v2 = vpop.xlane.xlu1 %9238  ;;  %v9345_v12 = vsel %vm18114_vm10, %v9159_v25, -inf  ;;  %v9565_v18 = vsel %vm9097_vm15, %v13151_v59, 0.0  ;;  %v9664_v56 = vsel %vm18115_vm13, %v9564_v57, 0.0  ;;  %vm18130_vm10 = vmmov %vm18006_vm0 }
0x2c94   : > { %v9466_v1 = vmul.f32 1.442695, %v9378_v33  ;;  %v9379_v6 = vsub.f32 %v16176_v40, %v16599_v2  ;;  %9343 = vmax.xlane.f32.xlu0 %v9342_v26  ;;  %13162 = vpow2.f32 %v9472_v24  ;;  %v9566_v26 = vsel %vm9097_vm15, %v13153_v5, 0.0  ;;  %v13157_v33 = vpop.eup %13156  ;;  %vm18131_vm13 = vmmov %vm18006_vm0 }
0x2c95   : > { %v9667_v16 = vsel %vm18116_vm4, %v9565_v18, 0.0  ;;  %v13159_v24 = vpop.eup %13158  ;;  %v9670_v25 = vsel %vm18117_vm1, %v9566_v26, 0.0  ;;  %v9568_v59 = vsel %vm9097_vm15, %v13157_v33, 0.0  ;;  %vm18133_vm4 = vmmov %vm18006_vm0 }
0x2c96   : > { %v9468_v27 = vmul.f32 1.442695, %v9379_v6  ;;  %9346 = vmax.xlane.f32.xlu1 %v9345_v12  ;;  %13164 = vpow2.f32 %v9466_v1  ;;  %v9567_v6 = vsel %vm9097_vm15, %v13155_v54, 0.0  ;;  %v9569_v12 = vsel %vm9097_vm15, %v13159_v24, 0.0  ;;  %vm18134_vm1 = vmmov %vm18006_vm0 }
0x2c97   : > { %v9673_v5 = vsel %vm18118_vm8, %v9567_v6, 0.0  ;;  %vm18135_vm8 = vmmov %vm18006_vm0 }
0x2c98   : > { %9665 = vadd.xlane.f32.xlu0 %v9664_v56  ;;  %13166 = vpow2.f32 %v9468_v27  ;;  %v9676_v56 = vsel %vm18120_vm7, %v9568_v59, 0.0  ;;  %vm18136_vm7 = vmmov %vm18006_vm0 }
0x2c9a   : > { %9668 = vadd.xlane.f32.xlu1 %v9667_v16 }
0x2c9c   : > { %9671 = vadd.xlane.f32.xlu0 %v9670_v25  ;;  %v13161_v1 = vpop.eup %13160 }
0x2c9d   : > { %v16618_v57 = vpop.xlane.xlu0 %9253  ;;  %v9572_v16 = vsel %vm9097_vm15, %v13161_v1, 0.0 }
0x2c9e   : > { %v9384_v27 = vsub.f32 %v16191_v35, %v16618_v57  ;;  %9674 = vadd.xlane.f32.xlu1 %v9673_v5  ;;  %v13163_v54 = vpop.eup %13162  ;;  %v9679_v5 = vsel %vm18121_vm11, %v9569_v12, 0.0  ;;  %vm18138_vm11 = vmmov %vm18006_vm0 }
0x2c9f   : > { %v16625_v18 = vpop.xlane.xlu1 %9256  ;;  %v9573_v59 = vsel %vm9097_vm15, %v13163_v54, 0.0 }
0x2ca0   : > { %18119 = vst [vmem:[#allocation82_spill] sm:$0xff] %v16625_v18  ;;  %v9478_v26 = vmul.f32 1.442695, %v9384_v27  ;;  %v9385_v33 = vsub.f32 %v16197_v28, %v16625_v18  ;;  %9677 = vadd.xlane.f32.xlu0 %v9676_v56  ;;  %v13165_v6 = vpop.eup %13164  ;;  %v9688_v56 = vsel %vm18122_vm12, %v9572_v16, 0.0  ;;  %vm18139_vm12 = vmmov %vm18006_vm0 }
0x2ca1   : > { %v16632_v25 = vpop.xlane.xlu0 %9247  ;;  %v9570_v12 = vsel %vm9097_vm15, %v13165_v6, 0.0 }
0x2ca2   : > { %13168 = vpow2.f32 %v9478_v26  ;;  %v9480_v24 = vmul.f32 1.442695, %v9385_v33  ;;  %v9382_v35 = vsub.f32 %v16194_v36, %v16632_v25  ;;  %9680 = vadd.xlane.f32.xlu1 %v9679_v5  ;;  %v13167_v27 = vpop.eup %13166  ;;  %v9691_v26 = vsel %vm18123_vm14, %v9573_v59, 0.0  ;;  %vm18141_vm14 = vmmov %vm18006_vm0 }
0x2ca3   : > { %v16639_v28 = vpop.xlane.xlu1 %9250  ;;  %v9571_v54 = vsel %vm9097_vm15, %v13167_v27, 0.0  ;;  %v9682_v5 = vsel %vm18124_vm2, %v9570_v12, 0.0  ;;  %vm18142_vm2 = vmmov %vm18006_vm0 }
0x2ca4   : > { %13170 = vpow2.f32 %v9480_v24  ;;  %v9474_v1 = vmul.f32 1.442695, %v9382_v35  ;;  %v9383_v18 = vsub.f32 %v16204_v51, %v16639_v28  ;;  %9689 = vadd.xlane.f32.xlu0 %v9688_v56  ;;  %v9685_v35 = vsel %vm18006_vm0, %v9571_v54, 0.0 }
0x2ca6   : > { %13172 = vpow2.f32 %v9474_v1  ;;  %v9476_v33 = vmul.f32 1.442695, %v9383_v18  ;;  %9692 = vadd.xlane.f32.xlu1 %v9691_v26 }
0x2ca8   : > { %13174 = vpow2.f32 %v9476_v33  ;;  %9683 = vadd.xlane.f32.xlu0 %v9682_v5 }
0x2caa   : > { %9686 = vadd.xlane.f32.xlu1 %v9685_v35 }
0x2cac   : > { %v13169_v16 = vpop.eup %13168 }
0x2cad   : > { %v16651_v24 = vpop.xlane.xlu0 %9265  ;;  %v9576_v6 = vsel %vm9097_vm15, %v13169_v16, 0.0 }
0x2cae   : > { %v13171_v59 = vpop.eup %13170  ;;  %v9388_v18 = vsub.f32 %v16219_v13, %v16651_v24  ;;  %v9700_v56 = vsel %vm18125_vm6, %v9576_v6, 0.0  ;;  %vm18143_vm6 = vmmov %vm18006_vm0 }
0x2caf   : > { %v16658_v27 = vpop.xlane.xlu1 %9268  ;;  %9701 = vadd.xlane.f32.xlu0 %v9700_v56  ;;  %v9577_v1 = vsel %vm9097_vm15, %v13171_v59, 0.0 }
0x2cb0   : > { %v13173_v12 = vpop.eup %13172  ;;  %v9486_v26 = vmul.f32 1.442695, %v9388_v18  ;;  %v9389_v33 = vsub.f32 %v16225_v63, %v16658_v27  ;;  %v9703_v54 = vsel %vm18126_vm3, %v9577_v1, 0.0  ;;  %vm18144_vm3 = vmmov %vm18006_vm0 }
0x2cb1   : > { %9704 = vadd.xlane.f32.xlu1 %v9703_v54  ;;  %v16665_v5 = vpop.xlane.xlu0 %9259  ;;  %v9574_v35 = vsel %vm9097_vm15, %v13173_v12, 0.0 }
0x2cb2   : > { %v13175_v16 = vpop.eup %13174  ;;  %13176 = vpow2.f32 %v9486_v26  ;;  %v9488_v6 = vmul.f32 1.442695, %v9389_v33  ;;  %v9386_v56 = vsub.f32 %v16222_v38, %v16665_v5  ;;  %v9694_v59 = vsel %vm18127_vm5, %v9574_v35, 0.0  ;;  %vm18145_vm5 = vmmov %vm18006_vm0 }
0x2cb3   : > { %v16672_v18 = vpop.xlane.xlu1 %9262  ;;  %9695 = vadd.xlane.f32.xlu0 %v9694_v59  ;;  %v9575_v1 = vsel %vm9097_vm15, %v13175_v16, 0.0 }
0x2cb4   : > { %13178 = vpow2.f32 %v9488_v6  ;;  %v9482_v54 = vmul.f32 1.442695, %v9386_v56  ;;  %v9387_v63 = vsub.f32 %v16232_v49, %v16672_v18  ;;  %v9697_v12 = vsel %vm18128_vm9, %v9575_v1, 0.0  ;;  %vm18146_vm9 = vmmov %vm18006_vm0 }
0x2cb5   : > { %9698 = vadd.xlane.f32.xlu1 %v9697_v12 }
0x2cb6   : > { %13180 = vpow2.f32 %v9482_v54  ;;  %v9484_v26 = vmul.f32 1.442695, %v9387_v63 }
0x2cb8   : > { %13182 = vpow2.f32 %v9484_v26 }
0x2cbc   : > { %v13177_v33 = vpop.eup %13176 }
0x2cbd   : > { %v16679_v38 = vpop.xlane.xlu0 %9277  ;;  %v9580_v35 = vsel %vm9097_vm15, %v13177_v33, 0.0 }
0x2cbe   : > { %18129 = vst [vmem:[#allocation83_spill] sm:$0xff] %v16679_v38  ;;  %v13179_v59 = vpop.eup %13178  ;;  %v9392_v16 = vsub.f32 %v16247_v29, %v16679_v38  ;;  %v9712_v6 = vsel %vm18130_vm10, %v9580_v35, 0.0  ;;  %vm18147_vm10 = vmmov %vm18006_vm0 }
0x2cbf   : > { %v16686_v56 = vpop.xlane.xlu1 %9280  ;;  %9713 = vadd.xlane.f32.xlu0 %v9712_v6  ;;  %v9581_v1 = vsel %vm9097_vm15, %v13179_v59, 0.0 }
0x2cc0   : > { %v13181_v63 = vpop.eup %13180  ;;  %v9494_v54 = vmul.f32 1.442695, %v9392_v16  ;;  %v9393_v12 = vsub.f32 %v16257_v42, %v16686_v56  ;;  %v9715_v26 = vsel %vm18131_vm13, %v9581_v1, 0.0  ;;  %vm18151_vm13 = vmmov %vm18006_vm0 }
0x2cc1   : > { %9716 = vadd.xlane.f32.xlu1 %v9715_v26  ;;  %v16693_v33 = vpop.xlane.xlu0 %9271  ;;  %v9578_v29 = vsel %vm9097_vm15, %v13181_v63, 0.0 }
0x2cc2   : > { %18132 = vst [vmem:[#allocation84_spill] sm:$0xff] %v16693_v33  ;;  %v13183_v35 = vpop.eup %13182  ;;  %13184 = vpow2.f32 %v9494_v54  ;;  %v9496_v38 = vmul.f32 1.442695, %v9393_v12  ;;  %v9390_v6 = vsub.f32 %v16250_v9, %v16693_v33  ;;  %v9706_v59 = vsel %vm18133_vm4, %v9578_v29, 0.0  ;;  %vm18153_vm4 = vmmov %vm18006_vm0 }
0x2cc3   : > { %v16700_v16 = vpop.xlane.xlu1 %9274  ;;  %9707 = vadd.xlane.f32.xlu0 %v9706_v59  ;;  %v9579_v1 = vsel %vm9097_vm15, %v13183_v35, 0.0 }
0x2cc4   : > { %13186 = vpow2.f32 %v9496_v38  ;;  %v9490_v26 = vmul.f32 1.442695, %v9390_v6  ;;  %v9391_v42 = vsub.f32 %v16266_v55, %v16700_v16  ;;  %v9709_v63 = vsel %vm18134_vm1, %v9579_v1, 0.0  ;;  %vm18154_vm1 = vmmov %vm18006_vm0 }
0x2cc5   : > { %9710 = vadd.xlane.f32.xlu1 %v9709_v63 }
0x2cc6   : > { %13188 = vpow2.f32 %v9490_v26  ;;  %v9492_v54 = vmul.f32 1.442695, %v9391_v42 }
0x2cc8   : > { %13190 = vpow2.f32 %v9492_v54 }
0x2ccc   : > { %v13185_v12 = vpop.eup %13184  ;;  %v9618_v9 = vpop.xlane.xlu0 %9617 }
0x2ccd   : > { %13192 = vlog2.f32 %v9618_v9  ;;  %v9584_v29 = vsel %vm9097_vm15, %v13185_v12, 0.0 }
0x2cce   : > { %v13187_v59 = vpop.eup %13186  ;;  %v9621_v33 = vpop.xlane.xlu1 %9620  ;;  %v9724_v38 = vsel %vm18135_vm8, %v9584_v29, 0.0  ;;  %vm18156_vm8 = vmmov %vm18006_vm0 }
0x2ccf   : > { %13194 = vlog2.f32 %v9621_v33  ;;  %9725 = vadd.xlane.f32.xlu0 %v9724_v38  ;;  %v9585_v35 = vsel %vm9097_vm15, %v13187_v59, 0.0 }
0x2cd0   : > { %v13189_v6 = vpop.eup %13188  ;;  %v16712_v1 = vpop.xlane.xlu0 %9289  ;;  %v9727_v42 = vsel %vm18136_vm7, %v9585_v35, 0.0  ;;  %vm18160_vm7 = vmmov %vm18006_vm0 }
0x2cd1   : > { %v9396_v9 = vsub.f32 %v16291_v53, %v16712_v1  ;;  %9728 = vadd.xlane.f32.xlu1 %v9727_v42  ;;  %v9582_v26 = vsel %vm9097_vm15, %v13189_v6, 0.0 }
0x2cd2   : > { %v13191_v63 = vpop.eup %13190  ;;  %v16719_v54 = vpop.xlane.xlu1 %9292  ;;  %v9718_v33 = vsel %vm18138_vm11, %v9582_v26, 0.0  ;;  %vm18162_vm11 = vmmov %vm18006_vm0 }
0x2cd3   : > { %18137 = vst [vmem:[#allocation85_spill] sm:$0xff] %v16719_v54  ;;  %v9502_v12 = vmul.f32 1.442695, %v9396_v9  ;;  %v9397_v29 = vsub.f32 %v16301_v0, %v16719_v54  ;;  %9719 = vadd.xlane.f32.xlu0 %v9718_v33  ;;  %v9583_v59 = vsel %vm9097_vm15, %v13191_v63, 0.0 }
0x2cd4   : > { %v9612_v38 = vpop.xlane.xlu0 %9611  ;;  %v9721_v35 = vsel %vm18139_vm12, %v9583_v59, 0.0  ;;  %vm18163_vm12 = vmmov %vm18006_vm0 }
0x2cd5   : > { %13196 = vpow2.f32 %v9502_v12  ;;  %v9504_v42 = vmul.f32 1.442695, %v9397_v29  ;;  %9722 = vadd.xlane.f32.xlu1 %v9721_v35 }
0x2cd6   : > { %13198 = vlog2.f32 %v9612_v38  ;;  %v9615_v6 = vpop.xlane.xlu1 %9614 }
0x2cd7   : > { %v13193_v53 = vpop.eup %13192  ;;  %13200 = vpow2.f32 %v9504_v42 }
0x2cd8   : > { %v9807_v26 = vmul.f32 0.6931472, %v13193_v53  ;;  %13202 = vlog2.f32 %v9615_v6  ;;  %v16727_v9 = vpop.xlane.xlu0 %9283 }
0x2cd9   : > { %v13195_v0 = vpop.eup %13194  ;;  %v9394_v33 = vsub.f32 %v16322_v43, %v16727_v9 }
0x2cda   : > { %v9932_v63 = vadd.f32 %v9807_v26, %v16252_v15  ;;  %v9809_v54 = vmul.f32 0.6931472, %v13195_v0  ;;  %v16732_v59 = vpop.xlane.xlu1 %9286 }
0x2cdb   : > { %v9498_v12 = vmul.f32 1.442695, %v9394_v33  ;;  %v9395_v29 = vsub.f32 %v16332_v48, %v16732_v59 }
0x2cdc   : > { %v9996_v53 = vsub.f32 %v15981_v11, %v9932_v63  ;;  %v9933_v38 = vadd.f32 %v9809_v54, %v16262_v23  ;;  %v9630_v35 = vpop.xlane.xlu0 %9629 }
0x2cdd   : > { %13204 = vpow2.f32 %v9498_v12  ;;  %v9500_v15 = vmul.f32 1.442695, %v9395_v29 }
0x2cde   : > { %v10060_v0 = vsel %vm9097_vm15, %v9996_v53, %v15981_v11  ;;  %v9997_v42 = vsub.f32 %v15988_v47, %v9933_v38  ;;  %13206 = vlog2.f32 %v9630_v35  ;;  %v9633_v6 = vpop.xlane.xlu1 %9632 }
0x2cdf   : > { %v13197_v26 = vpop.eup %13196  ;;  %10124 = vst.msk [vmem:[%s16741_s20 + $0x10] sm:$0xff] %vm18141_vm14, %v10060_v0  ;;  %13208 = vpow2.f32 %v9500_v15  ;;  %vm18167_vm14 = vmmov %vm18006_vm0 }
0x2ce0   : > { %v13199_v33 = vpop.eup %13198  ;;  %v10061_v23 = vsel %vm9097_vm15, %v9997_v42, %v15988_v47  ;;  %13210 = vlog2.f32 %v9633_v6  ;;  %v16754_v54 = vpop.xlane.xlu0 %9301  ;;  %v9588_v63 = vsel %vm9097_vm15, %v13197_v26, 0.0 }
0x2ce1   : > { %v13201_v11 = vpop.eup %13200  ;;  %10125 = vst.msk [vmem:[%s16741_s20 + $0x18] sm:$0xff] %vm18142_vm2, %v10061_v23  ;;  %v9803_v12 = vmul.f32 0.6931472, %v13199_v33  ;;  %v9400_v29 = vsub.f32 %v16347_v45, %v16754_v54  ;;  %v9736_v53 = vsel %vm18006_vm0, %v9588_v63, 0.0  ;;  %vm18171_vm2 = vmmov %vm18006_vm0 }
0x2ce2   : > { %v13203_v38 = vpop.eup %13202  ;;  %v16763_v35 = vpop.xlane.xlu1 %9304  ;;  %9737 = vadd.xlane.f32.xlu0 %v9736_v53  ;;  %v9589_v47 = vsel %vm9097_vm15, %v13201_v11, 0.0 }
0x2ce3   : > { %v9930_v15 = vadd.f32 %v9803_v12, %v16276_v44  ;;  %v9805_v0 = vmul.f32 0.6931472, %v13203_v38  ;;  %v9510_v42 = vmul.f32 1.442695, %v9400_v29  ;;  %v9401_v6 = vsub.f32 %v16357_v52, %v16763_v35 }
0x2ce4   : > { %v9739_v26 = vsel %vm18143_vm6, %v9589_v47, 0.0  ;;  %v9624_v33 = vpop.xlane.xlu0 %9623  ;;  %vm18174_vm6 = vmmov %vm18006_vm0 }
0x2ce5   : > { %v9994_v23 = vsub.f32 %v15985_v32, %v9930_v15  ;;  %v9931_v63 = vadd.f32 %v9805_v0, %v16284_v4  ;;  %13212 = vpow2.f32 %v9510_v42  ;;  %v9512_v53 = vmul.f32 1.442695, %v9401_v6  ;;  %9740 = vadd.xlane.f32.xlu1 %v9739_v26 }
0x2ce6   : > { %13214 = vlog2.f32 %v9624_v33  ;;  %v9627_v11 = vpop.xlane.xlu1 %9626 }
0x2ce7   : > { %v13205_v44 = vpop.eup %13204  ;;  %v10058_v12 = vsel %vm9097_vm15, %v9994_v23, %v15985_v32  ;;  %v9995_v29 = vsub.f32 %v15995_v30, %v9931_v63  ;;  %13216 = vpow2.f32 %v9512_v53 }
0x2ce8   : > { %v13207_v38 = vpop.eup %13206  ;;  %10122 = vst.msk [vmem:[%s16741_s20] sm:$0xff] %vm18144_vm3, %v10058_v12  ;;  %13218 = vlog2.f32 %v9627_v11  ;;  %v16779_v47 = vpop.xlane.xlu0 %9295  ;;  %v9586_v4 = vsel %vm9097_vm15, %v13205_v44, 0.0  ;;  %vm18177_vm3 = vmmov %vm18006_vm0 }
0x2ce9   : > { %v13209_v15 = vpop.eup %13208  ;;  %v10059_v0 = vsel %vm9097_vm15, %v9995_v29, %v15995_v30  ;;  %v9815_v42 = vmul.f32 0.6931472, %v13207_v38  ;;  %v9398_v32 = vsub.f32 %v16378_v58, %v16779_v47  ;;  %v9730_v6 = vsel %vm18145_vm5, %v9586_v4, 0.0  ;;  %v18148_v29 = vld [vmem:[#allocation21_spill] sm:$0xff]  ;;  %v18149_v4 = vld [vmem:[#allocation54_spill] sm:$0xff]  ;;  %vm18181_vm5 = vmmov %vm18006_vm0 }
0x2cea   : > { %v13211_v26 = vpop.eup %13210  ;;  %10123 = vst.msk [vmem:[%s16741_s20 + $0x8] sm:$0xff] %vm18146_vm9, %v10059_v0  ;;  %v16791_v33 = vpop.xlane.xlu1 %9298  ;;  %9731 = vadd.xlane.f32.xlu0 %v9730_v6  ;;  %v9587_v23 = vsel %vm9097_vm15, %v13209_v15, 0.0  ;;  %vm18183_vm9 = vmmov %vm18006_vm0 }
0x2ceb   : > { %v9936_v63 = vadd.f32 %v9815_v42, %v16293_v8  ;;  %v9817_v53 = vmul.f32 0.6931472, %v13211_v26  ;;  %v9506_v11 = vmul.f32 1.442695, %v9398_v32  ;;  %v9399_v30 = vsub.f32 %v16388_v20, %v16791_v33  ;;  %v18150_v32 = vld [vmem:[#allocation22_spill] sm:$0xff] }
0x2cec   : > { %v9733_v44 = vsel %vm18147_vm10, %v9587_v23, 0.0  ;;  %v9642_v12 = vpop.xlane.xlu0 %9641  ;;  %vm18184_vm10 = vmmov %vm18006_vm0 }
0x2ced   : > { %v10000_v38 = vsub.f32 %v18148_v29, %v9936_v63  ;;  %v9937_v0 = vadd.f32 %v9817_v53, %v18149_v4  ;;  %13220 = vpow2.f32 %v9506_v11  ;;  %v9508_v6 = vmul.f32 1.442695, %v9399_v30  ;;  %9734 = vadd.xlane.f32.xlu1 %v9733_v44 }
0x2cee   : > { %13222 = vlog2.f32 %v9642_v12  ;;  %v9645_v15 = vpop.xlane.xlu1 %9644 }
0x2cef   : > { %v13213_v8 = vpop.eup %13212  ;;  %v10064_v42 = vsel %vm9097_vm15, %v10000_v38, %v18148_v29  ;;  %v10001_v26 = vsub.f32 %v18150_v32, %v9937_v0  ;;  %13224 = vpow2.f32 %v9508_v6  ;;  %v18155_v6 = vld [vmem:[#allocation52_spill] sm:$0xff] }
0x2cf0   : > { %v13215_v23 = vpop.eup %13214  ;;  %10128 = vst.msk [vmem:[%s16741_s20 + $0x30] sm:$0xff] %vm18151_vm13, %v10064_v42  ;;  %13226 = vlog2.f32 %v9645_v15  ;;  %v16807_v63 = vpop.xlane.xlu0 %9313  ;;  %v9592_v53 = vsel %vm9097_vm15, %v13213_v8, 0.0  ;;  %vm18186_vm13 = vmmov %vm18006_vm0 }
0x2cf1   : > { %18152 = vst [vmem:[#allocation21_spill] sm:$0xff] %v16807_v63  ;;  %v13217_v11 = vpop.eup %13216  ;;  %v10065_v30 = vsel %vm9097_vm15, %v10001_v26, %v18150_v32  ;;  %v9811_v44 = vmul.f32 0.6931472, %v13215_v23  ;;  %v9404_v12 = vsub.f32 %v16403_v31, %v16807_v63  ;;  %v9748_v29 = vsel %vm18153_vm4, %v9592_v53, 0.0  ;;  %v18157_v53 = vld [vmem:[#allocation32_spill] sm:$0xff]  ;;  %vm18192_vm4 = vmmov %vm18006_vm0 }
0x2cf2   : > { %v13219_v38 = vpop.eup %13218  ;;  %10129 = vst.msk [vmem:[%s16741_s20 + $0x38] sm:$0xff] %vm18154_vm1, %v10065_v30  ;;  %v16819_v4 = vpop.xlane.xlu1 %9316  ;;  %9749 = vadd.xlane.f32.xlu0 %v9748_v29  ;;  %v9593_v0 = vsel %vm9097_vm15, %v13217_v11, 0.0  ;;  %v18158_v30 = vld [vmem:[#allocation57_spill] sm:$0xff]  ;;  %vm18194_vm1 = vmmov %vm18006_vm0 }
0x2cf3   : > { %v9934_v15 = vadd.f32 %v9811_v44, %v18155_v6  ;;  %v9813_v8 = vmul.f32 0.6931472, %v13219_v38  ;;  %v9518_v42 = vmul.f32 1.442695, %v9404_v12  ;;  %v9405_v32 = vsub.f32 %v16413_v50, %v16819_v4  ;;  %v18159_v38 = vld [vmem:[#allocation34_spill] sm:$0xff] }
0x2cf4   : > { %v9751_v26 = vsel %vm18156_vm8, %v9593_v0, 0.0  ;;  %v9636_v23 = vpop.xlane.xlu0 %9635  ;;  %vm18195_vm8 = vmmov %vm18006_vm0 }
0x2cf5   : > { %v9998_v31 = vsub.f32 %v18157_v53, %v9934_v15  ;;  %v9935_v63 = vadd.f32 %v9813_v8, %v18158_v30  ;;  %13228 = vpow2.f32 %v9518_v42  ;;  %v9520_v29 = vmul.f32 1.442695, %v9405_v32  ;;  %9752 = vadd.xlane.f32.xlu1 %v9751_v26 }
0x2cf6   : > { %13230 = vlog2.f32 %v9636_v23  ;;  %v9639_v11 = vpop.xlane.xlu1 %9638 }
0x2cf7   : > { %v13221_v44 = vpop.eup %13220  ;;  %v10062_v12 = vsel %vm9097_vm15, %v9998_v31, %v18157_v53  ;;  %v9999_v6 = vsub.f32 %v18159_v38, %v9935_v63  ;;  %13232 = vpow2.f32 %v9520_v29  ;;  %v18165_v29 = vld [vmem:[#allocation55_spill] sm:$0xff] }
0x2cf8   : > { %v13223_v0 = vpop.eup %13222  ;;  %10126 = vst.msk [vmem:[%s16741_s20 + $0x20] sm:$0xff] %vm18160_vm7, %v10062_v12  ;;  %13234 = vlog2.f32 %v9639_v11  ;;  %v16835_v15 = vpop.xlane.xlu0 %9307  ;;  %v9590_v8 = vsel %vm9097_vm15, %v13221_v44, 0.0  ;;  %vm18197_vm7 = vmmov %vm18006_vm0 }
0x2cf9   : > { %18161 = vst [vmem:[#allocation54_spill] sm:$0xff] %v16835_v15  ;;  %v13225_v42 = vpop.eup %13224  ;;  %v10063_v32 = vsel %vm9097_vm15, %v9999_v6, %v18159_v38  ;;  %v9823_v26 = vmul.f32 0.6931472, %v13223_v0  ;;  %v9402_v31 = vsub.f32 %v16434_v62, %v16835_v15  ;;  %v9742_v63 = vsel %vm18162_vm11, %v9590_v8, 0.0  ;;  %v18166_v38 = vld [vmem:[#allocation68_spill] sm:$0xff]  ;;  %v18168_v62 = vld [vmem:[#allocation23_spill] sm:$0xff]  ;;  %vm18201_vm11 = vmmov %vm18006_vm0 }
0x2cfa   : > { %v13227_v23 = vpop.eup %13226  ;;  %10127 = vst.msk [vmem:[%s16741_s20 + $0x28] sm:$0xff] %vm18163_vm12, %v10063_v32  ;;  %v16847_v53 = vpop.xlane.xlu1 %9310  ;;  %9743 = vadd.xlane.f32.xlu0 %v9742_v63  ;;  %v9591_v30 = vsel %vm9097_vm15, %v13225_v42, 0.0  ;;  %v18169_v32 = vld [vmem:[#allocation58_spill] sm:$0xff]  ;;  %vm18202_vm12 = vmmov %vm18006_vm0 }
0x2cfb   : > { %18164 = vst [vmem:[#allocation22_spill] sm:$0xff] %v16847_v53  ;;  %v9940_v11 = vadd.f32 %v9823_v26, %v18165_v29  ;;  %v9825_v44 = vmul.f32 0.6931472, %v13227_v23  ;;  %v9514_v12 = vmul.f32 1.442695, %v9402_v31  ;;  %v9403_v6 = vsub.f32 %v18166_v38, %v16847_v53  ;;  %v18170_v23 = vld [vmem:[#allocation24_spill] sm:$0xff] }
0x2cfc   : > { %v9745_v0 = vsel %vm18167_vm14, %v9591_v30, 0.0  ;;  %v9654_v8 = vpop.xlane.xlu0 %9653  ;;  %vm18203_vm14 = vmmov %vm18006_vm0 }
0x2cfd   : > { %v10004_v15 = vsub.f32 %v18168_v62, %v9940_v11  ;;  %v9941_v50 = vadd.f32 %v9825_v44, %v18169_v32  ;;  %13236 = vpow2.f32 %v9514_v12  ;;  %v9516_v63 = vmul.f32 1.442695, %v9403_v6  ;;  %9746 = vadd.xlane.f32.xlu1 %v9745_v0 }
0x2cfe   : > { %13238 = vlog2.f32 %v9654_v8  ;;  %v9657_v42 = vpop.xlane.xlu1 %9656 }
0x2cff   : > { %v13229_v26 = vpop.eup %13228  ;;  %v10068_v31 = vsel %vm9097_vm15, %v10004_v15, %v18168_v62  ;;  %v10005_v29 = vsub.f32 %v18170_v23, %v9941_v50  ;;  %13240 = vpow2.f32 %v9516_v63  ;;  %v18173_v62 = vld [vmem:[#allocation67_spill] sm:$0xff] }
0x2d00   : > { %v13231_v30 = vpop.eup %13230  ;;  %10132 = vst.msk [vmem:[%s16741_s20 + $0x50] sm:$0xff] %vm18171_vm2, %v10068_v31  ;;  %13242 = vlog2.f32 %v9657_v42  ;;  %v16863_v11 = vpop.xlane.xlu0 %9325  ;;  %v9596_v44 = vsel %vm9097_vm15, %v13229_v26, 0.0  ;;  %v18175_v42 = vld [vmem:[#allocation56_spill] sm:$0xff]  ;;  %vm18204_vm2 = vmmov %vm18006_vm0 }
0x2d01   : > { %18172 = vst [vmem:[#allocation52_spill] sm:$0xff] %v16863_v11  ;;  %v13233_v12 = vpop.eup %13232  ;;  %v10069_v6 = vsel %vm9097_vm15, %v10005_v29, %v18170_v23  ;;  %v9819_v0 = vmul.f32 0.6931472, %v13231_v30  ;;  %v9408_v15 = vsub.f32 %v18173_v62, %v16863_v11  ;;  %v9760_v50 = vsel %vm18006_vm0, %v9596_v44, 0.0  ;;  %v18176_v23 = vld [vmem:[#allocation70_spill] sm:$0xff]  ;;  %v18178_v62 = vld [vmem:[#allocation35_spill] sm:$0xff] }
0x2d02   : > { %v13235_v8 = vpop.eup %13234  ;;  %10133 = vst.msk [vmem:[%s16741_s20 + $0x58] sm:$0xff] %vm18174_vm6, %v10069_v6  ;;  %v16875_v32 = vpop.xlane.xlu1 %9328  ;;  %9761 = vadd.xlane.f32.xlu0 %v9760_v50  ;;  %v9597_v63 = vsel %vm9097_vm15, %v13233_v12, 0.0  ;;  %v18179_v6 = vld [vmem:[#allocation61_spill] sm:$0xff]  ;;  %vm18208_vm6 = vmmov %vm18006_vm0 }
0x2d03   : > { %v9938_v26 = vadd.f32 %v9819_v0, %v18175_v42  ;;  %v9821_v31 = vmul.f32 0.6931472, %v13235_v8  ;;  %v9526_v38 = vmul.f32 1.442695, %v9408_v15  ;;  %v9409_v29 = vsub.f32 %v18176_v23, %v16875_v32  ;;  %v18180_v8 = vld [vmem:[#allocation36_spill] sm:$0xff] }
0x2d04   : > { %v9763_v30 = vsel %vm18177_vm3, %v9597_v63, 0.0  ;;  %v9648_v44 = vpop.xlane.xlu0 %9647  ;;  %vm18212_vm3 = vmmov %vm18006_vm0 }
0x2d05   : > { %v10002_v11 = vsub.f32 %v18178_v62, %v9938_v26  ;;  %v9939_v53 = vadd.f32 %v9821_v31, %v18179_v6  ;;  %13244 = vpow2.f32 %v9526_v38  ;;  %v9528_v50 = vmul.f32 1.442695, %v9409_v29  ;;  %9764 = vadd.xlane.f32.xlu1 %v9763_v30 }
0x2d06   : > { %13246 = vlog2.f32 %v9648_v44  ;;  %v9651_v12 = vpop.xlane.xlu1 %9650 }
0x2d07   : > { %v13237_v0 = vpop.eup %13236  ;;  %v10066_v15 = vsel %vm9097_vm15, %v10002_v11, %v18178_v62  ;;  %v10003_v42 = vsub.f32 %v18180_v8, %v9939_v53  ;;  %13248 = vpow2.f32 %v9528_v50  ;;  %v18185_v50 = vld [vmem:[#allocation62_spill] sm:$0xff] }
0x2d08   : > { %v13239_v63 = vpop.eup %13238  ;;  %10130 = vst.msk [vmem:[%s16741_s20 + $0x40] sm:$0xff] %vm18181_vm5, %v10066_v15  ;;  %13250 = vlog2.f32 %v9651_v12  ;;  %v16891_v26 = vpop.xlane.xlu0 %9319  ;;  %v9594_v38 = vsel %vm9097_vm15, %v13237_v0, 0.0  ;;  %vm18213_vm5 = vmmov %vm18006_vm0 }
0x2d09   : > { %18182 = vst [vmem:[#allocation32_spill] sm:$0xff] %v16891_v26  ;;  %v13241_v31 = vpop.eup %13240  ;;  %v10067_v29 = vsel %vm9097_vm15, %v10003_v42, %v18180_v8  ;;  %v9831_v30 = vmul.f32 0.6931472, %v13239_v63  ;;  %v9406_v11 = vsub.f32 %v16486_v46, %v16891_v26  ;;  %v9754_v53 = vsel %vm18183_vm9, %v9594_v38, 0.0  ;;  %v18187_v63 = vld [vmem:[#allocation37_spill] sm:$0xff]  ;;  %vm18214_vm9 = vmmov %vm18006_vm0 }
0x2d0a   : > { %v13243_v62 = vpop.eup %13242  ;;  %10131 = vst.msk [vmem:[%s16741_s20 + $0x48] sm:$0xff] %vm18184_vm10, %v10067_v29  ;;  %v16903_v44 = vpop.xlane.xlu1 %9322  ;;  %9755 = vadd.xlane.f32.xlu0 %v9754_v53  ;;  %v9595_v6 = vsel %vm9097_vm15, %v13241_v31, 0.0  ;;  %v18188_v46 = vld [vmem:[#allocation65_spill] sm:$0xff]  ;;  %vm18215_vm10 = vmmov %vm18006_vm0 }
0x2d0b   : > { %v9944_v12 = vadd.f32 %v9831_v30, %v18185_v50  ;;  %v9833_v0 = vmul.f32 0.6931472, %v13243_v62  ;;  %v9522_v15 = vmul.f32 1.442695, %v9406_v11  ;;  %v9407_v8 = vsub.f32 %v16496_v17, %v16903_v44  ;;  %v18190_v62 = vld [vmem:[#allocation38_spill] sm:$0xff] }
0x2d0c   : > { %v9757_v42 = vsel %vm18186_vm13, %v9595_v6, 0.0  ;;  %vm18217_vm13 = vmmov %vm18006_vm0 }
0x2d0d   : > { %v10008_v38 = vsub.f32 %v18187_v63, %v9944_v12  ;;  %v9945_v29 = vadd.f32 %v9833_v0, %v18188_v46  ;;  %13252 = vpow2.f32 %v9522_v15  ;;  %v9524_v26 = vmul.f32 1.442695, %v9407_v8  ;;  %9758 = vadd.xlane.f32.xlu1 %v9757_v42  ;;  %v16913_v53 = vpop.xlane.xlu0 %9337  ;;  %v18193_v0 = vld [vmem:[#allocation74_spill] sm:$0xff] }
0x2d0e   : > { %18189 = vst [vmem:[#allocation57_spill] sm:$0xff] %v16913_v53  ;;  %v9412_v31 = vsub.f32 %v16510_v14, %v16913_v53 }
0x2d0f   : > { %v13245_v30 = vpop.eup %13244  ;;  %v10072_v11 = vsel %vm9097_vm15, %v10008_v38, %v18187_v63  ;;  %v10009_v6 = vsub.f32 %v18190_v62, %v9945_v29  ;;  %13254 = vpow2.f32 %v9524_v26  ;;  %v16921_v50 = vpop.xlane.xlu1 %9340 }
0x2d10   : > { %18191 = vst [vmem:[#allocation34_spill] sm:$0xff] %v16921_v50  ;;  %v13247_v46 = vpop.eup %13246  ;;  %10136 = vst.msk [vmem:[%s16741_s20 + $0x70] sm:$0xff] %vm18192_vm4, %v10072_v11  ;;  %v9534_v12 = vmul.f32 1.442695, %v9412_v31  ;;  %v9413_v15 = vsub.f32 %v18193_v0, %v16921_v50  ;;  %v9600_v8 = vsel %vm9097_vm15, %v13245_v30, 0.0  ;;  %v18196_v0 = vld [vmem:[#allocation63_spill] sm:$0xff] }
0x2d11   : > { %v13249_v42 = vpop.eup %13248  ;;  %v10073_v63 = vsel %vm9097_vm15, %v10009_v6, %v18190_v62  ;;  %v9827_v38 = vmul.f32 0.6931472, %v13247_v46  ;;  %v9660_v29 = vpop.xlane.xlu0 %9659  ;;  %v9772_v26 = vsel %vm18194_vm1, %v9600_v8, 0.0  ;;  %v18198_v6 = vld [vmem:[#allocation25_spill] sm:$0xff]  ;;  %v18199_v8 = vld [vmem:[#allocation64_spill] sm:$0xff]  ;;  %vm18218_vm4 = vmmov %vm18006_vm0 }
0x2d12   : > { %v13251_v14 = vpop.eup %13250  ;;  %10137 = vst.msk [vmem:[%s16741_s20 + $0x78] sm:$0xff] %vm18195_vm8, %v10073_v63  ;;  %13256 = vpow2.f32 %v9534_v12  ;;  %v9536_v31 = vmul.f32 1.442695, %v9413_v15  ;;  %9773 = vadd.xlane.f32.xlu0 %v9772_v26  ;;  %v9601_v11 = vsel %vm9097_vm15, %v13249_v42, 0.0  ;;  %v18200_v63 = vld [vmem:[#allocation27_spill] sm:$0xff]  ;;  %vm18220_vm1 = vmmov %vm18006_vm0 }
0x2d13   : > { %v9942_v30 = vadd.f32 %v9827_v38, %v18196_v0  ;;  %v9829_v50 = vmul.f32 0.6931472, %v13251_v14  ;;  %13258 = vlog2.f32 %v9660_v29  ;;  %v9663_v53 = vpop.xlane.xlu1 %9662  ;;  %v9775_v62 = vsel %vm18197_vm7, %v9601_v11, 0.0  ;;  %vm18221_vm8 = vmmov %vm18006_vm0 }
0x2d14   : > { %13260 = vpow2.f32 %v9536_v31  ;;  %9776 = vadd.xlane.f32.xlu1 %v9775_v62  ;;  %vm18223_vm7 = vmmov %vm18006_vm0 }
0x2d15   : > { %v10006_v46 = vsub.f32 %v18198_v6, %v9942_v30  ;;  %v9943_v12 = vadd.f32 %v9829_v50, %v18199_v8  ;;  %13262 = vlog2.f32 %v9663_v53  ;;  %v16941_v15 = vpop.xlane.xlu0 %9331 }
0x2d16   : > { %v9410_v42 = vsub.f32 %v16527_v34, %v16941_v15 }
0x2d17   : > { %v13253_v0 = vpop.eup %13252  ;;  %v10070_v14 = vsel %vm9097_vm15, %v10006_v46, %v18198_v6  ;;  %v10007_v38 = vsub.f32 %v18200_v63, %v9943_v12  ;;  %v16949_v29 = vpop.xlane.xlu1 %9334 }
0x2d18   : > { %10134 = vst.msk [vmem:[%s16741_s20 + $0x60] sm:$0xff] %vm18201_vm11, %v10070_v14  ;;  %v9530_v26 = vmul.f32 1.442695, %v9410_v42  ;;  %v9411_v53 = vsub.f32 %v16540_v60, %v16949_v29  ;;  %v9598_v50 = vsel %vm9097_vm15, %v13253_v0, 0.0  ;;  %vm18226_vm11 = vmmov %vm18006_vm0 }
0x2d19   : > { %v13255_v31 = vpop.eup %13254  ;;  %v10071_v11 = vsel %vm9097_vm15, %v10007_v38, %v18200_v63  ;;  %v9766_v30 = vsel %vm18202_vm12, %v9598_v50, 0.0  ;;  %vm18228_vm12 = vmmov %vm18006_vm0 }
0x2d1a   : > { %10135 = vst.msk [vmem:[%s16741_s20 + $0x68] sm:$0xff] %vm18203_vm14, %v10071_v11  ;;  %13264 = vpow2.f32 %v9530_v26  ;;  %v9532_v62 = vmul.f32 1.442695, %v9411_v53  ;;  %9767 = vadd.xlane.f32.xlu0 %v9766_v30  ;;  %v9599_v6 = vsel %vm9097_vm15, %v13255_v31, 0.0  ;;  %v18207_v11 = vld [vmem:[#allocation20_spill] sm:$0xff]  ;;  %vm18230_vm14 = vmmov %vm18006_vm0 }
0x2d1b   : > { %v9769_v46 = vsel %vm18204_vm2, %v9599_v6, 0.0  ;;  %vm18232_vm2 = vmmov %vm18006_vm0 }
0x2d1c   : > { %v13257_v8 = vpop.eup %13256  ;;  %13266 = vpow2.f32 %v9532_v62  ;;  %9770 = vadd.xlane.f32.xlu1 %v9769_v46 }
0x2d1d   : > { %v13259_v12 = vpop.eup %13258  ;;  %v16966_v42 = vpop.xlane.xlu0 %9349  ;;  %v9604_v0 = vsel %vm9097_vm15, %v13257_v8, 0.0 }
0x2d1e   : > { %18205 = vst [vmem:[#allocation55_spill] sm:$0xff] %v16966_v42  ;;  %v13261_v14 = vpop.eup %13260  ;;  %v9835_v63 = vmul.f32 0.6931472, %v13259_v12  ;;  %v9416_v38 = vsub.f32 %v16565_v19, %v16966_v42  ;;  %v9784_v26 = vsel %vm18006_vm0, %v9604_v0, 0.0  ;;  %v18209_v0 = vld [vmem:[#allocation28_spill] sm:$0xff] }
0x2d1f   : > { %v13263_v53 = vpop.eup %13262  ;;  %v16973_v50 = vpop.xlane.xlu1 %9352  ;;  %9785 = vadd.xlane.f32.xlu0 %v9784_v26  ;;  %v9605_v31 = vsel %vm9097_vm15, %v13261_v14, 0.0  ;;  %v18210_v42 = vld [vmem:[#allocation72_spill] sm:$0xff] }
0x2d20   : > { %18206 = vst [vmem:[#allocation23_spill] sm:$0xff] %v16973_v50  ;;  %v9946_v30 = vadd.f32 %v9835_v63, %v18207_v11  ;;  %v9837_v62 = vmul.f32 0.6931472, %v13263_v53  ;;  %v9542_v6 = vmul.f32 1.442695, %v9416_v38  ;;  %v9417_v46 = vsub.f32 %v16571_v61, %v16973_v50 }
0x2d21   : > { %v9787_v8 = vsel %vm18208_vm6, %v9605_v31, 0.0  ;;  %v16981_v12 = vpop.xlane.xlu0 %9343  ;;  %v18211_v31 = vld [vmem:[#allocation29_spill] sm:$0xff]  ;;  %vm18237_vm6 = vmmov %vm18006_vm0 }
0x2d22   : > { %v10010_v19 = vsub.f32 %v18209_v0, %v9946_v30  ;;  %v9947_v60 = vadd.f32 %v9837_v62, %v18210_v42  ;;  %v9544_v26 = vmul.f32 1.442695, %v9417_v46  ;;  %9788 = vadd.xlane.f32.xlu1 %v9787_v8  ;;  %v9414_v14 = vsub.f32 %v16567_v10, %v16981_v12 }
0x2d23   : > { %v16987_v63 = vpop.xlane.xlu1 %9346  ;;  %13268 = vpow2.f32 %v9542_v6 }
0x2d24   : > { %v13265_v38 = vpop.eup %13264  ;;  %v10074_v53 = vsel %vm9097_vm15, %v10010_v19, %v18209_v0  ;;  %v10011_v11 = vsub.f32 %v18211_v31, %v9947_v60  ;;  %v9415_v30 = vsub.f32 %v16578_v37, %v16987_v63  ;;  %13270 = vpow2.f32 %v9544_v26 }
0x2d25   : > { %10138 = vst.msk [vmem:[%s16741_s20 + $0x80] sm:$0xff] %vm18212_vm3, %v10074_v53  ;;  %v9538_v42 = vmul.f32 1.442695, %v9414_v14  ;;  %v9666_v62 = vpop.xlane.xlu0 %9665  ;;  %v9602_v46 = vsel %vm9097_vm15, %v13265_v38, 0.0  ;;  %vm18239_vm3 = vmmov %vm18006_vm0 }
0x2d26   : > { %v13267_v8 = vpop.eup %13266  ;;  %v10075_v61 = vsel %vm9097_vm15, %v10011_v11, %v18211_v31  ;;  %v9540_v19 = vmul.f32 1.442695, %v9415_v30  ;;  %13272 = vlog2.f32 %v9666_v62  ;;  %v9778_v60 = vsel %vm18213_vm5, %v9602_v46, 0.0  ;;  %vm18240_vm5 = vmmov %vm18006_vm0 }
0x2d27   : > { %10139 = vst.msk [vmem:[%s16741_s20 + $0x88] sm:$0xff] %vm18214_vm9, %v10075_v61  ;;  %13274 = vpow2.f32 %v9538_v42  ;;  %v9669_v6 = vpop.xlane.xlu1 %9668  ;;  %9779 = vadd.xlane.f32.xlu0 %v9778_v60  ;;  %v9603_v0 = vsel %vm9097_vm15, %v13267_v8, 0.0  ;;  %vm18241_vm9 = vmmov %vm18006_vm0 }
0x2d28   : > { %13276 = vpow2.f32 %v9540_v19  ;;  %v9781_v26 = vsel %vm18215_vm10, %v9603_v0, 0.0  ;;  %vm18245_vm10 = vmmov %vm18006_vm0 }
0x2d29   : > { %13278 = vlog2.f32 %v9669_v6  ;;  %9782 = vadd.xlane.f32.xlu1 %v9781_v26  ;;  %v9672_v14 = vpop.xlane.xlu0 %9671  ;;  %v18216_v6 = vld [vmem:[#allocation69_spill] sm:$0xff] }
0x2d2a   : > { %13280 = vlog2.f32 %v9672_v14 }
0x2d2b   : > { %v9675_v38 = vpop.xlane.xlu1 %9674 }
0x2d2c   : > { %13282 = vlog2.f32 %v9675_v38 }
0x2d2d   : > { %v9678_v53 = vpop.xlane.xlu0 %9677  ;;  %v13269_v31 = vpop.eup %13268 }
0x2d2e   : > { %13284 = vlog2.f32 %v9678_v53  ;;  %v13271_v11 = vpop.eup %13270 }
0x2d2f   : > { %v9681_v61 = vpop.xlane.xlu1 %9680 }
0x2d30   : > { %v13273_v30 = vpop.eup %13272  ;;  %13286 = vlog2.f32 %v9681_v61 }
0x2d31   : > { %v13275_v42 = vpop.eup %13274  ;;  %v9839_v62 = vmul.f32 0.6931472, %v13273_v30  ;;  %v9690_v46 = vpop.xlane.xlu0 %9689  ;;  %v9608_v30 = vsel %vm9097_vm15, %v13269_v31, 0.0 }
0x2d32   : > { %v13277_v8 = vpop.eup %13276  ;;  %13288 = vlog2.f32 %v9690_v46  ;;  %v9606_v19 = vsel %vm9097_vm15, %v13275_v42, 0.0  ;;  %v18219_v42 = vld [vmem:[#allocation39_spill] sm:$0xff] }
0x2d33   : > { %v13279_v60 = vpop.eup %13278  ;;  %v9948_v0 = vadd.f32 %v9839_v62, %v18216_v6  ;;  %v9693_v26 = vpop.xlane.xlu1 %9692  ;;  %v9790_v14 = vsel %vm18217_vm13, %v9606_v19, 0.0  ;;  %v9607_v38 = vsel %vm9097_vm15, %v13277_v8, 0.0  ;;  %v9609_v19 = vsel %vm9097_vm15, %v13271_v11, 0.0  ;;  %vm18246_vm13 = vmmov %vm18006_vm0 }
0x2d34   : > { %v13281_v53 = vpop.eup %13280  ;;  %v9841_v50 = vmul.f32 0.6931472, %v13279_v60  ;;  %13290 = vlog2.f32 %v9693_v26  ;;  %9791 = vadd.xlane.f32.xlu0 %v9790_v14  ;;  %v9793_v61 = vsel %vm18218_vm4, %v9607_v38, 0.0  ;;  %vm18247_vm4 = vmmov %vm18006_vm0 }
0x2d35   : > { %v10012_v46 = vsub.f32 %v18219_v42, %v9948_v0  ;;  %v9843_v37 = vmul.f32 0.6931472, %v13281_v53  ;;  %9794 = vadd.xlane.f32.xlu1 %v9793_v61  ;;  %v9684_v62 = vpop.xlane.xlu0 %9683  ;;  %v9796_v0 = vsel %vm18220_vm1, %v9608_v30, 0.0  ;;  %v18222_v53 = vld [vmem:[#allocation40_spill] sm:$0xff]  ;;  %vm18248_vm1 = vmmov %vm18006_vm0 }
0x2d36   : > { %v13283_v6 = vpop.eup %13282  ;;  %v9949_v8 = vadd.f32 %v9841_v50, %v16469_v41  ;;  %13292 = vlog2.f32 %v9684_v62  ;;  %v9799_v41 = vsel %vm18223_vm7, %v9609_v19, 0.0  ;;  %v18224_v50 = vld [vmem:[#allocation41_spill] sm:$0xff]  ;;  %vm18252_vm7 = vmmov %vm18006_vm0 }
0x2d37   : > { %v10076_v60 = vsel %vm9097_vm15, %v10012_v46, %v18219_v42  ;;  %v9950_v26 = vadd.f32 %v9843_v37, %v16534_v39  ;;  %v9845_v31 = vmul.f32 0.6931472, %v13283_v6  ;;  %v9687_v14 = vpop.xlane.xlu1 %9686  ;;  %v18225_v42 = vld [vmem:[#allocation76_spill] sm:$0xff]  ;;  %v18227_v6 = vld [vmem:[#allocation42_spill] sm:$0xff] }
0x2d38   : > { %v13285_v38 = vpop.eup %13284  ;;  %10140 = vst.msk [vmem:[%s16741_s20 + $0x90] sm:$0xff] %vm18221_vm8, %v10076_v60  ;;  %v10013_v11 = vsub.f32 %v18222_v53, %v9949_v8  ;;  %13294 = vlog2.f32 %v9687_v14  ;;  %9797 = vadd.xlane.f32.xlu0 %v9796_v0  ;;  %v18229_v0 = vld [vmem:[#allocation26_spill] sm:$0xff]  ;;  %vm18249_vm8 = vmmov %vm18006_vm0 }
0x2d39   : > { %v10014_v61 = vsub.f32 %v18224_v50, %v9950_v26  ;;  %v9951_v46 = vadd.f32 %v9845_v31, %v18225_v42  ;;  %v9847_v39 = vmul.f32 0.6931472, %v13285_v38  ;;  %9800 = vadd.xlane.f32.xlu1 %v9799_v41 }
0x2d3a   : > { %v13287_v37 = vpop.eup %13286  ;;  %v10077_v30 = vsel %vm9097_vm15, %v10013_v11, %v18222_v53 }
0x2d3b   : > { %10141 = vst.msk [vmem:[%s16741_s20 + $0x98] sm:$0xff] %vm18226_vm11, %v10077_v30  ;;  %v10078_v62 = vsel %vm9097_vm15, %v10014_v61, %v18224_v50  ;;  %v10015_v19 = vsub.f32 %v18227_v6, %v9951_v46  ;;  %v9952_v8 = vadd.f32 %v9847_v39, %v16513_v21  ;;  %v9849_v60 = vmul.f32 0.6931472, %v13287_v37  ;;  %v18231_v61 = vld [vmem:[#allocation30_spill] sm:$0xff]  ;;  %vm18253_vm11 = vmmov %vm18006_vm0 }
0x2d3c   : > { %v13289_v26 = vpop.eup %13288  ;;  %10142 = vst.msk [vmem:[%s16741_s20 + $0xa0] sm:$0xff] %vm18228_vm12, %v10078_v62  ;;  %v9702_v31 = vpop.xlane.xlu0 %9701  ;;  %v18233_v62 = vld [vmem:[#allocation31_spill] sm:$0xff]  ;;  %vm18254_vm12 = vmmov %vm18006_vm0 }
0x2d3d   : > { %v10079_v14 = vsel %vm9097_vm15, %v10015_v19, %v18227_v6  ;;  %v10016_v38 = vsub.f32 %v18229_v0, %v9952_v8  ;;  %v9953_v53 = vadd.f32 %v9849_v60, %v16523_v22  ;;  %v9855_v11 = vmul.f32 0.6931472, %v13289_v26  ;;  %v18234_v19 = vld [vmem:[#allocation80_spill] sm:$0xff] }
0x2d3e   : > { %v13291_v41 = vpop.eup %13290  ;;  %10143 = vst.msk [vmem:[%s16741_s20 + $0xa8] sm:$0xff] %vm18230_vm14, %v10079_v14  ;;  %13296 = vlog2.f32 %v9702_v31  ;;  %v9705_v21 = vpop.xlane.xlu1 %9704  ;;  %v18235_v14 = vld [vmem:[#allocation33_spill] sm:$0xff]  ;;  %vm18259_vm14 = vmmov %vm18006_vm0 }
0x2d3f   : > { %v10080_v50 = vsel %vm9097_vm15, %v10016_v38, %v18229_v0  ;;  %v10017_v42 = vsub.f32 %v18231_v61, %v9953_v53  ;;  %v9956_v46 = vadd.f32 %v9855_v11, %v16569_v7  ;;  %v9857_v39 = vmul.f32 0.6931472, %v13291_v41  ;;  %v18236_v38 = vld [vmem:[#allocation81_spill] sm:$0xff] }
0x2d40   : > { %v13293_v37 = vpop.eup %13292  ;;  %10144 = vst.msk [vmem:[%s16741_s20 + $0xb0] sm:$0xff] %vm18232_vm2, %v10080_v50  ;;  %13298 = vlog2.f32 %v9705_v21  ;;  %v9696_v22 = vpop.xlane.xlu0 %9695  ;;  %v18238_v21 = vld [vmem:[#allocation43_spill] sm:$0xff]  ;;  %vm18261_vm2 = vmmov %vm18006_vm0 }
0x2d41   : > { %v10081_v30 = vsel %vm9097_vm15, %v10017_v42, %v18231_v61  ;;  %v10020_v6 = vsub.f32 %v18233_v62, %v9956_v46  ;;  %v9957_v8 = vadd.f32 %v9857_v39, %v18234_v19  ;;  %v9851_v60 = vmul.f32 0.6931472, %v13293_v37 }
0x2d42   : > { %v13295_v26 = vpop.eup %13294  ;;  %10145 = vst.msk [vmem:[%s16741_s20 + $0xb8] sm:$0xff] %vm18006_vm0, %v10081_v30  ;;  %13300 = vlog2.f32 %v9696_v22  ;;  %v9699_v7 = vpop.xlane.xlu1 %9698 }
0x2d43   : > { %v10084_v31 = vsel %vm9097_vm15, %v10020_v6, %v18233_v62  ;;  %v10021_v0 = vsub.f32 %v18235_v14, %v9957_v8  ;;  %v9954_v53 = vadd.f32 %v9851_v60, %v18236_v38  ;;  %v9853_v11 = vmul.f32 0.6931472, %v13295_v26  ;;  %v18242_v8 = vld [vmem:[#allocation44_spill] sm:$0xff]  ;;  %v18243_v26 = vld [vmem:[#allocation82_spill] sm:$0xff] }
0x2d44   : > { %10148 = vst.msk [vmem:[%s16741_s20 + $0xd0] sm:$0xff] %vm18237_vm6, %v10084_v31  ;;  %13302 = vlog2.f32 %v9699_v7  ;;  %v18244_v38 = vld [vmem:[#allocation46_spill] sm:$0xff]  ;;  %vm18262_vm6 = vmmov %vm18006_vm0 }
0x2d45   : > { %v10085_v41 = vsel %vm9097_vm15, %v10021_v0, %v18235_v14  ;;  %v10018_v50 = vsub.f32 %v18238_v21, %v9954_v53  ;;  %v9955_v61 = vadd.f32 %v9853_v11, %v16599_v2 }
0x2d46   : > { %10149 = vst.msk [vmem:[%s16741_s20 + $0xd8] sm:$0xff] %vm18239_vm3, %v10085_v41  ;;  %vm18265_vm3 = vmmov %vm18006_vm0 }
0x2d47   : > { %v10082_v42 = vsel %vm9097_vm15, %v10018_v50, %v18238_v21  ;;  %v10019_v46 = vsub.f32 %v16176_v40, %v9955_v61 }
0x2d48   : > { %v13297_v39 = vpop.eup %13296  ;;  %10146 = vst.msk [vmem:[%s16741_s20 + $0xc0] sm:$0xff] %vm18240_vm5, %v10082_v42  ;;  %vm18267_vm5 = vmmov %vm18006_vm0 }
0x2d49   : > { %v10083_v37 = vsel %vm9097_vm15, %v10019_v46, %v16176_v40  ;;  %v9863_v22 = vmul.f32 0.6931472, %v13297_v39 }
0x2d4a   : > { %v13299_v30 = vpop.eup %13298  ;;  %10147 = vst.msk [vmem:[%s16741_s20 + $0xc8] sm:$0xff] %vm18241_vm9, %v10083_v37  ;;  %vm18268_vm9 = vmmov %vm18006_vm0 }
0x2d4b   : > { %v9960_v2 = vadd.f32 %v9863_v22, %v16618_v57  ;;  %v9865_v62 = vmul.f32 0.6931472, %v13299_v30 }
0x2d4c   : > { %v13301_v6 = vpop.eup %13300  ;;  %v9714_v19 = vpop.xlane.xlu0 %9713 }
0x2d4d   : > { %v10024_v60 = vsub.f32 %v18242_v8, %v9960_v2  ;;  %v9961_v7 = vadd.f32 %v9865_v62, %v18243_v26  ;;  %v9859_v31 = vmul.f32 0.6931472, %v13301_v6  ;;  %13304 = vlog2.f32 %v9714_v19 }
0x2d4e   : > { %v13303_v14 = vpop.eup %13302  ;;  %v9717_v0 = vpop.xlane.xlu1 %9716 }
0x2d4f   : > { %v10088_v40 = vsel %vm9097_vm15, %v10024_v60, %v18242_v8  ;;  %v10025_v53 = vsub.f32 %v18244_v38, %v9961_v7  ;;  %v9958_v57 = vadd.f32 %v9859_v31, %v16632_v25  ;;  %v9861_v11 = vmul.f32 0.6931472, %v13303_v14  ;;  %v18250_v31 = vld [vmem:[#allocation49_spill] sm:$0xff] }
0x2d50   : > { %10152 = vst.msk [vmem:[%s16741_s20 + $0xf0] sm:$0xff] %vm18245_vm10, %v10088_v40  ;;  %13306 = vlog2.f32 %v9717_v0  ;;  %v9708_v41 = vpop.xlane.xlu0 %9707  ;;  %v18251_v0 = vld [vmem:[#allocation45_spill] sm:$0xff]  ;;  %vm18269_vm10 = vmmov %vm18006_vm0 }
0x2d51   : > { %v10089_v21 = vsel %vm9097_vm15, %v10025_v53, %v18244_v38  ;;  %v10022_v50 = vsub.f32 %v16194_v36, %v9958_v57  ;;  %v9959_v61 = vadd.f32 %v9861_v11, %v16639_v28  ;;  %13308 = vlog2.f32 %v9708_v41 }
0x2d52   : > { %10153 = vst.msk [vmem:[%s16741_s20 + $0xf8] sm:$0xff] %vm18246_vm13, %v10089_v21  ;;  %v9711_v42 = vpop.xlane.xlu1 %9710  ;;  %vm18270_vm13 = vmmov %vm18006_vm0 }
0x2d53   : > { %v10086_v25 = vsel %vm9097_vm15, %v10022_v50, %v16194_v36  ;;  %v10023_v46 = vsub.f32 %v16204_v51, %v9959_v61  ;;  %13310 = vlog2.f32 %v9711_v42  ;;  %v18255_v50 = vld [vmem:[#allocation83_spill] sm:$0xff] }
0x2d54   : > { %10150 = vst.msk [vmem:[%s16741_s20 + $0xe0] sm:$0xff] %vm18247_vm4, %v10086_v25  ;;  %vm18271_vm4 = vmmov %vm18006_vm0 }
0x2d55   : > { %v10087_v39 = vsel %vm9097_vm15, %v10023_v46, %v16204_v51  ;;  %v18256_v46 = vld [vmem:[#allocation47_spill] sm:$0xff] }
0x2d56   : > { %10151 = vst.msk [vmem:[%s16741_s20 + $0xe8] sm:$0xff] %vm18248_vm1, %v10087_v39  ;;  %vm18272_vm1 = vmmov %vm18006_vm0 }
0x2d57   : > { %v13305_v28 = vpop.eup %13304 }
0x2d58   : > { %v9871_v37 = vmul.f32 0.6931472, %v13305_v28 }
0x2d5a   : > { %v13307_v22 = vpop.eup %13306  ;;  %v9964_v30 = vadd.f32 %v9871_v37, %v16651_v24 }
0x2d5b   : > { %v13309_v2 = vpop.eup %13308  ;;  %v9873_v62 = vmul.f32 0.6931472, %v13307_v22 }
0x2d5c   : > { %v10028_v36 = vsub.f32 %v16219_v13, %v9964_v30  ;;  %v9867_v6 = vmul.f32 0.6931472, %v13309_v2  ;;  %v9726_v19 = vpop.xlane.xlu0 %9725  ;;  %v18257_v30 = vld [vmem:[#allocation48_spill] sm:$0xff] }
0x2d5d   : > { %v13311_v8 = vpop.eup %13310  ;;  %v9965_v60 = vadd.f32 %v9873_v62, %v16658_v27  ;;  %13312 = vlog2.f32 %v9726_v19  ;;  %v18258_v62 = vld [vmem:[#allocation84_spill] sm:$0xff] }
0x2d5e   : > { %v10092_v51 = vsel %vm9097_vm15, %v10028_v36, %v16219_v13  ;;  %v9962_v26 = vadd.f32 %v9867_v6, %v16665_v5  ;;  %v9869_v7 = vmul.f32 0.6931472, %v13311_v8  ;;  %v9729_v24 = vpop.xlane.xlu1 %9728  ;;  %v18260_v8 = vld [vmem:[#allocation50_spill] sm:$0xff] }
0x2d5f   : > { %10156 = vst.msk [vmem:[%s16741_s20 + $0x110] sm:$0xff] %vm18249_vm8, %v10092_v51  ;;  %v10029_v14 = vsub.f32 %v18250_v31, %v9965_v60  ;;  %13314 = vlog2.f32 %v9729_v24  ;;  %vm18273_vm8 = vmmov %vm18006_vm0 }
0x2d60   : > { %v10026_v40 = vsub.f32 %v18251_v0, %v9962_v26  ;;  %v9963_v27 = vadd.f32 %v9869_v7, %v16672_v18  ;;  %v9720_v38 = vpop.xlane.xlu0 %9719 }
0x2d61   : > { %v10093_v13 = vsel %vm9097_vm15, %v10029_v14, %v18250_v31  ;;  %13316 = vlog2.f32 %v9720_v38 }
0x2d62   : > { %10157 = vst.msk [vmem:[%s16741_s20 + $0x118] sm:$0xff] %vm18252_vm7, %v10093_v13  ;;  %v10090_v5 = vsel %vm9097_vm15, %v10026_v40, %v18251_v0  ;;  %v10027_v53 = vsub.f32 %v16232_v49, %v9963_v27  ;;  %v9723_v57 = vpop.xlane.xlu1 %9722  ;;  %vm18276_vm7 = vmmov %vm18006_vm0 }
0x2d63   : > { %10154 = vst.msk [vmem:[%s16741_s20 + $0x100] sm:$0xff] %vm18253_vm11, %v10090_v5  ;;  %13318 = vlog2.f32 %v9723_v57  ;;  %v18263_v5 = vld [vmem:[#allocation53_spill] sm:$0xff]  ;;  %vm18278_vm11 = vmmov %vm18006_vm0 }
0x2d64   : > { %v10091_v18 = vsel %vm9097_vm15, %v10027_v53, %v16232_v49 }
0x2d65   : > { %10155 = vst.msk [vmem:[%s16741_s20 + $0x108] sm:$0xff] %vm18254_vm12, %v10091_v18  ;;  %v18264_v18 = vld [vmem:[#allocation85_spill] sm:$0xff]  ;;  %vm18282_vm12 = vmmov %vm18006_vm0 }
0x2d67   : > { %v13313_v11 = vpop.eup %13312 }
0x2d68   : > { %v9879_v41 = vmul.f32 0.6931472, %v13313_v11 }
0x2d69   : > { %v13315_v21 = vpop.eup %13314 }
0x2d6a   : > { %v9968_v61 = vadd.f32 %v9879_v41, %v18255_v50  ;;  %v9881_v42 = vmul.f32 0.6931472, %v13315_v21  ;;  %v18266_v21 = vld [vmem:[#allocation51_spill] sm:$0xff] }
0x2d6b   : > { %v13317_v25 = vpop.eup %13316 }
0x2d6c   : > { %v10032_v39 = vsub.f32 %v18256_v46, %v9968_v61  ;;  %v9969_v28 = vadd.f32 %v9881_v42, %v16686_v56  ;;  %v9875_v37 = vmul.f32 0.6931472, %v13317_v25 }
0x2d6d   : > { %v13319_v22 = vpop.eup %13318 }
0x2d6e   : > { %v10096_v49 = vsel %vm9097_vm15, %v10032_v39, %v18256_v46  ;;  %v10033_v2 = vsub.f32 %v18257_v30, %v9969_v28  ;;  %v9966_v36 = vadd.f32 %v9875_v37, %v18258_v62  ;;  %v9877_v6 = vmul.f32 0.6931472, %v13319_v22 }
0x2d6f   : > { %10160 = vst.msk [vmem:[%s16741_s20 + $0x130] sm:$0xff] %vm18259_vm14, %v10096_v49  ;;  %v9738_v19 = vpop.xlane.xlu0 %9737  ;;  %vm18284_vm14 = vmmov %vm18006_vm0 }
0x2d70   : > { %v10097_v56 = vsel %vm9097_vm15, %v10033_v2, %v18257_v30  ;;  %v10030_v60 = vsub.f32 %v18260_v8, %v9966_v36  ;;  %v9967_v51 = vadd.f32 %v9877_v6, %v16700_v16  ;;  %13320 = vlog2.f32 %v9738_v19 }
0x2d71   : > { %10161 = vst.msk [vmem:[%s16741_s20 + $0x138] sm:$0xff] %vm18261_vm2, %v10097_v56  ;;  %vm18287_vm2 = vmmov %vm18006_vm0 }
0x2d72   : > { %v10094_v26 = vsel %vm9097_vm15, %v10030_v60, %v18260_v8  ;;  %v10031_v7 = vsub.f32 %v16266_v55, %v9967_v51  ;;  %v9741_v24 = vpop.xlane.xlu1 %9740 }
0x2d73   : > { %10158 = vst.msk [vmem:[%s16741_s20 + $0x120] sm:$0xff] %vm18006_vm0, %v10094_v26  ;;  %13322 = vlog2.f32 %v9741_v24 }
0x2d74   : > { %v10095_v31 = vsel %vm9097_vm15, %v10031_v7, %v16266_v55 }
0x2d75   : > { %10159 = vst.msk [vmem:[%s16741_s20 + $0x128] sm:$0xff] %vm18262_vm6, %v10095_v31  ;;  %vm18290_vm6 = vmmov %vm18006_vm0 }
0x2d77   : > { %v9732_v16 = vpop.xlane.xlu0 %9731 }
0x2d78   : > { %13324 = vlog2.f32 %v9732_v16 }
0x2d7a   : > { %v13321_v14 = vpop.eup %13320  ;;  %v9735_v0 = vpop.xlane.xlu1 %9734 }
0x2d7b   : > { %v9887_v40 = vmul.f32 0.6931472, %v13321_v14  ;;  %13326 = vlog2.f32 %v9735_v0 }
0x2d7d   : > { %v13323_v27 = vpop.eup %13322  ;;  %v9972_v38 = vadd.f32 %v9887_v40, %v16712_v1 }
0x2d7e   : > { %v9889_v13 = vmul.f32 0.6931472, %v13323_v27 }
0x2d7f   : > { %v10036_v53 = vsub.f32 %v18263_v5, %v9972_v38  ;;  %v9750_v57 = vpop.xlane.xlu0 %9749 }
0x2d80   : > { %v9973_v11 = vadd.f32 %v9889_v13, %v18264_v18  ;;  %13328 = vlog2.f32 %v9750_v57 }
0x2d81   : > { %v10100_v55 = vsel %vm9097_vm15, %v10036_v53, %v18263_v5  ;;  %v18275_v53 = vld [vmem:[#allocation59_spill] sm:$0xff] }
0x2d82   : > { %v13325_v41 = vpop.eup %13324  ;;  %10164 = vst.msk [vmem:[%s16741_s20 + $0x150] sm:$0xff] %vm18265_vm3, %v10100_v55  ;;  %v10037_v50 = vsub.f32 %v18266_v21, %v9973_v11  ;;  %v9753_v61 = vpop.xlane.xlu1 %9752  ;;  %vm18292_vm3 = vmmov %vm18006_vm0 }
0x2d83   : > { %v9883_v42 = vmul.f32 0.6931472, %v13325_v41  ;;  %13330 = vlog2.f32 %v9753_v61 }
0x2d84   : > { %v10101_v1 = vsel %vm9097_vm15, %v10037_v50, %v18266_v21 }
0x2d85   : > { %v13327_v25 = vpop.eup %13326  ;;  %10165 = vst.msk [vmem:[%s16741_s20 + $0x158] sm:$0xff] %vm18267_vm5, %v10101_v1  ;;  %v9970_v46 = vadd.f32 %v9883_v42, %v16727_v9  ;;  %vm18295_vm5 = vmmov %vm18006_vm0 }
0x2d86   : > { %v9885_v39 = vmul.f32 0.6931472, %v13327_v25 }
0x2d87   : > { %v10034_v28 = vsub.f32 %v16322_v43, %v9970_v46  ;;  %v9744_v37 = vpop.xlane.xlu0 %9743 }
0x2d88   : > { %v9971_v22 = vadd.f32 %v9885_v39, %v16732_v59  ;;  %13332 = vlog2.f32 %v9744_v37  ;;  %v18280_v39 = vld [vmem:[#allocation66_spill] sm:$0xff] }
0x2d89   : > { %v10098_v49 = vsel %vm9097_vm15, %v10034_v28, %v16322_v43 }
0x2d8a   : > { %v13329_v30 = vpop.eup %13328  ;;  %10162 = vst.msk [vmem:[%s16741_s20 + $0x140] sm:$0xff] %vm18268_vm9, %v10098_v49  ;;  %v10035_v2 = vsub.f32 %v16332_v48, %v9971_v22  ;;  %v9747_v62 = vpop.xlane.xlu1 %9746  ;;  %v18281_v22 = vld [vmem:[#allocation22_spill] sm:$0xff]  ;;  %vm18297_vm9 = vmmov %vm18006_vm0 }
0x2d8b   : > { %v9895_v36 = vmul.f32 0.6931472, %v13329_v30  ;;  %13334 = vlog2.f32 %v9747_v62 }
0x2d8c   : > { %v10099_v9 = vsel %vm9097_vm15, %v10035_v2, %v16332_v48 }
0x2d8d   : > { %v13331_v6 = vpop.eup %13330  ;;  %10163 = vst.msk [vmem:[%s16741_s20 + $0x148] sm:$0xff] %vm18269_vm10, %v10099_v9  ;;  %v9976_v59 = vadd.f32 %v9895_v36, %v16754_v54  ;;  %v18283_v36 = vld [vmem:[#allocation68_spill] sm:$0xff]  ;;  %vm18299_vm10 = vmmov %vm18006_vm0 }
0x2d8e   : > { %v9897_v43 = vmul.f32 0.6931472, %v13331_v6 }
0x2d8f   : > { %v10040_v19 = vsub.f32 %v16347_v45, %v9976_v59  ;;  %v9762_v56 = vpop.xlane.xlu0 %9761 }
0x2d90   : > { %v9977_v8 = vadd.f32 %v9897_v43, %v16763_v35  ;;  %13336 = vlog2.f32 %v9762_v56  ;;  %v18285_v56 = vld [vmem:[#allocation52_spill] sm:$0xff] }
0x2d91   : > { %v10104_v60 = vsel %vm9097_vm15, %v10040_v19, %v16347_v45 }
0x2d92   : > { %v13333_v51 = vpop.eup %13332  ;;  %10168 = vst.msk [vmem:[%s16741_s20 + $0x170] sm:$0xff] %vm18270_vm13, %v10104_v60  ;;  %v10041_v48 = vsub.f32 %v16357_v52, %v9977_v8  ;;  %v9765_v26 = vpop.xlane.xlu1 %9764  ;;  %vm18300_vm13 = vmmov %vm18006_vm0 }
0x2d93   : > { %v9891_v7 = vmul.f32 0.6931472, %v13333_v51  ;;  %13338 = vlog2.f32 %v9765_v26  ;;  %v18286_v51 = vld [vmem:[#allocation67_spill] sm:$0xff] }
0x2d94   : > { %v10105_v54 = vsel %vm9097_vm15, %v10041_v48, %v16357_v52 }
0x2d95   : > { %v13335_v24 = vpop.eup %13334  ;;  %10169 = vst.msk [vmem:[%s16741_s20 + $0x178] sm:$0xff] %vm18271_vm4, %v10105_v54  ;;  %v9974_v35 = vadd.f32 %v9891_v7, %v16779_v47  ;;  %vm18303_vm4 = vmmov %vm18006_vm0 }
0x2d96   : > { %v9893_v45 = vmul.f32 0.6931472, %v13335_v24 }
0x2d97   : > { %v10038_v31 = vsub.f32 %v16378_v58, %v9974_v35  ;;  %v9756_v16 = vpop.xlane.xlu0 %9755 }
0x2d98   : > { %v9975_v14 = vadd.f32 %v9893_v45, %v16791_v33  ;;  %13340 = vlog2.f32 %v9756_v16  ;;  %v18274_v33 = vld [vmem:[#allocation21_spill] sm:$0xff] }
0x2d99   : > { %v10102_v0 = vsel %vm9097_vm15, %v10038_v31, %v16378_v58 }
0x2d9a   : > { %v13337_v40 = vpop.eup %13336  ;;  %10166 = vst.msk [vmem:[%s16741_s20 + $0x160] sm:$0xff] %vm18272_vm1, %v10102_v0  ;;  %v10039_v52 = vsub.f32 %v16388_v20, %v9975_v14  ;;  %v9759_v27 = vpop.xlane.xlu1 %9758  ;;  %v18288_v14 = vld [vmem:[#allocation32_spill] sm:$0xff]  ;;  %vm18305_vm1 = vmmov %vm18006_vm0 }
0x2d9b   : > { %v9903_v38 = vmul.f32 0.6931472, %v13337_v40  ;;  %13342 = vlog2.f32 %v9759_v27 }
0x2d9c   : > { %v10103_v47 = vsel %vm9097_vm15, %v10039_v52, %v16388_v20  ;;  %v18277_v20 = vld [vmem:[#allocation60_spill] sm:$0xff] }
0x2d9d   : > { %v13339_v13 = vpop.eup %13338  ;;  %10167 = vst.msk [vmem:[%s16741_s20 + $0x168] sm:$0xff] %vm18273_vm8, %v10103_v47  ;;  %v9980_v5 = vadd.f32 %v9903_v38, %v18274_v33  ;;  %v18289_v38 = vld [vmem:[#allocation71_spill] sm:$0xff]  ;;  %vm18308_vm8 = vmmov %vm18006_vm0 }
0x2d9e   : > { %v9905_v58 = vmul.f32 0.6931472, %v13339_v13 }
0x2d9f   : > { %v10044_v57 = vsub.f32 %v18275_v53, %v9980_v5  ;;  %v9774_v18 = vpop.xlane.xlu0 %9773 }
0x2da0   : > { %v9981_v11 = vadd.f32 %v9905_v58, %v16819_v4  ;;  %13344 = vlog2.f32 %v9774_v18  ;;  %v18279_v4 = vld [vmem:[#allocation54_spill] sm:$0xff] }
0x2da1   : > { %v10108_v55 = vsel %vm9097_vm15, %v10044_v57, %v18275_v53  ;;  %v9777_v41 = vpop.xlane.xlu1 %9776  ;;  %v18291_v53 = vld [vmem:[#allocation57_spill] sm:$0xff] }
0x2da2   : > { %v13341_v21 = vpop.eup %13340  ;;  %10172 = vst.msk [vmem:[%s16741_s20 + $0x190] sm:$0xff] %vm18276_vm7, %v10108_v55  ;;  %v10045_v50 = vsub.f32 %v18277_v20, %v9981_v11  ;;  %13346 = vlog2.f32 %v9777_v41  ;;  %v18294_v41 = vld [vmem:[#allocation34_spill] sm:$0xff]  ;;  %vm18309_vm7 = vmmov %vm18006_vm0 }
0x2da3   : > { %v9899_v61 = vmul.f32 0.6931472, %v13341_v21 }
0x2da4   : > { %v10109_v42 = vsel %vm9097_vm15, %v10045_v50, %v18277_v20 }
0x2da5   : > { %v13343_v1 = vpop.eup %13342  ;;  %10173 = vst.msk [vmem:[%s16741_s20 + $0x198] sm:$0xff] %vm18278_vm11, %v10109_v42  ;;  %v9978_v25 = vadd.f32 %v9899_v61, %v18279_v4  ;;  %v18296_v61 = vld [vmem:[#allocation74_spill] sm:$0xff] }
0x2da6   : > { %v9901_v46 = vmul.f32 0.6931472, %v13343_v1 }
0x2da7   : > { %v10042_v28 = vsub.f32 %v18280_v39, %v9978_v25  ;;  %v9768_v37 = vpop.xlane.xlu0 %9767 }
0x2da8   : > { %v9979_v49 = vadd.f32 %v9901_v46, %v18281_v22  ;;  %13348 = vlog2.f32 %v9768_v37 }
0x2da9   : > { %v10106_v30 = vsel %vm9097_vm15, %v10042_v28, %v18280_v39  ;;  %v9771_v2 = vpop.xlane.xlu1 %9770 }
0x2daa   : > { %v13345_v62 = vpop.eup %13344  ;;  %10170 = vst.msk [vmem:[%s16741_s20 + $0x180] sm:$0xff] %vm18282_vm12, %v10106_v30  ;;  %v10043_v9 = vsub.f32 %v18283_v36, %v9979_v49  ;;  %13350 = vlog2.f32 %v9771_v2  ;;  %v18298_v2 = vld [vmem:[#allocation75_spill] sm:$0xff] }
0x2dab   : > { %v9911_v6 = vmul.f32 0.6931472, %v13345_v62 }
0x2dac   : > { %v13347_v59 = vpop.eup %13346  ;;  %v10107_v43 = vsel %vm9097_vm15, %v10043_v9, %v18283_v36  ;;  %v9786_v19 = vpop.xlane.xlu0 %9785 }
0x2dad   : > { %10171 = vst.msk [vmem:[%s16741_s20 + $0x188] sm:$0xff] %vm18284_vm14, %v10107_v43  ;;  %v9984_v8 = vadd.f32 %v9911_v6, %v18285_v56  ;;  %v9913_v60 = vmul.f32 0.6931472, %v13347_v59  ;;  %13352 = vlog2.f32 %v9786_v19 }
0x2daf   : > { %v10048_v48 = vsub.f32 %v18286_v51, %v9984_v8  ;;  %v9985_v26 = vadd.f32 %v9913_v60, %v16875_v32  ;;  %v9789_v7 = vpop.xlane.xlu1 %9788 }
0x2db0   : > { %13354 = vlog2.f32 %v9789_v7 }
0x2db1   : > { %v10112_v54 = vsel %vm9097_vm15, %v10048_v48, %v18286_v51  ;;  %v10049_v24 = vsub.f32 %v18176_v23, %v9985_v26  ;;  %v18301_v51 = vld [vmem:[#allocation79_spill] sm:$0xff] }
0x2db2   : > { %v13349_v35 = vpop.eup %13348  ;;  %10176 = vst.msk [vmem:[%s16741_s20 + $0x1b0] sm:$0xff] %vm18287_vm2, %v10112_v54  ;;  %v18302_v54 = vld [vmem:[#allocation55_spill] sm:$0xff] }
0x2db3   : > { %v10113_v45 = vsel %vm9097_vm15, %v10049_v24, %v18176_v23  ;;  %v9907_v31 = vmul.f32 0.6931472, %v13349_v35 }
0x2db4   : > { %v13351_v16 = vpop.eup %13350  ;;  %10177 = vst.msk [vmem:[%s16741_s20 + $0x1b8] sm:$0xff] %vm18006_vm0, %v10113_v45  ;;  %v9780_v32 = vpop.xlane.xlu0 %9779  ;;  %v18306_v45 = vld [vmem:[#allocation77_spill] sm:$0xff] }
0x2db5   : > { %v9982_v0 = vadd.f32 %v9907_v31, %v18288_v14  ;;  %v9909_v40 = vmul.f32 0.6931472, %v13351_v16  ;;  %13356 = vlog2.f32 %v9780_v32  ;;  %v18307_v16 = vld [vmem:[#allocation78_spill] sm:$0xff] }
0x2db6   : > { %v9783_v52 = vpop.xlane.xlu1 %9782 }
0x2db7   : > { %v13353_v27 = vpop.eup %13352  ;;  %v10046_v47 = vsub.f32 %v18289_v38, %v9982_v0  ;;  %v9983_v13 = vadd.f32 %v9909_v40, %v16903_v44  ;;  %13358 = vlog2.f32 %v9783_v52  ;;  %v18293_v44 = vld [vmem:[#allocation73_spill] sm:$0xff] }
0x2db8   : > { %v9919_v23 = vmul.f32 0.6931472, %v13353_v27 }
0x2db9   : > { %v10110_v33 = vsel %vm9097_vm15, %v10046_v47, %v18289_v38  ;;  %v10047_v5 = vsub.f32 %v16496_v17, %v9983_v13 }
0x2dba   : > { %v13355_v58 = vpop.eup %13354  ;;  %10174 = vst.msk [vmem:[%s16741_s20 + $0x1a0] sm:$0xff] %vm18290_vm6, %v10110_v33  ;;  %v9988_v57 = vadd.f32 %v9919_v23, %v18291_v53 }
0x2dbb   : > { %v10111_v18 = vsel %vm9097_vm15, %v10047_v5, %v16496_v17  ;;  %v9921_v11 = vmul.f32 0.6931472, %v13355_v58 }
0x2dbc   : > { %10175 = vst.msk [vmem:[%s16741_s20 + $0x1a8] sm:$0xff] %vm18292_vm3, %v10111_v18  ;;  %v10052_v55 = vsub.f32 %v18293_v44, %v9988_v57 }
0x2dbd   : > { %v9989_v21 = vadd.f32 %v9921_v11, %v18294_v41 }
0x2dbe   : > { %v10116_v20 = vsel %vm9097_vm15, %v10052_v55, %v18293_v44 }
0x2dbf   : > { %v13357_v50 = vpop.eup %13356  ;;  %10180 = vst.msk [vmem:[%s16741_s20 + $0x1d0] sm:$0xff] %vm18295_vm5, %v10116_v20  ;;  %v10053_v42 = vsub.f32 %v18296_v61, %v9989_v21 }
0x2dc0   : > { %v9915_v1 = vmul.f32 0.6931472, %v13357_v50 }
0x2dc1   : > { %v13359_v4 = vpop.eup %13358  ;;  %v10117_v17 = vsel %vm9097_vm15, %v10053_v42, %v18296_v61  ;;  %v9792_v25 = vpop.xlane.xlu0 %9791 }
0x2dc2   : > { %10181 = vst.msk [vmem:[%s16741_s20 + $0x1d8] sm:$0xff] %vm18297_vm9, %v10117_v17  ;;  %v9986_v46 = vadd.f32 %v9915_v1, %v16941_v15  ;;  %v9917_v39 = vmul.f32 0.6931472, %v13359_v4  ;;  %13360 = vlog2.f32 %v9792_v25  ;;  %v9795_v28 = vpop.xlane.xlu1 %9794 }
0x2dc3   : > { %13362 = vlog2.f32 %v9795_v28 }
0x2dc4   : > { %v10050_v37 = vsub.f32 %v16527_v34, %v9986_v46  ;;  %v9987_v22 = vadd.f32 %v9917_v39, %v16949_v29 }
0x2dc5   : > { %v9798_v49 = vpop.xlane.xlu0 %9797 }
0x2dc6   : > { %v10114_v30 = vsel %vm9097_vm15, %v10050_v37, %v16527_v34  ;;  %v10051_v62 = vsub.f32 %v18298_v2, %v9987_v22  ;;  %13364 = vlog2.f32 %v9798_v49  ;;  %v9801_v36 = vpop.xlane.xlu1 %9800 }
0x2dc7   : > { %10178 = vst.msk [vmem:[%s16741_s20 + $0x1c0] sm:$0xff] %vm18299_vm10, %v10114_v30  ;;  %13366 = vlog2.f32 %v9801_v36 }
0x2dc8   : > { %v10115_v15 = vsel %vm9097_vm15, %v10051_v62, %v18298_v2 }
0x2dc9   : > { %10179 = vst.msk [vmem:[%s16741_s20 + $0x1c8] sm:$0xff] %vm18300_vm13, %v10115_v15 }
0x2dcc   : > { %v13361_v29 = vpop.eup %13360 }
0x2dcd   : > { %v13363_v9 = vpop.eup %13362  ;;  %v9923_v6 = vmul.f32 0.6931472, %v13361_v29 }
0x2dce   : > { %v9925_v59 = vmul.f32 0.6931472, %v13363_v9 }
0x2dcf   : > { %v9990_v34 = vadd.f32 %v9923_v6, %v16981_v12 }
0x2dd0   : > { %v13365_v43 = vpop.eup %13364  ;;  %v9991_v19 = vadd.f32 %v9925_v59, %v16987_v63  ;;  %v18304_v63 = vld [vmem:[#allocation23_spill] sm:$0xff] }
0x2dd1   : > { %v13367_v56 = vpop.eup %13366  ;;  %v10054_v8 = vsub.f32 %v16567_v10, %v9990_v34  ;;  %v9927_v60 = vmul.f32 0.6931472, %v13365_v43 }
0x2dd2   : > { %v10055_v48 = vsub.f32 %v18301_v51, %v9991_v19  ;;  %v9929_v26 = vmul.f32 0.6931472, %v13367_v56 }
0x2dd3   : > { %v10118_v7 = vsel %vm9097_vm15, %v10054_v8, %v16567_v10  ;;  %v9992_v24 = vadd.f32 %v9927_v60, %v18302_v54 }
0x2dd4   : > { %10182 = vst.msk [vmem:[%s16741_s20 + $0x1e0] sm:$0xff] %vm18303_vm4, %v10118_v7  ;;  %v10119_v12 = vsel %vm9097_vm15, %v10055_v48, %v18301_v51  ;;  %v9993_v35 = vadd.f32 %v9929_v26, %v18304_v63 }
0x2dd5   : > { %10183 = vst.msk [vmem:[%s16741_s20 + $0x1e8] sm:$0xff] %vm18305_vm1, %v10119_v12  ;;  %v10056_v31 = vsub.f32 %v18306_v45, %v9992_v24 }
0x2dd6   : > { %v10057_v32 = vsub.f32 %v18307_v16, %v9993_v35 }
0x2dd7   : > { %v10120_v10 = vsel %vm9097_vm15, %v10056_v31, %v18306_v45 }
0x2dd8   : > { %10184 = vst.msk [vmem:[%s16741_s20 + $0x1f0] sm:$0xff] %vm18308_vm8, %v10120_v10  ;;  %v10121_v14 = vsel %vm9097_vm15, %v10057_v32, %v18307_v16 }
0x2dd9   : > { %10185 = vst.msk [vmem:[%s16741_s20 + $0x1f8] sm:$0xff] %vm18309_vm7, %v10121_v14 }
0x2dda PF: > { %s18310_s16 = sld [smem:[#allocation18_spill]]  ;;  %s18311_s17 = sld [smem:[#allocation17_spill]] }
0x2ddb   : > { %s18312_s15 = sld [smem:[#allocation19_spill]]  ;;  %s18313_s13 = smov %s13588_s14 }
0x2de0   : > { %p27_p10 = scmp.ge.s32.totalorder %s18310_s16, 4   ;;  %s18314_s14 = smov %s18311_s17 }
0x2de2   :  { %29 = sbr.rel (!%p27_p10) target bundleno = 14 (0xe), region = 163 }
0x2de9   :  { %10207 = vsyncpa [#allocation3], 1 }
0x2dea   :  { %10209 = vsyncpa [#allocation3 + $0x1], 1 }
0x2deb   :  { %10210 = vsyncpa [#allocation5], 1 }
0x2dec   :  { %10212 = vsyncpa [#allocation5 + $0x1], 1 }
0x2ded   :  { %10213 = vsyncpa [#allocation8], 1 }
0x2dee   :  { %10215 = vsyncpa [#allocation8 + $0x1], 1 }
0x2def   :  { %10216 = vsyncpa [#allocation11], 1 }

</bundles_post_ra>
